<compile_context>
chip_gen: v7x
topology: tpu7x:2x2x1
jax: 0.10.0
libtpu: 0.0.40
codegen_flags: <defaults>
</compile_context>

<pallas_src>
import numpy as np
import jax
import jax.numpy as jnp
from jax.experimental import pallas as pl
from jax.experimental.pallas import tpu as pltpu

VMEM = pltpu.MemorySpace.VMEM
_EPS = 1e-5


# ----------------------------- Pallas kernels ------------------------------

def _gen_block_bn_relu_kernel(x_ref, w_ref, b_ref, r_ref, rt_ref, g_ref, bt_ref, o_ref):
    """Fused ConvTranspose2d (folded matmul) + bias + train-mode BatchNorm2d + ReLU.

    x : (N, H*W*Cin)           f32   NHWC-flat activations
    w : (H*W*Cin, OH*OW*Cout)  bf16  conv-transpose weight with col2im pre-folded
    b : (1, OH*OW*Cout)        f32   bias tiled over spatial positions
    r : (OH*OW*Cout, Cout)     f32   0/1 per-channel reduction matrix
    rt: (Cout, OH*OW*Cout)     f32   its transpose (per-channel broadcast matrix)
    g,bt: (1, OH*OW*Cout)      f32   BN gamma / beta tiled over spatial positions
    """
    x = x_ref[...]
    w = w_ref[...].astype(jnp.float32)       # bf16 storage halves weight DMA; f32 MXU math
    pre = jnp.dot(x, w, preferred_element_type=jnp.float32) + b_ref[...]

    # Per-channel batch statistics (biased variance, train-mode BatchNorm2d) on the
    # channel-interleaved layout via tiny 0/1 reduction matmuls -- no reshapes.
    r = r_ref[...]
    n_red = x.shape[0] * (pre.shape[1] // r.shape[1])        # N * OH * OW (static)
    inv_cnt = 1.0 / float(n_red)
    s1 = jnp.dot(pre, r, preferred_element_type=jnp.float32)          # (N, Cout)
    s2 = jnp.dot(pre * pre, r, preferred_element_type=jnp.float32)    # (N, Cout)
    mean_c = jnp.sum(s1, axis=0, keepdims=True) * inv_cnt             # (1, Cout)
    ex2_c = jnp.sum(s2, axis=0, keepdims=True) * inv_cnt
    inv_c = jax.lax.rsqrt(ex2_c - mean_c * mean_c + _EPS)

    # Broadcast per-channel stats back to the interleaved layout (MXU, no reshape).
    mean_f = jnp.dot(mean_c, rt_ref[...], preferred_element_type=jnp.float32)
    inv_f = jnp.dot(inv_c, rt_ref[...], preferred_element_type=jnp.float32)

    y = (pre - mean_f) * inv_f * g_ref[...] + bt_ref[...]
    o_ref[...] = jnp.maximum(y, 0.0)


def _gen_block_tanh_kernel(x_ref, w_ref, b_ref, o_ref):
    """Fused final ConvTranspose2d (folded matmul) + bias + Tanh."""
    w = w_ref[...].astype(jnp.float32)
    pre = jnp.dot(x_ref[...], w, preferred_element_type=jnp.float32) + b_ref[...]
    o_ref[...] = jnp.tanh(pre)


# ------------------------------ call wrappers -------------------------------

def _vmem_specs(n):
    return [pl.BlockSpec(memory_space=VMEM) for _ in range(n)]


def gen_block_bn_relu(x, w_full, bias_full, r, rt, gamma_full, beta_full):
    n = x.shape[0]
    dout = w_full.shape[1]
    return pl.pallas_call(
        _gen_block_bn_relu_kernel,
        out_shape=jax.ShapeDtypeStruct((n, dout), jnp.float32),
        in_specs=_vmem_specs(7),
        out_specs=pl.BlockSpec(memory_space=VMEM),
    )(x, w_full, bias_full, r, rt, gamma_full, beta_full)


def gen_block_tanh(x, w_full, bias_full):
    n = x.shape[0]
    dout = w_full.shape[1]
    return pl.pallas_call(
        _gen_block_tanh_kernel,
        out_shape=jax.ShapeDtypeStruct((n, dout), jnp.float32),
        in_specs=_vmem_specs(3),
        out_specs=pl.BlockSpec(memory_space=VMEM),
    )(x, w_full, bias_full)


# --------------------------- parameter setup (host) --------------------------

def _fold_scatter_into_weight(w, H, W, K, stride):
    """Fold the conv-transpose col2im scatter into the weight.

    w: (Cin, K, K, Cout) numpy f32.  Returns (H*W*Cin, OH*OW*Cout), OH, OW.
    Row index = (ih*W+iw)*Cin + ci (NHWC-flat input), col = (oh*OW+ow)*Cout + co.
    """
    Cin, _, _, Cout = w.shape
    OH = (H - 1) * stride + K
    OW = (W - 1) * stride + K
    wf = np.zeros((H * W * Cin, OH * OW * Cout), dtype=np.float32)
    for ih in range(H):
        for iw in range(W):
            r0 = (ih * W + iw) * Cin
            for kh in range(K):
                for kw in range(K):
                    c0 = ((ih * stride + kh) * OW + (iw * stride + kw)) * Cout
                    wf[r0:r0 + Cin, c0:c0 + Cout] += w[:, kh, kw, :]
    return wf, OH, OW


def init_generator_params(key, input_dim=10, im_chan=1, hidden_dim=64):
    layer_defs = [
        # (cin, cout, kernel, stride, final_layer)
        (input_dim, hidden_dim * 4, 3, 2, False),
        (hidden_dim * 4, hidden_dim * 2, 4, 1, False),
        (hidden_dim * 2, hidden_dim, 3, 2, False),
        (hidden_dim, im_chan, 4, 2, True),
    ]
    params = []
    H = W = 1
    for (cin, cout, k, s, final) in layer_defs:
        key, wk, bk = jax.random.split(key, 3)
        bound = 1.0 / np.sqrt(cin * k * k)
        w = jax.random.uniform(wk, (cin, k, k, cout), jnp.float32, -bound, bound)
        # Round the master weights to bf16 once so the bf16 folded weight on the
        # device is exactly the weights used by the float64 reference below.
        w = np.asarray(w.astype(jnp.bfloat16).astype(jnp.float32))
        b = np.asarray(jax.random.uniform(bk, (cout,), jnp.float32, -bound, bound))

        wf, OH, OW = _fold_scatter_into_weight(w, H, W, k, s)
        layer = dict(
            w=w, b=b, k=k, stride=s, final=final, cout=cout, OH=OH, OW=OW,
            w_full=jnp.asarray(wf, jnp.bfloat16),
            bias_full=jnp.asarray(np.tile(b, OH * OW)[None, :], dtype=jnp.float32),
        )
        if not final:
            gamma = np.ones((cout,), np.float32)
            beta = np.zeros((cout,), np.float32)
            red = np.tile(np.eye(cout, dtype=np.float32), (OH * OW, 1))  # (OH*OW*Cout, Cout)
            layer.update(
                gamma=gamma, beta=beta,
                gamma_full=jnp.asarray(np.tile(gamma, OH * OW)[None, :]),
                beta_full=jnp.asarray(np.tile(beta, OH * OW)[None, :]),
                r=jnp.asarray(red),
                rt=jnp.asarray(np.ascontiguousarray(red.T)),
            )
        params.append(layer)
        H, W = OH, OW
    return params


# ----------------------------------- forward ---------------------------------

def generator_forward(noise, params, input_dim):
    """noise: (N, input_dim) -> image: (N, im_chan, 28, 28), NCHW like PyTorch."""
    N = noise.shape[0]
    x = noise.reshape(N, input_dim)          # NHWC-flat view of (N, input_dim, 1, 1)
    for p in params:
        if p["final"]:
            x = gen_block_tanh(x, p["w_full"], p["bias_full"])
        else:
            x = gen_block_bn_relu(x, p["w_full"], p["bias_full"], p["r"], p["rt"],
                                  p["gamma_full"], p["beta_full"])
    last = params[-1]
    x = x.reshape(N, last["OH"], last["OW"], last["cout"])
    return jnp.transpose(x, (0, 3, 1, 2))    # -> NCHW


# ------------------------------ numpy reference ------------------------------

def _convt_ref_nchw(x, w, b, stride):
    # x: (N, Cin, H, W), w: (Cin, Cout, K, K) (torch layout), padding=0
    N, Cin, H, W = x.shape
    _, Cout, K, _ = w.shape
    OH = (H - 1) * stride + K
    OW = (W - 1) * stride + K
    out = np.zeros((N, Cout, OH, OW), dtype=np.float64)
    for n in range(N):
        for ih in range(H):
            for iw in range(W):
                contrib = np.einsum("c,cokl->okl", x[n, :, ih, iw], w)
                out[n, :, ih * stride:ih * stride + K, iw * stride:iw * stride + K] += contrib
    return out + b[None, :, None, None]


def _reference_forward(noise, params, input_dim):
    x = np.asarray(noise, np.float64).reshape(noise.shape[0], input_dim, 1, 1)
    for p in params:
        w_t = np.transpose(np.asarray(p["w"], np.float64), (0, 3, 1, 2))  # (Cin,Cout,K,K)
        b_t = np.asarray(p["b"], np.float64)
        x = _convt_ref_nchw(x, w_t, b_t, p["stride"])
        if p["final"]:
            x = np.tanh(x)
        else:
            mean = x.mean(axis=(0, 2, 3), keepdims=True)
            var = x.var(axis=(0, 2, 3), keepdims=True)   # biased, train-mode BN
            x = np.maximum((x - mean) / np.sqrt(var + 1e-5), 0.0)  # gamma=1, beta=0
    return x


# ----------------------------------- main ------------------------------------

if __name__ == "__main__":
    key = jax.random.PRNGKey(0)
    input_dim, im_chan, hidden_dim = 10, 1, 8   # small hidden_dim for a quick run
    batch = 2

    pkey, nkey = jax.random.split(key)
    params = init_generator_params(pkey, input_dim, im_chan, hidden_dim)
    noise = jax.random.normal(nkey, (batch, input_dim), jnp.float32)

    forward = jax.jit(lambda z: generator_forward(z, params, input_dim))
    out = jax.block_until_ready(forward(noise))
    assert out.shape == (batch, im_chan, 28, 28), out.shape

    ref = _reference_forward(np.asarray(noise), params, input_dim)
    np.testing.assert_allclose(np.asarray(out), ref, rtol=2e-3, atol=2e-3)

    print("KERNEL_OK")
</pallas_src>

<mosaic_0001>
module attributes {stable_mosaic.version = 11 : i64} {
  func.func @_gen_block_bn_relu_kernel(%arg0: memref<2x10xf32, #tpu.memory_space<vmem>>, %arg1: memref<10x288xbf16, #tpu.memory_space<vmem>>, %arg2: memref<1x288xf32, #tpu.memory_space<vmem>>, %arg3: memref<288x32xf32, #tpu.memory_space<vmem>>, %arg4: memref<32x288xf32, #tpu.memory_space<vmem>>, %arg5: memref<1x288xf32, #tpu.memory_space<vmem>>, %arg6: memref<1x288xf32, #tpu.memory_space<vmem>>, %arg7: memref<2x288xf32, #tpu.memory_space<vmem>>) attributes {dimension_semantics = [], scalar_prefetch = 0 : i64, scratch_operands = 0 : i64, tpu.core_type = #tpu.core_type<tc>} {
    %c0 = arith.constant 0 : index
    %c0_0 = arith.constant 0 : index
    %0 = vector.load %arg0[%c0, %c0_0] : memref<2x10xf32, #tpu.memory_space<vmem>>, vector<2x10xf32>
    %c0_1 = arith.constant 0 : index
    %c0_2 = arith.constant 0 : index
    %1 = vector.load %arg1[%c0_1, %c0_2] : memref<10x288xbf16, #tpu.memory_space<vmem>>, vector<10x288xbf16>
    %2 = arith.extf %1 : vector<10x288xbf16> to vector<10x288xf32>
    %cst = arith.constant dense<0.000000e+00> : vector<2x288xf32>
    %3 = tpu.matmul %0, %2, %cst {dimension_numbers = #tpu.dot_dimension_numbers<[1], [0], [0], [1], [0, 0, 1, 1], [], []>} : vector<2x10xf32>, vector<10x288xf32>, vector<2x288xf32> -> vector<2x288xf32>
    %c0_3 = arith.constant 0 : index
    %c0_4 = arith.constant 0 : index
    %4 = vector.load %arg2[%c0_3, %c0_4] : memref<1x288xf32, #tpu.memory_space<vmem>>, vector<1x288xf32>
    %5 = vector.broadcast %4 : vector<1x288xf32> to vector<2x288xf32>
    %6 = arith.addf %3, %5 : vector<2x288xf32>
    %c0_5 = arith.constant 0 : index
    %c0_6 = arith.constant 0 : index
    %7 = vector.load %arg3[%c0_5, %c0_6] : memref<288x32xf32, #tpu.memory_space<vmem>>, vector<288x32xf32>
    %cst_7 = arith.constant dense<0.000000e+00> : vector<2x32xf32>
    %8 = tpu.matmul %6, %7, %cst_7 {dimension_numbers = #tpu.dot_dimension_numbers<[1], [0], [0], [1], [0, 0, 1, 1], [], []>} : vector<2x288xf32>, vector<288x32xf32>, vector<2x32xf32> -> vector<2x32xf32>
    %9 = arith.mulf %6, %6 : vector<2x288xf32>
    %cst_8 = arith.constant dense<0.000000e+00> : vector<2x32xf32>
    %10 = tpu.matmul %9, %7, %cst_8 {dimension_numbers = #tpu.dot_dimension_numbers<[1], [0], [0], [1], [0, 0, 1, 1], [], []>} : vector<2x288xf32>, vector<288x32xf32>, vector<2x32xf32> -> vector<2x32xf32>
    %cst_9 = arith.constant dense<0.000000e+00> : vector<32xf32>
    %11 = vector.multi_reduction <add>, %8, %cst_9 [0] : vector<2x32xf32> to vector<32xf32>
    %12 = vector.shape_cast %11 : vector<32xf32> to vector<1x32xf32>
    %cst_10 = arith.constant 0.055555556 : f32
    %13 = vector.broadcast %cst_10 : f32 to vector<1x32xf32>
    %14 = arith.mulf %12, %13 : vector<1x32xf32>
    %cst_11 = arith.constant dense<0.000000e+00> : vector<32xf32>
    %15 = vector.multi_reduction <add>, %10, %cst_11 [0] : vector<2x32xf32> to vector<32xf32>
    %16 = vector.shape_cast %15 : vector<32xf32> to vector<1x32xf32>
    %cst_12 = arith.constant 0.055555556 : f32
    %17 = vector.broadcast %cst_12 : f32 to vector<1x32xf32>
    %18 = arith.mulf %16, %17 : vector<1x32xf32>
    %19 = arith.mulf %14, %14 : vector<1x32xf32>
    %20 = arith.subf %18, %19 : vector<1x32xf32>
    %cst_13 = arith.constant 9.99999974E-6 : f32
    %21 = vector.broadcast %cst_13 : f32 to vector<1x32xf32>
    %22 = arith.addf %20, %21 : vector<1x32xf32>
    %23 = math.rsqrt %22 : vector<1x32xf32>
    %c0_14 = arith.constant 0 : index
    %c0_15 = arith.constant 0 : index
    %24 = vector.load %arg4[%c0_14, %c0_15] : memref<32x288xf32, #tpu.memory_space<vmem>>, vector<32x288xf32>
    %cst_16 = arith.constant dense<0.000000e+00> : vector<1x288xf32>
    %25 = tpu.matmul %14, %24, %cst_16 {dimension_numbers = #tpu.dot_dimension_numbers<[1], [0], [0], [1], [0, 0, 1, 1], [], []>} : vector<1x32xf32>, vector<32x288xf32>, vector<1x288xf32> -> vector<1x288xf32>
    %c0_17 = arith.constant 0 : index
    %c0_18 = arith.constant 0 : index
    %26 = vector.load %arg4[%c0_17, %c0_18] : memref<32x288xf32, #tpu.memory_space<vmem>>, vector<32x288xf32>
    %cst_19 = arith.constant dense<0.000000e+00> : vector<1x288xf32>
    %27 = tpu.matmul %23, %26, %cst_19 {dimension_numbers = #tpu.dot_dimension_numbers<[1], [0], [0], [1], [0, 0, 1, 1], [], []>} : vector<1x32xf32>, vector<32x288xf32>, vector<1x288xf32> -> vector<1x288xf32>
    %28 = vector.broadcast %25 : vector<1x288xf32> to vector<2x288xf32>
    %29 = arith.subf %6, %28 : vector<2x288xf32>
    %30 = vector.broadcast %27 : vector<1x288xf32> to vector<2x288xf32>
    %31 = arith.mulf %29, %30 : vector<2x288xf32>
    %c0_20 = arith.constant 0 : index
    %c0_21 = arith.constant 0 : index
    %32 = vector.load %arg5[%c0_20, %c0_21] : memref<1x288xf32, #tpu.memory_space<vmem>>, vector<1x288xf32>
    %33 = vector.broadcast %32 : vector<1x288xf32> to vector<2x288xf32>
    %34 = arith.mulf %31, %33 : vector<2x288xf32>
    %c0_22 = arith.constant 0 : index
    %c0_23 = arith.constant 0 : index
    %35 = vector.load %arg6[%c0_22, %c0_23] : memref<1x288xf32, #tpu.memory_space<vmem>>, vector<1x288xf32>
    %36 = vector.broadcast %35 : vector<1x288xf32> to vector<2x288xf32>
    %37 = arith.addf %34, %36 : vector<2x288xf32>
    %cst_24 = arith.constant 0.000000e+00 : f32
    %38 = vector.broadcast %cst_24 : f32 to vector<2x288xf32>
    %39 = arith.maximumf %37, %38 : vector<2x288xf32>
    %c0_25 = arith.constant 0 : index
    %c0_26 = arith.constant 0 : index
    %40 = vector.load %arg7[%c0_25, %c0_26] : memref<2x288xf32, #tpu.memory_space<vmem>>, vector<2x288xf32>
    tpu.vector_store %arg7[%c0_25, %c0_26], %39 {strides = array<i32>} : memref<2x288xf32, #tpu.memory_space<vmem>>, vector<2x288xf32>,
    return
  }
}

module attributes {stable_mosaic.version = 11 : i64} {
  func.func @_gen_block_bn_relu_kernel(%arg0: memref<2x288xf32, #tpu.memory_space<vmem>>, %arg1: memref<288x576xbf16, #tpu.memory_space<vmem>>, %arg2: memref<1x576xf32, #tpu.memory_space<vmem>>, %arg3: memref<576x16xf32, #tpu.memory_space<vmem>>, %arg4: memref<16x576xf32, #tpu.memory_space<vmem>>, %arg5: memref<1x576xf32, #tpu.memory_space<vmem>>, %arg6: memref<1x576xf32, #tpu.memory_space<vmem>>, %arg7: memref<2x576xf32, #tpu.memory_space<vmem>>) attributes {dimension_semantics = [], scalar_prefetch = 0 : i64, scratch_operands = 0 : i64, tpu.core_type = #tpu.core_type<tc>} {
    %c0 = arith.constant 0 : index
    %c0_0 = arith.constant 0 : index
    %0 = vector.load %arg0[%c0, %c0_0] : memref<2x288xf32, #tpu.memory_space<vmem>>, vector<2x288xf32>
    %c0_1 = arith.constant 0 : index
    %c0_2 = arith.constant 0 : index
    %1 = vector.load %arg1[%c0_1, %c0_2] : memref<288x576xbf16, #tpu.memory_space<vmem>>, vector<288x576xbf16>
    %2 = arith.extf %1 : vector<288x576xbf16> to vector<288x576xf32>
    %cst = arith.constant dense<0.000000e+00> : vector<2x576xf32>
    %3 = tpu.matmul %0, %2, %cst {dimension_numbers = #tpu.dot_dimension_numbers<[1], [0], [0], [1], [0, 0, 1, 1], [], []>} : vector<2x288xf32>, vector<288x576xf32>, vector<2x576xf32> -> vector<2x576xf32>
    %c0_3 = arith.constant 0 : index
    %c0_4 = arith.constant 0 : index
    %4 = vector.load %arg2[%c0_3, %c0_4] : memref<1x576xf32, #tpu.memory_space<vmem>>, vector<1x576xf32>
    %5 = vector.broadcast %4 : vector<1x576xf32> to vector<2x576xf32>
    %6 = arith.addf %3, %5 : vector<2x576xf32>
    %c0_5 = arith.constant 0 : index
    %c0_6 = arith.constant 0 : index
    %7 = vector.load %arg3[%c0_5, %c0_6] : memref<576x16xf32, #tpu.memory_space<vmem>>, vector<576x16xf32>
    %cst_7 = arith.constant dense<0.000000e+00> : vector<2x16xf32>
    %8 = tpu.matmul %6, %7, %cst_7 {dimension_numbers = #tpu.dot_dimension_numbers<[1], [0], [0], [1], [0, 0, 1, 1], [], []>} : vector<2x576xf32>, vector<576x16xf32>, vector<2x16xf32> -> vector<2x16xf32>
    %9 = arith.mulf %6, %6 : vector<2x576xf32>
    %cst_8 = arith.constant dense<0.000000e+00> : vector<2x16xf32>
    %10 = tpu.matmul %9, %7, %cst_8 {dimension_numbers = #tpu.dot_dimension_numbers<[1], [0], [0], [1], [0, 0, 1, 1], [], []>} : vector<2x576xf32>, vector<576x16xf32>, vector<2x16xf32> -> vector<2x16xf32>
    %cst_9 = arith.constant dense<0.000000e+00> : vector<16xf32>
    %11 = vector.multi_reduction <add>, %8, %cst_9 [0] : vector<2x16xf32> to vector<16xf32>
    %12 = vector.shape_cast %11 : vector<16xf32> to vector<1x16xf32>
    %cst_10 = arith.constant 0.013888889 : f32
    %13 = vector.broadcast %cst_10 : f32 to vector<1x16xf32>
    %14 = arith.mulf %12, %13 : vector<1x16xf32>
    %cst_11 = arith.constant dense<0.000000e+00> : vector<16xf32>
    %15 = vector.multi_reduction <add>, %10, %cst_11 [0] : vector<2x16xf32> to vector<16xf32>
    %16 = vector.shape_cast %15 : vector<16xf32> to vector<1x16xf32>
    %cst_12 = arith.constant 0.013888889 : f32
    %17 = vector.broadcast %cst_12 : f32 to vector<1x16xf32>
    %18 = arith.mulf %16, %17 : vector<1x16xf32>
    %19 = arith.mulf %14, %14 : vector<1x16xf32>
    %20 = arith.subf %18, %19 : vector<1x16xf32>
    %cst_13 = arith.constant 9.99999974E-6 : f32
    %21 = vector.broadcast %cst_13 : f32 to vector<1x16xf32>
    %22 = arith.addf %20, %21 : vector<1x16xf32>
    %23 = math.rsqrt %22 : vector<1x16xf32>
    %c0_14 = arith.constant 0 : index
    %c0_15 = arith.constant 0 : index
    %24 = vector.load %arg4[%c0_14, %c0_15] : memref<16x576xf32, #tpu.memory_space<vmem>>, vector<16x576xf32>
    %cst_16 = arith.constant dense<0.000000e+00> : vector<1x576xf32>
    %25 = tpu.matmul %14, %24, %cst_16 {dimension_numbers = #tpu.dot_dimension_numbers<[1], [0], [0], [1], [0, 0, 1, 1], [], []>} : vector<1x16xf32>, vector<16x576xf32>, vector<1x576xf32> -> vector<1x576xf32>
    %c0_17 = arith.constant 0 : index
    %c0_18 = arith.constant 0 : index
    %26 = vector.load %arg4[%c0_17, %c0_18] : memref<16x576xf32, #tpu.memory_space<vmem>>, vector<16x576xf32>
    %cst_19 = arith.constant dense<0.000000e+00> : vector<1x576xf32>
    %27 = tpu.matmul %23, %26, %cst_19 {dimension_numbers = #tpu.dot_dimension_numbers<[1], [0], [0], [1], [0, 0, 1, 1], [], []>} : vector<1x16xf32>, vector<16x576xf32>, vector<1x576xf32> -> vector<1x576xf32>
    %28 = vector.broadcast %25 : vector<1x576xf32> to vector<2x576xf32>
    %29 = arith.subf %6, %28 : vector<2x576xf32>
    %30 = vector.broadcast %27 : vector<1x576xf32> to vector<2x576xf32>
    %31 = arith.mulf %29, %30 : vector<2x576xf32>
    %c0_20 = arith.constant 0 : index
    %c0_21 = arith.constant 0 : index
    %32 = vector.load %arg5[%c0_20, %c0_21] : memref<1x576xf32, #tpu.memory_space<vmem>>, vector<1x576xf32>
    %33 = vector.broadcast %32 : vector<1x576xf32> to vector<2x576xf32>
    %34 = arith.mulf %31, %33 : vector<2x576xf32>
    %c0_22 = arith.constant 0 : index
    %c0_23 = arith.constant 0 : index
    %35 = vector.load %arg6[%c0_22, %c0_23] : memref<1x576xf32, #tpu.memory_space<vmem>>, vector<1x576xf32>
    %36 = vector.broadcast %35 : vector<1x576xf32> to vector<2x576xf32>
    %37 = arith.addf %34, %36 : vector<2x576xf32>
    %cst_24 = arith.constant 0.000000e+00 : f32
    %38 = vector.broadcast %cst_24 : f32 to vector<2x576xf32>
    %39 = arith.maximumf %37, %38 : vector<2x576xf32>
    %c0_25 = arith.constant 0 : index
    %c0_26 = arith.constant 0 : index
    %40 = vector.load %arg7[%c0_25, %c0_26] : memref<2x576xf32, #tpu.memory_space<vmem>>, vector<2x576xf32>
    tpu.vector_store %arg7[%c0_25, %c0_26], %39 {strides = array<i32>} : memref<2x576xf32, #tpu.memory_space<vmem>>, vector<2x576xf32>,
    return
  }
}

module attributes {stable_mosaic.version = 11 : i64} {
  func.func @_gen_block_bn_relu_kernel(%arg0: memref<2x576xf32, #tpu.memory_space<vmem>>, %arg1: memref<576x1352xbf16, #tpu.memory_space<vmem>>, %arg2: memref<1x1352xf32, #tpu.memory_space<vmem>>, %arg3: memref<1352x8xf32, #tpu.memory_space<vmem>>, %arg4: memref<8x1352xf32, #tpu.memory_space<vmem>>, %arg5: memref<1x1352xf32, #tpu.memory_space<vmem>>, %arg6: memref<1x1352xf32, #tpu.memory_space<vmem>>, %arg7: memref<2x1352xf32, #tpu.memory_space<vmem>>) attributes {dimension_semantics = [], scalar_prefetch = 0 : i64, scratch_operands = 0 : i64, tpu.core_type = #tpu.core_type<tc>} {
    %c0 = arith.constant 0 : index
    %c0_0 = arith.constant 0 : index
    %0 = vector.load %arg0[%c0, %c0_0] : memref<2x576xf32, #tpu.memory_space<vmem>>, vector<2x576xf32>
    %c0_1 = arith.constant 0 : index
    %c0_2 = arith.constant 0 : index
    %1 = vector.load %arg1[%c0_1, %c0_2] : memref<576x1352xbf16, #tpu.memory_space<vmem>>, vector<576x1352xbf16>
    %2 = arith.extf %1 : vector<576x1352xbf16> to vector<576x1352xf32>
    %cst = arith.constant dense<0.000000e+00> : vector<2x1352xf32>
    %3 = tpu.matmul %0, %2, %cst {dimension_numbers = #tpu.dot_dimension_numbers<[1], [0], [0], [1], [0, 0, 1, 1], [], []>} : vector<2x576xf32>, vector<576x1352xf32>, vector<2x1352xf32> -> vector<2x1352xf32>
    %c0_3 = arith.constant 0 : index
    %c0_4 = arith.constant 0 : index
    %4 = vector.load %arg2[%c0_3, %c0_4] : memref<1x1352xf32, #tpu.memory_space<vmem>>, vector<1x1352xf32>
    %5 = vector.broadcast %4 : vector<1x1352xf32> to vector<2x1352xf32>
    %6 = arith.addf %3, %5 : vector<2x1352xf32>
    %c0_5 = arith.constant 0 : index
    %c0_6 = arith.constant 0 : index
    %7 = vector.load %arg3[%c0_5, %c0_6] : memref<1352x8xf32, #tpu.memory_space<vmem>>, vector<1352x8xf32>
    %cst_7 = arith.constant dense<0.000000e+00> : vector<2x8xf32>
    %8 = tpu.matmul %6, %7, %cst_7 {dimension_numbers = #tpu.dot_dimension_numbers<[1], [0], [0], [1], [0, 0, 1, 1], [], []>} : vector<2x1352xf32>, vector<1352x8xf32>, vector<2x8xf32> -> vector<2x8xf32>
    %9 = arith.mulf %6, %6 : vector<2x1352xf32>
    %cst_8 = arith.constant dense<0.000000e+00> : vector<2x8xf32>
    %10 = tpu.matmul %9, %7, %cst_8 {dimension_numbers = #tpu.dot_dimension_numbers<[1], [0], [0], [1], [0, 0, 1, 1], [], []>} : vector<2x1352xf32>, vector<1352x8xf32>, vector<2x8xf32> -> vector<2x8xf32>
    %cst_9 = arith.constant dense<0.000000e+00> : vector<8xf32>
    %11 = vector.multi_reduction <add>, %8, %cst_9 [0] : vector<2x8xf32> to vector<8xf32>
    %12 = vector.shape_cast %11 : vector<8xf32> to vector<1x8xf32>
    %cst_10 = arith.constant 2.958580e-03 : f32
    %13 = vector.broadcast %cst_10 : f32 to vector<1x8xf32>
    %14 = arith.mulf %12, %13 : vector<1x8xf32>
    %cst_11 = arith.constant dense<0.000000e+00> : vector<8xf32>
    %15 = vector.multi_reduction <add>, %10, %cst_11 [0] : vector<2x8xf32> to vector<8xf32>
    %16 = vector.shape_cast %15 : vector<8xf32> to vector<1x8xf32>
    %cst_12 = arith.constant 2.958580e-03 : f32
    %17 = vector.broadcast %cst_12 : f32 to vector<1x8xf32>
    %18 = arith.mulf %16, %17 : vector<1x8xf32>
    %19 = arith.mulf %14, %14 : vector<1x8xf32>
    %20 = arith.subf %18, %19 : vector<1x8xf32>
    %cst_13 = arith.constant 9.99999974E-6 : f32
    %21 = vector.broadcast %cst_13 : f32 to vector<1x8xf32>
    %22 = arith.addf %20, %21 : vector<1x8xf32>
    %23 = math.rsqrt %22 : vector<1x8xf32>
    %c0_14 = arith.constant 0 : index
    %c0_15 = arith.constant 0 : index
    %24 = vector.load %arg4[%c0_14, %c0_15] : memref<8x1352xf32, #tpu.memory_space<vmem>>, vector<8x1352xf32>
    %cst_16 = arith.constant dense<0.000000e+00> : vector<1x1352xf32>
    %25 = tpu.matmul %14, %24, %cst_16 {dimension_numbers = #tpu.dot_dimension_numbers<[1], [0], [0], [1], [0, 0, 1, 1], [], []>} : vector<1x8xf32>, vector<8x1352xf32>, vector<1x1352xf32> -> vector<1x1352xf32>
    %c0_17 = arith.constant 0 : index
    %c0_18 = arith.constant 0 : index
    %26 = vector.load %arg4[%c0_17, %c0_18] : memref<8x1352xf32, #tpu.memory_space<vmem>>, vector<8x1352xf32>
    %cst_19 = arith.constant dense<0.000000e+00> : vector<1x1352xf32>
    %27 = tpu.matmul %23, %26, %cst_19 {dimension_numbers = #tpu.dot_dimension_numbers<[1], [0], [0], [1], [0, 0, 1, 1], [], []>} : vector<1x8xf32>, vector<8x1352xf32>, vector<1x1352xf32> -> vector<1x1352xf32>
    %28 = vector.broadcast %25 : vector<1x1352xf32> to vector<2x1352xf32>
    %29 = arith.subf %6, %28 : vector<2x1352xf32>
    %30 = vector.broadcast %27 : vector<1x1352xf32> to vector<2x1352xf32>
    %31 = arith.mulf %29, %30 : vector<2x1352xf32>
    %c0_20 = arith.constant 0 : index
    %c0_21 = arith.constant 0 : index
    %32 = vector.load %arg5[%c0_20, %c0_21] : memref<1x1352xf32, #tpu.memory_space<vmem>>, vector<1x1352xf32>
    %33 = vector.broadcast %32 : vector<1x1352xf32> to vector<2x1352xf32>
    %34 = arith.mulf %31, %33 : vector<2x1352xf32>
    %c0_22 = arith.constant 0 : index
    %c0_23 = arith.constant 0 : index
    %35 = vector.load %arg6[%c0_22, %c0_23] : memref<1x1352xf32, #tpu.memory_space<vmem>>, vector<1x1352xf32>
    %36 = vector.broadcast %35 : vector<1x1352xf32> to vector<2x1352xf32>
    %37 = arith.addf %34, %36 : vector<2x1352xf32>
    %cst_24 = arith.constant 0.000000e+00 : f32
    %38 = vector.broadcast %cst_24 : f32 to vector<2x1352xf32>
    %39 = arith.maximumf %37, %38 : vector<2x1352xf32>
    %c0_25 = arith.constant 0 : index
    %c0_26 = arith.constant 0 : index
    %40 = vector.load %arg7[%c0_25, %c0_26] : memref<2x1352xf32, #tpu.memory_space<vmem>>, vector<2x1352xf32>
    tpu.vector_store %arg7[%c0_25, %c0_26], %39 {strides = array<i32>} : memref<2x1352xf32, #tpu.memory_space<vmem>>, vector<2x1352xf32>,
    return
  }
}

module attributes {stable_mosaic.version = 11 : i64} {
  func.func @_gen_block_tanh_kernel(%arg0: memref<2x1352xf32, #tpu.memory_space<vmem>>, %arg1: memref<1352x784xbf16, #tpu.memory_space<vmem>>, %arg2: memref<1x784xf32, #tpu.memory_space<vmem>>, %arg3: memref<2x784xf32, #tpu.memory_space<vmem>>) attributes {dimension_semantics = [], scalar_prefetch = 0 : i64, scratch_operands = 0 : i64, tpu.core_type = #tpu.core_type<tc>} {
    %c0 = arith.constant 0 : index
    %c0_0 = arith.constant 0 : index
    %0 = vector.load %arg1[%c0, %c0_0] : memref<1352x784xbf16, #tpu.memory_space<vmem>>, vector<1352x784xbf16>
    %1 = arith.extf %0 : vector<1352x784xbf16> to vector<1352x784xf32>
    %c0_1 = arith.constant 0 : index
    %c0_2 = arith.constant 0 : index
    %2 = vector.load %arg0[%c0_1, %c0_2] : memref<2x1352xf32, #tpu.memory_space<vmem>>, vector<2x1352xf32>
    %cst = arith.constant dense<0.000000e+00> : vector<2x784xf32>
    %3 = tpu.matmul %2, %1, %cst {dimension_numbers = #tpu.dot_dimension_numbers<[1], [0], [0], [1], [0, 0, 1, 1], [], []>} : vector<2x1352xf32>, vector<1352x784xf32>, vector<2x784xf32> -> vector<2x784xf32>
    %c0_3 = arith.constant 0 : index
    %c0_4 = arith.constant 0 : index
    %4 = vector.load %arg2[%c0_3, %c0_4] : memref<1x784xf32, #tpu.memory_space<vmem>>, vector<1x784xf32>
    %5 = vector.broadcast %4 : vector<1x784xf32> to vector<2x784xf32>
    %6 = arith.addf %3, %5 : vector<2x784xf32>
    %7 = math.tanh %6 : vector<2x784xf32>
    %c0_5 = arith.constant 0 : index
    %c0_6 = arith.constant 0 : index
    %8 = vector.load %arg3[%c0_5, %c0_6] : memref<2x784xf32, #tpu.memory_space<vmem>>, vector<2x784xf32>
    tpu.vector_store %arg3[%c0_5, %c0_6], %7 {strides = array<i32>} : memref<2x784xf32, #tpu.memory_space<vmem>>, vector<2x784xf32>,
    return
  }
}

</mosaic_0001>

<bundles_post_ra>
// kernel: _lambda_.5
= control target key start
LH: loop header
LB: loop body
LE: loop exit
PB: predicated region body
PF: predicated region fallthrough
CT: control target
= control target key end

     0   :  { %12 = vsyncpa [#allocation3], 0  ;;  %s3547_s0 = inlined_call_operand.vmem [shape: f32[2,288], index: 0, kind: input, shape index: {}]   ;;  %s3548_s1 = inlined_call_operand.vmem [shape: bf16[288,576], index: 1, kind: input, shape index: {}]   ;;  %s3549_s2 = inlined_call_operand.hbm [shape: f32[1,576], index: 2, kind: input, shape index: {}]   ;;  %s3550_s3 = inlined_call_operand.hbm [shape: f32[576,16], index: 3, kind: input, shape index: {}]   ;;  %s3551_s4 = inlined_call_operand.hbm [shape: f32[16,576], index: 4, kind: input, shape index: {}]   ;;  %s3552_s5 = inlined_call_operand.vmem [shape: f32[1,576], index: 5, kind: input, shape index: {}]   ;;  %s3553_s6 = inlined_call_operand.vmem [shape: f32[1,576], index: 6, kind: input, shape index: {}]   ;;  %s3554_s7 = inlined_call_operand.vmem [shape: f32[2,576], index: 7, kind: output, shape index: {}]  }
   0x1   :  { %13 = vsyncpa [#allocation5], 0  ;;  %s2894_s24 = smov [#allocation4]   ;;  %s2824_s28 = scalar_lea.hbm %s3550_s3, 9216 }
   0x2   :  { %s33_s25 = sshll.u32 %s2894_s24, 4  ;;  %p2825_p0 = scmp.ne.s32.totalorder %s3550_s3, %s2824_s28  ;;  %s34_s25 = int_to_ptr.vmem [resolvable:$true] %s33_s25 }
   0x3   :  { %p2828_p1 = scmp.lt.u32.totalorder %s2824_s28, %s3550_s3 }
   0x5   :  { %p2830_p2 = pnand %p2828_p1, %p2825_p0 }
   0x7   :  { %2833 = shalt.err (!%p2830_p2)
}
   0x8   :  { %s2834_s10 = scalar_lea.vmem %s34_s25, 9216  ;;  %p2839_p4 = scmp.lt.s32.totalorder %s34_s25, %s34_s25 }
   0x9   :  { %p2835_p3 = scmp.ne.s32.totalorder %s34_s25, %s2834_s10  ;;  %p2840_p5 = scmp.lt.s32.totalorder %s2834_s10, %s2834_s10 }
   0xb   :  { %p2841_p6 = por %p2840_p5, %p2839_p4 }
   0xd   :  { %p2842_p7 = pnand %p2841_p6, %p2835_p3 }
   0xf   :  { %2845 = shalt.err (!%p2842_p7)
}
  0x10   :  { %s2895_s11 = smov 128   ;;  %s2896_s12 = smov 8  }
  0x11   :  { %39 = dma.hbm_to_vmem [thread:$0]  %s3550_s3, 9216, %s34_s25, [#allocation5], %s2895_s11, %s2895_s11, %s2896_s12  }
  0x12   :  { %s2897_s15 = smov [#allocation2]   ;;  %s2898_s17 = smov [#allocation6]  }
  0x13   :  { %s24_s16 = sshll.u32 %s2897_s15, 4  ;;  %s45_s18 = sshll.u32 %s2898_s17, 4  ;;  %s25_s16 = int_to_ptr.vmem [resolvable:$true] %s24_s16  ;;  %s46_s18 = int_to_ptr.vmem [resolvable:$true] %s45_s18 }
  0x14   :  { %s2846_s21 = scalar_lea.hbm %s3549_s2, 80 }
  0x15   :  { %p2847_p8 = scmp.ne.s32.totalorder %s3549_s2, %s2846_s21  ;;  %p2850_p9 = scmp.lt.u32.totalorder %s2846_s21, %s3549_s2 }
  0x17   :  { %p2852_p10 = pnand %p2850_p9, %p2847_p8 }
  0x19   :  { %2855 = shalt.err (!%p2852_p10)
}
  0x1a   :  { %s2856_s3 = scalar_lea.vmem %s25_s16, 80  ;;  %s2860_s25 = scalar_lea.vmem %s25_s16, 96 }
  0x1b   :  { %p2857_p11 = scmp.ne.s32.totalorder %s25_s16, %s2856_s3  ;;  %p2861_p12 = scmp.lt.s32.totalorder %s25_s16, %s25_s16 }
  0x1c   :  { %p2862_p13 = scmp.lt.s32.totalorder %s2860_s25, %s2856_s3 }
  0x1e   :  { %p2863_p0 = por %p2862_p13, %p2861_p12 }
  0x20   :  { %p2864_p1 = pnand %p2863_p0, %p2857_p11 }
  0x22   :  { %2867 = shalt.err (!%p2864_p1)
}
  0x23   :  { %27 = dma.hbm_to_vmem [thread:$0]  %s3549_s2, 80, %s25_s16, [#allocation3]  }
  0x24   :  { %s2868_s8 = scalar_lea.hbm %s3551_s4, 1280 }
  0x25   :  { %p2869_p2 = scmp.ne.s32.totalorder %s3551_s4, %s2868_s8  ;;  %p2872_p3 = scmp.lt.u32.totalorder %s2868_s8, %s3551_s4 }
  0x27   :  { %p2874_p4 = pnand %p2872_p3, %p2869_p2 }
  0x29   :  { %2877 = shalt.err (!%p2874_p4)
}
  0x2a   :  { %s2878_s13 = scalar_lea.vmem %s46_s18, 1280  ;;  %p2883_p6 = scmp.lt.s32.totalorder %s46_s18, %s46_s18 }
  0x2b   :  { %p2879_p5 = scmp.ne.s32.totalorder %s46_s18, %s2878_s13  ;;  %p2884_p7 = scmp.lt.s32.totalorder %s2878_s13, %s2878_s13 }
  0x2d   :  { %p2885_p8 = por %p2884_p7, %p2883_p6 }
  0x2f   :  { %p2886_p9 = pnand %p2885_p8, %p2879_p5 }
  0x31   :  { %2889 = shalt.err (!%p2886_p9)
}
  0x32   :  { %s2899_s2 = smov 640   ;;  %s2900_s14 = smov 40  }
  0x33   :  { %51 = dma.hbm_to_vmem [thread:$0]  %s3551_s4, 1280, %s46_s18, [#allocation5], %s2899_s2, %s2899_s2, %s2900_s14  }
  0x34   :  { %2890 = dma.done.wait [#allocation3], 80  }
  0x35   :  { %2891 = vsyncadd [#allocation3], 4294967216 }
  0x36   :  { %2892 = dma.done.wait [#allocation5], 10496  }
  0x37   :  { %2893 = vsyncadd [#allocation5], 4294956800  ;;  %v2695_v0 = vld [vmem:[%s3548_s1 + $0x4] ss:$20 sps:$4 sm:$0xff]   ;;  %v2697_v1 = vld [vmem:[%s3548_s1 + $0xc] ss:$20 sps:$4 sm:$0xff]   ;;  %v356_v36 = vlaneseq }
  0x38   :  { %2231 = vmatprep.subr.bf16.mxu0 %v2695_v0  ;;  %v2699_v2 = vld [vmem:[%s3548_s1] ss:$20 sps:$4 sm:$0xff]   ;;  %v2700_v3 = vld [vmem:[%s3548_s1 + $0x8] ss:$20 sps:$4 sm:$0xff]   ;;  %2303 = vmatprep.subr.bf16.mxu1 %v2697_v1  ;;  %v2706_v7 = vld [vmem:[%s3548_s1 + $0x30] ss:$20 sps:$4 sm:$0xff]  }
  0x39   :  { %v2701_v4 = vld [vmem:[%s3548_s1 + $0x2c] ss:$20 sps:$4 sm:$0xff]   ;;  %2233 = vmatpush1.bf16.msra.mxu0 %v2699_v2  ;;  %2305 = vmatpush1.bf16.msra.mxu1 %v2700_v3  ;;  %v2703_v5 = vld [vmem:[%s3548_s1 + $0x34] ss:$20 sps:$4 sm:$0xff]   ;;  %v2709_v9 = vld [vmem:[%s3548_s1 + $0x5c] ss:$20 sps:$4 sm:$0xff]  }
  0x3a   :  { %v2705_v6 = vld [vmem:[%s3548_s1 + $0x28] ss:$20 sps:$4 sm:$0xff]   ;;  %2235 = vmatprep.subr.bf16.mxu0 %v2701_v4  ;;  %2307 = vmatprep.subr.bf16.mxu1 %v2703_v5  ;;  %v2711_v10 = vld [vmem:[%s3548_s1 + $0x50] ss:$20 sps:$4 sm:$0xff]   ;;  %v2712_v11 = vld [vmem:[%s3548_s1 + $0x58] ss:$20 sps:$4 sm:$0xff]  }
  0x3b   :  { %v2707_v8 = vld [vmem:[%s3548_s1 + $0x54] ss:$20 sps:$4 sm:$0xff]   ;;  %v2713_v12 = vld [vmem:[%s3548_s1 + $0x7c] ss:$20 sps:$4 sm:$0xff]   ;;  %v2715_v13 = vld [vmem:[%s3548_s1 + $0x84] ss:$20 sps:$4 sm:$0xff]  }
  0x3c   :  { %v2717_v14 = vld [vmem:[%s3548_s1 + $0x78] ss:$20 sps:$4 sm:$0xff]   ;;  %v2718_v15 = vld [vmem:[%s3548_s1 + $0x80] ss:$20 sps:$4 sm:$0xff]   ;;  %v2724_v19 = vld [vmem:[%s3548_s1 + $0xa8] ss:$20 sps:$4 sm:$0xff]  }
  0x3d   :  { %2237 = vmatpush1.bf16.msra.mxu0 %v2705_v6  ;;  %2309 = vmatpush1.bf16.msra.mxu1 %v2706_v7  ;;  %v2719_v16 = vld [vmem:[%s3548_s1 + $0xa4] ss:$20 sps:$4 sm:$0xff]   ;;  %v2721_v17 = vld [vmem:[%s3548_s1 + $0xac] ss:$20 sps:$4 sm:$0xff]   ;;  %v2727_v21 = vld [vmem:[%s3548_s1 + $0xd4] ss:$20 sps:$4 sm:$0xff]  }
  0x3e   :  { %2239 = vmatprep.subr.bf16.mxu0 %v2707_v8  ;;  %2311 = vmatprep.subr.bf16.mxu1 %v2709_v9  ;;  %v2723_v18 = vld [vmem:[%s3548_s1 + $0xa0] ss:$20 sps:$4 sm:$0xff]   ;;  %v2729_v22 = vld [vmem:[%s3548_s1 + $0xc8] ss:$20 sps:$4 sm:$0xff]   ;;  %v2730_v23 = vld [vmem:[%s3548_s1 + $0xd0] ss:$20 sps:$4 sm:$0xff]  }
  0x3f   :  { %v2725_v20 = vld [vmem:[%s3548_s1 + $0xcc] ss:$20 sps:$4 sm:$0xff]   ;;  %v2731_v24 = vld [vmem:[%s3548_s1 + $0xf4] ss:$20 sps:$4 sm:$0xff]   ;;  %v2733_v25 = vld [vmem:[%s3548_s1 + $0xfc] ss:$20 sps:$4 sm:$0xff]  }
  0x40   :  { %v2735_v26 = vld [vmem:[%s3548_s1 + $0xf0] ss:$20 sps:$4 sm:$0xff]   ;;  %v2736_v27 = vld [vmem:[%s3548_s1 + $0xf8] ss:$20 sps:$4 sm:$0xff]   ;;  %v2742_v31 = vld [vmem:[%s3548_s1 + $0x120] ss:$20 sps:$4 sm:$0xff]  }
  0x41   :  { %2241 = vmatpush1.bf16.msra.mxu0 %v2711_v10  ;;  %2313 = vmatpush1.bf16.msra.mxu1 %v2712_v11  ;;  %v2737_v28 = vld [vmem:[%s3548_s1 + $0x11c] ss:$20 sps:$4 sm:$0xff]   ;;  %v2739_v29 = vld [vmem:[%s3548_s1 + $0x124] ss:$20 sps:$4 sm:$0xff]   ;;  %v2745_v33 = vld [vmem:[%s3548_s1 + $0x14c] ss:$20 sps:$4 sm:$0xff]  }
  0x42   :  { %2243 = vmatprep.subr.bf16.mxu0 %v2713_v12  ;;  %2315 = vmatprep.subr.bf16.mxu1 %v2715_v13  ;;  %v2741_v30 = vld [vmem:[%s3548_s1 + $0x118] ss:$20 sps:$4 sm:$0xff]   ;;  %v2747_v34 = vld [vmem:[%s3548_s1 + $0x140] ss:$20 sps:$4 sm:$0xff]   ;;  %v2748_v35 = vld [vmem:[%s3548_s1 + $0x148] ss:$20 sps:$4 sm:$0xff]  }
  0x43   :  { %v2743_v32 = vld [vmem:[%s3548_s1 + $0x144] ss:$20 sps:$4 sm:$0xff]   ;;  %v2901_v37 = vmov 1983009808   ;;  %v2749_v39 = vld [vmem:[%s3548_s1 + $0x16c] ss:$20 sps:$4 sm:$0xff]  }
  0x44   :  { %v384_v38 = vunpack.c.l.s4 %v2901_v37  ;;  %v2751_v40 = vld [vmem:[%s3548_s1 + $0x174] ss:$20 sps:$4 sm:$0xff]   ;;  %v3098_v42 = vshrl.u32 %v356_v36, 7  ;;  %v2754_v44 = vld [vmem:[%s3548_s1 + $0x170] ss:$20 sps:$4 sm:$0xff]   ;;  %vm400_vm0 = vcmask 261120  }
  0x45   :  { %2245 = vmatpush1.bf16.msra.mxu0 %v2717_v14  ;;  %2317 = vmatpush1.bf16.msra.mxu1 %v2718_v15  ;;  %v2753_v41 = vld [vmem:[%s3548_s1 + $0x168] ss:$20 sps:$4 sm:$0xff]   ;;  %v2759_v47 = vld [vmem:[%s3548_s1 + $0x190] ss:$20 sps:$4 sm:$0xff]   ;;  %v2760_v48 = vld [vmem:[%s3548_s1 + $0x198] ss:$20 sps:$4 sm:$0xff]  }
  0x46   :  { %2247 = vmatprep.subr.bf16.mxu0 %v2719_v16  ;;  %2319 = vmatprep.subr.bf16.mxu1 %v2721_v17  ;;  %v385_v43 = vunpack.c.0.s8 %v384_v38  ;;  %v2755_v45 = vld [vmem:[%s3548_s1 + $0x194] ss:$20 sps:$4 sm:$0xff]   ;;  %v2757_v46 = vld [vmem:[%s3548_s1 + $0x19c] ss:$20 sps:$4 sm:$0xff]   ;;  %v2763_v51 = vld [vmem:[%s3548_s1 + $0x1c4] ss:$20 sps:$4 sm:$0xff]  }
  0x47   :  { %v2761_v50 = vld [vmem:[%s3548_s1 + $0x1bc] ss:$20 sps:$4 sm:$0xff]   ;;  %v3127_v52 = vld [vmem:[%s3547_s0] sm:$0x3f]  ;;  %v2765_v53 = vld [vmem:[%s3548_s1 + $0x1b8] ss:$20 sps:$4 sm:$0xff]  }
  0x48   :  { %v3116_v49 = vsub.s32 %v385_v43, %v3098_v42  ;;  %v2766_v55 = vld [vmem:[%s3548_s1 + $0x1c0] ss:$20 sps:$4 sm:$0xff]   ;;  %v2767_v56 = vld [vmem:[%s3548_s1 + $0x1e4] ss:$20 sps:$4 sm:$0xff]   ;;  %v2772_v60 = vld [vmem:[%s3548_s1 + $0x1e8] ss:$20 sps:$4 sm:$0xff]   ;;  %v382_v15 = vcombine.high %v3127_v52, %v3127_v52 }
  0x49   :  { %2249 = vmatpush1.bf16.msra.mxu0 %v2723_v18  ;;  %2321 = vmatpush1.bf16.msra.mxu1 %v2724_v19  ;;  %v2769_v57 = vld [vmem:[%s3548_s1 + $0x1ec] ss:$20 sps:$4 sm:$0xff]   ;;  %v2775_v62 = vld [vmem:[%s3548_s1 + $0x214] ss:$20 sps:$4 sm:$0xff]   ;;  %v2778_v0 = vld [vmem:[%s3548_s1 + $0x210] ss:$20 sps:$4 sm:$0xff]  }
  0x4a   :  { %2251 = vmatprep.subr.bf16.mxu0 %v2725_v20  ;;  %2323 = vmatprep.subr.bf16.mxu1 %v2727_v21  ;;  %v3134_v54 = vrot.slane %v3127_v52, %v3116_v49  ;;  %v2771_v59 = vld [vmem:[%s3548_s1 + $0x1e0] ss:$20 sps:$4 sm:$0xff]   ;;  %v2777_v63 = vld [vmem:[%s3548_s1 + $0x208] ss:$20 sps:$4 sm:$0xff]   ;;  %v2783_v3 = vld [vmem:[%s3548_s1 + $0x230] ss:$20 sps:$4 sm:$0xff]   ;;  %v396_v20 = vrot.slane %v382_v15, %v3116_v49 }
  0x4b   :  { %v2773_v61 = vld [vmem:[%s3548_s1 + $0x20c] ss:$20 sps:$4 sm:$0xff]   ;;  %v2779_v1 = vld [vmem:[%s3548_s1 + $0x234] ss:$20 sps:$4 sm:$0xff]   ;;  %v2781_v2 = vld [vmem:[%s3548_s1 + $0x23c] ss:$20 sps:$4 sm:$0xff]  }
  0x4c   :  { %v3147_v58 = vcombine.high %v3134_v54, %v3134_v54  ;;  %v2784_v4 = vld [vmem:[%s3548_s1 + $0x238] ss:$20 sps:$4 sm:$0xff]   ;;  %v2785_v5 = vld [vmem:[%s3548_s1 + $0x25c] ss:$20 sps:$4 sm:$0xff]   ;;  %v2790_v8 = vld [vmem:[%s3548_s1 + $0x260] ss:$20 sps:$4 sm:$0xff]  }
  0x4d   :  { %2253 = vmatpush1.bf16.msra.mxu0 %v2729_v22  ;;  %2325 = vmatpush1.bf16.msra.mxu1 %v2730_v23  ;;  %v2787_v6 = vld [vmem:[%s3548_s1 + $0x264] ss:$20 sps:$4 sm:$0xff]   ;;  %v2794_v10 = vld [vmem:[%s3548_s1 + $0x28c] ss:$20 sps:$4 sm:$0xff]   ;;  %v2796_v12 = vld [vmem:[%s3548_s1 + $0x288] ss:$20 sps:$4 sm:$0xff]  }
  0x4e   :  { %2255 = vmatprep.subr.bf16.mxu0 %v2731_v24  ;;  %2327 = vmatprep.subr.bf16.mxu1 %v2733_v25  ;;  %v2789_v7 = vld [vmem:[%s3548_s1 + $0x258] ss:$20 sps:$4 sm:$0xff]   ;;  %v2793_v11 = vld [vmem:[%s3548_s1 + $0x280] ss:$20 sps:$4 sm:$0xff]   ;;  %v2799_v16 = vld [vmem:[%s3548_s1 + $0x2a8] ss:$20 sps:$4 sm:$0xff]  }
  0x4f   :  { %467 = vmatprep.mubr.f32.mxu0 %v3147_v58  ;;  %609 = vmatprep.mubr.f32.mxu1 %v3147_v58  ;;  %v2791_v9 = vld [vmem:[%s3548_s1 + $0x284] ss:$20 sps:$4 sm:$0xff]   ;;  %v2797_v13 = vld [vmem:[%s3548_s1 + $0x2ac] ss:$20 sps:$4 sm:$0xff]   ;;  %v2800_v14 = vld [vmem:[%s3548_s1 + $0x2b4] ss:$20 sps:$4 sm:$0xff]  }
  0x50   :  { %v2802_v17 = vld [vmem:[%s3548_s1 + $0x2b0] ss:$20 sps:$4 sm:$0xff]   ;;  %v2902_v19 = vmov 0.0   ;;  %v2806_v23 = vld [vmem:[%s3548_s1 + $0x178] ss:$20 sps:$4 sm:$0xff]   ;;  %v2903_v24 = vmov 0.0|0.0  }
  0x51   :  { %2257 = vmatpush1.bf16.msra.mxu0 %v2735_v26  ;;  %2329 = vmatpush1.bf16.msra.mxu1 %v2736_v27  ;;  %v2804_v18 = vld [vmem:[%s3548_s1 + $0x150] ss:$20 sps:$4 sm:$0xff]   ;;  %v2807_v27 = vld [vmem:[%s3548_s1 + $0x38] ss:$20 sps:$4 sm:$0xff]   ;;  %vm2904_vm1 = vmmov 0   ;;  %vm899_vm2 = vcmask 523264  }
  0x52   :  { %2259 = vmatprep.subr.bf16.mxu0 %v2737_v28  ;;  %2331 = vmatprep.subr.bf16.mxu1 %v2739_v29  ;;  %v2805_v21 = vld [vmem:[%s3548_s1 + $0x10] ss:$20 sps:$4 sm:$0xff]   ;;  %v2821_v28 = vld [vmem:[%s3548_s1 + $0x2b8] ss:$20 sps:$4 sm:$0xff]   ;;  %v2808_v29 = vld [vmem:[%s3548_s1 + $0x1a0] ss:$20 sps:$4 sm:$0xff]  }
  0x53   :  { %v2820_v22 = vld [vmem:[%s3548_s1 + $0x290] ss:$20 sps:$4 sm:$0xff]   ;;  %v2810_v37 = vld [vmem:[%s3548_s1 + $0x1c8] ss:$20 sps:$4 sm:$0xff]   ;;  %vm1331_vm3 = vcmask 123904   ;;  %vm1362_vm4 = vcmask 130048  }
  0x54   :  { %v843_v25 = vld [vmem:[#allocation4 + $0x80] sm:$0xff]  ;;  %v844_v26 = vld [vmem:[#allocation4 + $0x88] sm:$0xff]  ;;  %v850_v52 = vld [vmem:[#allocation4 + $0xb8] sm:$0xff]  ;;  %vm1944_vm5 = vcmask 517120  }
  0x55   :  { %2261 = vmatpush1.bf16.msra.mxu0 %v2741_v30  ;;  %2333 = vmatpush1.bf16.msra.mxu1 %v2742_v31  ;;  %v3249_v30 = vpack.c.bf16 %v844_v26, %v843_v25  ;;  %v827_v31 = vld [vmem:[#allocation4] sm:$0xff]  ;;  %v848_v43 = vld [vmem:[#allocation4 + $0xa8] sm:$0xff]  ;;  %v877_v26 = vld [vmem:[#allocation4 + $0x190] sm:$0xff] }
  0x56   :  { %2263 = vmatprep.subr.bf16.mxu0 %v2743_v32  ;;  %2335 = vmatprep.subr.bf16.mxu1 %v2745_v33  ;;  %v828_v32 = vld [vmem:[#allocation4 + $0x8] sm:$0xff]  ;;  %v845_v33 = vld [vmem:[#allocation4 + $0x90] sm:$0xff] }
  0x57   :  { %v3257_v36 = vpack.c.bf16 %v828_v32, %v827_v31  ;;  %v856_v15 = vld [vmem:[#allocation4 + $0xe8] sm:$0xff]  ;;  %v861_v32 = vld [vmem:[#allocation4 + $0x110] sm:$0xff] }
  0x58   :  { %v840_v25 = vld [vmem:[#allocation4 + $0x68] sm:$0xff] }
  0x59   :  { %2265 = vmatpush1.bf16.msra.mxu0 %v2747_v34  ;;  %2337 = vmatpush1.bf16.msra.mxu1 %v2748_v35  ;;  %v846_v34 = vld [vmem:[#allocation4 + $0x98] sm:$0xff] }
  0x5a   :  { %2267 = vmatprep.subr.bf16.mxu0 %v2749_v39  ;;  %2339 = vmatprep.subr.bf16.mxu1 %v2751_v40  ;;  %v2809_v35 = vld [vmem:[%s3548_s1 + $0x60] ss:$20 sps:$4 sm:$0xff]   ;;  %v3263_v38 = vpack.c.bf16 %v846_v34, %v845_v33  ;;  %v879_v34 = vld [vmem:[#allocation4 + $0x1a0] sm:$0xff] }
  0x5b   :  { %v829_v39 = vld [vmem:[#allocation4 + $0x10] sm:$0xff]  ;;  %v830_v40 = vld [vmem:[#allocation4 + $0x18] sm:$0xff] }
  0x5c   :  { %v862_v33 = vld [vmem:[#allocation4 + $0x118] sm:$0xff] }
  0x5d   :  { %2269 = vmatpush1.bf16.msra.mxu0 %v2753_v41  ;;  %2341 = vmatpush1.bf16.msra.mxu1 %v2754_v44  ;;  %v847_v41 = vld [vmem:[#allocation4 + $0xa0] sm:$0xff] }
  0x5e   :  { %2271 = vmatprep.subr.bf16.mxu0 %v2755_v45  ;;  %2343 = vmatprep.subr.bf16.mxu1 %v2757_v46  ;;  %v2811_v44 = vld [vmem:[%s3548_s1 + $0x88] ss:$20 sps:$4 sm:$0xff]   ;;  %v3270_v45 = vpack.c.bf16 %v830_v40, %v829_v39  ;;  %v2812_v46 = vld [vmem:[%s3548_s1 + $0x1f0] ss:$20 sps:$4 sm:$0xff]  }
  0x5f   :  { %v863_v40 = vld [vmem:[#allocation4 + $0x120] sm:$0xff] }
  0x61   :  { %2273 = vmatpush1.bf16.msra.mxu0 %v2759_v47  ;;  %2345 = vmatpush1.bf16.msra.mxu1 %v2760_v48  ;;  %v3276_v47 = vpack.c.bf16 %v848_v43, %v847_v41  ;;  %v831_v48 = vld [vmem:[#allocation4 + $0x20] sm:$0xff]  ;;  %v864_v41 = vld [vmem:[#allocation4 + $0x128] sm:$0xff]  ;;  %v881_v43 = vld [vmem:[#allocation4 + $0x1b0] sm:$0xff] }
  0x62   :  { %2275 = vmatprep.subr.bf16.mxu0 %v2761_v50  ;;  %2347 = vmatprep.subr.bf16.mxu1 %v2763_v51  ;;  %v832_v50 = vld [vmem:[#allocation4 + $0x28] sm:$0xff]  ;;  %v849_v51 = vld [vmem:[#allocation4 + $0xb0] sm:$0xff] }
  0x65   :  { %2277 = vmatpush1.bf16.msra.mxu0 %v2765_v53  ;;  %2349 = vmatpush1.bf16.msra.mxu1 %v2766_v55  ;;  %v2813_v53 = vld [vmem:[%s3548_s1 + $0xb0] ss:$20 sps:$4 sm:$0xff]   ;;  %v3282_v55 = vpack.c.bf16 %v832_v50, %v831_v48  ;;  %v865_v48 = vld [vmem:[#allocation4 + $0x130] sm:$0xff] }
  0x66   :  { %2279 = vmatprep.subr.bf16.mxu0 %v2767_v56  ;;  %2351 = vmatprep.subr.bf16.mxu1 %v2769_v57  ;;  %v2814_v56 = vld [vmem:[%s3548_s1 + $0x218] ss:$20 sps:$4 sm:$0xff]   ;;  %v3288_v57 = vpack.c.bf16 %v850_v52, %v849_v51  ;;  %v866_v50 = vld [vmem:[#allocation4 + $0x138] sm:$0xff] }
  0x67   :  { %v883_v51 = vld [vmem:[#allocation4 + $0x1c0] sm:$0xff]  ;;  %v884_v52 = vld [vmem:[#allocation4 + $0x1c8] sm:$0xff] }
  0x69   :  { %2281 = vmatpush1.bf16.msra.mxu0 %v2771_v59  ;;  %2353 = vmatpush1.bf16.msra.mxu1 %v2772_v60  ;;  %v834_v59 = vld [vmem:[#allocation4 + $0x38] sm:$0xff]  ;;  %v851_v60 = vld [vmem:[#allocation4 + $0xc0] sm:$0xff] }
  0x6a   :  { %2283 = vmatprep.subr.bf16.mxu0 %v2773_v61  ;;  %2355 = vmatprep.subr.bf16.mxu1 %v2775_v62  ;;  %v852_v61 = vld [vmem:[#allocation4 + $0xc8] sm:$0xff] }
  0x6b   :  { %v2815_v62 = vld [vmem:[%s3548_s1 + $0xd8] ss:$20 sps:$4 sm:$0xff]  }
  0x6d   :  { %2285 = vmatpush1.bf16.msra.mxu0 %v2777_v63  ;;  %2357 = vmatpush1.bf16.msra.mxu1 %v2778_v0  ;;  %v2816_v0 = vld [vmem:[%s3548_s1 + $0x240] ss:$20 sps:$4 sm:$0xff]  }
  0x6e   :  { %2287 = vmatprep.subr.bf16.mxu0 %v2779_v1  ;;  %2359 = vmatprep.subr.bf16.mxu1 %v2781_v2  ;;  %v3300_v1 = vpack.c.bf16 %v852_v61, %v851_v60  ;;  %v835_v2 = vld [vmem:[#allocation4 + $0x40] sm:$0xff]  ;;  %v885_v60 = vld [vmem:[#allocation4 + $0x1d0] sm:$0xff]  ;;  %v886_v61 = vld [vmem:[#allocation4 + $0x1d8] sm:$0xff] }
  0x71   :  { %2289 = vmatpush1.bf16.msra.mxu0 %v2783_v3  ;;  %2361 = vmatpush1.bf16.msra.mxu1 %v2784_v4  ;;  %v836_v3 = vld [vmem:[#allocation4 + $0x48] sm:$0xff]  ;;  %v853_v4 = vld [vmem:[#allocation4 + $0xd0] sm:$0xff] }
  0x72   :  { %2291 = vmatprep.subr.bf16.mxu0 %v2785_v5  ;;  %2363 = vmatprep.subr.bf16.mxu1 %v2787_v6  ;;  %v854_v5 = vld [vmem:[#allocation4 + $0xd8] sm:$0xff] }
  0x73   :  { %v2817_v6 = vld [vmem:[%s3548_s1 + $0x100] ss:$20 sps:$4 sm:$0xff]  }
  0x75   :  { %2293 = vmatpush1.bf16.msra.mxu0 %v2789_v7  ;;  %2365 = vmatpush1.bf16.msra.mxu1 %v2790_v8  ;;  %v2818_v7 = vld [vmem:[%s3548_s1 + $0x268] ss:$20 sps:$4 sm:$0xff]   ;;  %v3309_v8 = vpack.c.bf16 %v836_v3, %v835_v2 }
  0x76   :  { %2295 = vmatprep.subr.bf16.mxu0 %v2791_v9  ;;  %2367 = vmatprep.subr.bf16.mxu1 %v2794_v10  ;;  %v875_v9 = vld [vmem:[#allocation4 + $0x180] sm:$0xff]  ;;  %v3312_v10 = vpack.c.bf16 %v854_v5, %v853_v4  ;;  %v869_v2 = vld [vmem:[#allocation4 + $0x150] sm:$0xff]  ;;  %v870_v3 = vld [vmem:[#allocation4 + $0x158] sm:$0xff] }
  0x77   :  { %v887_v4 = vld [vmem:[#allocation4 + $0x1e0] sm:$0xff]  ;;  %v888_v5 = vld [vmem:[#allocation4 + $0x1e8] sm:$0xff] }
  0x78   :  { %468 = vmatmul.mubr.f32.vlgmr.msra.gmra.mrb[0].mxu0 %v3134_v54  ;;  %610 = vmatmul.mubr.f32.vlgmr.msra.gmra.mrb[0].mxu1 %v3134_v54 }
  0x79   :  { %2297 = vmatpush1.bf16.msra.mxu0 %v2793_v11  ;;  %2369 = vmatpush1.bf16.msra.mxu1 %v2796_v12  ;;  %v837_v11 = vld [vmem:[#allocation4 + $0x50] sm:$0xff]  ;;  %v838_v12 = vld [vmem:[#allocation4 + $0x58] sm:$0xff] }
  0x7a   :  { %2299 = vmatprep.subr.bf16.mxu0 %v2797_v13  ;;  %2371 = vmatprep.subr.bf16.mxu1 %v2800_v14  ;;  %v876_v13 = vld [vmem:[#allocation4 + $0x188] sm:$0xff]  ;;  %v855_v14 = vld [vmem:[#allocation4 + $0xe0] sm:$0xff] }
  0x7b   :  { %538 = vmatprep.mubr.f32.mxu0 %v2902_v19  ;;  %680 = vmatprep.mubr.f32.mxu1 %v2902_v19 }
  0x7d   :  { %2301 = vmatpush1.bf16.msra.mxu0 %v2799_v16  ;;  %2373 = vmatpush1.bf16.msra.mxu1 %v2802_v17  ;;  %v2819_v16 = vld [vmem:[%s3548_s1 + $0x128] ss:$20 sps:$4 sm:$0xff]  }
  0x7e   :  { %2375 = vmatprep.subr.bf16.mxu0 %v2804_v18  ;;  %2406 = vmatprep.subr.bf16.mxu1 %v2903_v24  ;;  %v859_v17 = vld [vmem:[#allocation4 + $0x100] sm:$0xff]  ;;  %v3318_v18 = vpack.c.bf16 %v838_v12, %v837_v11  ;;  %v872_v11 = vld [vmem:[#allocation4 + $0x168] sm:$0xff] }
  0x80   :  { %1952 = vmatmul.mubr.msk.f32.vlgmr.msra.gmra.mrb[0].mxu0 %vm400_vm0, %v396_v20  ;;  %1953 = vmatmul.mubr.msk.f32.vlgmr.msra.gmra.mrb[0].mxu1 %vm400_vm0, %v396_v20 }
  0x81   :  { %2377 = vmatpush3.bf16.msra.mxu0 %v2805_v21  ;;  %2408 = vmatpush3.bf16.msra.mxu1 %v2820_v22  ;;  %v860_v21 = vld [vmem:[#allocation4 + $0x108] sm:$0xff]  ;;  %v3323_v22 = vpack.c.bf16 %v856_v15, %v855_v14  ;;  %v890_v14 = vld [vmem:[#allocation4 + $0x1f8] sm:$0xff] }
  0x82   :  { %2379 = vmatprep.subr.bf16.mxu0 %v2806_v23  ;;  %751 = vmatprep.mubr.f32.mxu0 %v3147_v58  ;;  %v833_v58 = vld [vmem:[#allocation4 + $0x30] sm:$0xff]  ;;  %v839_v23 = vld [vmem:[#allocation4 + $0x60] sm:$0xff] }
  0x83   :  { %2409 = vmatprep.subr.bf16.mxu1 %v2903_v24  ;;  %2175 = vmatprep.mubr.msk.f32.mxu1 %vm2904_vm1, %v2902_v19  ;;  %v3294_v63 = vpack.c.bf16 %v834_v59, %v833_v58  ;;  %v867_v58 = vld [vmem:[#allocation4 + $0x140] sm:$0xff]  ;;  %v868_v59 = vld [vmem:[#allocation4 + $0x148] sm:$0xff] }
  0x85   :  { %2381 = vmatpush3.bf16.msra.mxu0 %v2807_v27  ;;  %2411 = vmatpush3.bf16.msra.mxu1 %v2821_v28  ;;  %v878_v27 = vld [vmem:[#allocation4 + $0x198] sm:$0xff]  ;;  %v3325_v28 = vpack.c.bf16 %v860_v21, %v859_v17  ;;  %v873_v21 = vld [vmem:[#allocation4 + $0x170] sm:$0xff] }
  0x86   :  { %2383 = vmatprep.subr.bf16.mxu0 %v2808_v29  ;;  %2413 = vmatprep.subr.bf16.mxu1 %v3249_v30  ;;  %v3328_v29 = vpack.c.bf16 %v840_v25, %v839_v23  ;;  %v3331_v31 = vpack.c.bf16 %v878_v27, %v877_v26  ;;  %v858_v17 = vld [vmem:[#allocation4 + $0xf8] sm:$0xff]  ;;  %v841_v26 = vld [vmem:[#allocation4 + $0x70] sm:$0xff] }
  0x87   :  { %v874_v25 = vld [vmem:[#allocation4 + $0x178] sm:$0xff] }
  0x88   :  { %2176 = vmatmul.mubr.msk.f32.vlgmr.msra.gmra.mrb[2].mxu1 %vm400_vm0, %v396_v20  ;;  %v3320_v20 = vpack.c.bf16 %v876_v13, %v875_v9  ;;  %v871_v9 = vld [vmem:[#allocation4 + $0x160] sm:$0xff]  ;;  %v889_v13 = vld [vmem:[#allocation4 + $0x1f0] sm:$0xff]  ;;  %v842_v27 = vld [vmem:[#allocation4 + $0x78] sm:$0xff] }
  0x89   :  { %2385 = vmatpush3.bf16.msra.mxu0 %v2809_v35  ;;  %2415 = vmatpush3.bf16.msra.mxu1 %v3257_v36  ;;  %v880_v35 = vld [vmem:[#allocation4 + $0x1a8] sm:$0xff]  ;;  %v3367_v12 = vpack.c.bf16 %v872_v11, %v871_v9  ;;  %v3371_v15 = vpack.c.bf16 %v890_v14, %v889_v13  ;;  %v893_v11 = vld [vmem:[#allocation4 + $0x210] sm:$0xff]  ;;  %v894_v13 = vld [vmem:[#allocation4 + $0x218] sm:$0xff] }
  0x8a   :  { %2387 = vmatprep.subr.bf16.mxu0 %v2810_v37  ;;  %2417 = vmatprep.subr.bf16.mxu1 %v3263_v38  ;;  %v3336_v37 = vpack.c.bf16 %v862_v33, %v861_v32  ;;  %v3340_v39 = vpack.c.bf16 %v880_v35, %v879_v34  ;;  %v3376_v32 = vpack.c.bf16 %v874_v25, %v873_v21  ;;  %v3386_v34 = vsub.s32 2, %v3098_v42  ;;  %v896_v21 = vld [vmem:[#allocation4 + $0x228] sm:$0xff] }
  0x8b   :  { %v3378_v33 = vpack.c.bf16 %v842_v27, %v841_v26  ;;  %v3389_v35 = vsub.s32 1, %v3098_v42  ;;  %v898_v27 = vld [vmem:[#allocation4 + $0x238] sm:$0xff] }
  0x8d   :  { %2389 = vmatpush3.bf16.msra.mxu0 %v2811_v44  ;;  %2419 = vmatpush3.bf16.msra.mxu1 %v3270_v45  ;;  %v882_v44 = vld [vmem:[#allocation4 + $0x1b8] sm:$0xff] }
  0x8e   :  { %2391 = vmatprep.subr.bf16.mxu0 %v2812_v46  ;;  %2421 = vmatprep.subr.bf16.mxu1 %v3276_v47  ;;  %v3343_v46 = vpack.c.bf16 %v864_v41, %v863_v40  ;;  %v3392_v40 = vsub.s32 3, %v3098_v42  ;;  %v3395_v41 = vsub.s32 0, %v3098_v42 }
  0x91   :  { %2393 = vmatpush3.bf16.msra.mxu0 %v2813_v53  ;;  %2423 = vmatpush3.bf16.msra.mxu1 %v3282_v55  ;;  %v3349_v53 = vpack.c.bf16 %v866_v50, %v865_v48 }
  0x92   :  { %2395 = vmatprep.subr.bf16.mxu0 %v2814_v56  ;;  %2425 = vmatprep.subr.bf16.mxu1 %v3288_v57  ;;  %v3352_v56 = vpack.c.bf16 %v884_v52, %v883_v51  ;;  %v891_v51 = vld [vmem:[#allocation4 + $0x200] sm:$0xff]  ;;  %v892_v52 = vld [vmem:[#allocation4 + $0x208] sm:$0xff] }
  0x95   :  { %2397 = vmatpush3.bf16.msra.mxu0 %v2815_v62  ;;  %2427 = vmatpush3.bf16.msra.mxu1 %v3294_v63  ;;  %v3355_v62 = vpack.c.bf16 %v868_v59, %v867_v58 }
  0x96   :  { %2399 = vmatprep.subr.bf16.mxu0 %v2816_v0  ;;  %2429 = vmatprep.subr.bf16.mxu1 %v3300_v1  ;;  %v3358_v0 = vpack.c.bf16 %v886_v61, %v885_v60 }
  0x99   :  { %2401 = vmatpush3.bf16.msra.mxu0 %v2817_v6  ;;  %2431 = vmatpush3.bf16.msra.mxu1 %v3309_v8  ;;  %v3361_v6 = vpack.c.bf16 %v870_v3, %v869_v2 }
  0x9a   :  { %2403 = vmatprep.subr.bf16.mxu0 %v2818_v7  ;;  %2433 = vmatprep.subr.bf16.mxu1 %v3312_v10  ;;  %v3364_v7 = vpack.c.bf16 %v888_v5, %v887_v4  ;;  %v3413_v5 = vpack.c.bf16 %v892_v52, %v891_v51 }
  0x9d   :  { %2405 = vmatpush3.bf16.msra.mxu0 %v2819_v16  ;;  %2435 = vmatpush3.bf16.msra.mxu1 %v3318_v18  ;;  %v857_v16 = vld [vmem:[#allocation4 + $0xf0] sm:$0xff] }
  0x9e   :  { %2445 = vmatprep.subr.bf16.mxu0 %v3320_v20  ;;  %2437 = vmatprep.subr.bf16.mxu1 %v3323_v22  ;;  %v3373_v23 = vpack.c.bf16 %v858_v17, %v857_v16  ;;  %v3425_v16 = vpack.c.bf16 %v894_v13, %v893_v11  ;;  %v895_v17 = vld [vmem:[#allocation4 + $0x220] sm:$0xff] }
  0xa0   :  { %752 = vmatmul.mubr.f32.vlgmr.msra.gmra.mrb[2].mxu0 %v3134_v54  ;;  %v3346_v54 = vpack.c.bf16 %v882_v44, %v881_v43  ;;  %v3397_v43 = vld [vmem:[#allocation2] sm:$0x1f] }
  0xa1   :  { %2447 = vmatpush3.bf16.msra.mxu0 %v3325_v28  ;;  %2439 = vmatpush3.bf16.msra.mxu1 %v3328_v29  ;;  %v367_v44 = vrot.slane %v3397_v43, %v3386_v34  ;;  %v371_v48 = vrot.slane %v3397_v43, %v3392_v40  ;;  %v359_v50 = vrot.slane %v3397_v43, %v3395_v41 }
  0xa2   :  { %2449 = vmatprep.subr.bf16.mxu0 %v3331_v31  ;;  %2441 = vmatprep.subr.bf16.mxu1 %v3373_v23 }
  0xa5   :  { %2451 = vmatpush3.bf16.msra.mxu0 %v3336_v37  ;;  %2443 = vmatpush3.bf16.msra.mxu1 %v3378_v33 }
  0xa6   :  { %2453 = vmatprep.subr.bf16.mxu0 %v3340_v39  ;;  %2476 = vmatprep.subr.bf16.mxu1 %v2903_v24 }
  0xa9   :  { %2455 = vmatpush3.bf16.msra.mxu0 %v3343_v46 }
  0xaa   :  { %2457 = vmatprep.subr.bf16.mxu0 %v3346_v54 }
  0xad   :  { %2459 = vmatpush3.bf16.msra.mxu0 %v3349_v53 }
  0xae   :  { %2461 = vmatprep.subr.bf16.mxu0 %v3352_v56 }
  0xb1   :  { %2463 = vmatpush3.bf16.msra.mxu0 %v3355_v62 }
  0xb2   :  { %2465 = vmatprep.subr.bf16.mxu0 %v3358_v0 }
  0xb5   :  { %2467 = vmatpush3.bf16.msra.mxu0 %v3361_v6 }
  0xb6   :  { %2469 = vmatprep.subr.bf16.mxu0 %v3364_v7 }
  0xb9   :  { %2471 = vmatpush3.bf16.msra.mxu0 %v3367_v12 }
  0xba   :  { %2473 = vmatprep.subr.bf16.mxu0 %v3371_v15 }
  0xbd   :  { %2475 = vmatpush3.bf16.msra.mxu0 %v3376_v32 }
  0xbe   :  { %2521 = vmatprep.subr.bf16.mxu0 %v3320_v20  ;;  %v363_v20 = vrot.slane %v3397_v43, %v3389_v35 }
 0x153   :  { %v540_v58 = vpop.f32.mrb[0].mxu0  ;;  %v682_v59 = vpop.f32.mrb[0].mxu1 }
 0x154   :  { %v3407_v60 = vadd.f32 %v682_v59, %v367_v44  ;;  %v542_v61 = vpop.f32.mrb[1].mxu0  ;;  %v684_v2 = vpop.f32.mrb[1].mxu1  ;;  %v3415_v9 = vadd.f32 %v540_v58, %v359_v50 }
 0x155   :  { %v3409_v3 = vadd.f32 %v542_v61, %v363_v20  ;;  %v3411_v4 = vadd.f32 %v684_v2, %v371_v48  ;;  %v1354_v2 = vld [vmem:[#allocation6 + $0x10] sm:$0xff] }
 0x157   :  { %967 = vmatprep.mubr.f32.mxu1 %v3409_v3  ;;  %1037 = vmatprep.mubr.f32.mxu0 %v3411_v4  ;;  %v1116_v14 = vmul.f32 %v3411_v4, %v3411_v4 }
 0x158   :  { %968 = vmatmul.mubr.f32.vlgmr.msra.gmra.mrb[4].mxu1 %v3415_v9  ;;  %1038 = vmatmul.mubr.f32.vlgmr.msra.gmra.mrb[4].mxu0 %v3407_v60 }
 0x159   :  { %2523 = vmatpush3.bf16.msra.mxu0 %v3325_v28  ;;  %2478 = vmatpush3.bf16.msra.mxu1 %v3413_v5  ;;  %v2483_v28 = vpack.c.bf16 %v896_v21, %v895_v17  ;;  %v1361_v17 = vld [vmem:[#allocation6 + $0x48] sm:$0xff] }
 0x15a   :  { %2525 = vmatprep.subr.bf16.mxu0 %v3331_v31  ;;  %2479 = vmatprep.subr.bf16.mxu1 %v2903_v24  ;;  %v897_v31 = vld [vmem:[#allocation4 + $0x230] sm:$0xff] }
 0x15b   :  { %1255 = vmatprep.mubr.f32.mxu0 %v1116_v14  ;;  %v823_v25 = vpop.f32.mrb[2].mxu1  ;;  %2194 = vmatprep.mubr.msk.f32.mxu1 %vm2904_vm1, %v2902_v19  ;;  %v2486_v44 = vpack.c.bf16 %v898_v27, %v897_v31 }
 0x15c   :  { %v2177_v26 = vpop.f32.mrb[3].mxu1 }
 0x15d   :  { %2527 = vmatpush3.bf16.msra.mxu0 %v3336_v37  ;;  %2481 = vmatpush3.bf16.msra.mxu1 %v3425_v16  ;;  %v3446_v37 = vsub.s32 4, %v3098_v42 }
 0x15e   :  { %2529 = vmatprep.subr.bf16.mxu0 %v3340_v39  ;;  %2482 = vmatprep.subr.bf16.mxu1 %v2903_v24 }
 0x161   :  { %2531 = vmatpush3.bf16.msra.mxu0 %v3343_v46  ;;  %2484 = vmatpush3.bf16.msra.mxu1 %v2483_v28  ;;  %v375_v46 = vrot.slane %v3397_v43, %v3446_v37 }
 0x162   :  { %2533 = vmatprep.subr.bf16.mxu0 %v3346_v54  ;;  %2485 = vmatprep.subr.bf16.mxu1 %v2903_v24 }
 0x165   :  { %2535 = vmatpush3.bf16.msra.mxu0 %v3349_v53  ;;  %2487 = vmatpush3.bf16.msra.mxu1 %v2486_v44  ;;  %v1115_v53 = vmul.f32 %v3407_v60, %v3407_v60 }
 0x166   :  { %2537 = vmatprep.subr.bf16.mxu0 %v3352_v56  ;;  %2489 = vmatprep.subr.bf16.mxu1 %v3249_v30 }
 0x169   :  { %2539 = vmatpush3.bf16.msra.mxu0 %v3355_v62  ;;  %v1114_v62 = vmul.f32 %v3409_v3, %v3409_v3 }
 0x16a   :  { %2541 = vmatprep.subr.bf16.mxu0 %v3358_v0 }
 0x16d   :  { %2543 = vmatpush3.bf16.msra.mxu0 %v3361_v6 }
 0x16e   :  { %2545 = vmatprep.subr.bf16.mxu0 %v3364_v7 }
 0x171   :  { %2547 = vmatpush3.bf16.msra.mxu0 %v3367_v12 }
 0x172   :  { %2549 = vmatprep.subr.bf16.mxu0 %v3371_v15 }
 0x173   :  { %v1995_v39 = vpop.f32.mrb[2].mxu0 }
 0x174   :  { %v1996_v30 = vpop.f32.mrb[3].mxu0 }
 0x175   :  { %v1997_v54 = vadd.f32 %v1996_v30, %v1995_v39  ;;  %2551 = vmatpush3.bf16.msra.mxu0 %v3376_v32 }
 0x177   :  { %v754_v56 = vadd.f32 %v1997_v54, %v375_v46 }
 0x178   :  { %1256 = vmatmul.mubr.f32.vlgmr.msra.gmra.mrb[6].mxu0 %v1115_v53 }
 0x179   :  { %v3455_v42 = vadd.f32 %v823_v25, %v754_v56  ;;  %1430 = vmatprep.mubr.f32.mxu0 %v2902_v19 }
 0x17b   :  { %2195 = vmatmul.mubr.msk.f32.vlgmr.msra.gmra.mrb[6].mxu1 %vm899_vm2, %v3455_v42 }
 0x17c   :  { %2491 = vmatpush3.bf16.msra.mxu1 %v3257_v36  ;;  %1185 = vmatprep.mubr.f32.mxu1 %v1114_v62  ;;  %v1113_v36 = vmul.f32 %v3415_v9, %v3415_v9 }
 0x17d   :  { %2493 = vmatprep.subr.bf16.mxu1 %v3263_v38  ;;  %v1117_v38 = vmul.f32 %v3455_v42, %v3455_v42 }
 0x180   :  { %2495 = vmatpush3.bf16.msra.mxu1 %v3270_v45  ;;  %v1353_v45 = vld [vmem:[#allocation6 + $0x8] sm:$0xff] }
 0x181   :  { %2497 = vmatprep.subr.bf16.mxu1 %v3276_v47  ;;  %v1358_v47 = vld [vmem:[#allocation6 + $0x30] sm:$0xff] }
 0x184   :  { %2499 = vmatpush3.bf16.msra.mxu1 %v3282_v55  ;;  %v2564_v55 = vpack.c.bf16 %v1358_v47, %v1353_v45 }
 0x185   :  { %2501 = vmatprep.subr.bf16.mxu1 %v3288_v57  ;;  %v1352_v57 = vld [vmem:[#allocation6] sm:$0xff] }
 0x186   :  { %2565 = vmatprep.subr.bf16.mxu0 %v2564_v55 }
 0x188   :  { %2503 = vmatpush3.bf16.msra.mxu1 %v3294_v63  ;;  %v1357_v63 = vld [vmem:[#allocation6 + $0x28] sm:$0xff] }
 0x189   :  { %2505 = vmatprep.subr.bf16.mxu1 %v3300_v1  ;;  %v2566_v1 = vpack.c.bf16 %v1357_v63, %v1352_v57 }
 0x18b   :  { %2567 = vmatpush1.bf16.msra.mxu0 %v2566_v1 }
 0x18c   :  { %2507 = vmatpush3.bf16.msra.mxu1 %v3309_v8  ;;  %v1355_v8 = vld [vmem:[#allocation6 + $0x18] sm:$0xff] }
 0x18d   :  { %2509 = vmatprep.subr.bf16.mxu1 %v3312_v10  ;;  %v1360_v10 = vld [vmem:[#allocation6 + $0x40] sm:$0xff] }
 0x190   :  { %2511 = vmatpush3.bf16.msra.mxu1 %v3318_v18  ;;  %v2568_v18 = vpack.c.bf16 %v1360_v10, %v1355_v8 }
 0x191   :  { %2513 = vmatprep.subr.bf16.mxu1 %v3323_v22 }
 0x192   :  { %2569 = vmatprep.subr.bf16.mxu0 %v2568_v18 }
 0x194   :  { %2515 = vmatpush3.bf16.msra.mxu1 %v3328_v29 }
 0x195   :  { %2517 = vmatprep.subr.bf16.mxu1 %v3373_v23 }
 0x198   :  { %2519 = vmatpush3.bf16.msra.mxu1 %v3378_v33 }
 0x199   :  { %2552 = vmatprep.subr.bf16.mxu1 %v2903_v24 }
 0x19b   :  { %1186 = vmatmul.mubr.f32.vlgmr.msra.gmra.mrb[8].mxu1 %v1113_v36 }
 0x19c   :  { %2554 = vmatpush3.bf16.msra.mxu1 %v3413_v5  ;;  %2213 = vmatprep.mubr.msk.f32.mxu1 %vm2904_vm1, %v2902_v19  ;;  %v1359_v5 = vld [vmem:[#allocation6 + $0x38] sm:$0xff] }
 0x19d   :  { %2555 = vmatprep.subr.bf16.mxu1 %v2903_v24  ;;  %v2570_v13 = vpack.c.bf16 %v1359_v5, %v1354_v2 }
 0x1a0   :  { %2557 = vmatpush3.bf16.msra.mxu1 %v3425_v16  ;;  %v1356_v16 = vld [vmem:[#allocation6 + $0x20] sm:$0xff] }
 0x1a1   :  { %2558 = vmatprep.subr.bf16.mxu1 %v2903_v24  ;;  %v2573_v21 = vpack.c.bf16 %v1361_v17, %v1356_v16 }
 0x1a4   :  { %2560 = vmatpush3.bf16.msra.mxu1 %v2483_v28 }
 0x1a5   :  { %2561 = vmatprep.subr.bf16.mxu1 %v2903_v24 }
 0x1a8   :  { %2563 = vmatpush3.bf16.msra.mxu1 %v2486_v44 }
 0x1a9   :  { %2576 = vmatprep.subr.bf16.mxu1 %v2564_v55 }
 0x1ab   :  { %2214 = vmatmul.mubr.msk.f32.vlgmr.msra.gmra.mrb[10].mxu1 %vm899_vm2, %v1117_v38 }
 0x1ac   :  { %1645 = vmatprep.mubr.f32.mxu1 %v2902_v19  ;;  %2578 = vmatpush1.bf16.msra.mxu1 %v2566_v1 }
 0x1ad   :  { %2583 = vmatprep.subr.bf16.mxu1 %v2903_v24 }
 0x22b   :  { %v2035_v22 = vpop.f32.mrb[4].mxu1  ;;  %v2070_v29 = vpop.f32.mrb[4].mxu0 }
 0x22c   :  { %v2036_v0 = vpop.f32.mrb[5].mxu1  ;;  %v2071_v6 = vpop.f32.mrb[5].mxu0 }
 0x22d   :  { %v2037_v7 = vadd.f32 %v2036_v0, %v2035_v22  ;;  %v2072_v12 = vadd.f32 %v2071_v6, %v2070_v29  ;;  %v1843_v29 = vld [vmem:[%s3552_s5] sm:$0x1f] }
 0x22f   :  { %v1040_v15 = vadd.f32 %v2072_v12, %v2037_v7  ;;  %v1848_v12 = vrot.slane %v1843_v29, %v3395_v41 }
 0x24b   :  { %v2149_v23 = vpop.f32.mrb[6].mxu0 }
 0x24c   :  { %v2150_v32 = vpop.f32.mrb[7].mxu0 }
 0x24d   :  { %v2151_v33 = vadd.f32 %v2150_v32, %v2149_v23 }
 0x24e   :  { %v1109_v43 = vpop.f32.mrb[6].mxu1 }
 0x24f   :  { %v1110_v20 = vadd.f32 %v1109_v43, %v1040_v15  ;;  %v2196_v48 = vpop.f32.mrb[7].mxu1  ;;  %v1856_v15 = vrot.slane %v1843_v29, %v3386_v34 }
 0x250   :  { %v1860_v48 = vrot.slane %v1843_v29, %v3392_v40 }
 0x251   :  { %v1332_v50 = vsel %vm1331_vm3, %v1110_v20, 0.0  ;;  %v1852_v20 = vrot.slane %v1843_v29, %v3389_v35 }
 0x252   :  { %v1333_v51 = vrot.slane %v1332_v50, 4 }
 0x254   :  { %v1334_v52 = vadd.f32 %v1333_v51, %v1332_v50 }
 0x256   :  { %v1335_v58 = vrot.slane %v1334_v52, 2 }
 0x258   :  { %v1336_v59 = vadd.f32 %v1335_v58, %v1334_v52 }
 0x25a   :  { %v1337_v61 = vrot.slane %v1336_v59, 1 }
 0x25c   :  { %v1338_v11 = vadd.f32 %v1337_v61, %v1336_v59 }
 0x25e   :  { %v1339_v14 = vmul.f32 0.013888889, %v1338_v11 }
 0x260   :  { %1957 = vmatmul.mubr.msk.f32.vlgmr.msra.gmra.mrb[8].mxu0 %vm1362_vm4, %v1339_v14  ;;  %v1348_v38 = vmul.f32 %v1339_v14, %v1339_v14 }
 0x261   :  { %2571 = vmatpush1.bf16.msra.mxu0 %v2570_v13  ;;  %1501 = vmatprep.mubr.f32.mxu0 %v2902_v19 }
 0x262   :  { %2572 = vmatprep.subr.bf16.mxu0 %v2903_v24 }
 0x264   :  { %1958 = vmatmul.mubr.msk.f32.vlgmr.msra.gmra.mrb[10].mxu0 %vm1362_vm4, %v1339_v14 }
 0x265   :  { %2574 = vmatpush3.bf16.msra.mxu0 %v2573_v21  ;;  %2220 = vmatprep.mubr.msk.f32.mxu0 %vm2904_vm1, %v2902_v19 }
 0x266   :  { %2580 = vmatprep.subr.bf16.mxu0 %v2568_v18 }
 0x268   :  { %2221 = vmatmul.mubr.msk.f32.vlgmr.msra.gmra.mrb[12].mxu0 %vm1362_vm4, %v1339_v14 }
 0x269   :  { %2582 = vmatpush1.bf16.msra.mxu0 %v2570_v13  ;;  %1716 = vmatprep.mubr.f32.mxu0 %v2902_v19 }
 0x26e   :  { %v2114_v25 = vpop.f32.mrb[8].mxu1 }
 0x26f   :  { %v2115_v26 = vpop.f32.mrb[9].mxu1 }
 0x270   :  { %v2116_v28 = vadd.f32 %v2115_v26, %v2114_v25 }
 0x272   :  { %v1258_v31 = vadd.f32 %v2151_v33, %v2116_v28  ;;  %v1864_v28 = vrot.slane %v1843_v29, %v3446_v37 }
 0x27e   :  { %v1327_v27 = vpop.f32.mrb[10].mxu1 }
 0x27f   :  { %v1328_v44 = vadd.f32 %v1327_v27, %v1258_v31  ;;  %v2215_v39 = vpop.f32.mrb[11].mxu1 }
 0x281   :  { %v1340_v24 = vsel %vm1331_vm3, %v1328_v44, 0.0 }
 0x282   :  { %v1341_v46 = vrot.slane %v1340_v24, 4 }
 0x284   :  { %v1342_v30 = vadd.f32 %v1341_v46, %v1340_v24 }
 0x286   :  { %v1343_v54 = vrot.slane %v1342_v30, 2 }
 0x288   :  { %v1344_v53 = vadd.f32 %v1343_v54, %v1342_v30 }
 0x28a   :  { %v1345_v56 = vrot.slane %v1344_v53, 1 }
 0x28c   :  { %v1346_v62 = vadd.f32 %v1345_v56, %v1344_v53 }
 0x28e   :  { %v1347_v36 = vmul.f32 0.013888889, %v1346_v62 }
 0x290   :  { %v1349_v45 = vsub.f32 %v1347_v36, %v1348_v38 }
 0x292   :  { %v1350_v47 = vadd.f32 1e-05, %v1349_v45 }
 0x294   :  { %2822 = vrsqrt.f32 %v1350_v47 }
 0x29e   :  { %v2823_v55 = vpop.eup %2822 }
 0x29f   :  { %1960 = vmatmul.mubr.msk.f32.vlgmr.msra.gmra.mrb[12].mxu1 %vm1362_vm4, %v2823_v55  ;;  %1961 = vmatmul.mubr.msk.f32.vlgmr.msra.gmra.mrb[14].mxu0 %vm1362_vm4, %v2823_v55 }
 0x2a0   :  { %2585 = vmatpush3.bf16.msra.mxu1 %v2573_v21  ;;  %2227 = vmatprep.mubr.msk.f32.mxu1 %vm2904_vm1, %v2902_v19  ;;  %v1875_v19 = vld [vmem:[%s3553_s6] sm:$0x1f] }
 0x2a1   :  { %v1880_v33 = vrot.slane %v1875_v19, %v3395_v41  ;;  %v1884_v16 = vrot.slane %v1875_v19, %v3389_v35  ;;  %v1892_v25 = vrot.slane %v1875_v19, %v3392_v40  ;;  %v1896_v35 = vrot.slane %v1875_v19, %v3446_v37 }
 0x2a3   :  { %2228 = vmatmul.mubr.msk.f32.vlgmr.msra.gmra.mrb[14].mxu1 %vm1362_vm4, %v2823_v55 }
 0x333   :  { %v1432_v57 = vpop.f32.mrb[8].mxu0 }
 0x334   :  { %v1434_v63 = vpop.f32.mrb[9].mxu0  ;;  %v1796_v22 = vrot.slane %v1432_v57, %v3395_v41 }
 0x335   :  { %v1800_v6 = vrot.slane %v1434_v63, %v3395_v41 }
 0x336   :  { %v1813_v23 = vsub.f32 %v3415_v9, %v1796_v22 }
 0x337   :  { %v1503_v1 = vpop.f32.mrb[10].mxu0  ;;  %v1814_v9 = vsub.f32 %v3409_v3, %v1800_v6 }
 0x338   :  { %v1505_v8 = vpop.f32.mrb[11].mxu0  ;;  %v1804_v0 = vrot.slane %v1503_v1, %v3395_v41 }
 0x339   :  { %v1808_v7 = vrot.slane %v1505_v8, %v3395_v41 }
 0x33a   :  { %v1815_v50 = vsub.f32 %v3407_v60, %v1804_v0  ;;  %v1888_v60 = vrot.slane %v1875_v19, %v3386_v34 }
 0x33b   :  { %v1574_v10 = vpop.f32.mrb[12].mxu0  ;;  %v1816_v2 = vsub.f32 %v3411_v4, %v1808_v7 }
 0x33c   :  { %v2222_v18 = vpop.f32.mrb[13].mxu0  ;;  %v1812_v51 = vrot.slane %v1574_v10, %v3395_v41 }
 0x33e   :  { %v1817_v3 = vsub.f32 %v3455_v42, %v1812_v51 }
 0x372   :  { %v1647_v32 = vpop.f32.mrb[12].mxu1  ;;  %v1718_v43 = vpop.f32.mrb[14].mxu0 }
 0x373   :  { %v1821_v52 = vrot.slane %v1647_v32, %v3395_v41  ;;  %v1829_v58 = vrot.slane %v1718_v43, %v3395_v41  ;;  %v1649_v59 = vpop.f32.mrb[13].mxu1  ;;  %v1720_v61 = vpop.f32.mrb[15].mxu0 }
 0x374   :  { %v1825_v5 = vrot.slane %v1649_v59, %v3395_v41  ;;  %v1833_v11 = vrot.slane %v1720_v61, %v3395_v41 }
 0x375   :  { %v1838_v13 = vmul.f32 %v1821_v52, %v1813_v23  ;;  %v1840_v14 = vmul.f32 %v1829_v58, %v1815_v50 }
 0x376   :  { %v1839_v17 = vmul.f32 %v1825_v5, %v1814_v9  ;;  %v1841_v21 = vmul.f32 %v1833_v11, %v1816_v2  ;;  %v1789_v26 = vpop.f32.mrb[14].mxu1 }
 0x377   :  { %v1870_v4 = vmul.f32 %v1848_v12, %v1838_v13  ;;  %v1872_v31 = vmul.f32 %v1856_v15, %v1840_v14  ;;  %v1837_v27 = vrot.slane %v1789_v26, %v3395_v41  ;;  %v2229_v44 = vpop.f32.mrb[15].mxu1 }
 0x378   :  { %v1871_v39 = vmul.f32 %v1852_v20, %v1839_v17  ;;  %v1873_v24 = vmul.f32 %v1860_v48, %v1841_v21 }
 0x379   :  { %v1902_v46 = vadd.f32 %v1880_v33, %v1870_v4  ;;  %v1904_v34 = vadd.f32 %v1888_v60, %v1872_v31  ;;  %v1842_v30 = vmul.f32 %v1837_v27, %v1817_v3 }
 0x37a   :  { %v1903_v54 = vadd.f32 %v1884_v16, %v1871_v39  ;;  %v1905_v53 = vadd.f32 %v1892_v25, %v1873_v24 }
 0x37b   :  { %v1907_v40 = vmax.f32 %v1902_v46, 0.0  ;;  %v1909_v56 = vmax.f32 %v1904_v34, 0.0  ;;  %v1874_v62 = vmul.f32 %v1864_v28, %v1842_v30 }
 0x37c   :  { %v1908_v36 = vmax.f32 %v1903_v54, 0.0  ;;  %v1910_v38 = vmax.f32 %v1905_v53, 0.0 }
 0x37d   :  { %v1906_v42 = vadd.f32 %v1896_v35, %v1874_v62 }
 0x37e   :  { %v1917_v45 = vcombine.low %v1907_v40, %v1908_v36  ;;  %v1918_v47 = vcombine.low %v1909_v56, %v1910_v38 }
 0x37f   :  { %v1911_v55 = vmax.f32 %v1906_v42, 0.0 }
 0x380   :  { %v1925_v41 = vrot.slane %v1917_v45, %v3116_v49  ;;  %v1932_v57 = vrot.slane %v1918_v47, %v3116_v49 }
 0x381   :  { %v1940_v63 = vrot.slane %v1911_v55, %v3116_v49 }
 0x382   :  { %v1933_v1 = vcombine.low %v1925_v41, %v1932_v57 }
 0x383   :  { %1945 = vst.msk [vmem:[%s3554_s7 + $0x8] sm:$0x3] %vm1944_vm5, %v1940_v63 }
 0x384   :  { %1943 = vst [vmem:[%s3554_s7] sm:$0xff] %v1933_v1 }
 0x385   :  { %1950 = vsyncpa [#allocation3], 1 }
 0x386   :  { %1951 = vsyncpa [#allocation5], 1 }

// kernel: _lambda_.4
= control target key start
LH: loop header
LB: loop body
LE: loop exit
PB: predicated region body
PF: predicated region fallthrough
CT: control target
= control target key end

     0   :  { %12 = vsyncpa [#allocation3], 0  ;;  %s1683_s0 = inlined_call_operand.hbm [shape: f32[2,10], index: 0, kind: input, shape index: {}]   ;;  %s1684_s1 = inlined_call_operand.hbm [shape: bf16[10,288], index: 1, kind: input, shape index: {}]   ;;  %s1685_s2 = inlined_call_operand.hbm [shape: f32[1,288], index: 2, kind: input, shape index: {}]   ;;  %s1686_s3 = inlined_call_operand.hbm [shape: f32[288,32], index: 3, kind: input, shape index: {}]   ;;  %s1687_s4 = inlined_call_operand.hbm [shape: f32[32,288], index: 4, kind: input, shape index: {}]   ;;  %s1688_s5 = inlined_call_operand.vmem [shape: f32[1,288], index: 5, kind: input, shape index: {}]   ;;  %s1689_s6 = inlined_call_operand.vmem [shape: f32[1,288], index: 6, kind: input, shape index: {}]   ;;  %s1690_s7 = inlined_call_operand.vmem [shape: f32[2,288], index: 7, kind: output, shape index: {}]  }
   0x1   :  { %13 = vsyncpa [#allocation5], 0 }
   0x2   :  { %14 = vsyncpa [#allocation8], 0  ;;  %s1435_s24 = smov [#allocation4]   ;;  %s1319_s28 = scalar_lea.hbm %s1684_s1, 384 }
   0x3   :  { %s30_s25 = sshll.u32 %s1435_s24, 4  ;;  %p1320_p0 = scmp.ne.s32.totalorder %s1684_s1, %s1319_s28  ;;  %s31_s25 = int_to_ptr.vmem [resolvable:$true] %s30_s25 }
   0x4   :  { %p1323_p1 = scmp.lt.u32.totalorder %s1319_s28, %s1684_s1 }
   0x6   :  { %p1325_p2 = pnand %p1323_p1, %p1320_p0 }
   0x8   :  { %1328 = shalt.err (!%p1325_p2)
}
   0x9   :  { %s1329_s10 = scalar_lea.vmem %s31_s25, 384  ;;  %p1334_p4 = scmp.lt.s32.totalorder %s31_s25, %s31_s25 }
   0xa   :  { %p1330_p3 = scmp.ne.s32.totalorder %s31_s25, %s1329_s10  ;;  %p1335_p5 = scmp.lt.s32.totalorder %s1329_s10, %s1329_s10 }
   0xc   :  { %p1336_p6 = por %p1335_p5, %p1334_p4 }
   0xe   :  { %p1337_p7 = pnand %p1336_p6, %p1330_p3 }
  0x10   :  { %1340 = shalt.err (!%p1337_p7)
}
  0x11   :  { %s1436_s11 = smov 192   ;;  %s1437_s12 = smov 12  }
  0x12   :  { %36 = dma.hbm_to_vmem [thread:$0]  %s1684_s1, 384, %s31_s25, [#allocation5], %s1436_s11, %s1436_s11, %s1437_s12  }
  0x13   :  { %s1438_s15 = smov [#allocation7]   ;;  %s1341_s19 = scalar_lea.hbm %s1686_s3, 4608 }
  0x14   :  { %s52_s16 = sshll.u32 %s1438_s15, 4  ;;  %p1342_p8 = scmp.ne.s32.totalorder %s1686_s3, %s1341_s19  ;;  %s53_s16 = int_to_ptr.vmem [resolvable:$true] %s52_s16 }
  0x15   :  { %p1345_p9 = scmp.lt.u32.totalorder %s1341_s19, %s1686_s3 }
  0x17   :  { %p1347_p10 = pnand %p1345_p9, %p1342_p8 }
  0x19   :  { %1350 = shalt.err (!%p1347_p10)
}
  0x1a   :  { %s1351_s24 = scalar_lea.vmem %s53_s16, 4608  ;;  %p1356_p12 = scmp.lt.s32.totalorder %s53_s16, %s53_s16 }
  0x1b   :  { %p1352_p11 = scmp.ne.s32.totalorder %s53_s16, %s1351_s24  ;;  %p1357_p13 = scmp.lt.s32.totalorder %s1351_s24, %s1351_s24 }
  0x1d   :  { %p1358_p0 = por %p1357_p13, %p1356_p12 }
  0x1f   :  { %p1359_p1 = pnand %p1358_p0, %p1352_p11 }
  0x21   :  { %1362 = shalt.err (!%p1359_p1)
}
  0x22   :  { %s1439_s1 = smov 128   ;;  %s1440_s25 = smov 8  }
  0x23   :  { %58 = dma.hbm_to_vmem [thread:$0]  %s1686_s3, 4608, %s53_s16, [#allocation8], %s1439_s1, %s1439_s1, %s1440_s25  }
  0x24   :  { %s1441_s28 = smov [#allocation2]   ;;  %s1442_s30 = smov [#allocation6]  }
  0x25   :  { %s21_s29 = sshll.u32 %s1441_s28, 4  ;;  %s43_s8 = sshll.u32 %s1442_s30, 4  ;;  %s22_s29 = int_to_ptr.vmem [resolvable:$true] %s21_s29  ;;  %s44_s8 = int_to_ptr.vmem [resolvable:$true] %s43_s8 }
  0x26   :  { %s1363_s11 = scalar_lea.hbm %s1683_s0, 32 }
  0x27   :  { %p1364_p2 = scmp.ne.s32.totalorder %s1683_s0, %s1363_s11  ;;  %p1367_p3 = scmp.lt.u32.totalorder %s1363_s11, %s1683_s0 }
  0x29   :  { %p1369_p4 = pnand %p1367_p3, %p1364_p2 }
  0x2b   :  { %1372 = shalt.err (!%p1369_p4)
}
  0x2c   :  { %s1373_s3 = scalar_lea.vmem %s22_s29, 32  ;;  %p1378_p6 = scmp.lt.s32.totalorder %s22_s29, %s22_s29 }
  0x2d   :  { %p1374_p5 = scmp.ne.s32.totalorder %s22_s29, %s1373_s3  ;;  %p1379_p7 = scmp.lt.s32.totalorder %s1373_s3, %s1373_s3 }
  0x2f   :  { %p1380_p8 = por %p1379_p7, %p1378_p6 }
  0x31   :  { %p1381_p9 = pnand %p1380_p8, %p1374_p5 }
  0x33   :  { %1384 = shalt.err (!%p1381_p9)
}
  0x34   :  { %24 = dma.hbm_to_vmem [thread:$0]  %s1683_s0, 32, %s22_s29, [#allocation3]  }
  0x35   :  { %s1385_s20 = scalar_lea.hbm %s1685_s2, 48 }
  0x36   :  { %p1386_p10 = scmp.ne.s32.totalorder %s1685_s2, %s1385_s20  ;;  %p1389_p11 = scmp.lt.u32.totalorder %s1385_s20, %s1685_s2 }
  0x38   :  { %p1391_p12 = pnand %p1389_p11, %p1386_p10 }
  0x3a   :  { %1394 = shalt.err (!%p1391_p12)
}
  0x3b   :  { %s1395_s1 = scalar_lea.vmem %s44_s8, 48  ;;  %s1399_s25 = scalar_lea.vmem %s44_s8, 64 }
  0x3c   :  { %p1396_p13 = scmp.ne.s32.totalorder %s44_s8, %s1395_s1  ;;  %p1400_p0 = scmp.lt.s32.totalorder %s44_s8, %s44_s8 }
  0x3d   :  { %p1401_p1 = scmp.lt.s32.totalorder %s1399_s25, %s1395_s1 }
  0x3f   :  { %p1402_p2 = por %p1401_p1, %p1400_p0 }
  0x41   :  { %p1403_p3 = pnand %p1402_p2, %p1396_p13 }
  0x43   :  { %1406 = shalt.err (!%p1403_p3)
}
  0x44   :  { %46 = dma.hbm_to_vmem [thread:$0]  %s1685_s2, 48, %s44_s8, [#allocation5]  }
  0x45   :  { %s1443_s27 = smov [#allocation9]   ;;  %s1407_s9 = scalar_lea.hbm %s1687_s4, 1536 }
  0x46   :  { %s64_s28 = sshll.u32 %s1443_s27, 4  ;;  %p1408_p4 = scmp.ne.s32.totalorder %s1687_s4, %s1407_s9  ;;  %s65_s28 = int_to_ptr.vmem [resolvable:$true] %s64_s28 }
  0x47   :  { %p1411_p5 = scmp.lt.u32.totalorder %s1407_s9, %s1687_s4 }
  0x49   :  { %p1413_p6 = pnand %p1411_p5, %p1408_p4 }
  0x4b   :  { %1416 = shalt.err (!%p1413_p6)
}
  0x4c   :  { %s1417_s14 = scalar_lea.vmem %s65_s28, 1536  ;;  %p1422_p8 = scmp.lt.s32.totalorder %s65_s28, %s65_s28 }
  0x4d   :  { %p1418_p7 = scmp.ne.s32.totalorder %s65_s28, %s1417_s14  ;;  %p1423_p9 = scmp.lt.s32.totalorder %s1417_s14, %s1417_s14 }
  0x4f   :  { %p1424_p10 = por %p1423_p9, %p1422_p8 }
  0x51   :  { %p1425_p11 = pnand %p1424_p10, %p1418_p7 }
  0x53   :  { %1428 = shalt.err (!%p1425_p11)
}
  0x54   :  { %s1444_s2 = smov 384   ;;  %s1445_s8 = smov 24  }
  0x55   :  { %70 = dma.hbm_to_vmem [thread:$0]  %s1687_s4, 1536, %s65_s28, [#allocation8], %s1444_s2, %s1444_s2, %s1445_s8  }
  0x56   :  { %1429 = dma.done.wait [#allocation3], 32  }
  0x57   :  { %1430 = vsyncadd [#allocation3], 4294967264 }
  0x58   :  { %1431 = dma.done.wait [#allocation5], 432  }
  0x59   :  { %1432 = vsyncadd [#allocation5], 4294966864 }
  0x5a   :  { %1433 = dma.done.wait [#allocation8], 6144  }
  0x5b   :  { %1434 = vsyncadd [#allocation8], 4294961152  ;;  %v1446_v0 = vmov 0.0|0.0   ;;  %vm1447_vm0 = vmmov 0   ;;  %v1448_v1 = vmov 0.0   ;;  %vm122_vm1 = vcmask 1041408  }
  0x5c   :  { %1186 = vmatprep.subr.bf16.mxu1 %v1446_v0  ;;  %1133 = vmatprep.mubr.msk.f32.mxu1 %vm1447_vm0, %v1448_v1  ;;  %vm1449_vm2 = vmmov 1   ;;  %v1313_v2 = vld [vmem:[#allocation4 + $0x4] ss:$12 sps:$4 sm:$0x1f]   ;;  %v289_v4 = vld [vmem:[#allocation7 + $0x80] sm:$0xff]  ;;  %vm118_vm4 = vcmask 80896   ;;  %v103_v60 = vlaneseq }
  0x5d   :  { %196 = vmatprep.mubr.f32.mxu0 %v1448_v1  ;;  %vm1181_vm3 = vmpackc.low %vm122_vm1, %vm1449_vm2  ;;  %v1315_v3 = vld [vmem:[#allocation4] ss:$12 sps:$4 sm:$0x1f]   ;;  %v1316_v5 = vld [vmem:[#allocation4 + $0x8] ss:$12 sps:$4 sm:$0x1f]  }
  0x5e   :  { %1182 = vmatprep.subr.msk.bf16.mxu0 %vm1181_vm3, %v1313_v2  ;;  %v290_v6 = vld [vmem:[#allocation7 + $0x88] sm:$0xff]  ;;  %v90_v7 = vld [vmem:[#allocation2] sm:$0x3]  ;;  %1189 = vmatpush3.bf16.msk.msra.mxu1 %vm1181_vm3, %v1316_v5  ;;  %v291_v12 = vld [vmem:[#allocation7 + $0x90] sm:$0xff]  ;;  %v1596_v61 = vshrl.u32 %v103_v60, 7  ;;  %vm309_vm5 = vcmask 261120  }
  0x5f   :  { %1185 = vmatpush1.bf16.msk.msra.mxu0 %vm1181_vm3, %v1315_v3  ;;  %v1190_v8 = vpack.c.bf16 %v290_v6, %v289_v4  ;;  %v273_v9 = vld [vmem:[#allocation7] sm:$0xff]  ;;  %v274_v10 = vld [vmem:[#allocation7 + $0x8] sm:$0xff]  ;;  %v292_v13 = vld [vmem:[#allocation7 + $0x98] sm:$0xff]  ;;  %1222 = vmatprep.subr.bf16.mxu1 %v1446_v0  ;;  %vm599_vm6 = vcmask 254976   ;;  %vm1013_vm7 = vcmask 1043458   ;;  %vm1015_vm9 = vcmask 259076  }
  0x60   :  { %v1556_v11 = vpack.c.bf16 %v274_v10, %v273_v9  ;;  %v275_v14 = vld [vmem:[#allocation7 + $0x10] sm:$0xff]  ;;  %v1558_v15 = vpack.c.bf16 %v292_v13, %v291_v12  ;;  %v276_v16 = vld [vmem:[#allocation7 + $0x18] sm:$0xff]  ;;  %v293_v17 = vld [vmem:[#allocation7 + $0xa0] sm:$0xff]  ;;  %v1599_v62 = vsub.s32 0, %v1596_v61  ;;  %v1602_v63 = vsub.s32 2, %v1596_v61 }
  0x61   :  { %1191 = vmatprep.subr.bf16.mxu0 %v1190_v8  ;;  %v294_v18 = vld [vmem:[#allocation7 + $0xa8] sm:$0xff]  ;;  %1134 = vmatmul.mubr.msk.f32.vlgmr.msra.gmra.mrb[0].mxu1 %vm118_vm4, %v90_v7  ;;  %v1564_v19 = vpack.c.bf16 %v276_v16, %v275_v14  ;;  %v277_v21 = vld [vmem:[#allocation7 + $0x20] sm:$0xff]  ;;  %v295_v23 = vld [vmem:[#allocation7 + $0xb0] sm:$0xff]  ;;  %v1605_v2 = vsub.s32 1, %v1596_v61 }
  0x62   :  { %1027 = vmatmul.mubr.msk.f32.vlgmr.msra.gmra.mrb[0].mxu0 %vm118_vm4, %v90_v7  ;;  %v1567_v20 = vpack.c.bf16 %v294_v18, %v293_v17  ;;  %v278_v22 = vld [vmem:[#allocation7 + $0x28] sm:$0xff]  ;;  %1144 = vmatprep.mubr.msk.f32.mxu1 %vm1447_vm0, %v1448_v1  ;;  %v296_v24 = vld [vmem:[#allocation7 + $0xb8] sm:$0xff]  ;;  %v305_v25 = vld [vmem:[#allocation7 + $0x100] sm:$0xff] }
  0x63   :  { %1193 = vmatpush3.bf16.msra.mxu0 %v1556_v11  ;;  %v1572_v26 = vpack.c.bf16 %v278_v22, %v277_v21  ;;  %v306_v27 = vld [vmem:[#allocation7 + $0x108] sm:$0xff]  ;;  %v1575_v28 = vpack.c.bf16 %v296_v24, %v295_v23  ;;  %v279_v29 = vld [vmem:[#allocation7 + $0x30] sm:$0xff]  ;;  %v280_v30 = vld [vmem:[#allocation7 + $0x38] sm:$0xff] }
  0x64   :  { %1195 = vmatprep.subr.bf16.mxu0 %v1558_v15  ;;  %v1577_v31 = vpack.c.bf16 %v306_v27, %v305_v25  ;;  %v307_v32 = vld [vmem:[#allocation7 + $0x110] sm:$0xff]  ;;  %v297_v33 = vld [vmem:[#allocation7 + $0xc0] sm:$0xff]  ;;  %v298_v34 = vld [vmem:[#allocation7 + $0xc8] sm:$0xff]  ;;  %v1583_v37 = vpack.c.bf16 %v280_v30, %v279_v29 }
  0x65   :  { %v308_v35 = vld [vmem:[#allocation7 + $0x118] sm:$0xff]  ;;  %v1587_v38 = vpack.c.bf16 %v298_v34, %v297_v33  ;;  %v281_v39 = vld [vmem:[#allocation7 + $0x40] sm:$0xff]  ;;  %v282_v40 = vld [vmem:[#allocation7 + $0x48] sm:$0xff] }
  0x66   :  { %1224 = vmatpush3.bf16.msra.mxu1 %v1577_v31  ;;  %v1580_v36 = vpack.c.bf16 %v308_v35, %v307_v32  ;;  %v299_v41 = vld [vmem:[#allocation7 + $0xd0] sm:$0xff]  ;;  %v300_v42 = vld [vmem:[#allocation7 + $0xd8] sm:$0xff]  ;;  %v1591_v43 = vpack.c.bf16 %v282_v40, %v281_v39  ;;  %v301_v47 = vld [vmem:[#allocation7 + $0xe0] sm:$0xff] }
  0x67   :  { %1197 = vmatpush3.bf16.msra.mxu0 %v1564_v19  ;;  %1225 = vmatprep.subr.bf16.mxu1 %v1446_v0  ;;  %v1210_v44 = vpack.c.bf16 %v300_v42, %v299_v41  ;;  %v283_v45 = vld [vmem:[#allocation7 + $0x50] sm:$0xff]  ;;  %v284_v46 = vld [vmem:[#allocation7 + $0x58] sm:$0xff]  ;;  %v302_v48 = vld [vmem:[#allocation7 + $0xe8] sm:$0xff] }
  0x68   :  { %1199 = vmatprep.subr.bf16.mxu0 %v1567_v20  ;;  %v1212_v49 = vpack.c.bf16 %v284_v46, %v283_v45  ;;  %v1214_v50 = vpack.c.bf16 %v302_v48, %v301_v47  ;;  %v285_v51 = vld [vmem:[#allocation7 + $0x60] sm:$0xff]  ;;  %v286_v52 = vld [vmem:[#allocation7 + $0x68] sm:$0xff]  ;;  %v303_v54 = vld [vmem:[#allocation7 + $0xf0] sm:$0xff] }
  0x69   :  { %v1216_v53 = vpack.c.bf16 %v286_v52, %v285_v51  ;;  %v304_v55 = vld [vmem:[#allocation7 + $0xf8] sm:$0xff]  ;;  %v287_v57 = vld [vmem:[#allocation7 + $0x70] sm:$0xff]  ;;  %v621_v17 = vld [vmem:[#allocation9 + $0x8] sm:$0xff] }
  0x6a   :  { %1227 = vmatpush3.bf16.msra.mxu1 %v1580_v36  ;;  %v1218_v56 = vpack.c.bf16 %v304_v55, %v303_v54  ;;  %v288_v58 = vld [vmem:[#allocation7 + $0x78] sm:$0xff]  ;;  %v624_v18 = vld [vmem:[#allocation9 + $0x20] sm:$0xff]  ;;  %v622_v22 = vld [vmem:[#allocation9 + $0x10] sm:$0xff] }
  0x6b   :  { %1201 = vmatpush3.bf16.msra.mxu0 %v1572_v26  ;;  %1229 = vmatprep.subr.bf16.mxu1 %v1190_v8  ;;  %v1220_v59 = vpack.c.bf16 %v288_v58, %v287_v57  ;;  %v101_v3 = vld [vmem:[#allocation6] sm:$0x7]  ;;  %v625_v24 = vld [vmem:[#allocation9 + $0x28] sm:$0xff]  ;;  %v630_v27 = vld [vmem:[#allocation9 + $0x50] sm:$0xff] }
  0x6c   :  { %1203 = vmatprep.subr.bf16.mxu0 %v1575_v28  ;;  %v106_v4 = vrot.slane %v101_v3, %v1599_v62  ;;  %v114_v5 = vrot.slane %v101_v3, %v1602_v63  ;;  %v110_v6 = vrot.slane %v101_v3, %v1605_v2  ;;  %v623_v21 = vld [vmem:[#allocation9 + $0x18] sm:$0xff]  ;;  %v1275_v25 = vpack.c.bf16 %v625_v24, %v622_v22  ;;  %v626_v29 = vld [vmem:[#allocation9 + $0x30] sm:$0xff]  ;;  %v629_v30 = vld [vmem:[#allocation9 + $0x48] sm:$0xff] }
  0x6d   :  { %v1272_v32 = vpack.c.bf16 %v629_v30, %v626_v29  ;;  %v631_v33 = vld [vmem:[#allocation9 + $0x58] sm:$0xff]  ;;  %v1450_v30 = vmov 1983009808   ;;  %vm1014_vm8 = vmor %vm1013_vm7, %vm122_vm1 }
  0x6e   :  { %vm1016_vm10 = vmor %vm1015_vm9, %vm1014_vm8 }
  0x6f   :  { %1205 = vmatpush3.bf16.msra.mxu0 %v1583_v37 }
  0x70   :  { %1207 = vmatprep.subr.bf16.mxu0 %v1587_v38 }
  0x73   :  { %1209 = vmatpush3.bf16.msra.mxu0 %v1591_v43 }
  0x74   :  { %1211 = vmatprep.subr.bf16.mxu0 %v1210_v44 }
  0x77   :  { %1213 = vmatpush3.bf16.msra.mxu0 %v1212_v49 }
  0x78   :  { %1215 = vmatprep.subr.bf16.mxu0 %v1214_v50 }
  0x7b   :  { %1217 = vmatpush3.bf16.msra.mxu0 %v1216_v53 }
  0x7c   :  { %1219 = vmatprep.subr.bf16.mxu0 %v1218_v56 }
  0x7f   :  { %1221 = vmatpush3.bf16.msra.mxu0 %v1220_v59 }
  0x80   :  { %1260 = vmatprep.subr.bf16.mxu0 %v1446_v0 }
 0x134   :  { %v269_v8 = vpop.f32.mrb[0].mxu1 }
 0x135   :  { %v198_v7 = vpop.f32.mrb[0].mxu0  ;;  %v1612_v12 = vadd.f32 %v269_v8, %v114_v5  ;;  %v1135_v13 = vpop.f32.mrb[1].mxu1 }
 0x136   :  { %v1610_v9 = vadd.f32 %v198_v7, %v106_v4  ;;  %v200_v10 = vpop.f32.mrb[1].mxu0 }
 0x137   :  { %v1614_v14 = vadd.f32 %v200_v10, %v110_v6  ;;  %1145 = vmatmul.mubr.msk.f32.vlgmr.msra.gmra.mrb[2].mxu1 %vm309_vm5, %v1612_v12 }
 0x138   :  { %1231 = vmatpush3.bf16.msra.mxu1 %v1556_v11  ;;  %v455_v11 = vmul.f32 %v1612_v12, %v1612_v12 }
 0x139   :  { %377 = vmatprep.mubr.f32.mxu0 %v1614_v14  ;;  %v454_v16 = vmul.f32 %v1614_v14, %v1614_v14  ;;  %1233 = vmatprep.subr.bf16.mxu1 %v1558_v15  ;;  %v453_v15 = vmul.f32 %v1610_v9, %v1610_v9 }
 0x13a   :  { %378 = vmatmul.mubr.f32.vlgmr.msra.gmra.mrb[2].mxu0 %v1610_v9 }
 0x13b   :  { %1262 = vmatpush3.bf16.msra.mxu0 %v1577_v31  ;;  %1155 = vmatprep.mubr.msk.f32.mxu0 %vm1447_vm0, %v1448_v1  ;;  %v628_v31 = vld [vmem:[#allocation9 + $0x40] sm:$0xff] }
 0x13c   :  { %1263 = vmatprep.subr.bf16.mxu0 %v1446_v0  ;;  %523 = vmatprep.mubr.f32.mxu1 %v454_v16  ;;  %v1278_v34 = vpack.c.bf16 %v631_v33, %v628_v31  ;;  %v998_v31 = vunpack.c.l.s4 %v1450_v30 }
 0x13d   :  { %1235 = vmatpush3.bf16.msra.mxu1 %v1564_v19  ;;  %v1266_v19 = vpack.c.bf16 %v624_v18, %v621_v17 }
 0x13e   :  { %1237 = vmatprep.subr.bf16.mxu1 %v1567_v20  ;;  %v620_v20 = vld [vmem:[#allocation9] sm:$0xff] }
 0x13f   :  { %1265 = vmatpush3.bf16.msra.mxu0 %v1580_v36  ;;  %v1268_v23 = vpack.c.bf16 %v623_v21, %v620_v20  ;;  %v970_v20 = vld [vmem:[%s1689_s6] sm:$0x7] }
 0x140   :  { %1267 = vmatprep.subr.bf16.mxu0 %v1266_v19 }
 0x141   :  { %1239 = vmatpush3.bf16.msra.mxu1 %v1572_v26  ;;  %v627_v26 = vld [vmem:[#allocation9 + $0x38] sm:$0xff] }
 0x142   :  { %1156 = vmatmul.mubr.msk.f32.vlgmr.msra.gmra.mrb[4].mxu0 %vm309_vm5, %v455_v11  ;;  %1241 = vmatprep.subr.bf16.mxu1 %v1575_v28  ;;  %v1270_v28 = vpack.c.bf16 %v630_v27, %v627_v26 }
 0x143   :  { %699 = vmatprep.mubr.f32.mxu0 %v1448_v1  ;;  %1269 = vmatpush1.bf16.msra.mxu0 %v1268_v23 }
 0x144   :  { %1271 = vmatprep.subr.bf16.mxu0 %v1270_v28 }
 0x145   :  { %1243 = vmatpush3.bf16.msra.mxu1 %v1583_v37 }
 0x146   :  { %1245 = vmatprep.subr.bf16.mxu1 %v1587_v38 }
 0x147   :  { %1273 = vmatpush1.bf16.msra.mxu0 %v1272_v32 }
 0x148   :  { %1281 = vmatprep.subr.bf16.mxu0 %v1266_v19 }
 0x149   :  { %1247 = vmatpush3.bf16.msra.mxu1 %v1591_v43 }
 0x14a   :  { %1249 = vmatprep.subr.bf16.mxu1 %v1210_v44 }
 0x14d   :  { %1251 = vmatpush3.bf16.msra.mxu1 %v1212_v49 }
 0x14e   :  { %1253 = vmatprep.subr.bf16.mxu1 %v1214_v50 }
 0x151   :  { %1255 = vmatpush3.bf16.msra.mxu1 %v1216_v53 }
 0x152   :  { %1257 = vmatprep.subr.bf16.mxu1 %v1218_v56 }
 0x155   :  { %1259 = vmatpush3.bf16.msra.mxu1 %v1220_v59 }
 0x156   :  { %1274 = vmatprep.subr.bf16.mxu1 %v1446_v0 }
 0x158   :  { %524 = vmatmul.mubr.f32.vlgmr.msra.gmra.mrb[4].mxu1 %v453_v15  ;;  %v950_v15 = vld [vmem:[%s1688_s5] sm:$0x7] }
 0x159   :  { %1166 = vmatprep.mubr.msk.f32.mxu1 %vm1447_vm0, %v1448_v1  ;;  %1276 = vmatpush3.bf16.msra.mxu1 %v1275_v25  ;;  %v955_v19 = vrot.slane %v950_v15, %v1599_v62  ;;  %v963_v22 = vrot.slane %v950_v15, %v1602_v63  ;;  %v959_v33 = vrot.slane %v950_v15, %v1605_v2 }
 0x15a   :  { %1277 = vmatprep.subr.bf16.mxu1 %v1446_v0 }
 0x15d   :  { %1279 = vmatpush3.bf16.msra.mxu1 %v1278_v34 }
 0x15e   :  { %1288 = vmatprep.subr.bf16.mxu1 %v1446_v0 }
 0x20a   :  { %v449_v35 = vpop.f32.mrb[2].mxu1 }
 0x20b   :  { %v1146_v36 = vpop.f32.mrb[3].mxu1 }
 0x20d   :  { %v1071_v37 = vpop.f32.mrb[2].mxu0 }
 0x20e   :  { %v1072_v38 = vpop.f32.mrb[3].mxu0 }
 0x20f   :  { %v1073_v39 = vadd.f32 %v1072_v38, %v1071_v37  ;;  %v979_v37 = vrot.slane %v970_v20, %v1605_v2 }
 0x211   :  { %v450_v40 = vadd.f32 %v1073_v39, %v449_v35  ;;  %v975_v35 = vrot.slane %v970_v20, %v1599_v62 }
 0x213   :  { %v600_v41 = vsel %vm599_vm6, %v450_v40, 0.0  ;;  %v999_v40 = vunpack.c.0.s8 %v998_v31 }
 0x214   :  { %v601_v42 = vrot.slane %v600_v41, 4 }
 0x215   :  { %v595_v43 = vpop.f32.mrb[4].mxu0 }
 0x216   :  { %v602_v44 = vadd.f32 %v601_v42, %v600_v41  ;;  %v1157_v45 = vpop.f32.mrb[5].mxu0 }
 0x218   :  { %v603_v46 = vrot.slane %v602_v44, 2 }
 0x21a   :  { %v604_v47 = vadd.f32 %v603_v46, %v602_v44  ;;  %v1002_v46 = vsub.s32 %v999_v40, %v1596_v61 }
 0x21c   :  { %v605_v48 = vrot.slane %v604_v47, 1 }
 0x21e   :  { %v606_v49 = vadd.f32 %v605_v48, %v604_v47 }
 0x220   :  { %v607_v50 = vmul.f32 0.055555556, %v606_v49 }
 0x222   :  { %1032 = vmatmul.mubr.msk.f32.vlgmr.msra.gmra.mrb[6].mxu0 %vm309_vm5, %v607_v50  ;;  %1167 = vmatmul.mubr.msk.f32.vlgmr.msra.gmra.mrb[6].mxu1 %vm309_vm5, %v607_v50  ;;  %v616_v4 = vmul.f32 %v607_v50, %v607_v50 }
 0x223   :  { %1283 = vmatpush1.bf16.msra.mxu0 %v1268_v23  ;;  %1290 = vmatpush3.bf16.msra.mxu1 %v1275_v25 }
 0x224   :  { %1285 = vmatprep.subr.bf16.mxu0 %v1270_v28  ;;  %1291 = vmatprep.subr.bf16.mxu1 %v1446_v0 }
 0x225   :  { %843 = vmatprep.mubr.f32.mxu0 %v1448_v1  ;;  %1177 = vmatprep.mubr.msk.f32.mxu1 %vm1447_vm0, %v1448_v1 }
 0x227   :  { %1287 = vmatpush1.bf16.msra.mxu0 %v1272_v32  ;;  %1293 = vmatpush3.bf16.msra.mxu1 %v1278_v34 }
 0x22b   :  { %v1111_v51 = vpop.f32.mrb[4].mxu1 }
 0x22c   :  { %v1112_v52 = vpop.f32.mrb[5].mxu1 }
 0x22d   :  { %v1113_v53 = vadd.f32 %v1112_v52, %v1111_v51 }
 0x22f   :  { %v596_v54 = vadd.f32 %v1113_v53, %v595_v43 }
 0x231   :  { %v608_v55 = vsel %vm599_vm6, %v596_v54, 0.0 }
 0x232   :  { %v609_v56 = vrot.slane %v608_v55, 4 }
 0x234   :  { %v610_v57 = vadd.f32 %v609_v56, %v608_v55 }
 0x236   :  { %v611_v58 = vrot.slane %v610_v57, 2 }
 0x238   :  { %v612_v59 = vadd.f32 %v611_v58, %v610_v57 }
 0x23a   :  { %v613_v60 = vrot.slane %v612_v59, 1 }
 0x23c   :  { %v614_v3 = vadd.f32 %v613_v60, %v612_v59 }
 0x23e   :  { %v615_v0 = vmul.f32 0.055555556, %v614_v3 }
 0x240   :  { %v617_v5 = vsub.f32 %v615_v0, %v616_v4 }
 0x242   :  { %v618_v6 = vadd.f32 1e-05, %v617_v5 }
 0x244   :  { %1317 = vrsqrt.f32 %v618_v6 }
 0x24e   :  { %v1318_v1 = vpop.eup %1317 }
 0x24f   :  { %1034 = vmatmul.mubr.msk.f32.vlgmr.msra.gmra.mrb[8].mxu0 %vm309_vm5, %v1318_v1  ;;  %1178 = vmatmul.mubr.msk.f32.vlgmr.msra.gmra.mrb[8].mxu1 %vm309_vm5, %v1318_v1 }
 0x2f5   :  { %v701_v7 = vpop.f32.mrb[6].mxu0  ;;  %v772_v8 = vpop.f32.mrb[6].mxu1 }
 0x2f6   :  { %v703_v10 = vpop.f32.mrb[7].mxu0  ;;  %v1168_v13 = vpop.f32.mrb[7].mxu1  ;;  %v923_v16 = vrot.slane %v701_v7, %v1599_v62  ;;  %v931_v11 = vrot.slane %v772_v8, %v1599_v62 }
 0x2f7   :  { %v927_v17 = vrot.slane %v703_v10, %v1599_v62 }
 0x2f8   :  { %v932_v23 = vsub.f32 %v1610_v9, %v923_v16  ;;  %v934_v24 = vsub.f32 %v1612_v12, %v931_v11  ;;  %v983_v12 = vrot.slane %v970_v20, %v1602_v63 }
 0x2f9   :  { %v933_v29 = vsub.f32 %v1614_v14, %v927_v17 }
 0x322   :  { %v845_v18 = vpop.f32.mrb[8].mxu0  ;;  %v916_v21 = vpop.f32.mrb[8].mxu1 }
 0x323   :  { %v938_v25 = vrot.slane %v845_v18, %v1599_v62  ;;  %v946_v26 = vrot.slane %v916_v21, %v1599_v62  ;;  %v847_v27 = vpop.f32.mrb[9].mxu0  ;;  %v1179_v28 = vpop.f32.mrb[9].mxu1 }
 0x324   :  { %v942_v32 = vrot.slane %v847_v27, %v1599_v62 }
 0x325   :  { %v947_v34 = vmul.f32 %v938_v25, %v932_v23  ;;  %v949_v9 = vmul.f32 %v946_v26, %v934_v24 }
 0x326   :  { %v948_v36 = vmul.f32 %v942_v32, %v933_v29 }
 0x327   :  { %v967_v38 = vmul.f32 %v955_v19, %v947_v34  ;;  %v969_v39 = vmul.f32 %v963_v22, %v949_v9 }
 0x328   :  { %v968_v41 = vmul.f32 %v959_v33, %v948_v36 }
 0x329   :  { %v987_v14 = vadd.f32 %v975_v35, %v967_v38  ;;  %v989_v42 = vadd.f32 %v983_v12, %v969_v39 }
 0x32a   :  { %v988_v43 = vadd.f32 %v979_v37, %v968_v41 }
 0x32b   :  { %v990_v44 = vmax.f32 %v987_v14, 0.0  ;;  %v992_v45 = vmax.f32 %v989_v42, 0.0 }
 0x32c   :  { %v991_v47 = vmax.f32 %v988_v43, 0.0 }
 0x32d   :  { %v1010_v63 = vrot.slane %v992_v45, %v1002_v46 }
 0x32e   :  { %v996_v62 = vcombine.low %v990_v44, %v991_v47 }
 0x330   :  { %v1003_v48 = vrot.slane %v996_v62, %v1002_v46 }
 0x332   :  { %v1011_v2 = vcombine.low %v1003_v48, %v1010_v63 }
 0x334   :  { %1017 = vst.msk [vmem:[%s1690_s7] sm:$0x3f] %vm1016_vm10, %v1011_v2 }
 0x335   :  { %1022 = vsyncpa [#allocation3], 1 }
 0x336   :  { %1023 = vsyncpa [#allocation5], 1 }
 0x337   :  { %1024 = vsyncpa [#allocation8], 1 }

// kernel: _lambda_.7
= control target key start
LH: loop header
LB: loop body
LE: loop exit
PB: predicated region body
PF: predicated region fallthrough
CT: control target
= control target key end

     0   :  { %v1878_v36 = vlaneseq  ;;  %v6612_v37 = vmov 1983009808   ;;  %vm1976_vm0 = vcmask 588800   ;;  %vm6615_vm1 = vmmov 0   ;;  %s8577_s1 = inlined_call_operand.vmem [shape: bf16[1352,784], index: 1, kind: input, shape index: {}]   ;;  %s8578_s0 = inlined_call_operand.vmem [shape: f32[2,1352], index: 0, kind: input, shape index: {}]   ;;  %s8579_s2 = inlined_call_operand.vmem [shape: f32[1,784], index: 2, kind: input, shape index: {}]   ;;  %s8580_s3 = inlined_call_operand.vmem [shape: f32[2,784], index: 3, kind: output, shape index: {}]  }
   0x1   :  { %v5755_v0 = vld [vmem:[%s8577_s1 + $0x4] ss:$28 sps:$4 sm:$0xff]   ;;  %v5761_v4 = vld [vmem:[%s8577_s1 + $0x3c] ss:$28 sps:$4 sm:$0xff]   ;;  %v5767_v8 = vld [vmem:[%s8577_s1 + $0x74] ss:$28 sps:$4 sm:$0xff]   ;;  %v1918_v38 = vunpack.c.l.s4 %v6612_v37 }
   0x2   :  { %v5757_v1 = vld [vmem:[%s8577_s1 + $0x384] ss:$28 sps:$4 sm:$0xff]   ;;  %3948 = vmatprep.subr.bf16.mxu1 %v5755_v0  ;;  %v5763_v5 = vld [vmem:[%s8577_s1 + $0x3bc] ss:$28 sps:$4 sm:$0xff]   ;;  %v5769_v9 = vld [vmem:[%s8577_s1 + $0x3f4] ss:$28 sps:$4 sm:$0xff]  }
   0x3   :  { %v5759_v2 = vld [vmem:[%s8577_s1] ss:$28 sps:$4 sm:$0xff]   ;;  %4012 = vmatprep.subr.bf16.mxu0 %v5757_v1  ;;  %v5765_v6 = vld [vmem:[%s8577_s1 + $0x38] ss:$28 sps:$4 sm:$0xff]   ;;  %v5771_v10 = vld [vmem:[%s8577_s1 + $0x70] ss:$28 sps:$4 sm:$0xff]   ;;  %v1919_v43 = vunpack.c.0.s8 %v1918_v38 }
   0x4   :  { %v5760_v3 = vld [vmem:[%s8577_s1 + $0x380] ss:$28 sps:$4 sm:$0xff]   ;;  %3950 = vmatpush1.bf16.msra.mxu1 %v5759_v2  ;;  %v5766_v7 = vld [vmem:[%s8577_s1 + $0x3b8] ss:$28 sps:$4 sm:$0xff]   ;;  %v5772_v11 = vld [vmem:[%s8577_s1 + $0x3f0] ss:$28 sps:$4 sm:$0xff]  }
   0x5   :  { %4014 = vmatpush1.bf16.msra.mxu0 %v5760_v3  ;;  %3952 = vmatprep.subr.bf16.mxu1 %v5761_v4  ;;  %v5773_v12 = vld [vmem:[%s8577_s1 + $0xac] ss:$28 sps:$4 sm:$0xff]   ;;  %v5779_v16 = vld [vmem:[%s8577_s1 + $0xe4] ss:$28 sps:$4 sm:$0xff]   ;;  %v5785_v20 = vld [vmem:[%s8577_s1 + $0x11c] ss:$28 sps:$4 sm:$0xff]  }
   0x6   :  { %4016 = vmatprep.subr.bf16.mxu0 %v5763_v5  ;;  %v5775_v13 = vld [vmem:[%s8577_s1 + $0x42c] ss:$28 sps:$4 sm:$0xff]   ;;  %v5781_v17 = vld [vmem:[%s8577_s1 + $0x464] ss:$28 sps:$4 sm:$0xff]   ;;  %v5787_v21 = vld [vmem:[%s8577_s1 + $0x49c] ss:$28 sps:$4 sm:$0xff]  }
   0x7   :  { %v5777_v14 = vld [vmem:[%s8577_s1 + $0xa8] ss:$28 sps:$4 sm:$0xff]   ;;  %v5783_v18 = vld [vmem:[%s8577_s1 + $0xe0] ss:$28 sps:$4 sm:$0xff]   ;;  %v5789_v22 = vld [vmem:[%s8577_s1 + $0x118] ss:$28 sps:$4 sm:$0xff]  }
   0x8   :  { %3954 = vmatpush1.bf16.msra.mxu1 %v5765_v6  ;;  %v5778_v15 = vld [vmem:[%s8577_s1 + $0x428] ss:$28 sps:$4 sm:$0xff]   ;;  %v5784_v19 = vld [vmem:[%s8577_s1 + $0x460] ss:$28 sps:$4 sm:$0xff]   ;;  %v5790_v23 = vld [vmem:[%s8577_s1 + $0x498] ss:$28 sps:$4 sm:$0xff]  }
   0x9   :  { %4018 = vmatpush1.bf16.msra.mxu0 %v5766_v7  ;;  %3956 = vmatprep.subr.bf16.mxu1 %v5767_v8  ;;  %v5791_v24 = vld [vmem:[%s8577_s1 + $0x154] ss:$28 sps:$4 sm:$0xff]   ;;  %v5797_v28 = vld [vmem:[%s8577_s1 + $0x18c] ss:$28 sps:$4 sm:$0xff]   ;;  %v5803_v32 = vld [vmem:[%s8577_s1 + $0x1c4] ss:$28 sps:$4 sm:$0xff]  }
   0xa   :  { %4020 = vmatprep.subr.bf16.mxu0 %v5769_v9  ;;  %v5793_v25 = vld [vmem:[%s8577_s1 + $0x4d4] ss:$28 sps:$4 sm:$0xff]   ;;  %v5799_v29 = vld [vmem:[%s8577_s1 + $0x50c] ss:$28 sps:$4 sm:$0xff]   ;;  %v5805_v33 = vld [vmem:[%s8577_s1 + $0x544] ss:$28 sps:$4 sm:$0xff]  }
   0xb   :  { %v5795_v26 = vld [vmem:[%s8577_s1 + $0x150] ss:$28 sps:$4 sm:$0xff]   ;;  %v5801_v30 = vld [vmem:[%s8577_s1 + $0x188] ss:$28 sps:$4 sm:$0xff]   ;;  %v5807_v34 = vld [vmem:[%s8577_s1 + $0x1c0] ss:$28 sps:$4 sm:$0xff]  }
   0xc   :  { %3958 = vmatpush1.bf16.msra.mxu1 %v5771_v10  ;;  %v5796_v27 = vld [vmem:[%s8577_s1 + $0x4d0] ss:$28 sps:$4 sm:$0xff]   ;;  %v5802_v31 = vld [vmem:[%s8577_s1 + $0x508] ss:$28 sps:$4 sm:$0xff]   ;;  %v5808_v35 = vld [vmem:[%s8577_s1 + $0x540] ss:$28 sps:$4 sm:$0xff]  }
   0xd   :  { %4022 = vmatpush1.bf16.msra.mxu0 %v5772_v11  ;;  %3960 = vmatprep.subr.bf16.mxu1 %v5773_v12  ;;  %v5809_v39 = vld [vmem:[%s8577_s1 + $0x1fc] ss:$28 sps:$4 sm:$0xff]   ;;  %v6753_v42 = vshrl.u32 %v1878_v36, 7  ;;  %v5815_v45 = vld [vmem:[%s8577_s1 + $0x234] ss:$28 sps:$4 sm:$0xff]   ;;  %v1873_v52 = vld [vmem:[%s8578_s0] sm:$0xff] }
   0xe   :  { %4024 = vmatprep.subr.bf16.mxu0 %v5775_v13  ;;  %v5811_v40 = vld [vmem:[%s8577_s1 + $0x57c] ss:$28 sps:$4 sm:$0xff]   ;;  %v5817_v46 = vld [vmem:[%s8577_s1 + $0x5b4] ss:$28 sps:$4 sm:$0xff]   ;;  %v5821_v50 = vld [vmem:[%s8577_s1 + $0x26c] ss:$28 sps:$4 sm:$0xff]   ;;  %v1916_v55 = vcombine.high %v1873_v52, %v1873_v52 }
   0xf   :  { %v5813_v41 = vld [vmem:[%s8577_s1 + $0x1f8] ss:$28 sps:$4 sm:$0xff]   ;;  %v5819_v47 = vld [vmem:[%s8577_s1 + $0x230] ss:$28 sps:$4 sm:$0xff]   ;;  %v6771_v49 = vsub.s32 %v1919_v43, %v6753_v42  ;;  %v5825_v53 = vld [vmem:[%s8577_s1 + $0x268] ss:$28 sps:$4 sm:$0xff]  }
  0x10   :  { %3962 = vmatpush1.bf16.msra.mxu1 %v5777_v14  ;;  %v5814_v44 = vld [vmem:[%s8577_s1 + $0x578] ss:$28 sps:$4 sm:$0xff]   ;;  %v5820_v48 = vld [vmem:[%s8577_s1 + $0x5b0] ss:$28 sps:$4 sm:$0xff]   ;;  %v5826_v56 = vld [vmem:[%s8577_s1 + $0x5e8] ss:$28 sps:$4 sm:$0xff]  }
  0x11   :  { %4026 = vmatpush1.bf16.msra.mxu0 %v5778_v15  ;;  %3964 = vmatprep.subr.bf16.mxu1 %v5779_v16  ;;  %v5823_v51 = vld [vmem:[%s8577_s1 + $0x5ec] ss:$28 sps:$4 sm:$0xff]   ;;  %v6786_v54 = vrot.slane %v1873_v52, %v6771_v49  ;;  %v5827_v57 = vld [vmem:[%s8577_s1 + $0x2a4] ss:$28 sps:$4 sm:$0xff]   ;;  %v6802_v60 = vrot.slane %v1916_v55, %v6771_v49  ;;  %v5833_v0 = vld [vmem:[%s8577_s1 + $0x2dc] ss:$28 sps:$4 sm:$0xff]  }
  0x12   :  { %4028 = vmatprep.subr.bf16.mxu0 %v5781_v17  ;;  %v5829_v58 = vld [vmem:[%s8577_s1 + $0x624] ss:$28 sps:$4 sm:$0xff]   ;;  %v5835_v1 = vld [vmem:[%s8577_s1 + $0x65c] ss:$28 sps:$4 sm:$0xff]   ;;  %v5839_v4 = vld [vmem:[%s8577_s1 + $0x314] ss:$28 sps:$4 sm:$0xff]  }
  0x13   :  { %v6799_v59 = vcombine.high %v6786_v54, %v6786_v54  ;;  %v5831_v61 = vld [vmem:[%s8577_s1 + $0x2a0] ss:$28 sps:$4 sm:$0xff]   ;;  %v6810_v62 = vcombine.high %v6802_v60, %v6802_v60  ;;  %v5837_v2 = vld [vmem:[%s8577_s1 + $0x2d8] ss:$28 sps:$4 sm:$0xff]   ;;  %v5843_v6 = vld [vmem:[%s8577_s1 + $0x310] ss:$28 sps:$4 sm:$0xff]  }
  0x14   :  { %3966 = vmatpush1.bf16.msra.mxu1 %v5783_v18  ;;  %v5832_v63 = vld [vmem:[%s8577_s1 + $0x620] ss:$28 sps:$4 sm:$0xff]   ;;  %v5838_v3 = vld [vmem:[%s8577_s1 + $0x658] ss:$28 sps:$4 sm:$0xff]   ;;  %v5844_v7 = vld [vmem:[%s8577_s1 + $0x690] ss:$28 sps:$4 sm:$0xff]  }
  0x15   :  { %4030 = vmatpush1.bf16.msra.mxu0 %v5784_v19  ;;  %3968 = vmatprep.subr.bf16.mxu1 %v5785_v20  ;;  %v5841_v5 = vld [vmem:[%s8577_s1 + $0x694] ss:$28 sps:$4 sm:$0xff]   ;;  %v5845_v8 = vld [vmem:[%s8577_s1 + $0x34c] ss:$28 sps:$4 sm:$0xff]   ;;  %v5852_v12 = vld [vmem:[%s8577_s1 + $0x704] ss:$28 sps:$4 sm:$0xff]  }
  0x16   :  { %4032 = vmatprep.subr.bf16.mxu0 %v5787_v21  ;;  %2043 = vmatprep.mubr.f32.mxu1 %v6799_v59  ;;  %v5847_v9 = vld [vmem:[%s8577_s1 + $0x6cc] ss:$28 sps:$4 sm:$0xff]   ;;  %v5855_v13 = vld [vmem:[%s8577_s1 + $0x1184] ss:$28 sps:$4 sm:$0xff]   ;;  %v5858_v16 = vld [vmem:[%s8577_s1 + $0x73c] ss:$28 sps:$4 sm:$0xff]  }
  0x17   :  { %2114 = vmatprep.mubr.f32.mxu0 %v6810_v62  ;;  %v5849_v10 = vld [vmem:[%s8577_s1 + $0x348] ss:$28 sps:$4 sm:$0xff]   ;;  %v5854_v14 = vld [vmem:[%s8577_s1 + $0x700] ss:$28 sps:$4 sm:$0xff]   ;;  %v5860_v18 = vld [vmem:[%s8577_s1 + $0x738] ss:$28 sps:$4 sm:$0xff]  }
  0x18   :  { %3970 = vmatpush1.bf16.msra.mxu1 %v5789_v22  ;;  %v5850_v11 = vld [vmem:[%s8577_s1 + $0x6c8] ss:$28 sps:$4 sm:$0xff]   ;;  %v5857_v15 = vld [vmem:[%s8577_s1 + $0x1180] ss:$28 sps:$4 sm:$0xff]   ;;  %v5863_v19 = vld [vmem:[%s8577_s1 + $0x11b8] ss:$28 sps:$4 sm:$0xff]  }
  0x19   :  { %4034 = vmatpush1.bf16.msra.mxu0 %v5790_v23  ;;  %3972 = vmatprep.subr.bf16.mxu1 %v5791_v24  ;;  %v5861_v17 = vld [vmem:[%s8577_s1 + $0x11bc] ss:$28 sps:$4 sm:$0xff]   ;;  %v5864_v20 = vld [vmem:[%s8577_s1 + $0x774] ss:$28 sps:$4 sm:$0xff]   ;;  %v6613_v22 = vmov 0.0   ;;  %vm3727_vm2 = vcmask 1041408  }
  0x1a   :  { %4036 = vmatprep.subr.bf16.mxu0 %v5793_v25  ;;  %v5867_v21 = vld [vmem:[%s8577_s1 + $0x11f4] ss:$28 sps:$4 sm:$0xff]   ;;  %v5870_v25 = vld [vmem:[%s8577_s1 + $0x7ac] ss:$28 sps:$4 sm:$0xff]   ;;  %vm3728_vm3 = vcmask 1043458   ;;  %vm3730_vm5 = vcmask 128004  }
  0x1b   :  { %v5866_v23 = vld [vmem:[%s8577_s1 + $0x770] ss:$28 sps:$4 sm:$0xff]   ;;  %v5882_v38 = vld [vmem:[%s8577_s1 + $0x8] ss:$28 sps:$4 sm:$0xff]   ;;  %v5894_v52 = vld [vmem:[%s8577_s1 + $0x78] ss:$28 sps:$4 sm:$0xff]  }
  0x1c   :  { %3974 = vmatpush1.bf16.msra.mxu1 %v5795_v26  ;;  %v5869_v24 = vld [vmem:[%s8577_s1 + $0x11f0] ss:$28 sps:$4 sm:$0xff]   ;;  %v5897_v55 = vld [vmem:[%s8577_s1 + $0x888] ss:$28 sps:$4 sm:$0xff]   ;;  %vm3729_vm4 = vmor %vm3728_vm3, %vm3727_vm2 }
  0x1d   :  { %4038 = vmatpush1.bf16.msra.mxu0 %v5796_v27  ;;  %3976 = vmatprep.subr.bf16.mxu1 %v5797_v28  ;;  %v5873_v26 = vld [vmem:[%s8577_s1 + $0x122c] ss:$28 sps:$4 sm:$0xff]   ;;  %v686_v27 = vld [vmem:[%s8577_s1 + $0x1260] sm:$0xff]  ;;  %v6903_v28 = vld [vmem:[%s8578_s0 + $0x10] sm:$0x3f] }
  0x1e   :  { %4040 = vmatprep.subr.bf16.mxu0 %v5799_v29  ;;  %v5872_v29 = vld [vmem:[%s8577_s1 + $0x7a8] ss:$28 sps:$4 sm:$0xff]   ;;  %v5889_v43 = vld [vmem:[%s8577_s1 + $0x854] ss:$28 sps:$4 sm:$0xff]   ;;  %vm3731_vm6 = vmor %vm3730_vm5, %vm3729_vm4 }
  0x1f   :  { %v5880_v36 = vld [vmem:[%s8577_s1 + $0xc] ss:$28 sps:$4 sm:$0xff]  }
  0x20   :  { %3978 = vmatpush1.bf16.msra.mxu1 %v5801_v30  ;;  %v5875_v30 = vld [vmem:[%s8577_s1 + $0x1228] ss:$28 sps:$4 sm:$0xff]  }
  0x21   :  { %4042 = vmatpush1.bf16.msra.mxu0 %v5802_v31  ;;  %3980 = vmatprep.subr.bf16.mxu1 %v5803_v32  ;;  %v5876_v31 = vld [vmem:[%s8577_s1 + $0x7e4] ss:$28 sps:$4 sm:$0xff]   ;;  %v1867_v32 = vunpack.c.h.bf16 %v686_v27 }
  0x22   :  { %4044 = vmatprep.subr.bf16.mxu0 %v5805_v33  ;;  %v1950_v33 = vcombine.high %v6903_v28, %v6903_v28 }
  0x24   :  { %3982 = vmatpush1.bf16.msra.mxu1 %v5807_v34  ;;  %v5878_v34 = vld [vmem:[%s8577_s1 + $0x7e0] ss:$28 sps:$4 sm:$0xff]   ;;  %v6923_v37 = vrot.slane %v1950_v33, %v6771_v49  ;;  %v5952_v33 = vld [vmem:[%s8577_s1 + $0x2ac] ss:$28 sps:$4 sm:$0xff]  }
  0x25   :  { %4046 = vmatpush1.bf16.msra.mxu0 %v5808_v35  ;;  %3984 = vmatprep.subr.bf16.mxu1 %v5809_v39  ;;  %v1866_v35 = vunpack.c.l.bf16 %v686_v27  ;;  %v5883_v39 = vld [vmem:[%s8577_s1 + $0x81c] ss:$28 sps:$4 sm:$0xff]   ;;  %v5946_v27 = vld [vmem:[%s8577_s1 + $0x274] ss:$28 sps:$4 sm:$0xff]  }
  0x26   :  { %4048 = vmatprep.subr.bf16.mxu0 %v5811_v40  ;;  %v5886_v40 = vld [vmem:[%s8577_s1 + $0x44] ss:$28 sps:$4 sm:$0xff]  }
  0x28   :  { %3986 = vmatpush1.bf16.msra.mxu1 %v5813_v41  ;;  %v5885_v41 = vld [vmem:[%s8577_s1 + $0x818] ss:$28 sps:$4 sm:$0xff]  }
  0x29   :  { %4050 = vmatpush1.bf16.msra.mxu0 %v5814_v44  ;;  %3988 = vmatprep.subr.bf16.mxu1 %v5815_v45  ;;  %v5888_v44 = vld [vmem:[%s8577_s1 + $0x40] ss:$28 sps:$4 sm:$0xff]   ;;  %v6948_v45 = vld [vmem:[%s8578_s0 + $0x8] sm:$0xff] }
  0x2a   :  { %4052 = vmatprep.subr.bf16.mxu0 %v5817_v46  ;;  %v5892_v46 = vld [vmem:[%s8577_s1 + $0x7c] ss:$28 sps:$4 sm:$0xff]  }
  0x2c   :  { %3990 = vmatpush1.bf16.msra.mxu1 %v5819_v47  ;;  %v6955_v47 = vrot.slane %v6948_v45, %v6771_v49 }
  0x2d   :  { %4054 = vmatpush1.bf16.msra.mxu0 %v5820_v48  ;;  %3992 = vmatprep.subr.bf16.mxu1 %v5821_v50  ;;  %v5891_v48 = vld [vmem:[%s8577_s1 + $0x850] ss:$28 sps:$4 sm:$0xff]  }
  0x2e   :  { %4056 = vmatprep.subr.bf16.mxu0 %v5823_v51  ;;  %v5895_v50 = vld [vmem:[%s8577_s1 + $0x88c] ss:$28 sps:$4 sm:$0xff]   ;;  %v6966_v51 = vcombine.high %v6955_v47, %v6955_v47 }
  0x30   :  { %3994 = vmatpush1.bf16.msra.mxu1 %v5825_v53  ;;  %v5898_v53 = vld [vmem:[%s8577_s1 + $0xb4] ss:$28 sps:$4 sm:$0xff]  }
  0x31   :  { %4058 = vmatpush1.bf16.msra.mxu0 %v5826_v56  ;;  %3996 = vmatprep.subr.bf16.mxu1 %v5827_v57  ;;  %v5901_v56 = vld [vmem:[%s8577_s1 + $0x8c4] ss:$28 sps:$4 sm:$0xff]   ;;  %v5900_v57 = vld [vmem:[%s8577_s1 + $0xb0] ss:$28 sps:$4 sm:$0xff]  }
  0x32   :  { %4060 = vmatprep.subr.bf16.mxu0 %v5829_v58  ;;  %v5904_v58 = vld [vmem:[%s8577_s1 + $0xec] ss:$28 sps:$4 sm:$0xff]  }
  0x34   :  { %3998 = vmatpush1.bf16.msra.mxu1 %v5831_v61  ;;  %v5903_v61 = vld [vmem:[%s8577_s1 + $0x8c0] ss:$28 sps:$4 sm:$0xff]  }
  0x35   :  { %4062 = vmatpush1.bf16.msra.mxu0 %v5832_v63  ;;  %4000 = vmatprep.subr.bf16.mxu1 %v5833_v0  ;;  %v5907_v63 = vld [vmem:[%s8577_s1 + $0x8fc] ss:$28 sps:$4 sm:$0xff]   ;;  %v5906_v0 = vld [vmem:[%s8577_s1 + $0xe8] ss:$28 sps:$4 sm:$0xff]  }
  0x36   :  { %4064 = vmatprep.subr.bf16.mxu0 %v5835_v1  ;;  %v5910_v1 = vld [vmem:[%s8577_s1 + $0x124] ss:$28 sps:$4 sm:$0xff]  }
  0x38   :  { %4002 = vmatpush1.bf16.msra.mxu1 %v5837_v2  ;;  %v5909_v2 = vld [vmem:[%s8577_s1 + $0x8f8] ss:$28 sps:$4 sm:$0xff]  }
  0x39   :  { %4066 = vmatpush1.bf16.msra.mxu0 %v5838_v3  ;;  %4004 = vmatprep.subr.bf16.mxu1 %v5839_v4  ;;  %v5913_v3 = vld [vmem:[%s8577_s1 + $0x934] ss:$28 sps:$4 sm:$0xff]   ;;  %v5912_v4 = vld [vmem:[%s8577_s1 + $0x120] ss:$28 sps:$4 sm:$0xff]  }
  0x3a   :  { %4068 = vmatprep.subr.bf16.mxu0 %v5841_v5  ;;  %v5916_v5 = vld [vmem:[%s8577_s1 + $0x15c] ss:$28 sps:$4 sm:$0xff]  }
  0x3c   :  { %4006 = vmatpush1.bf16.msra.mxu1 %v5843_v6  ;;  %v5915_v6 = vld [vmem:[%s8577_s1 + $0x930] ss:$28 sps:$4 sm:$0xff]  }
  0x3d   :  { %4070 = vmatpush1.bf16.msra.mxu0 %v5844_v7  ;;  %4008 = vmatprep.subr.bf16.mxu1 %v5845_v8  ;;  %v5919_v7 = vld [vmem:[%s8577_s1 + $0x96c] ss:$28 sps:$4 sm:$0xff]   ;;  %v5918_v8 = vld [vmem:[%s8577_s1 + $0x158] ss:$28 sps:$4 sm:$0xff]  }
  0x3e   :  { %4072 = vmatprep.subr.bf16.mxu0 %v5847_v9  ;;  %v5922_v9 = vld [vmem:[%s8577_s1 + $0x194] ss:$28 sps:$4 sm:$0xff]  }
  0x40   :  { %4010 = vmatpush1.bf16.msra.mxu1 %v5849_v10  ;;  %v5921_v10 = vld [vmem:[%s8577_s1 + $0x968] ss:$28 sps:$4 sm:$0xff]  }
  0x41   :  { %4074 = vmatpush1.bf16.msra.mxu0 %v5850_v11  ;;  %4268 = vmatprep.subr.bf16.mxu1 %v5855_v13  ;;  %v5925_v11 = vld [vmem:[%s8577_s1 + $0x9a4] ss:$28 sps:$4 sm:$0xff]   ;;  %v5928_v13 = vld [vmem:[%s8577_s1 + $0x1cc] ss:$28 sps:$4 sm:$0xff]  }
  0x42   :  { %4076 = vmatprep.subr.bf16.mxu0 %v5852_v12  ;;  %v5924_v12 = vld [vmem:[%s8577_s1 + $0x190] ss:$28 sps:$4 sm:$0xff]  }
  0x43   :  { %2044 = vmatmul.mubr.f32.vlgmr.msra.gmra.mrb[0].mxu1 %v6786_v54 }
  0x44   :  { %2115 = vmatmul.mubr.f32.vlgmr.msra.gmra.mrb[0].mxu0 %v6802_v60  ;;  %4270 = vmatpush1.bf16.msra.mxu1 %v5857_v15  ;;  %v5931_v15 = vld [vmem:[%s8577_s1 + $0x9dc] ss:$28 sps:$4 sm:$0xff]  }
  0x45   :  { %4078 = vmatpush1.bf16.msra.mxu0 %v5854_v14  ;;  %4272 = vmatprep.subr.bf16.mxu1 %v5861_v17  ;;  %v5927_v14 = vld [vmem:[%s8577_s1 + $0x9a0] ss:$28 sps:$4 sm:$0xff]  }
  0x46   :  { %4080 = vmatprep.subr.bf16.mxu0 %v5858_v16  ;;  %2398 = vmatprep.mubr.f32.mxu1 %v6613_v22  ;;  %v5930_v16 = vld [vmem:[%s8577_s1 + $0x1c8] ss:$28 sps:$4 sm:$0xff]  }
  0x47   :  { %2185 = vmatprep.mubr.f32.mxu0 %v6966_v51  ;;  %v5934_v17 = vld [vmem:[%s8577_s1 + $0x204] ss:$28 sps:$4 sm:$0xff]  }
  0x48   :  { %4274 = vmatpush1.bf16.msra.mxu1 %v5863_v19  ;;  %v5937_v19 = vld [vmem:[%s8577_s1 + $0xa14] ss:$28 sps:$4 sm:$0xff]  }
  0x49   :  { %4082 = vmatpush1.bf16.msra.mxu0 %v5860_v18  ;;  %4276 = vmatprep.subr.bf16.mxu1 %v5867_v21  ;;  %v5933_v18 = vld [vmem:[%s8577_s1 + $0x9d8] ss:$28 sps:$4 sm:$0xff]  }
  0x4a   :  { %4084 = vmatprep.subr.bf16.mxu0 %v5864_v20  ;;  %v5936_v20 = vld [vmem:[%s8577_s1 + $0x200] ss:$28 sps:$4 sm:$0xff]  }
  0x4b   :  { %v5940_v21 = vld [vmem:[%s8577_s1 + $0x23c] ss:$28 sps:$4 sm:$0xff]  }
  0x4c   :  { %4278 = vmatpush1.bf16.msra.mxu1 %v5869_v24  ;;  %v1933_v24 = vcombine.high %v6948_v45, %v6948_v45  ;;  %v5963_v45 = vld [vmem:[%s8577_s1 + $0xaf0] ss:$28 sps:$4 sm:$0xff]  }
  0x4d   :  { %4086 = vmatpush1.bf16.msra.mxu0 %v5866_v23  ;;  %4280 = vmatprep.subr.bf16.mxu1 %v5873_v26  ;;  %v5939_v23 = vld [vmem:[%s8577_s1 + $0xa10] ss:$28 sps:$4 sm:$0xff]   ;;  %v5942_v26 = vld [vmem:[%s8577_s1 + $0x238] ss:$28 sps:$4 sm:$0xff]  }
  0x4e   :  { %4088 = vmatprep.subr.bf16.mxu0 %v5870_v25  ;;  %v5943_v25 = vld [vmem:[%s8577_s1 + $0xa4c] ss:$28 sps:$4 sm:$0xff]  }
  0x50   :  { %4282 = vmatpush1.bf16.msra.mxu1 %v5875_v30  ;;  %v7077_v30 = vrot.slane %v1933_v24, %v6771_v49  ;;  %v6018_v24 = vld [vmem:[%s8577_s1 + $0x514] ss:$28 sps:$4 sm:$0xff]  }
  0x51   :  { %4090 = vmatpush1.bf16.msra.mxu0 %v5872_v29  ;;  %2350 = vmatprep.subr.mxu1 %v1867_v32  ;;  %v5945_v29 = vld [vmem:[%s8577_s1 + $0xa48] ss:$28 sps:$4 sm:$0xff]   ;;  %v5948_v32 = vld [vmem:[%s8577_s1 + $0x270] ss:$28 sps:$4 sm:$0xff]  }
  0x52   :  { %4092 = vmatprep.subr.bf16.mxu0 %v5876_v31  ;;  %v5949_v31 = vld [vmem:[%s8577_s1 + $0xa84] ss:$28 sps:$4 sm:$0xff]  }
  0x54   :  { %2351 = vmatpush1.msra.mxu1 %v1866_v35  ;;  %v7093_v35 = vcombine.high %v7077_v30, %v7077_v30 }
  0x55   :  { %4094 = vmatpush1.bf16.msra.mxu0 %v5878_v34  ;;  %3737 = vmatmul.mubr.msk.f32.vlgmr.msra.gmra.mrb[2].mxu1 %vm1976_vm0, %v6923_v37  ;;  %v5951_v34 = vld [vmem:[%s8577_s1 + $0xa80] ss:$28 sps:$4 sm:$0xff]  }
  0x56   :  { %4284 = vmatprep.subr.bf16.mxu1 %v5880_v36  ;;  %4096 = vmatprep.subr.bf16.mxu0 %v5883_v39  ;;  %v5955_v36 = vld [vmem:[%s8577_s1 + $0xabc] ss:$28 sps:$4 sm:$0xff]   ;;  %v5958_v39 = vld [vmem:[%s8577_s1 + $0x2e4] ss:$28 sps:$4 sm:$0xff]  }
  0x57   :  { %4286 = vmatpush1.bf16.msra.mxu1 %v5882_v38  ;;  %2469 = vmatprep.mubr.f32.mxu1 %v6799_v59  ;;  %v5954_v38 = vld [vmem:[%s8577_s1 + $0x2a8] ss:$28 sps:$4 sm:$0xff]  }
  0x58   :  { %4288 = vmatprep.subr.bf16.mxu1 %v5886_v40  ;;  %v5957_v40 = vld [vmem:[%s8577_s1 + $0xab8] ss:$28 sps:$4 sm:$0xff]  }
  0x59   :  { %4098 = vmatpush1.bf16.msra.mxu0 %v5885_v41  ;;  %v5961_v41 = vld [vmem:[%s8577_s1 + $0xaf4] ss:$28 sps:$4 sm:$0xff]  }
  0x5a   :  { %4100 = vmatprep.subr.bf16.mxu0 %v5889_v43  ;;  %v5960_v43 = vld [vmem:[%s8577_s1 + $0x2e0] ss:$28 sps:$4 sm:$0xff]  }
  0x5b   :  { %4290 = vmatpush1.bf16.msra.mxu1 %v5888_v44  ;;  %v5964_v44 = vld [vmem:[%s8577_s1 + $0x31c] ss:$28 sps:$4 sm:$0xff]  }
  0x5c   :  { %4292 = vmatprep.subr.bf16.mxu1 %v5892_v46  ;;  %v5967_v46 = vld [vmem:[%s8577_s1 + $0xb2c] ss:$28 sps:$4 sm:$0xff]  }
  0x5d   :  { %4102 = vmatpush1.bf16.msra.mxu0 %v5891_v48  ;;  %v5966_v48 = vld [vmem:[%s8577_s1 + $0x318] ss:$28 sps:$4 sm:$0xff]  }
  0x5e   :  { %4104 = vmatprep.subr.bf16.mxu0 %v5895_v50  ;;  %v5970_v50 = vld [vmem:[%s8577_s1 + $0x354] ss:$28 sps:$4 sm:$0xff]  }
  0x5f   :  { %4294 = vmatpush1.bf16.msra.mxu1 %v5894_v52  ;;  %v5969_v52 = vld [vmem:[%s8577_s1 + $0xb28] ss:$28 sps:$4 sm:$0xff]  }
  0x60   :  { %4296 = vmatprep.subr.bf16.mxu1 %v5898_v53  ;;  %v5973_v53 = vld [vmem:[%s8577_s1 + $0xb64] ss:$28 sps:$4 sm:$0xff]  }
  0x61   :  { %4106 = vmatpush1.bf16.msra.mxu0 %v5897_v55  ;;  %v5972_v55 = vld [vmem:[%s8577_s1 + $0x350] ss:$28 sps:$4 sm:$0xff]  }
  0x62   :  { %4108 = vmatprep.subr.bf16.mxu0 %v5901_v56  ;;  %v5976_v56 = vld [vmem:[%s8577_s1 + $0x38c] ss:$28 sps:$4 sm:$0xff]  }
  0x63   :  { %4298 = vmatpush1.bf16.msra.mxu1 %v5900_v57  ;;  %v5975_v57 = vld [vmem:[%s8577_s1 + $0xb60] ss:$28 sps:$4 sm:$0xff]  }
  0x64   :  { %4300 = vmatprep.subr.bf16.mxu1 %v5904_v58  ;;  %v5979_v58 = vld [vmem:[%s8577_s1 + $0xb9c] ss:$28 sps:$4 sm:$0xff]  }
  0x65   :  { %4110 = vmatpush1.bf16.msra.mxu0 %v5903_v61  ;;  %v5978_v61 = vld [vmem:[%s8577_s1 + $0x388] ss:$28 sps:$4 sm:$0xff]  }
  0x66   :  { %4112 = vmatprep.subr.bf16.mxu0 %v5907_v63  ;;  %v5982_v63 = vld [vmem:[%s8577_s1 + $0x3c4] ss:$28 sps:$4 sm:$0xff]  }
  0x67   :  { %4302 = vmatpush1.bf16.msra.mxu1 %v5906_v0  ;;  %v5981_v0 = vld [vmem:[%s8577_s1 + $0xb98] ss:$28 sps:$4 sm:$0xff]  }
  0x68   :  { %4304 = vmatprep.subr.bf16.mxu1 %v5910_v1  ;;  %v5985_v1 = vld [vmem:[%s8577_s1 + $0xbd4] ss:$28 sps:$4 sm:$0xff]  }
  0x69   :  { %4114 = vmatpush1.bf16.msra.mxu0 %v5909_v2  ;;  %v5984_v2 = vld [vmem:[%s8577_s1 + $0x3c0] ss:$28 sps:$4 sm:$0xff]  }
  0x6a   :  { %4116 = vmatprep.subr.bf16.mxu0 %v5913_v3  ;;  %v5988_v3 = vld [vmem:[%s8577_s1 + $0x3fc] ss:$28 sps:$4 sm:$0xff]  }
  0x6b   :  { %4306 = vmatpush1.bf16.msra.mxu1 %v5912_v4  ;;  %v5987_v4 = vld [vmem:[%s8577_s1 + $0xbd0] ss:$28 sps:$4 sm:$0xff]  }
  0x6c   :  { %4308 = vmatprep.subr.bf16.mxu1 %v5916_v5  ;;  %v5991_v5 = vld [vmem:[%s8577_s1 + $0xc0c] ss:$28 sps:$4 sm:$0xff]  }
  0x6d   :  { %4118 = vmatpush1.bf16.msra.mxu0 %v5915_v6  ;;  %v5990_v6 = vld [vmem:[%s8577_s1 + $0x3f8] ss:$28 sps:$4 sm:$0xff]  }
  0x6e   :  { %4120 = vmatprep.subr.bf16.mxu0 %v5919_v7  ;;  %v5994_v7 = vld [vmem:[%s8577_s1 + $0x434] ss:$28 sps:$4 sm:$0xff]  }
  0x6f   :  { %4310 = vmatpush1.bf16.msra.mxu1 %v5918_v8  ;;  %v5993_v8 = vld [vmem:[%s8577_s1 + $0xc08] ss:$28 sps:$4 sm:$0xff]  }
  0x70   :  { %4312 = vmatprep.subr.bf16.mxu1 %v5922_v9  ;;  %v5997_v9 = vld [vmem:[%s8577_s1 + $0xc44] ss:$28 sps:$4 sm:$0xff]  }
  0x71   :  { %4122 = vmatpush1.bf16.msra.mxu0 %v5921_v10  ;;  %v5996_v10 = vld [vmem:[%s8577_s1 + $0x430] ss:$28 sps:$4 sm:$0xff]  }
  0x72   :  { %4124 = vmatprep.subr.bf16.mxu0 %v5925_v11  ;;  %v6000_v11 = vld [vmem:[%s8577_s1 + $0x46c] ss:$28 sps:$4 sm:$0xff]  }
  0x73   :  { %4314 = vmatpush1.bf16.msra.mxu1 %v5924_v12  ;;  %v5999_v12 = vld [vmem:[%s8577_s1 + $0xc40] ss:$28 sps:$4 sm:$0xff]  }
  0x74   :  { %4316 = vmatprep.subr.bf16.mxu1 %v5928_v13  ;;  %v6003_v13 = vld [vmem:[%s8577_s1 + $0xc7c] ss:$28 sps:$4 sm:$0xff]  }
  0x75   :  { %4126 = vmatpush1.bf16.msra.mxu0 %v5927_v14  ;;  %v6002_v14 = vld [vmem:[%s8577_s1 + $0x468] ss:$28 sps:$4 sm:$0xff]  }
  0x76   :  { %4128 = vmatprep.subr.bf16.mxu0 %v5931_v15  ;;  %v6006_v15 = vld [vmem:[%s8577_s1 + $0x4a4] ss:$28 sps:$4 sm:$0xff]  }
  0x77   :  { %4318 = vmatpush1.bf16.msra.mxu1 %v5930_v16  ;;  %v6005_v16 = vld [vmem:[%s8577_s1 + $0xc78] ss:$28 sps:$4 sm:$0xff]  }
  0x78   :  { %4320 = vmatprep.subr.bf16.mxu1 %v5934_v17  ;;  %v6009_v17 = vld [vmem:[%s8577_s1 + $0xcb4] ss:$28 sps:$4 sm:$0xff]  }
  0x79   :  { %4130 = vmatpush1.bf16.msra.mxu0 %v5933_v18  ;;  %v6008_v18 = vld [vmem:[%s8577_s1 + $0x4a0] ss:$28 sps:$4 sm:$0xff]  }
  0x7a   :  { %4132 = vmatprep.subr.bf16.mxu0 %v5937_v19  ;;  %v6012_v19 = vld [vmem:[%s8577_s1 + $0x4dc] ss:$28 sps:$4 sm:$0xff]  }
  0x7b   :  { %4322 = vmatpush1.bf16.msra.mxu1 %v5936_v20  ;;  %v6011_v20 = vld [vmem:[%s8577_s1 + $0xcb0] ss:$28 sps:$4 sm:$0xff]  }
  0x7c   :  { %4324 = vmatprep.subr.bf16.mxu1 %v5940_v21  ;;  %v6015_v21 = vld [vmem:[%s8577_s1 + $0xcec] ss:$28 sps:$4 sm:$0xff]  }
  0x7d   :  { %4134 = vmatpush1.bf16.msra.mxu0 %v5939_v23  ;;  %v6014_v23 = vld [vmem:[%s8577_s1 + $0x4d8] ss:$28 sps:$4 sm:$0xff]  }
  0x7e   :  { %4136 = vmatprep.subr.bf16.mxu0 %v5943_v25  ;;  %v6017_v25 = vld [vmem:[%s8577_s1 + $0xce8] ss:$28 sps:$4 sm:$0xff]  }
  0x7f   :  { %4326 = vmatpush1.bf16.msra.mxu1 %v5942_v26  ;;  %v6021_v26 = vld [vmem:[%s8577_s1 + $0xd24] ss:$28 sps:$4 sm:$0xff]  }
  0x80   :  { %4328 = vmatprep.subr.bf16.mxu1 %v5946_v27  ;;  %v6020_v27 = vld [vmem:[%s8577_s1 + $0x510] ss:$28 sps:$4 sm:$0xff]  }
  0x81   :  { %4138 = vmatpush1.bf16.msra.mxu0 %v5945_v29  ;;  %v6024_v29 = vld [vmem:[%s8577_s1 + $0x54c] ss:$28 sps:$4 sm:$0xff]  }
  0x82   :  { %4140 = vmatprep.subr.bf16.mxu0 %v5949_v31  ;;  %v6023_v31 = vld [vmem:[%s8577_s1 + $0xd20] ss:$28 sps:$4 sm:$0xff]  }
  0x83   :  { %4330 = vmatpush1.bf16.msra.mxu1 %v5948_v32  ;;  %v6027_v32 = vld [vmem:[%s8577_s1 + $0xd5c] ss:$28 sps:$4 sm:$0xff]  }
  0x84   :  { %2186 = vmatmul.mubr.f32.vlgmr.msra.gmra.mrb[0].mxu0 %v6955_v47  ;;  %4332 = vmatprep.subr.bf16.mxu1 %v5952_v33  ;;  %v6026_v33 = vld [vmem:[%s8577_s1 + $0x548] ss:$28 sps:$4 sm:$0xff]  }
  0x85   :  { %4142 = vmatpush1.bf16.msra.mxu0 %v5951_v34  ;;  %2256 = vmatprep.mubr.f32.mxu0 %v7093_v35  ;;  %v6030_v34 = vld [vmem:[%s8577_s1 + $0x584] ss:$28 sps:$4 sm:$0xff]  }
  0x86   :  { %4144 = vmatprep.subr.bf16.mxu0 %v5955_v36  ;;  %v6029_v36 = vld [vmem:[%s8577_s1 + $0xd58] ss:$28 sps:$4 sm:$0xff]  }
  0x87   :  { %4334 = vmatpush1.bf16.msra.mxu1 %v5954_v38  ;;  %v6033_v38 = vld [vmem:[%s8577_s1 + $0xd94] ss:$28 sps:$4 sm:$0xff]  }
  0x88   :  { %4336 = vmatprep.subr.bf16.mxu1 %v5958_v39  ;;  %v6032_v39 = vld [vmem:[%s8577_s1 + $0x580] ss:$28 sps:$4 sm:$0xff]  }
  0x89   :  { %4146 = vmatpush1.bf16.msra.mxu0 %v5957_v40  ;;  %v6036_v40 = vld [vmem:[%s8577_s1 + $0x5bc] ss:$28 sps:$4 sm:$0xff]  }
  0x8a   :  { %4148 = vmatprep.subr.bf16.mxu0 %v5961_v41  ;;  %v6035_v41 = vld [vmem:[%s8577_s1 + $0xd90] ss:$28 sps:$4 sm:$0xff]  }
  0x8b   :  { %4338 = vmatpush1.bf16.msra.mxu1 %v5960_v43  ;;  %v6039_v43 = vld [vmem:[%s8577_s1 + $0xdcc] ss:$28 sps:$4 sm:$0xff]  }
  0x8c   :  { %4340 = vmatprep.subr.bf16.mxu1 %v5964_v44  ;;  %v6038_v44 = vld [vmem:[%s8577_s1 + $0x5b8] ss:$28 sps:$4 sm:$0xff]  }
  0x8d   :  { %4150 = vmatpush1.bf16.msra.mxu0 %v5963_v45  ;;  %v6042_v45 = vld [vmem:[%s8577_s1 + $0x5f4] ss:$28 sps:$4 sm:$0xff]  }
  0x8e   :  { %4152 = vmatprep.subr.bf16.mxu0 %v5967_v46  ;;  %v7278_v46 = vrot.slane %v6903_v28, %v6771_v49  ;;  %v6049_v28 = vld [vmem:[%s8577_s1 + $0x62c] ss:$28 sps:$4 sm:$0xff]  }
  0x8f   :  { %4342 = vmatpush1.bf16.msra.mxu1 %v5966_v48  ;;  %v6041_v48 = vld [vmem:[%s8577_s1 + $0xdc8] ss:$28 sps:$4 sm:$0xff]  }
  0x90   :  { %4344 = vmatprep.subr.bf16.mxu1 %v5970_v50  ;;  %v6046_v50 = vld [vmem:[%s8577_s1 + $0xe04] ss:$28 sps:$4 sm:$0xff]  }
  0x91   :  { %4154 = vmatpush1.bf16.msra.mxu0 %v5969_v52  ;;  %v6044_v52 = vld [vmem:[%s8577_s1 + $0x5f0] ss:$28 sps:$4 sm:$0xff]  }
  0x92   :  { %4156 = vmatprep.subr.bf16.mxu0 %v5973_v53  ;;  %v6048_v53 = vld [vmem:[%s8577_s1 + $0xe00] ss:$28 sps:$4 sm:$0xff]  }
  0x93   :  { %4346 = vmatpush1.bf16.msra.mxu1 %v5972_v55  ;;  %v7297_v55 = vcombine.high %v7278_v46, %v7278_v46 }
  0x94   :  { %4348 = vmatprep.subr.bf16.mxu1 %v5976_v56  ;;  %v6052_v56 = vld [vmem:[%s8577_s1 + $0xe3c] ss:$28 sps:$4 sm:$0xff]  }
  0x95   :  { %4158 = vmatpush1.bf16.msra.mxu0 %v5975_v57  ;;  %v6051_v57 = vld [vmem:[%s8577_s1 + $0x628] ss:$28 sps:$4 sm:$0xff]  }
  0x96   :  { %2470 = vmatmul.mubr.f32.vlgmr.msra.gmra.mrb[4].mxu1 %v6786_v54  ;;  %4160 = vmatprep.subr.bf16.mxu0 %v5979_v58  ;;  %v6055_v58 = vld [vmem:[%s8577_s1 + $0x664] ss:$28 sps:$4 sm:$0xff]  }
  0x97   :  { %4350 = vmatpush1.bf16.msra.mxu1 %v5978_v61  ;;  %2540 = vmatprep.mubr.f32.mxu1 %v6810_v62  ;;  %v6054_v61 = vld [vmem:[%s8577_s1 + $0xe38] ss:$28 sps:$4 sm:$0xff]  }
  0x98   :  { %4352 = vmatprep.subr.bf16.mxu1 %v5982_v63  ;;  %v6058_v63 = vld [vmem:[%s8577_s1 + $0xe74] ss:$28 sps:$4 sm:$0xff]  }
  0x99   :  { %4162 = vmatpush1.bf16.msra.mxu0 %v5981_v0  ;;  %v6057_v0 = vld [vmem:[%s8577_s1 + $0x660] ss:$28 sps:$4 sm:$0xff]  }
  0x9a   :  { %4164 = vmatprep.subr.bf16.mxu0 %v5985_v1  ;;  %v6061_v1 = vld [vmem:[%s8577_s1 + $0x69c] ss:$28 sps:$4 sm:$0xff]  }
  0x9b   :  { %4354 = vmatpush1.bf16.msra.mxu1 %v5984_v2  ;;  %v6060_v2 = vld [vmem:[%s8577_s1 + $0xe70] ss:$28 sps:$4 sm:$0xff]  }
  0x9c   :  { %4356 = vmatprep.subr.bf16.mxu1 %v5988_v3  ;;  %v6064_v3 = vld [vmem:[%s8577_s1 + $0xeac] ss:$28 sps:$4 sm:$0xff]  }
  0x9d   :  { %4166 = vmatpush1.bf16.msra.mxu0 %v5987_v4  ;;  %v6063_v4 = vld [vmem:[%s8577_s1 + $0x698] ss:$28 sps:$4 sm:$0xff]  }
  0x9e   :  { %4168 = vmatprep.subr.bf16.mxu0 %v5991_v5  ;;  %v6067_v5 = vld [vmem:[%s8577_s1 + $0x6d4] ss:$28 sps:$4 sm:$0xff]  }
  0x9f   :  { %4358 = vmatpush1.bf16.msra.mxu1 %v5990_v6  ;;  %v6066_v6 = vld [vmem:[%s8577_s1 + $0xea8] ss:$28 sps:$4 sm:$0xff]  }
  0xa0   :  { %4360 = vmatprep.subr.bf16.mxu1 %v5994_v7  ;;  %v6070_v7 = vld [vmem:[%s8577_s1 + $0xee4] ss:$28 sps:$4 sm:$0xff]  }
  0xa1   :  { %4170 = vmatpush1.bf16.msra.mxu0 %v5993_v8  ;;  %v6069_v8 = vld [vmem:[%s8577_s1 + $0x6d0] ss:$28 sps:$4 sm:$0xff]  }
  0xa2   :  { %4172 = vmatprep.subr.bf16.mxu0 %v5997_v9  ;;  %v6073_v9 = vld [vmem:[%s8577_s1 + $0x70c] ss:$28 sps:$4 sm:$0xff]  }
  0xa3   :  { %4362 = vmatpush1.bf16.msra.mxu1 %v5996_v10  ;;  %v6072_v10 = vld [vmem:[%s8577_s1 + $0xee0] ss:$28 sps:$4 sm:$0xff]  }
  0xa4   :  { %4364 = vmatprep.subr.bf16.mxu1 %v6000_v11  ;;  %v6076_v11 = vld [vmem:[%s8577_s1 + $0xf1c] ss:$28 sps:$4 sm:$0xff]  }
  0xa5   :  { %4174 = vmatpush1.bf16.msra.mxu0 %v5999_v12  ;;  %v6075_v12 = vld [vmem:[%s8577_s1 + $0x708] ss:$28 sps:$4 sm:$0xff]  }
  0xa6   :  { %4176 = vmatprep.subr.bf16.mxu0 %v6003_v13  ;;  %v6079_v13 = vld [vmem:[%s8577_s1 + $0x744] ss:$28 sps:$4 sm:$0xff]  }
  0xa7   :  { %4366 = vmatpush1.bf16.msra.mxu1 %v6002_v14  ;;  %v6078_v14 = vld [vmem:[%s8577_s1 + $0xf18] ss:$28 sps:$4 sm:$0xff]  }
  0xa8   :  { %4368 = vmatprep.subr.bf16.mxu1 %v6006_v15  ;;  %v6082_v15 = vld [vmem:[%s8577_s1 + $0xf54] ss:$28 sps:$4 sm:$0xff]  }
  0xa9   :  { %4178 = vmatpush1.bf16.msra.mxu0 %v6005_v16  ;;  %v6081_v16 = vld [vmem:[%s8577_s1 + $0x740] ss:$28 sps:$4 sm:$0xff]  }
  0xaa   :  { %4180 = vmatprep.subr.bf16.mxu0 %v6009_v17  ;;  %v6085_v17 = vld [vmem:[%s8577_s1 + $0x77c] ss:$28 sps:$4 sm:$0xff]  }
  0xab   :  { %4370 = vmatpush1.bf16.msra.mxu1 %v6008_v18  ;;  %v6084_v18 = vld [vmem:[%s8577_s1 + $0xf50] ss:$28 sps:$4 sm:$0xff]  }
  0xac   :  { %4372 = vmatprep.subr.bf16.mxu1 %v6012_v19  ;;  %v6088_v19 = vld [vmem:[%s8577_s1 + $0xf8c] ss:$28 sps:$4 sm:$0xff]  }
  0xad   :  { %4182 = vmatpush1.bf16.msra.mxu0 %v6011_v20  ;;  %v6087_v20 = vld [vmem:[%s8577_s1 + $0x778] ss:$28 sps:$4 sm:$0xff]  }
  0xae   :  { %4184 = vmatprep.subr.bf16.mxu0 %v6015_v21  ;;  %v6091_v21 = vld [vmem:[%s8577_s1 + $0x7b4] ss:$28 sps:$4 sm:$0xff]  }
  0xaf   :  { %4374 = vmatpush1.bf16.msra.mxu1 %v6014_v23  ;;  %v6090_v23 = vld [vmem:[%s8577_s1 + $0xf88] ss:$28 sps:$4 sm:$0xff]  }
  0xb0   :  { %4376 = vmatprep.subr.bf16.mxu1 %v6018_v24  ;;  %v6094_v24 = vld [vmem:[%s8577_s1 + $0xfc4] ss:$28 sps:$4 sm:$0xff]  }
  0xb1   :  { %4186 = vmatpush1.bf16.msra.mxu0 %v6017_v25  ;;  %v6093_v25 = vld [vmem:[%s8577_s1 + $0x7b0] ss:$28 sps:$4 sm:$0xff]  }
  0xb2   :  { %4188 = vmatprep.subr.bf16.mxu0 %v6021_v26  ;;  %v6097_v26 = vld [vmem:[%s8577_s1 + $0x7ec] ss:$28 sps:$4 sm:$0xff]  }
  0xb3   :  { %4378 = vmatpush1.bf16.msra.mxu1 %v6020_v27  ;;  %v6096_v27 = vld [vmem:[%s8577_s1 + $0xfc0] ss:$28 sps:$4 sm:$0xff]  }
  0xb4   :  { %4380 = vmatprep.subr.bf16.mxu1 %v6024_v29  ;;  %v6100_v29 = vld [vmem:[%s8577_s1 + $0xffc] ss:$28 sps:$4 sm:$0xff]  }
  0xb5   :  { %4190 = vmatpush1.bf16.msra.mxu0 %v6023_v31  ;;  %v6099_v31 = vld [vmem:[%s8577_s1 + $0x7e8] ss:$28 sps:$4 sm:$0xff]  }
  0xb6   :  { %4192 = vmatprep.subr.bf16.mxu0 %v6027_v32  ;;  %v6103_v32 = vld [vmem:[%s8577_s1 + $0x824] ss:$28 sps:$4 sm:$0xff]  }
  0xb7   :  { %4382 = vmatpush1.bf16.msra.mxu1 %v6026_v33  ;;  %v6102_v33 = vld [vmem:[%s8577_s1 + $0xff8] ss:$28 sps:$4 sm:$0xff]  }
  0xb8   :  { %4384 = vmatprep.subr.bf16.mxu1 %v6030_v34  ;;  %v6106_v34 = vld [vmem:[%s8577_s1 + $0x1034] ss:$28 sps:$4 sm:$0xff]  }
  0xb9   :  { %4194 = vmatpush1.bf16.msra.mxu0 %v6029_v36  ;;  %v6105_v36 = vld [vmem:[%s8577_s1 + $0x820] ss:$28 sps:$4 sm:$0xff]  }
  0xba   :  { %4196 = vmatprep.subr.bf16.mxu0 %v6033_v38  ;;  %v6109_v38 = vld [vmem:[%s8577_s1 + $0x85c] ss:$28 sps:$4 sm:$0xff]  }
  0xbb   :  { %4386 = vmatpush1.bf16.msra.mxu1 %v6032_v39  ;;  %v6108_v39 = vld [vmem:[%s8577_s1 + $0x1030] ss:$28 sps:$4 sm:$0xff]  }
  0xbc   :  { %4388 = vmatprep.subr.bf16.mxu1 %v6036_v40  ;;  %v6112_v40 = vld [vmem:[%s8577_s1 + $0x106c] ss:$28 sps:$4 sm:$0xff]  }
  0xbd   :  { %4198 = vmatpush1.bf16.msra.mxu0 %v6035_v41  ;;  %v6111_v41 = vld [vmem:[%s8577_s1 + $0x858] ss:$28 sps:$4 sm:$0xff]  }
  0xbe   :  { %4200 = vmatprep.subr.bf16.mxu0 %v6039_v43  ;;  %v6115_v43 = vld [vmem:[%s8577_s1 + $0x894] ss:$28 sps:$4 sm:$0xff]  }
  0xbf   :  { %4390 = vmatpush1.bf16.msra.mxu1 %v6038_v44  ;;  %v6114_v44 = vld [vmem:[%s8577_s1 + $0x1068] ss:$28 sps:$4 sm:$0xff]  }
  0xc0   :  { %4392 = vmatprep.subr.bf16.mxu1 %v6042_v45  ;;  %v6118_v45 = vld [vmem:[%s8577_s1 + $0x10a4] ss:$28 sps:$4 sm:$0xff]  }
  0xc1   :  { %4202 = vmatpush1.bf16.msra.mxu0 %v6041_v48  ;;  %v6117_v48 = vld [vmem:[%s8577_s1 + $0x890] ss:$28 sps:$4 sm:$0xff]  }
  0xc2   :  { %4204 = vmatprep.subr.bf16.mxu0 %v6046_v50  ;;  %v6121_v50 = vld [vmem:[%s8577_s1 + $0x8cc] ss:$28 sps:$4 sm:$0xff]  }
  0xc3   :  { %4394 = vmatpush1.bf16.msra.mxu1 %v6044_v52  ;;  %v6120_v52 = vld [vmem:[%s8577_s1 + $0x10a0] ss:$28 sps:$4 sm:$0xff]  }
  0xc4   :  { %2257 = vmatmul.mubr.f32.vlgmr.msra.gmra.mrb[0].mxu0 %v7077_v30  ;;  %4396 = vmatprep.subr.bf16.mxu1 %v6049_v28  ;;  %v6124_v28 = vld [vmem:[%s8577_s1 + $0x10dc] ss:$28 sps:$4 sm:$0xff]  }
  0xc5   :  { %4206 = vmatpush1.bf16.msra.mxu0 %v6048_v53  ;;  %2327 = vmatprep.mubr.f32.mxu0 %v7297_v55  ;;  %v6123_v53 = vld [vmem:[%s8577_s1 + $0x8c8] ss:$28 sps:$4 sm:$0xff]  }
  0xc6   :  { %4208 = vmatprep.subr.bf16.mxu0 %v6052_v56  ;;  %v6127_v56 = vld [vmem:[%s8577_s1 + $0x904] ss:$28 sps:$4 sm:$0xff]  }
  0xc7   :  { %4398 = vmatpush1.bf16.msra.mxu1 %v6051_v57  ;;  %v6126_v57 = vld [vmem:[%s8577_s1 + $0x10d8] ss:$28 sps:$4 sm:$0xff]  }
  0xc8   :  { %4400 = vmatprep.subr.bf16.mxu1 %v6055_v58  ;;  %v6130_v58 = vld [vmem:[%s8577_s1 + $0x1114] ss:$28 sps:$4 sm:$0xff]  }
  0xc9   :  { %4210 = vmatpush1.bf16.msra.mxu0 %v6054_v61  ;;  %v6129_v61 = vld [vmem:[%s8577_s1 + $0x900] ss:$28 sps:$4 sm:$0xff]  }
  0xca   :  { %4212 = vmatprep.subr.bf16.mxu0 %v6058_v63  ;;  %v6133_v63 = vld [vmem:[%s8577_s1 + $0x93c] ss:$28 sps:$4 sm:$0xff]  }
  0xcb   :  { %4402 = vmatpush1.bf16.msra.mxu1 %v6057_v0  ;;  %v6132_v0 = vld [vmem:[%s8577_s1 + $0x1110] ss:$28 sps:$4 sm:$0xff]  }
  0xcc   :  { %4404 = vmatprep.subr.bf16.mxu1 %v6061_v1  ;;  %v6136_v1 = vld [vmem:[%s8577_s1 + $0x114c] ss:$28 sps:$4 sm:$0xff]  }
  0xcd   :  { %4214 = vmatpush1.bf16.msra.mxu0 %v6060_v2  ;;  %v6135_v2 = vld [vmem:[%s8577_s1 + $0x938] ss:$28 sps:$4 sm:$0xff]  }
  0xce   :  { %4216 = vmatprep.subr.bf16.mxu0 %v6064_v3  ;;  %v6139_v3 = vld [vmem:[%s8577_s1 + $0x974] ss:$28 sps:$4 sm:$0xff]  }
  0xcf   :  { %4406 = vmatpush1.bf16.msra.mxu1 %v6063_v4  ;;  %v6138_v4 = vld [vmem:[%s8577_s1 + $0x1148] ss:$28 sps:$4 sm:$0xff]  }
  0xd0   :  { %4408 = vmatprep.subr.bf16.mxu1 %v6067_v5  ;;  %v6142_v5 = vld [vmem:[%s8577_s1 + $0x14] ss:$28 sps:$4 sm:$0xff]  }
  0xd1   :  { %4218 = vmatpush1.bf16.msra.mxu0 %v6066_v6  ;;  %v6141_v6 = vld [vmem:[%s8577_s1 + $0x970] ss:$28 sps:$4 sm:$0xff]  }
  0xd2   :  { %4220 = vmatprep.subr.bf16.mxu0 %v6070_v7  ;;  %v6145_v7 = vld [vmem:[%s8577_s1 + $0x9ac] ss:$28 sps:$4 sm:$0xff]  }
  0xd3   :  { %4410 = vmatpush1.bf16.msra.mxu1 %v6069_v8  ;;  %v6144_v8 = vld [vmem:[%s8577_s1 + $0x10] ss:$28 sps:$4 sm:$0xff]  }
  0xd4   :  { %4412 = vmatprep.subr.bf16.mxu1 %v6073_v9  ;;  %v6148_v9 = vld [vmem:[%s8577_s1 + $0x4c] ss:$28 sps:$4 sm:$0xff]  }
  0xd5   :  { %4222 = vmatpush1.bf16.msra.mxu0 %v6072_v10  ;;  %v6147_v10 = vld [vmem:[%s8577_s1 + $0x9a8] ss:$28 sps:$4 sm:$0xff]  }
  0xd6   :  { %2541 = vmatmul.mubr.f32.vlgmr.msra.gmra.mrb[4].mxu1 %v6802_v60  ;;  %4224 = vmatprep.subr.bf16.mxu0 %v6076_v11  ;;  %v6150_v11 = vld [vmem:[%s8577_s1 + $0x48] ss:$28 sps:$4 sm:$0xff]  }
  0xd7   :  { %4414 = vmatpush1.bf16.msra.mxu1 %v6075_v12  ;;  %2611 = vmatprep.mubr.f32.mxu1 %v6966_v51  ;;  %v6151_v12 = vld [vmem:[%s8577_s1 + $0x9e4] ss:$28 sps:$4 sm:$0xff]  }
  0xd8   :  { %4416 = vmatprep.subr.bf16.mxu1 %v6079_v13  ;;  %v6153_v13 = vld [vmem:[%s8577_s1 + $0x9e0] ss:$28 sps:$4 sm:$0xff]  }
  0xd9   :  { %4226 = vmatpush1.bf16.msra.mxu0 %v6078_v14  ;;  %v6154_v14 = vld [vmem:[%s8577_s1 + $0x84] ss:$28 sps:$4 sm:$0xff]  }
  0xda   :  { %4228 = vmatprep.subr.bf16.mxu0 %v6082_v15  ;;  %v6156_v15 = vld [vmem:[%s8577_s1 + $0x80] ss:$28 sps:$4 sm:$0xff]  }
  0xdb   :  { %4418 = vmatpush1.bf16.msra.mxu1 %v6081_v16  ;;  %v6157_v16 = vld [vmem:[%s8577_s1 + $0xa1c] ss:$28 sps:$4 sm:$0xff]  }
  0xdc   :  { %4420 = vmatprep.subr.bf16.mxu1 %v6085_v17  ;;  %v6159_v17 = vld [vmem:[%s8577_s1 + $0xa18] ss:$28 sps:$4 sm:$0xff]  }
  0xdd   :  { %4230 = vmatpush1.bf16.msra.mxu0 %v6084_v18  ;;  %v6160_v18 = vld [vmem:[%s8577_s1 + $0xbc] ss:$28 sps:$4 sm:$0xff]  }
  0xde   :  { %4232 = vmatprep.subr.bf16.mxu0 %v6088_v19  ;;  %v6162_v19 = vld [vmem:[%s8577_s1 + $0xb8] ss:$28 sps:$4 sm:$0xff]  }
  0xdf   :  { %4422 = vmatpush1.bf16.msra.mxu1 %v6087_v20  ;;  %v6163_v20 = vld [vmem:[%s8577_s1 + $0xa54] ss:$28 sps:$4 sm:$0xff]  }
  0xe0   :  { %4424 = vmatprep.subr.bf16.mxu1 %v6091_v21  ;;  %v6165_v21 = vld [vmem:[%s8577_s1 + $0xa50] ss:$28 sps:$4 sm:$0xff]  }
  0xe1   :  { %4234 = vmatpush1.bf16.msra.mxu0 %v6090_v23  ;;  %v6166_v23 = vld [vmem:[%s8577_s1 + $0xf4] ss:$28 sps:$4 sm:$0xff]  }
  0xe2   :  { %4236 = vmatprep.subr.bf16.mxu0 %v6094_v24  ;;  %v6168_v24 = vld [vmem:[%s8577_s1 + $0xf0] ss:$28 sps:$4 sm:$0xff]  }
  0xe3   :  { %4426 = vmatpush1.bf16.msra.mxu1 %v6093_v25  ;;  %v6169_v25 = vld [vmem:[%s8577_s1 + $0xa8c] ss:$28 sps:$4 sm:$0xff]  }
  0xe4   :  { %4428 = vmatprep.subr.bf16.mxu1 %v6097_v26  ;;  %v6171_v26 = vld [vmem:[%s8577_s1 + $0xa88] ss:$28 sps:$4 sm:$0xff]  }
  0xe5   :  { %4238 = vmatpush1.bf16.msra.mxu0 %v6096_v27  ;;  %v6172_v27 = vld [vmem:[%s8577_s1 + $0x12c] ss:$28 sps:$4 sm:$0xff]  }
  0xe6   :  { %4240 = vmatprep.subr.bf16.mxu0 %v6100_v29  ;;  %v6174_v29 = vld [vmem:[%s8577_s1 + $0x128] ss:$28 sps:$4 sm:$0xff]  }
  0xe7   :  { %4430 = vmatpush1.bf16.msra.mxu1 %v6099_v31  ;;  %v6175_v31 = vld [vmem:[%s8577_s1 + $0xac4] ss:$28 sps:$4 sm:$0xff]  }
  0xe8   :  { %4432 = vmatprep.subr.bf16.mxu1 %v6103_v32  ;;  %v6177_v32 = vld [vmem:[%s8577_s1 + $0xac0] ss:$28 sps:$4 sm:$0xff]  }
  0xe9   :  { %4242 = vmatpush1.bf16.msra.mxu0 %v6102_v33  ;;  %v6178_v33 = vld [vmem:[%s8577_s1 + $0x164] ss:$28 sps:$4 sm:$0xff]  }
  0xea   :  { %4244 = vmatprep.subr.bf16.mxu0 %v6106_v34 }
  0xeb   :  { %4434 = vmatpush1.bf16.msra.mxu1 %v6105_v36  ;;  %v6180_v36 = vld [vmem:[%s8577_s1 + $0x160] ss:$28 sps:$4 sm:$0xff]  }
  0xec   :  { %4436 = vmatprep.subr.bf16.mxu1 %v6109_v38 }
  0xed   :  { %4246 = vmatpush1.bf16.msra.mxu0 %v6108_v39  ;;  %v6181_v39 = vld [vmem:[%s8577_s1 + $0xafc] ss:$28 sps:$4 sm:$0xff]  }
  0xee   :  { %4248 = vmatprep.subr.bf16.mxu0 %v6112_v40  ;;  %v6183_v40 = vld [vmem:[%s8577_s1 + $0xaf8] ss:$28 sps:$4 sm:$0xff]  }
  0xef   :  { %4438 = vmatpush1.bf16.msra.mxu1 %v6111_v41  ;;  %v6184_v41 = vld [vmem:[%s8577_s1 + $0x19c] ss:$28 sps:$4 sm:$0xff]  }
  0xf0   :  { %4440 = vmatprep.subr.bf16.mxu1 %v6115_v43  ;;  %v6186_v43 = vld [vmem:[%s8577_s1 + $0x198] ss:$28 sps:$4 sm:$0xff]  }
  0xf1   :  { %4250 = vmatpush1.bf16.msra.mxu0 %v6114_v44  ;;  %v6187_v44 = vld [vmem:[%s8577_s1 + $0xb34] ss:$28 sps:$4 sm:$0xff]  }
  0xf2   :  { %4252 = vmatprep.subr.bf16.mxu0 %v6118_v45  ;;  %v6189_v45 = vld [vmem:[%s8577_s1 + $0xb30] ss:$28 sps:$4 sm:$0xff]  }
  0xf3   :  { %4442 = vmatpush1.bf16.msra.mxu1 %v6117_v48  ;;  %v6190_v48 = vld [vmem:[%s8577_s1 + $0x1d4] ss:$28 sps:$4 sm:$0xff]  }
  0xf4   :  { %4444 = vmatprep.subr.bf16.mxu1 %v6121_v50  ;;  %v6192_v50 = vld [vmem:[%s8577_s1 + $0x1d0] ss:$28 sps:$4 sm:$0xff]  }
  0xf5   :  { %4254 = vmatpush1.bf16.msra.mxu0 %v6120_v52  ;;  %v6193_v52 = vld [vmem:[%s8577_s1 + $0xb6c] ss:$28 sps:$4 sm:$0xff]  }
  0xf6   :  { %4256 = vmatprep.subr.bf16.mxu0 %v6124_v28  ;;  %v6195_v28 = vld [vmem:[%s8577_s1 + $0xb68] ss:$28 sps:$4 sm:$0xff]  }
  0xf7   :  { %4446 = vmatpush1.bf16.msra.mxu1 %v6123_v53  ;;  %v6196_v53 = vld [vmem:[%s8577_s1 + $0x20c] ss:$28 sps:$4 sm:$0xff]  }
  0xf8   :  { %4448 = vmatprep.subr.bf16.mxu1 %v6127_v56  ;;  %v6198_v56 = vld [vmem:[%s8577_s1 + $0x208] ss:$28 sps:$4 sm:$0xff]  }
  0xf9   :  { %4258 = vmatpush1.bf16.msra.mxu0 %v6126_v57  ;;  %v6199_v57 = vld [vmem:[%s8577_s1 + $0xba4] ss:$28 sps:$4 sm:$0xff]  }
  0xfa   :  { %4260 = vmatprep.subr.bf16.mxu0 %v6130_v58  ;;  %v6202_v58 = vld [vmem:[%s8577_s1 + $0x244] ss:$28 sps:$4 sm:$0xff]  }
  0xfb   :  { %4450 = vmatpush1.bf16.msra.mxu1 %v6129_v61  ;;  %v6201_v61 = vld [vmem:[%s8577_s1 + $0xba0] ss:$28 sps:$4 sm:$0xff]  }
  0xfc   :  { %4452 = vmatprep.subr.bf16.mxu1 %v6133_v63  ;;  %v6205_v63 = vld [vmem:[%s8577_s1 + $0xbdc] ss:$28 sps:$4 sm:$0xff]  }
  0xfd   :  { %4262 = vmatpush1.bf16.msra.mxu0 %v6132_v0 }
  0xfe   :  { %4264 = vmatprep.subr.bf16.mxu0 %v6136_v1  ;;  %v6204_v1 = vld [vmem:[%s8577_s1 + $0x240] ss:$28 sps:$4 sm:$0xff]  }
  0xff   :  { %4454 = vmatpush1.bf16.msra.mxu1 %v6135_v2 }
 0x100   :  { %4456 = vmatprep.subr.bf16.mxu1 %v6139_v3  ;;  %v6207_v3 = vld [vmem:[%s8577_s1 + $0xbd8] ss:$28 sps:$4 sm:$0xff]  }
 0x101   :  { %4266 = vmatpush1.bf16.msra.mxu0 %v6138_v4  ;;  %v6208_v4 = vld [vmem:[%s8577_s1 + $0x27c] ss:$28 sps:$4 sm:$0xff]  }
 0x102   :  { %4620 = vmatprep.subr.bf16.mxu0 %v6142_v5  ;;  %v6211_v5 = vld [vmem:[%s8577_s1 + $0xc14] ss:$28 sps:$4 sm:$0xff]  }
 0x103   :  { %4458 = vmatpush1.bf16.msra.mxu1 %v6141_v6  ;;  %v6210_v6 = vld [vmem:[%s8577_s1 + $0x278] ss:$28 sps:$4 sm:$0xff]  }
 0x104   :  { %2328 = vmatmul.mubr.f32.vlgmr.msra.gmra.mrb[0].mxu0 %v7278_v46  ;;  %4460 = vmatprep.subr.bf16.mxu1 %v6145_v7  ;;  %v6213_v7 = vld [vmem:[%s8577_s1 + $0xc10] ss:$28 sps:$4 sm:$0xff]  }
 0x105   :  { %4622 = vmatpush1.bf16.msra.mxu0 %v6144_v8  ;;  %2895 = vmatprep.mubr.f32.mxu0 %v6799_v59  ;;  %v6214_v8 = vld [vmem:[%s8577_s1 + $0x2b4] ss:$28 sps:$4 sm:$0xff]  }
 0x106   :  { %4624 = vmatprep.subr.bf16.mxu0 %v6148_v9  ;;  %v6217_v9 = vld [vmem:[%s8577_s1 + $0xc4c] ss:$28 sps:$4 sm:$0xff]  }
 0x107   :  { %4462 = vmatpush1.bf16.msra.mxu1 %v6147_v10  ;;  %v6216_v10 = vld [vmem:[%s8577_s1 + $0x2b0] ss:$28 sps:$4 sm:$0xff]  }
 0x108   :  { %4464 = vmatprep.subr.bf16.mxu1 %v6151_v12  ;;  %v6220_v12 = vld [vmem:[%s8577_s1 + $0x2ec] ss:$28 sps:$4 sm:$0xff]  }
 0x109   :  { %4626 = vmatpush1.bf16.msra.mxu0 %v6150_v11  ;;  %v6219_v11 = vld [vmem:[%s8577_s1 + $0xc48] ss:$28 sps:$4 sm:$0xff]  }
 0x10a   :  { %4628 = vmatprep.subr.bf16.mxu0 %v6154_v14  ;;  %v6222_v14 = vld [vmem:[%s8577_s1 + $0x2e8] ss:$28 sps:$4 sm:$0xff]  }
 0x10b   :  { %4466 = vmatpush1.bf16.msra.mxu1 %v6153_v13  ;;  %v6223_v13 = vld [vmem:[%s8577_s1 + $0xc84] ss:$28 sps:$4 sm:$0xff]  }
 0x10c   :  { %4468 = vmatprep.subr.bf16.mxu1 %v6157_v16  ;;  %v6226_v16 = vld [vmem:[%s8577_s1 + $0x324] ss:$28 sps:$4 sm:$0xff]  }
 0x10d   :  { %4630 = vmatpush1.bf16.msra.mxu0 %v6156_v15  ;;  %v6225_v15 = vld [vmem:[%s8577_s1 + $0xc80] ss:$28 sps:$4 sm:$0xff]  }
 0x10e   :  { %4632 = vmatprep.subr.bf16.mxu0 %v6160_v18  ;;  %v6228_v18 = vld [vmem:[%s8577_s1 + $0x320] ss:$28 sps:$4 sm:$0xff]  }
 0x10f   :  { %4470 = vmatpush1.bf16.msra.mxu1 %v6159_v17  ;;  %v6229_v17 = vld [vmem:[%s8577_s1 + $0xcbc] ss:$28 sps:$4 sm:$0xff]  }
 0x110   :  { %4472 = vmatprep.subr.bf16.mxu1 %v6163_v20  ;;  %v6232_v20 = vld [vmem:[%s8577_s1 + $0x35c] ss:$28 sps:$4 sm:$0xff]  }
 0x111   :  { %4634 = vmatpush1.bf16.msra.mxu0 %v6162_v19  ;;  %v6231_v19 = vld [vmem:[%s8577_s1 + $0xcb8] ss:$28 sps:$4 sm:$0xff]  }
 0x112   :  { %4636 = vmatprep.subr.bf16.mxu0 %v6166_v23  ;;  %v6234_v23 = vld [vmem:[%s8577_s1 + $0x358] ss:$28 sps:$4 sm:$0xff]  }
 0x113   :  { %4474 = vmatpush1.bf16.msra.mxu1 %v6165_v21  ;;  %v6235_v21 = vld [vmem:[%s8577_s1 + $0xcf4] ss:$28 sps:$4 sm:$0xff]  }
 0x114   :  { %4476 = vmatprep.subr.bf16.mxu1 %v6169_v25  ;;  %v6238_v25 = vld [vmem:[%s8577_s1 + $0x394] ss:$28 sps:$4 sm:$0xff]  }
 0x115   :  { %4638 = vmatpush1.bf16.msra.mxu0 %v6168_v24  ;;  %v6237_v24 = vld [vmem:[%s8577_s1 + $0xcf0] ss:$28 sps:$4 sm:$0xff]  }
 0x116   :  { %2612 = vmatmul.mubr.f32.vlgmr.msra.gmra.mrb[4].mxu1 %v6955_v47  ;;  %4640 = vmatprep.subr.bf16.mxu0 %v6172_v27  ;;  %v7564_v34 = vpop.f32.mrb[0].mxu1  ;;  %v6240_v27 = vld [vmem:[%s8577_s1 + $0x390] ss:$28 sps:$4 sm:$0xff]  }
 0x117   :  { %4478 = vmatpush1.bf16.msra.mxu1 %v6171_v26  ;;  %2682 = vmatprep.mubr.f32.mxu1 %v7093_v35  ;;  %v7570_v38 = vpop.f32.mrb[1].mxu1  ;;  %v6241_v26 = vld [vmem:[%s8577_s1 + $0xd2c] ss:$28 sps:$4 sm:$0xff]  }
 0x118   :  { %4480 = vmatprep.subr.bf16.mxu1 %v6175_v31  ;;  %v6244_v31 = vld [vmem:[%s8577_s1 + $0x3cc] ss:$28 sps:$4 sm:$0xff]  }
 0x119   :  { %4642 = vmatpush1.bf16.msra.mxu0 %v6174_v29  ;;  %v6243_v29 = vld [vmem:[%s8577_s1 + $0xd28] ss:$28 sps:$4 sm:$0xff]  }
 0x11a   :  { %4644 = vmatprep.subr.bf16.mxu0 %v6178_v33  ;;  %v6246_v33 = vld [vmem:[%s8577_s1 + $0x3c8] ss:$28 sps:$4 sm:$0xff]  }
 0x11b   :  { %4482 = vmatpush1.bf16.msra.mxu1 %v6177_v32  ;;  %v6247_v32 = vld [vmem:[%s8577_s1 + $0xd64] ss:$28 sps:$4 sm:$0xff]  }
 0x11c   :  { %4484 = vmatprep.subr.bf16.mxu1 %v6181_v39  ;;  %v6250_v39 = vld [vmem:[%s8577_s1 + $0x404] ss:$28 sps:$4 sm:$0xff]  }
 0x11d   :  { %4646 = vmatpush1.bf16.msra.mxu0 %v6180_v36  ;;  %v6249_v36 = vld [vmem:[%s8577_s1 + $0xd60] ss:$28 sps:$4 sm:$0xff]  }
 0x11e   :  { %4648 = vmatprep.subr.bf16.mxu0 %v6184_v41  ;;  %v6252_v41 = vld [vmem:[%s8577_s1 + $0x400] ss:$28 sps:$4 sm:$0xff]  }
 0x11f   :  { %4486 = vmatpush1.bf16.msra.mxu1 %v6183_v40  ;;  %v6253_v40 = vld [vmem:[%s8577_s1 + $0xd9c] ss:$28 sps:$4 sm:$0xff]  }
 0x120   :  { %4488 = vmatprep.subr.bf16.mxu1 %v6187_v44  ;;  %v6256_v44 = vld [vmem:[%s8577_s1 + $0x43c] ss:$28 sps:$4 sm:$0xff]  }
 0x121   :  { %4650 = vmatpush1.bf16.msra.mxu0 %v6186_v43  ;;  %v6255_v43 = vld [vmem:[%s8577_s1 + $0xd98] ss:$28 sps:$4 sm:$0xff]  }
 0x122   :  { %4652 = vmatprep.subr.bf16.mxu0 %v6190_v48  ;;  %v6258_v48 = vld [vmem:[%s8577_s1 + $0x438] ss:$28 sps:$4 sm:$0xff]  }
 0x123   :  { %4490 = vmatpush1.bf16.msra.mxu1 %v6189_v45  ;;  %v6259_v45 = vld [vmem:[%s8577_s1 + $0xdd4] ss:$28 sps:$4 sm:$0xff]  }
 0x124   :  { %4492 = vmatprep.subr.bf16.mxu1 %v6193_v52  ;;  %v6262_v52 = vld [vmem:[%s8577_s1 + $0x474] ss:$28 sps:$4 sm:$0xff]  }
 0x125   :  { %4654 = vmatpush1.bf16.msra.mxu0 %v6192_v50  ;;  %v6261_v50 = vld [vmem:[%s8577_s1 + $0xdd0] ss:$28 sps:$4 sm:$0xff]  }
 0x126   :  { %4656 = vmatprep.subr.bf16.mxu0 %v6196_v53  ;;  %v6264_v53 = vld [vmem:[%s8577_s1 + $0x470] ss:$28 sps:$4 sm:$0xff]  }
 0x127   :  { %4494 = vmatpush1.bf16.msra.mxu1 %v6195_v28  ;;  %v6265_v28 = vld [vmem:[%s8577_s1 + $0xe0c] ss:$28 sps:$4 sm:$0xff]  }
 0x128   :  { %4496 = vmatprep.subr.bf16.mxu1 %v6199_v57  ;;  %v7620_v0 = vpop.f32.mrb[2].mxu1  ;;  %v6268_v57 = vld [vmem:[%s8577_s1 + $0x4ac] ss:$28 sps:$4 sm:$0xff]  }
 0x129   :  { %4658 = vmatpush1.bf16.msra.mxu0 %v6198_v56  ;;  %v7625_v2 = vpop.f32.mrb[3].mxu1  ;;  %v6267_v56 = vld [vmem:[%s8577_s1 + $0xe08] ss:$28 sps:$4 sm:$0xff]  }
 0x12a   :  { %4660 = vmatprep.subr.bf16.mxu0 %v6202_v58  ;;  %v6270_v58 = vld [vmem:[%s8577_s1 + $0x4a8] ss:$28 sps:$4 sm:$0xff]  }
 0x12b   :  { %4498 = vmatpush1.bf16.msra.mxu1 %v6201_v61  ;;  %v6271_v61 = vld [vmem:[%s8577_s1 + $0xe44] ss:$28 sps:$4 sm:$0xff]  }
 0x12c   :  { %4500 = vmatprep.subr.bf16.mxu1 %v6205_v63  ;;  %v6273_v63 = vld [vmem:[%s8577_s1 + $0xe40] ss:$28 sps:$4 sm:$0xff]  }
 0x12d   :  { %4662 = vmatpush1.bf16.msra.mxu0 %v6204_v1  ;;  %v6274_v1 = vld [vmem:[%s8577_s1 + $0x4e4] ss:$28 sps:$4 sm:$0xff]  }
 0x12e   :  { %4664 = vmatprep.subr.bf16.mxu0 %v6208_v4  ;;  %v6277_v4 = vld [vmem:[%s8577_s1 + $0xe7c] ss:$28 sps:$4 sm:$0xff]  }
 0x12f   :  { %4502 = vmatpush1.bf16.msra.mxu1 %v6207_v3  ;;  %v6276_v3 = vld [vmem:[%s8577_s1 + $0x4e0] ss:$28 sps:$4 sm:$0xff]  }
 0x130   :  { %4504 = vmatprep.subr.bf16.mxu1 %v6211_v5  ;;  %v6279_v5 = vld [vmem:[%s8577_s1 + $0xe78] ss:$28 sps:$4 sm:$0xff]  }
 0x131   :  { %4666 = vmatpush1.bf16.msra.mxu0 %v6210_v6  ;;  %v6280_v6 = vld [vmem:[%s8577_s1 + $0x51c] ss:$28 sps:$4 sm:$0xff]  }
 0x132   :  { %4668 = vmatprep.subr.bf16.mxu0 %v6214_v8  ;;  %v6283_v8 = vld [vmem:[%s8577_s1 + $0xeb4] ss:$28 sps:$4 sm:$0xff]  }
 0x133   :  { %4506 = vmatpush1.bf16.msra.mxu1 %v6213_v7  ;;  %v6282_v7 = vld [vmem:[%s8577_s1 + $0x518] ss:$28 sps:$4 sm:$0xff]  }
 0x134   :  { %4508 = vmatprep.subr.bf16.mxu1 %v6217_v9  ;;  %v6285_v9 = vld [vmem:[%s8577_s1 + $0xeb0] ss:$28 sps:$4 sm:$0xff]  }
 0x135   :  { %4670 = vmatpush1.bf16.msra.mxu0 %v6216_v10  ;;  %v6286_v10 = vld [vmem:[%s8577_s1 + $0x554] ss:$28 sps:$4 sm:$0xff]  }
 0x136   :  { %4672 = vmatprep.subr.bf16.mxu0 %v6220_v12  ;;  %v6289_v12 = vld [vmem:[%s8577_s1 + $0xeec] ss:$28 sps:$4 sm:$0xff]  }
 0x137   :  { %4510 = vmatpush1.bf16.msra.mxu1 %v6219_v11  ;;  %v6288_v11 = vld [vmem:[%s8577_s1 + $0x550] ss:$28 sps:$4 sm:$0xff]  }
 0x138   :  { %4512 = vmatprep.subr.bf16.mxu1 %v6223_v13  ;;  %v6291_v13 = vld [vmem:[%s8577_s1 + $0xee8] ss:$28 sps:$4 sm:$0xff]  }
 0x139   :  { %4674 = vmatpush1.bf16.msra.mxu0 %v6222_v14  ;;  %v6292_v14 = vld [vmem:[%s8577_s1 + $0x58c] ss:$28 sps:$4 sm:$0xff]  }
 0x13a   :  { %4676 = vmatprep.subr.bf16.mxu0 %v6226_v16  ;;  %v6295_v16 = vld [vmem:[%s8577_s1 + $0xf24] ss:$28 sps:$4 sm:$0xff]  }
 0x13b   :  { %4514 = vmatpush1.bf16.msra.mxu1 %v6225_v15  ;;  %v6294_v15 = vld [vmem:[%s8577_s1 + $0x588] ss:$28 sps:$4 sm:$0xff]  }
 0x13c   :  { %4516 = vmatprep.subr.bf16.mxu1 %v6229_v17  ;;  %v6297_v17 = vld [vmem:[%s8577_s1 + $0xf20] ss:$28 sps:$4 sm:$0xff]  }
 0x13d   :  { %4678 = vmatpush1.bf16.msra.mxu0 %v6228_v18  ;;  %v6298_v18 = vld [vmem:[%s8577_s1 + $0x5c4] ss:$28 sps:$4 sm:$0xff]  }
 0x13e   :  { %4680 = vmatprep.subr.bf16.mxu0 %v6232_v20  ;;  %v6301_v20 = vld [vmem:[%s8577_s1 + $0xf5c] ss:$28 sps:$4 sm:$0xff]  }
 0x13f   :  { %4518 = vmatpush1.bf16.msra.mxu1 %v6231_v19  ;;  %v6300_v19 = vld [vmem:[%s8577_s1 + $0x5c0] ss:$28 sps:$4 sm:$0xff]  }
 0x140   :  { %4520 = vmatprep.subr.bf16.mxu1 %v6235_v21  ;;  %v6303_v21 = vld [vmem:[%s8577_s1 + $0xf58] ss:$28 sps:$4 sm:$0xff]  }
 0x141   :  { %4682 = vmatpush1.bf16.msra.mxu0 %v6234_v23  ;;  %v6304_v23 = vld [vmem:[%s8577_s1 + $0x5fc] ss:$28 sps:$4 sm:$0xff]  }
 0x142   :  { %4684 = vmatprep.subr.bf16.mxu0 %v6238_v25  ;;  %v6306_v25 = vld [vmem:[%s8577_s1 + $0x5f8] ss:$28 sps:$4 sm:$0xff]  }
 0x143   :  { %4522 = vmatpush1.bf16.msra.mxu1 %v6237_v24  ;;  %v6307_v24 = vld [vmem:[%s8577_s1 + $0xf94] ss:$28 sps:$4 sm:$0xff]  }
 0x144   :  { %2896 = vmatmul.mubr.f32.vlgmr.msra.gmra.mrb[2].mxu0 %v6786_v54  ;;  %4524 = vmatprep.subr.bf16.mxu1 %v6241_v26  ;;  %v6309_v26 = vld [vmem:[%s8577_s1 + $0xf90] ss:$28 sps:$4 sm:$0xff]  }
 0x145   :  { %4686 = vmatpush1.bf16.msra.mxu0 %v6240_v27  ;;  %2966 = vmatprep.mubr.f32.mxu0 %v6810_v62  ;;  %v6310_v27 = vld [vmem:[%s8577_s1 + $0x634] ss:$28 sps:$4 sm:$0xff]  }
 0x146   :  { %4688 = vmatprep.subr.bf16.mxu0 %v6244_v31  ;;  %v6312_v31 = vld [vmem:[%s8577_s1 + $0x630] ss:$28 sps:$4 sm:$0xff]  }
 0x147   :  { %4526 = vmatpush1.bf16.msra.mxu1 %v6243_v29  ;;  %v6313_v29 = vld [vmem:[%s8577_s1 + $0xfcc] ss:$28 sps:$4 sm:$0xff]  }
 0x148   :  { %4528 = vmatprep.subr.bf16.mxu1 %v6247_v32  ;;  %v6315_v32 = vld [vmem:[%s8577_s1 + $0xfc8] ss:$28 sps:$4 sm:$0xff]  }
 0x149   :  { %4690 = vmatpush1.bf16.msra.mxu0 %v6246_v33  ;;  %v6316_v33 = vld [vmem:[%s8577_s1 + $0x66c] ss:$28 sps:$4 sm:$0xff]  }
 0x14a   :  { %4692 = vmatprep.subr.bf16.mxu0 %v6250_v39  ;;  %v6318_v39 = vld [vmem:[%s8577_s1 + $0x668] ss:$28 sps:$4 sm:$0xff]  }
 0x14b   :  { %4530 = vmatpush1.bf16.msra.mxu1 %v6249_v36  ;;  %v6319_v36 = vld [vmem:[%s8577_s1 + $0x1004] ss:$28 sps:$4 sm:$0xff]  }
 0x14c   :  { %4532 = vmatprep.subr.bf16.mxu1 %v6253_v40  ;;  %v6321_v40 = vld [vmem:[%s8577_s1 + $0x1000] ss:$28 sps:$4 sm:$0xff]  }
 0x14d   :  { %4694 = vmatpush1.bf16.msra.mxu0 %v6252_v41  ;;  %v6322_v41 = vld [vmem:[%s8577_s1 + $0x6a4] ss:$28 sps:$4 sm:$0xff]  }
 0x14e   :  { %4696 = vmatprep.subr.bf16.mxu0 %v6256_v44  ;;  %v6324_v44 = vld [vmem:[%s8577_s1 + $0x6a0] ss:$28 sps:$4 sm:$0xff]  }
 0x14f   :  { %4534 = vmatpush1.bf16.msra.mxu1 %v6255_v43  ;;  %v6325_v43 = vld [vmem:[%s8577_s1 + $0x103c] ss:$28 sps:$4 sm:$0xff]  }
 0x150   :  { %4536 = vmatprep.subr.bf16.mxu1 %v6259_v45  ;;  %v6327_v45 = vld [vmem:[%s8577_s1 + $0x1038] ss:$28 sps:$4 sm:$0xff]  }
 0x151   :  { %4698 = vmatpush1.bf16.msra.mxu0 %v6258_v48  ;;  %v6328_v48 = vld [vmem:[%s8577_s1 + $0x6dc] ss:$28 sps:$4 sm:$0xff]  }
 0x152   :  { %4700 = vmatprep.subr.bf16.mxu0 %v6262_v52  ;;  %v6330_v52 = vld [vmem:[%s8577_s1 + $0x6d8] ss:$28 sps:$4 sm:$0xff]  }
 0x153   :  { %4538 = vmatpush1.bf16.msra.mxu1 %v6261_v50  ;;  %v6331_v50 = vld [vmem:[%s8577_s1 + $0x1074] ss:$28 sps:$4 sm:$0xff]  }
 0x154   :  { %4540 = vmatprep.subr.bf16.mxu1 %v6265_v28  ;;  %v6333_v28 = vld [vmem:[%s8577_s1 + $0x1070] ss:$28 sps:$4 sm:$0xff]  }
 0x155   :  { %4702 = vmatpush1.bf16.msra.mxu0 %v6264_v53  ;;  %v6334_v53 = vld [vmem:[%s8577_s1 + $0x714] ss:$28 sps:$4 sm:$0xff]  }
 0x156   :  { %2683 = vmatmul.mubr.f32.vlgmr.msra.gmra.mrb[4].mxu1 %v7077_v30  ;;  %4704 = vmatprep.subr.bf16.mxu0 %v6268_v57  ;;  %v6336_v57 = vld [vmem:[%s8577_s1 + $0x710] ss:$28 sps:$4 sm:$0xff]  }
 0x157   :  { %4542 = vmatpush1.bf16.msra.mxu1 %v6267_v56  ;;  %2753 = vmatprep.mubr.f32.mxu1 %v7297_v55  ;;  %v6337_v56 = vld [vmem:[%s8577_s1 + $0x10ac] ss:$28 sps:$4 sm:$0xff]  }
 0x158   :  { %4544 = vmatprep.subr.bf16.mxu1 %v6271_v61  ;;  %v6340_v61 = vld [vmem:[%s8577_s1 + $0x74c] ss:$28 sps:$4 sm:$0xff]  }
 0x159   :  { %4706 = vmatpush1.bf16.msra.mxu0 %v6270_v58  ;;  %v6339_v58 = vld [vmem:[%s8577_s1 + $0x10a8] ss:$28 sps:$4 sm:$0xff]  }
 0x15a   :  { %4708 = vmatprep.subr.bf16.mxu0 %v6274_v1  ;;  %v6342_v1 = vld [vmem:[%s8577_s1 + $0x748] ss:$28 sps:$4 sm:$0xff]  }
 0x15b   :  { %4546 = vmatpush1.bf16.msra.mxu1 %v6273_v63  ;;  %v6343_v63 = vld [vmem:[%s8577_s1 + $0x10e4] ss:$28 sps:$4 sm:$0xff]  }
 0x15c   :  { %4548 = vmatprep.subr.bf16.mxu1 %v6277_v4  ;;  %v6346_v4 = vld [vmem:[%s8577_s1 + $0x784] ss:$28 sps:$4 sm:$0xff]  }
 0x15d   :  { %4710 = vmatpush1.bf16.msra.mxu0 %v6276_v3  ;;  %v6345_v3 = vld [vmem:[%s8577_s1 + $0x10e0] ss:$28 sps:$4 sm:$0xff]  }
 0x15e   :  { %4712 = vmatprep.subr.bf16.mxu0 %v6280_v6  ;;  %v6348_v6 = vld [vmem:[%s8577_s1 + $0x780] ss:$28 sps:$4 sm:$0xff]  }
 0x15f   :  { %4550 = vmatpush1.bf16.msra.mxu1 %v6279_v5  ;;  %v6349_v5 = vld [vmem:[%s8577_s1 + $0x111c] ss:$28 sps:$4 sm:$0xff]  }
 0x160   :  { %4552 = vmatprep.subr.bf16.mxu1 %v6283_v8  ;;  %v6352_v8 = vld [vmem:[%s8577_s1 + $0x7bc] ss:$28 sps:$4 sm:$0xff]  }
 0x161   :  { %4714 = vmatpush1.bf16.msra.mxu0 %v6282_v7  ;;  %v6351_v7 = vld [vmem:[%s8577_s1 + $0x1118] ss:$28 sps:$4 sm:$0xff]  }
 0x162   :  { %4716 = vmatprep.subr.bf16.mxu0 %v6286_v10  ;;  %v6354_v10 = vld [vmem:[%s8577_s1 + $0x7b8] ss:$28 sps:$4 sm:$0xff]  }
 0x163   :  { %4554 = vmatpush1.bf16.msra.mxu1 %v6285_v9  ;;  %v6355_v9 = vld [vmem:[%s8577_s1 + $0x1154] ss:$28 sps:$4 sm:$0xff]  }
 0x164   :  { %4556 = vmatprep.subr.bf16.mxu1 %v6289_v12  ;;  %v6358_v12 = vld [vmem:[%s8577_s1 + $0x7f4] ss:$28 sps:$4 sm:$0xff]  }
 0x165   :  { %4718 = vmatpush1.bf16.msra.mxu0 %v6288_v11  ;;  %v6357_v11 = vld [vmem:[%s8577_s1 + $0x1150] ss:$28 sps:$4 sm:$0xff]  }
 0x166   :  { %4720 = vmatprep.subr.bf16.mxu0 %v6292_v14  ;;  %v6360_v14 = vld [vmem:[%s8577_s1 + $0x7f0] ss:$28 sps:$4 sm:$0xff]  }
 0x167   :  { %4558 = vmatpush1.bf16.msra.mxu1 %v6291_v13  ;;  %v6361_v13 = vld [vmem:[%s8577_s1 + $0x118c] ss:$28 sps:$4 sm:$0xff]  }
 0x168   :  { %4560 = vmatprep.subr.bf16.mxu1 %v6295_v16  ;;  %v6363_v16 = vld [vmem:[%s8577_s1 + $0x1188] ss:$28 sps:$4 sm:$0xff]  }
 0x169   :  { %4722 = vmatpush1.bf16.msra.mxu0 %v6294_v15  ;;  %v6364_v15 = vld [vmem:[%s8577_s1 + $0x82c] ss:$28 sps:$4 sm:$0xff]  }
 0x16a   :  { %4724 = vmatprep.subr.bf16.mxu0 %v6298_v18  ;;  %v6366_v18 = vld [vmem:[%s8577_s1 + $0x828] ss:$28 sps:$4 sm:$0xff]  }
 0x16b   :  { %4562 = vmatpush1.bf16.msra.mxu1 %v6297_v17  ;;  %v6367_v17 = vld [vmem:[%s8577_s1 + $0x11c4] ss:$28 sps:$4 sm:$0xff]  }
 0x16c   :  { %4564 = vmatprep.subr.bf16.mxu1 %v6301_v20  ;;  %v6369_v20 = vld [vmem:[%s8577_s1 + $0x11c0] ss:$28 sps:$4 sm:$0xff]  }
 0x16d   :  { %4726 = vmatpush1.bf16.msra.mxu0 %v6300_v19  ;;  %v6370_v19 = vld [vmem:[%s8577_s1 + $0x864] ss:$28 sps:$4 sm:$0xff]  }
 0x16e   :  { %4728 = vmatprep.subr.bf16.mxu0 %v6304_v23  ;;  %v6372_v23 = vld [vmem:[%s8577_s1 + $0x860] ss:$28 sps:$4 sm:$0xff]  }
 0x16f   :  { %4566 = vmatpush1.bf16.msra.mxu1 %v6303_v21  ;;  %v6373_v21 = vld [vmem:[%s8577_s1 + $0x11fc] ss:$28 sps:$4 sm:$0xff]  }
 0x170   :  { %4568 = vmatprep.subr.bf16.mxu1 %v6307_v24  ;;  %v6376_v24 = vld [vmem:[%s8577_s1 + $0x89c] ss:$28 sps:$4 sm:$0xff]  }
 0x171   :  { %4730 = vmatpush1.bf16.msra.mxu0 %v6306_v25  ;;  %v6375_v25 = vld [vmem:[%s8577_s1 + $0x11f8] ss:$28 sps:$4 sm:$0xff]  }
 0x172   :  { %4732 = vmatprep.subr.bf16.mxu0 %v6310_v27  ;;  %v6378_v27 = vld [vmem:[%s8577_s1 + $0x898] ss:$28 sps:$4 sm:$0xff]  }
 0x173   :  { %4570 = vmatpush1.bf16.msra.mxu1 %v6309_v26  ;;  %v6379_v26 = vld [vmem:[%s8577_s1 + $0x1234] ss:$28 sps:$4 sm:$0xff]  }
 0x174   :  { %4572 = vmatprep.subr.bf16.mxu1 %v6313_v29  ;;  %v687_v29 = vld [vmem:[%s8577_s1 + $0x1268] sm:$0xff] }
 0x175   :  { %4734 = vmatpush1.bf16.msra.mxu0 %v6312_v31  ;;  %v6382_v31 = vld [vmem:[%s8577_s1 + $0x8d4] ss:$28 sps:$4 sm:$0xff]  }
 0x176   :  { %4736 = vmatprep.subr.bf16.mxu0 %v6316_v33  ;;  %v1869_v33 = vunpack.c.h.bf16 %v687_v29 }
 0x177   :  { %4574 = vmatpush1.bf16.msra.mxu1 %v6315_v32  ;;  %v6381_v32 = vld [vmem:[%s8577_s1 + $0x1230] ss:$28 sps:$4 sm:$0xff]  }
 0x178   :  { %4576 = vmatprep.subr.bf16.mxu1 %v6319_v36  ;;  %v6384_v36 = vld [vmem:[%s8577_s1 + $0x8d0] ss:$28 sps:$4 sm:$0xff]  }
 0x179   :  { %4738 = vmatpush1.bf16.msra.mxu0 %v6318_v39  ;;  %v6385_v39 = vld [vmem:[%s8577_s1 + $0x90c] ss:$28 sps:$4 sm:$0xff]  }
 0x17a   :  { %4740 = vmatprep.subr.bf16.mxu0 %v6322_v41  ;;  %v6388_v41 = vld [vmem:[%s8577_s1 + $0x1d8] ss:$28 sps:$4 sm:$0xff]  }
 0x17b   :  { %4578 = vmatpush1.bf16.msra.mxu1 %v6321_v40  ;;  %v1868_v40 = vunpack.c.l.bf16 %v687_v29  ;;  %v6437_v29 = vld [vmem:[%s8577_s1 + $0xb38] ss:$28 sps:$4 sm:$0xff]  }
 0x17c   :  { %4580 = vmatprep.subr.bf16.mxu1 %v6325_v43  ;;  %v6387_v43 = vld [vmem:[%s8577_s1 + $0x908] ss:$28 sps:$4 sm:$0xff]  }
 0x17d   :  { %4742 = vmatpush1.bf16.msra.mxu0 %v6324_v44  ;;  %v6389_v44 = vld [vmem:[%s8577_s1 + $0x18] ss:$28 sps:$4 sm:$0xff]  }
 0x17e   :  { %4744 = vmatprep.subr.bf16.mxu0 %v6328_v48  ;;  %v6393_v48 = vld [vmem:[%s8577_s1 + $0x210] ss:$28 sps:$4 sm:$0xff]  }
 0x17f   :  { %4582 = vmatpush1.bf16.msra.mxu1 %v6327_v45  ;;  %v6390_v45 = vld [vmem:[%s8577_s1 + $0x944] ss:$28 sps:$4 sm:$0xff]  }
 0x180   :  { %4584 = vmatprep.subr.bf16.mxu1 %v6331_v50  ;;  %v6392_v50 = vld [vmem:[%s8577_s1 + $0x940] ss:$28 sps:$4 sm:$0xff]  }
 0x181   :  { %4746 = vmatpush1.bf16.msra.mxu0 %v6330_v52  ;;  %v6394_v52 = vld [vmem:[%s8577_s1 + $0x50] ss:$28 sps:$4 sm:$0xff]  }
 0x182   :  { %4748 = vmatprep.subr.bf16.mxu0 %v6334_v53  ;;  %v6398_v53 = vld [vmem:[%s8577_s1 + $0x248] ss:$28 sps:$4 sm:$0xff]  }
 0x183   :  { %4586 = vmatpush1.bf16.msra.mxu1 %v6333_v28  ;;  %v6395_v28 = vld [vmem:[%s8577_s1 + $0x97c] ss:$28 sps:$4 sm:$0xff]  }
 0x184   :  { %2967 = vmatmul.mubr.f32.vlgmr.msra.gmra.mrb[2].mxu0 %v6802_v60  ;;  %4588 = vmatprep.subr.bf16.mxu1 %v6337_v56  ;;  %v6397_v56 = vld [vmem:[%s8577_s1 + $0x978] ss:$28 sps:$4 sm:$0xff]  }
 0x185   :  { %4750 = vmatpush1.bf16.msra.mxu0 %v6336_v57  ;;  %3037 = vmatprep.mubr.f32.mxu0 %v6966_v51  ;;  %v6399_v57 = vld [vmem:[%s8577_s1 + $0x88] ss:$28 sps:$4 sm:$0xff]  }
 0x186   :  { %4752 = vmatprep.subr.bf16.mxu0 %v6340_v61  ;;  %v6402_v61 = vld [vmem:[%s8577_s1 + $0x9b0] ss:$28 sps:$4 sm:$0xff]  }
 0x187   :  { %4590 = vmatpush1.bf16.msra.mxu1 %v6339_v58  ;;  %v6400_v58 = vld [vmem:[%s8577_s1 + $0x9b4] ss:$28 sps:$4 sm:$0xff]  }
 0x188   :  { %4592 = vmatprep.subr.bf16.mxu1 %v6343_v63  ;;  %v6404_v63 = vld [vmem:[%s8577_s1 + $0xc0] ss:$28 sps:$4 sm:$0xff]  }
 0x189   :  { %4754 = vmatpush1.bf16.msra.mxu0 %v6342_v1  ;;  %v6405_v1 = vld [vmem:[%s8577_s1 + $0x9ec] ss:$28 sps:$4 sm:$0xff]  }
 0x18a   :  { %4756 = vmatprep.subr.bf16.mxu0 %v6346_v4  ;;  %v6407_v4 = vld [vmem:[%s8577_s1 + $0x9e8] ss:$28 sps:$4 sm:$0xff]  }
 0x18b   :  { %4594 = vmatpush1.bf16.msra.mxu1 %v6345_v3  ;;  %v6408_v3 = vld [vmem:[%s8577_s1 + $0x2b8] ss:$28 sps:$4 sm:$0xff]  }
 0x18c   :  { %4596 = vmatprep.subr.bf16.mxu1 %v6349_v5  ;;  %v6409_v5 = vld [vmem:[%s8577_s1 + $0xf8] ss:$28 sps:$4 sm:$0xff]  }
 0x18d   :  { %4758 = vmatpush1.bf16.msra.mxu0 %v6348_v6  ;;  %v6410_v6 = vld [vmem:[%s8577_s1 + $0xa24] ss:$28 sps:$4 sm:$0xff]  }
 0x18e   :  { %4760 = vmatprep.subr.bf16.mxu0 %v6352_v8  ;;  %v6412_v8 = vld [vmem:[%s8577_s1 + $0xa20] ss:$28 sps:$4 sm:$0xff]  }
 0x18f   :  { %4598 = vmatpush1.bf16.msra.mxu1 %v6351_v7  ;;  %v6413_v7 = vld [vmem:[%s8577_s1 + $0x2f0] ss:$28 sps:$4 sm:$0xff]  }
 0x190   :  { %4600 = vmatprep.subr.bf16.mxu1 %v6355_v9  ;;  %v6414_v9 = vld [vmem:[%s8577_s1 + $0x130] ss:$28 sps:$4 sm:$0xff]  }
 0x191   :  { %4762 = vmatpush1.bf16.msra.mxu0 %v6354_v10  ;;  %v6415_v10 = vld [vmem:[%s8577_s1 + $0xa5c] ss:$28 sps:$4 sm:$0xff]  }
 0x192   :  { %4764 = vmatprep.subr.bf16.mxu0 %v6358_v12  ;;  %v6417_v12 = vld [vmem:[%s8577_s1 + $0xa58] ss:$28 sps:$4 sm:$0xff]  }
 0x193   :  { %4602 = vmatpush1.bf16.msra.mxu1 %v6357_v11  ;;  %v6418_v11 = vld [vmem:[%s8577_s1 + $0x328] ss:$28 sps:$4 sm:$0xff]  }
 0x194   :  { %4604 = vmatprep.subr.bf16.mxu1 %v6361_v13  ;;  %v6419_v13 = vld [vmem:[%s8577_s1 + $0x168] ss:$28 sps:$4 sm:$0xff]  }
 0x195   :  { %4766 = vmatpush1.bf16.msra.mxu0 %v6360_v14  ;;  %v6420_v14 = vld [vmem:[%s8577_s1 + $0xa94] ss:$28 sps:$4 sm:$0xff]  }
 0x196   :  { %2754 = vmatmul.mubr.f32.vlgmr.msra.gmra.mrb[4].mxu1 %v7278_v46  ;;  %4768 = vmatprep.subr.bf16.mxu0 %v6364_v15  ;;  %v6423_v15 = vld [vmem:[%s8577_s1 + $0x360] ss:$28 sps:$4 sm:$0xff]  }
 0x197   :  { %4606 = vmatpush1.bf16.msra.mxu1 %v6363_v16  ;;  %2824 = vmatprep.mubr.f32.mxu1 %v6613_v22  ;;  %v6422_v16 = vld [vmem:[%s8577_s1 + $0xa90] ss:$28 sps:$4 sm:$0xff]  }
 0x198   :  { %4608 = vmatprep.subr.bf16.mxu1 %v6367_v17  ;;  %v6424_v17 = vld [vmem:[%s8577_s1 + $0x1a0] ss:$28 sps:$4 sm:$0xff]  }
 0x199   :  { %4770 = vmatpush1.bf16.msra.mxu0 %v6366_v18  ;;  %v6425_v18 = vld [vmem:[%s8577_s1 + $0xacc] ss:$28 sps:$4 sm:$0xff]  }
 0x19a   :  { %4772 = vmatprep.subr.bf16.mxu0 %v6370_v19  ;;  %v6428_v19 = vld [vmem:[%s8577_s1 + $0x558] ss:$28 sps:$4 sm:$0xff]  }
 0x19b   :  { %4610 = vmatpush1.bf16.msra.mxu1 %v6369_v20  ;;  %v6427_v20 = vld [vmem:[%s8577_s1 + $0xac8] ss:$28 sps:$4 sm:$0xff]  }
 0x19c   :  { %4612 = vmatprep.subr.bf16.mxu1 %v6373_v21  ;;  %v6429_v21 = vld [vmem:[%s8577_s1 + $0x398] ss:$28 sps:$4 sm:$0xff]  }
 0x19d   :  { %4774 = vmatpush1.bf16.msra.mxu0 %v6372_v23  ;;  %v6430_v23 = vld [vmem:[%s8577_s1 + $0xb04] ss:$28 sps:$4 sm:$0xff]  }
 0x19e   :  { %4776 = vmatprep.subr.bf16.mxu0 %v6376_v24  ;;  %v6433_v24 = vld [vmem:[%s8577_s1 + $0x590] ss:$28 sps:$4 sm:$0xff]  }
 0x19f   :  { %4614 = vmatpush1.bf16.msra.mxu1 %v6375_v25  ;;  %v6432_v25 = vld [vmem:[%s8577_s1 + $0xb00] ss:$28 sps:$4 sm:$0xff]  }
 0x1a0   :  { %4616 = vmatprep.subr.bf16.mxu1 %v6379_v26  ;;  %v6434_v26 = vld [vmem:[%s8577_s1 + $0x3d0] ss:$28 sps:$4 sm:$0xff]  }
 0x1a1   :  { %4778 = vmatpush1.bf16.msra.mxu0 %v6378_v27  ;;  %v6435_v27 = vld [vmem:[%s8577_s1 + $0xb3c] ss:$28 sps:$4 sm:$0xff]  }
 0x1a2   :  { %4780 = vmatprep.subr.bf16.mxu0 %v6382_v31  ;;  %v6439_v31 = vld [vmem:[%s8577_s1 + $0x408] ss:$28 sps:$4 sm:$0xff]  }
 0x1a3   :  { %4618 = vmatpush1.bf16.msra.mxu1 %v6381_v32  ;;  %v1880_v32 = vsub.s32 0, %v6753_v42 }
 0x1a4   :  { %2776 = vmatprep.subr.mxu1 %v1869_v33  ;;  %v6440_v33 = vld [vmem:[%s8577_s1 + $0xb74] ss:$28 sps:$4 sm:$0xff]  }
 0x1a5   :  { %4782 = vmatpush1.bf16.msra.mxu0 %v6384_v36  ;;  %v8144_v36 = vld [vmem:[%s8579_s2] sm:$0x7f] }
 0x1a6   :  { %4784 = vmatprep.subr.bf16.mxu0 %v6385_v39  ;;  %v1884_v39 = vsub.s32 1, %v6753_v42 }
 0x1a7   :  { %2777 = vmatpush1.msra.mxu1 %v1868_v40  ;;  %v6442_v40 = vld [vmem:[%s8577_s1 + $0xb70] ss:$28 sps:$4 sm:$0xff]  }
 0x1a8   :  { %3738 = vmatmul.mubr.msk.f32.vlgmr.msra.gmra.mrb[4].mxu1 %vm1976_vm0, %v6923_v37  ;;  %4956 = vmatprep.subr.bf16.mxu1 %v6388_v41  ;;  %v6444_v41 = vld [vmem:[%s8577_s1 + $0x440] ss:$28 sps:$4 sm:$0xff]  }
 0x1a9   :  { %4786 = vmatpush1.bf16.msra.mxu0 %v6387_v43  ;;  %4958 = vmatpush3.bf16.msra.mxu1 %v6389_v44  ;;  %v1881_v43 = vrot.slane %v8144_v36, %v1880_v32  ;;  %v6445_v44 = vld [vmem:[%s8577_s1 + $0xbac] ss:$28 sps:$4 sm:$0xff]   ;;  %v6489_v32 = vld [vmem:[%s8577_s1 + $0x7f8] ss:$28 sps:$4 sm:$0xff]  }
 0x1aa   :  { %4788 = vmatprep.subr.bf16.mxu0 %v6390_v45  ;;  %4960 = vmatprep.subr.bf16.mxu1 %v6393_v48  ;;  %v6448_v45 = vld [vmem:[%s8577_s1 + $0x638] ss:$28 sps:$4 sm:$0xff]   ;;  %v1885_v48 = vrot.slane %v8144_v36, %v1884_v39  ;;  %v6492_v39 = vld [vmem:[%s8577_s1 + $0xda0] ss:$28 sps:$4 sm:$0xff]  }
 0x1ab   :  { %3321 = vmatprep.mubr.f32.mxu1 %v6799_v59  ;;  %v6403_v59 = vld [vmem:[%s8577_s1 + $0x280] ss:$28 sps:$4 sm:$0xff]  }
 0x1ad   :  { %4790 = vmatpush1.bf16.msra.mxu0 %v6392_v50  ;;  %4962 = vmatpush3.bf16.msra.mxu1 %v6394_v52  ;;  %v6447_v50 = vld [vmem:[%s8577_s1 + $0xba8] ss:$28 sps:$4 sm:$0xff]   ;;  %v6449_v52 = vld [vmem:[%s8577_s1 + $0x478] ss:$28 sps:$4 sm:$0xff]  }
 0x1ae   :  { %4792 = vmatprep.subr.bf16.mxu0 %v6395_v28  ;;  %4964 = vmatprep.subr.bf16.mxu1 %v6398_v53  ;;  %v2046_v28 = vadd.f32 %v7564_v34, %v1881_v43  ;;  %v6450_v53 = vld [vmem:[%s8577_s1 + $0xbe4] ss:$28 sps:$4 sm:$0xff]  }
 0x1af   :  { %v6452_v34 = vld [vmem:[%s8577_s1 + $0xbe0] ss:$28 sps:$4 sm:$0xff]   ;;  %v6498_v43 = vld [vmem:[%s8577_s1 + $0xa28] ss:$28 sps:$4 sm:$0xff]  }
 0x1b1   :  { %4794 = vmatpush1.bf16.msra.mxu0 %v6397_v56  ;;  %4966 = vmatpush3.bf16.msra.mxu1 %v6399_v57  ;;  %v6453_v56 = vld [vmem:[%s8577_s1 + $0x670] ss:$28 sps:$4 sm:$0xff]   ;;  %v2048_v57 = vadd.f32 %v7570_v38, %v1885_v48  ;;  %v6455_v38 = vld [vmem:[%s8577_s1 + $0xc1c] ss:$28 sps:$4 sm:$0xff]  }
 0x1b2   :  { %4796 = vmatprep.subr.bf16.mxu0 %v6400_v58  ;;  %4968 = vmatprep.subr.bf16.mxu1 %v6403_v59  ;;  %v6500_v48 = vld [vmem:[%s8577_s1 + $0xe14] ss:$28 sps:$4 sm:$0xff]  }
 0x1b5   :  { %4798 = vmatpush1.bf16.msra.mxu0 %v6402_v61  ;;  %4970 = vmatpush3.bf16.msra.mxu1 %v6404_v63 }
 0x1b6   :  { %4800 = vmatprep.subr.bf16.mxu0 %v6405_v1  ;;  %4972 = vmatprep.subr.bf16.mxu1 %v6408_v3  ;;  %v6454_v1 = vld [vmem:[%s8577_s1 + $0x4b0] ss:$28 sps:$4 sm:$0xff]  }
 0x1b9   :  { %4802 = vmatpush1.bf16.msra.mxu0 %v6407_v4  ;;  %4974 = vmatpush3.bf16.msra.mxu1 %v6409_v5  ;;  %v6458_v4 = vld [vmem:[%s8577_s1 + $0x6a8] ss:$28 sps:$4 sm:$0xff]  }
 0x1ba   :  { %4804 = vmatprep.subr.bf16.mxu0 %v6410_v6  ;;  %4976 = vmatprep.subr.bf16.mxu1 %v6413_v7  ;;  %v6459_v6 = vld [vmem:[%s8577_s1 + $0x4e8] ss:$28 sps:$4 sm:$0xff]   ;;  %v6460_v7 = vld [vmem:[%s8577_s1 + $0xc54] ss:$28 sps:$4 sm:$0xff]  }
 0x1bd   :  { %4806 = vmatpush1.bf16.msra.mxu0 %v6412_v8  ;;  %4978 = vmatpush3.bf16.msra.mxu1 %v6414_v9  ;;  %v6462_v8 = vld [vmem:[%s8577_s1 + $0xc50] ss:$28 sps:$4 sm:$0xff]   ;;  %v6464_v9 = vld [vmem:[%s8577_s1 + $0x520] ss:$28 sps:$4 sm:$0xff]  }
 0x1be   :  { %4808 = vmatprep.subr.bf16.mxu0 %v6415_v10  ;;  %4980 = vmatprep.subr.bf16.mxu1 %v6418_v11  ;;  %v6465_v10 = vld [vmem:[%s8577_s1 + $0xc8c] ss:$28 sps:$4 sm:$0xff]   ;;  %v6468_v11 = vld [vmem:[%s8577_s1 + $0x8d8] ss:$28 sps:$4 sm:$0xff]  }
 0x1c1   :  { %4810 = vmatpush1.bf16.msra.mxu0 %v6417_v12  ;;  %4982 = vmatpush3.bf16.msra.mxu1 %v6419_v13  ;;  %v6467_v12 = vld [vmem:[%s8577_s1 + $0xc88] ss:$28 sps:$4 sm:$0xff]   ;;  %v6469_v13 = vld [vmem:[%s8577_s1 + $0x718] ss:$28 sps:$4 sm:$0xff]  }
 0x1c2   :  { %4812 = vmatprep.subr.bf16.mxu0 %v6420_v14  ;;  %4984 = vmatprep.subr.bf16.mxu1 %v6423_v15  ;;  %v6470_v15 = vld [vmem:[%s8577_s1 + $0xcc4] ss:$28 sps:$4 sm:$0xff]  }
 0x1c4   :  { %3038 = vmatmul.mubr.f32.vlgmr.msra.gmra.mrb[2].mxu0 %v6955_v47 }
 0x1c5   :  { %4814 = vmatpush1.bf16.msra.mxu0 %v6422_v16  ;;  %4986 = vmatpush3.bf16.msra.mxu1 %v6424_v17  ;;  %v6473_v16 = vld [vmem:[%s8577_s1 + $0x910] ss:$28 sps:$4 sm:$0xff]  }
 0x1c6   :  { %4816 = vmatprep.subr.bf16.mxu0 %v6425_v18  ;;  %4988 = vmatprep.subr.bf16.mxu1 %v6428_v19  ;;  %v6472_v19 = vld [vmem:[%s8577_s1 + $0xcc0] ss:$28 sps:$4 sm:$0xff]  }
 0x1c7   :  { %3108 = vmatprep.mubr.f32.mxu0 %v7093_v35 }
 0x1c8   :  { %3322 = vmatmul.mubr.f32.vlgmr.msra.gmra.mrb[6].mxu1 %v6786_v54  ;;  %v6438_v54 = vld [vmem:[%s8577_s1 + $0x5c8] ss:$28 sps:$4 sm:$0xff]  }
 0x1c9   :  { %4818 = vmatpush1.bf16.msra.mxu0 %v6427_v20  ;;  %4990 = vmatpush3.bf16.msra.mxu1 %v6429_v21  ;;  %v6474_v20 = vld [vmem:[%s8577_s1 + $0x750] ss:$28 sps:$4 sm:$0xff]   ;;  %v6475_v21 = vld [vmem:[%s8577_s1 + $0xcfc] ss:$28 sps:$4 sm:$0xff]  }
 0x1ca   :  { %4820 = vmatprep.subr.bf16.mxu0 %v6430_v23  ;;  %4992 = vmatprep.subr.bf16.mxu1 %v6433_v24  ;;  %v6477_v23 = vld [vmem:[%s8577_s1 + $0xcf8] ss:$28 sps:$4 sm:$0xff]   ;;  %v6479_v24 = vld [vmem:[%s8577_s1 + $0x788] ss:$28 sps:$4 sm:$0xff]  }
 0x1cb   :  { %3391 = vmatprep.mubr.f32.mxu1 %v6810_v62  ;;  %v6443_v62 = vld [vmem:[%s8577_s1 + $0x600] ss:$28 sps:$4 sm:$0xff]  }
 0x1cd   :  { %4822 = vmatpush1.bf16.msra.mxu0 %v6432_v25  ;;  %4994 = vmatpush3.bf16.msra.mxu1 %v6434_v26  ;;  %v6480_v25 = vld [vmem:[%s8577_s1 + $0xd34] ss:$28 sps:$4 sm:$0xff]  }
 0x1ce   :  { %4824 = vmatprep.subr.bf16.mxu0 %v6435_v27  ;;  %4996 = vmatprep.subr.bf16.mxu1 %v6438_v54  ;;  %v6482_v26 = vld [vmem:[%s8577_s1 + $0xd30] ss:$28 sps:$4 sm:$0xff]   ;;  %v6484_v27 = vld [vmem:[%s8577_s1 + $0x7c0] ss:$28 sps:$4 sm:$0xff]  }
 0x1cf   :  { %v6485_v54 = vld [vmem:[%s8577_s1 + $0xd6c] ss:$28 sps:$4 sm:$0xff]  }
 0x1d1   :  { %4826 = vmatpush1.bf16.msra.mxu0 %v6437_v29  ;;  %4998 = vmatpush3.bf16.msra.mxu1 %v6439_v31  ;;  %v6488_v29 = vld [vmem:[%s8577_s1 + $0x9b8] ss:$28 sps:$4 sm:$0xff]   ;;  %v6487_v31 = vld [vmem:[%s8577_s1 + $0xd68] ss:$28 sps:$4 sm:$0xff]  }
 0x1d2   :  { %4828 = vmatprep.subr.bf16.mxu0 %v6440_v33  ;;  %5000 = vmatprep.subr.bf16.mxu1 %v6443_v62  ;;  %v6490_v33 = vld [vmem:[%s8577_s1 + $0xda4] ss:$28 sps:$4 sm:$0xff]   ;;  %v6493_v62 = vld [vmem:[%s8577_s1 + $0x9f0] ss:$28 sps:$4 sm:$0xff]  }
 0x1d5   :  { %4830 = vmatpush1.bf16.msra.mxu0 %v6442_v40  ;;  %5002 = vmatpush3.bf16.msra.mxu1 %v6444_v41  ;;  %v6494_v40 = vld [vmem:[%s8577_s1 + $0x830] ss:$28 sps:$4 sm:$0xff]   ;;  %v6495_v41 = vld [vmem:[%s8577_s1 + $0xddc] ss:$28 sps:$4 sm:$0xff]  }
 0x1d6   :  { %4832 = vmatprep.subr.bf16.mxu0 %v6445_v44  ;;  %5004 = vmatprep.subr.bf16.mxu1 %v6448_v45  ;;  %v6497_v44 = vld [vmem:[%s8577_s1 + $0xdd8] ss:$28 sps:$4 sm:$0xff]   ;;  %v6499_v45 = vld [vmem:[%s8577_s1 + $0x868] ss:$28 sps:$4 sm:$0xff]  }
 0x1d7   :  { %v2329_v58 = vpop.f32.mrb[0].mxu0 }
 0x1d8   :  { %v5128_v59 = vadd.f32 %v2329_v58, %v2046_v28  ;;  %v2331_v61 = vpop.f32.mrb[1].mxu0  ;;  %v6504_v28 = vld [vmem:[%s8577_s1 + $0x8a0] ss:$28 sps:$4 sm:$0xff]   ;;  %v6509_v58 = vld [vmem:[%s8577_s1 + $0xa98] ss:$28 sps:$4 sm:$0xff]  }
 0x1d9   :  { %v5131_v63 = vadd.f32 %v2331_v61, %v2048_v57  ;;  %4834 = vmatpush1.bf16.msra.mxu0 %v6447_v50  ;;  %5006 = vmatpush3.bf16.msra.mxu1 %v6449_v52  ;;  %v6503_v50 = vld [vmem:[%s8577_s1 + $0xa60] ss:$28 sps:$4 sm:$0xff]   ;;  %v6502_v52 = vld [vmem:[%s8577_s1 + $0xe10] ss:$28 sps:$4 sm:$0xff]   ;;  %v6507_v57 = vld [vmem:[%s8577_s1 + $0xe48] ss:$28 sps:$4 sm:$0xff]  }
 0x1da   :  { %v5129_v3 = vadd.f32 %v5128_v59, %v7620_v0  ;;  %4836 = vmatprep.subr.bf16.mxu0 %v6450_v53  ;;  %5008 = vmatprep.subr.bf16.mxu1 %v6453_v56  ;;  %v6457_v0 = vld [vmem:[%s8577_s1 + $0xc18] ss:$28 sps:$4 sm:$0xff]   ;;  %v6505_v53 = vld [vmem:[%s8577_s1 + $0xe4c] ss:$28 sps:$4 sm:$0xff]   ;;  %v6510_v59 = vld [vmem:[%s8577_s1 + $0xe84] ss:$28 sps:$4 sm:$0xff]  }
 0x1db   :  { %v5132_v5 = vadd.f32 %v5131_v63, %v7625_v2  ;;  %v6463_v2 = vld [vmem:[%s8577_s1 + $0x6e0] ss:$28 sps:$4 sm:$0xff]   ;;  %v6508_v56 = vld [vmem:[%s8577_s1 + $0xc58] ss:$28 sps:$4 sm:$0xff]   ;;  %v6513_v61 = vld [vmem:[%s8577_s1 + $0xc90] ss:$28 sps:$4 sm:$0xff]  }
 0x1dc   :  { %6598 = vtanh.f32 %v5129_v3  ;;  %v6512_v63 = vld [vmem:[%s8577_s1 + $0xe80] ss:$28 sps:$4 sm:$0xff]   ;;  %v6517_v3 = vld [vmem:[%s8577_s1 + $0xeb8] ss:$28 sps:$4 sm:$0xff]  }
 0x1dd   :  { %6600 = vtanh.f32 %v5132_v5  ;;  %4838 = vmatpush1.bf16.msra.mxu0 %v6452_v34  ;;  %5010 = vmatpush3.bf16.msra.mxu1 %v6454_v1  ;;  %v6514_v34 = vld [vmem:[%s8577_s1 + $0xad0] ss:$28 sps:$4 sm:$0xff]   ;;  %v6515_v1 = vld [vmem:[%s8577_s1 + $0xebc] ss:$28 sps:$4 sm:$0xff]  }
 0x1de   :  { %4840 = vmatprep.subr.bf16.mxu0 %v6455_v38  ;;  %5012 = vmatprep.subr.bf16.mxu1 %v6458_v4  ;;  %v6519_v38 = vld [vmem:[%s8577_s1 + $0xb08] ss:$28 sps:$4 sm:$0xff]   ;;  %v6520_v4 = vld [vmem:[%s8577_s1 + $0xef4] ss:$28 sps:$4 sm:$0xff]  }
 0x1df   :  { %v6522_v5 = vld [vmem:[%s8577_s1 + $0xef0] ss:$28 sps:$4 sm:$0xff]  }
 0x1e1   :  { %4842 = vmatpush1.bf16.msra.mxu0 %v6457_v0  ;;  %5014 = vmatpush3.bf16.msra.mxu1 %v6459_v6  ;;  %v6524_v0 = vld [vmem:[%s8577_s1 + $0xb40] ss:$28 sps:$4 sm:$0xff]   ;;  %v6525_v6 = vld [vmem:[%s8577_s1 + $0xf2c] ss:$28 sps:$4 sm:$0xff]  }
 0x1e2   :  { %4844 = vmatprep.subr.bf16.mxu0 %v6460_v7  ;;  %5016 = vmatprep.subr.bf16.mxu1 %v6463_v2  ;;  %v6528_v7 = vld [vmem:[%s8577_s1 + $0xd38] ss:$28 sps:$4 sm:$0xff]   ;;  %v6527_v2 = vld [vmem:[%s8577_s1 + $0xf28] ss:$28 sps:$4 sm:$0xff]  }
 0x1e5   :  { %4846 = vmatpush1.bf16.msra.mxu0 %v6462_v8  ;;  %5018 = vmatpush3.bf16.msra.mxu1 %v6464_v9  ;;  %v6529_v8 = vld [vmem:[%s8577_s1 + $0xb78] ss:$28 sps:$4 sm:$0xff]   ;;  %v6530_v9 = vld [vmem:[%s8577_s1 + $0xf64] ss:$28 sps:$4 sm:$0xff]  }
 0x1e6   :  { %v8219_v14 = vpop.eup %6598  ;;  %4848 = vmatprep.subr.bf16.mxu0 %v6465_v10  ;;  %5020 = vmatprep.subr.bf16.mxu1 %v6468_v11  ;;  %v6533_v10 = vld [vmem:[%s8577_s1 + $0xd70] ss:$28 sps:$4 sm:$0xff]   ;;  %v6532_v11 = vld [vmem:[%s8577_s1 + $0xf60] ss:$28 sps:$4 sm:$0xff]  }
 0x1e7   :  { %v8227_v17 = vpop.eup %6600 }
 0x1e8   :  { %v3691_v18 = vcombine.low %v8219_v14, %v8227_v17  ;;  %3392 = vmatmul.mubr.f32.vlgmr.msra.gmra.mrb[8].mxu1 %v6802_v60  ;;  %v6478_v60 = vld [vmem:[%s8577_s1 + $0x948] ss:$28 sps:$4 sm:$0xff]  }
 0x1e9   :  { %4850 = vmatpush1.bf16.msra.mxu0 %v6467_v12  ;;  %5022 = vmatpush3.bf16.msra.mxu1 %v6469_v13  ;;  %v6534_v12 = vld [vmem:[%s8577_s1 + $0xbb0] ss:$28 sps:$4 sm:$0xff]   ;;  %v6535_v13 = vld [vmem:[%s8577_s1 + $0xf9c] ss:$28 sps:$4 sm:$0xff]  }
 0x1ea   :  { %4852 = vmatprep.subr.bf16.mxu0 %v6470_v15  ;;  %5024 = vmatprep.subr.bf16.mxu1 %v6473_v16  ;;  %v6538_v15 = vld [vmem:[%s8577_s1 + $0xda8] ss:$28 sps:$4 sm:$0xff]   ;;  %v6537_v16 = vld [vmem:[%s8577_s1 + $0xf98] ss:$28 sps:$4 sm:$0xff]  }
 0x1eb   :  { %3461 = vmatprep.mubr.f32.mxu1 %v6966_v51  ;;  %v6483_v51 = vld [vmem:[%s8577_s1 + $0x980] ss:$28 sps:$4 sm:$0xff]  }
 0x1ed   :  { %4854 = vmatpush1.bf16.msra.mxu0 %v6472_v19  ;;  %5026 = vmatpush3.bf16.msra.mxu1 %v6474_v20  ;;  %v6539_v19 = vld [vmem:[%s8577_s1 + $0xbe8] ss:$28 sps:$4 sm:$0xff]   ;;  %v6540_v20 = vld [vmem:[%s8577_s1 + $0xfd4] ss:$28 sps:$4 sm:$0xff]  }
 0x1ee   :  { %4856 = vmatprep.subr.bf16.mxu0 %v6475_v21  ;;  %5028 = vmatprep.subr.bf16.mxu1 %v6478_v60  ;;  %v6543_v21 = vld [vmem:[%s8577_s1 + $0xde0] ss:$28 sps:$4 sm:$0xff]   ;;  %v6542_v60 = vld [vmem:[%s8577_s1 + $0xfd0] ss:$28 sps:$4 sm:$0xff]  }
 0x1f1   :  { %4858 = vmatpush1.bf16.msra.mxu0 %v6477_v23  ;;  %5030 = vmatpush3.bf16.msra.mxu1 %v6479_v24  ;;  %v6544_v23 = vld [vmem:[%s8577_s1 + $0xc20] ss:$28 sps:$4 sm:$0xff]   ;;  %v6545_v24 = vld [vmem:[%s8577_s1 + $0x100c] ss:$28 sps:$4 sm:$0xff]  }
 0x1f2   :  { %4860 = vmatprep.subr.bf16.mxu0 %v6480_v25  ;;  %5032 = vmatprep.subr.bf16.mxu1 %v6483_v51  ;;  %v6548_v25 = vld [vmem:[%s8577_s1 + $0xfd8] ss:$28 sps:$4 sm:$0xff]   ;;  %v6547_v51 = vld [vmem:[%s8577_s1 + $0x1008] ss:$28 sps:$4 sm:$0xff]  }
 0x1f5   :  { %4862 = vmatpush1.bf16.msra.mxu0 %v6482_v26  ;;  %5034 = vmatpush3.bf16.msra.mxu1 %v6484_v27  ;;  %v6549_v26 = vld [vmem:[%s8577_s1 + $0xe18] ss:$28 sps:$4 sm:$0xff]   ;;  %v6550_v27 = vld [vmem:[%s8577_s1 + $0x1044] ss:$28 sps:$4 sm:$0xff]  }
 0x1f6   :  { %4864 = vmatprep.subr.bf16.mxu0 %v6485_v54  ;;  %5036 = vmatprep.subr.bf16.mxu1 %v6488_v29  ;;  %v6553_v54 = vld [vmem:[%s8577_s1 + $0x1010] ss:$28 sps:$4 sm:$0xff]   ;;  %v6552_v29 = vld [vmem:[%s8577_s1 + $0x1040] ss:$28 sps:$4 sm:$0xff]  }
 0x1f9   :  { %4866 = vmatpush1.bf16.msra.mxu0 %v6487_v31  ;;  %5038 = vmatpush3.bf16.msra.mxu1 %v6489_v32  ;;  %v6554_v31 = vld [vmem:[%s8577_s1 + $0xe50] ss:$28 sps:$4 sm:$0xff]   ;;  %v6555_v32 = vld [vmem:[%s8577_s1 + $0x107c] ss:$28 sps:$4 sm:$0xff]  }
 0x1fa   :  { %4868 = vmatprep.subr.bf16.mxu0 %v6490_v33  ;;  %5040 = vmatprep.subr.bf16.mxu1 %v6493_v62  ;;  %v6557_v33 = vld [vmem:[%s8577_s1 + $0x1078] ss:$28 sps:$4 sm:$0xff]   ;;  %v6559_v62 = vld [vmem:[%s8577_s1 + $0xe88] ss:$28 sps:$4 sm:$0xff]  }
 0x1fd   :  { %4870 = vmatpush1.bf16.msra.mxu0 %v6492_v39  ;;  %5042 = vmatpush3.bf16.msra.mxu1 %v6494_v40  ;;  %v6560_v39 = vld [vmem:[%s8577_s1 + $0x10b4] ss:$28 sps:$4 sm:$0xff]  }
 0x1fe   :  { %4872 = vmatprep.subr.bf16.mxu0 %v6495_v41  ;;  %5044 = vmatprep.subr.bf16.mxu1 %v6498_v43  ;;  %v6562_v40 = vld [vmem:[%s8577_s1 + $0x10b0] ss:$28 sps:$4 sm:$0xff]   ;;  %v6564_v41 = vld [vmem:[%s8577_s1 + $0xec0] ss:$28 sps:$4 sm:$0xff]  }
 0x1ff   :  { %v6565_v43 = vld [vmem:[%s8577_s1 + $0x10ec] ss:$28 sps:$4 sm:$0xff]  }
 0x201   :  { %4874 = vmatpush1.bf16.msra.mxu0 %v6497_v44  ;;  %5046 = vmatpush3.bf16.msra.mxu1 %v6499_v45  ;;  %v6568_v44 = vld [vmem:[%s8577_s1 + $0x10b8] ss:$28 sps:$4 sm:$0xff]   ;;  %v6567_v45 = vld [vmem:[%s8577_s1 + $0x10e8] ss:$28 sps:$4 sm:$0xff]  }
 0x202   :  { %4876 = vmatprep.subr.bf16.mxu0 %v6500_v48  ;;  %5048 = vmatprep.subr.bf16.mxu1 %v6503_v50  ;;  %v6569_v48 = vld [vmem:[%s8577_s1 + $0xef8] ss:$28 sps:$4 sm:$0xff]   ;;  %v6570_v50 = vld [vmem:[%s8577_s1 + $0x1124] ss:$28 sps:$4 sm:$0xff]  }
 0x204   :  { %3109 = vmatmul.mubr.f32.vlgmr.msra.gmra.mrb[2].mxu0 %v7077_v30 }
 0x205   :  { %4878 = vmatpush1.bf16.msra.mxu0 %v6502_v52  ;;  %5050 = vmatpush3.bf16.msra.mxu1 %v6504_v28  ;;  %v6573_v52 = vld [vmem:[%s8577_s1 + $0x10f0] ss:$28 sps:$4 sm:$0xff]   ;;  %v6572_v28 = vld [vmem:[%s8577_s1 + $0x1120] ss:$28 sps:$4 sm:$0xff]  }
 0x206   :  { %4880 = vmatprep.subr.bf16.mxu0 %v6505_v53  ;;  %5052 = vmatprep.subr.bf16.mxu1 %v6508_v56  ;;  %v6574_v53 = vld [vmem:[%s8577_s1 + $0xf30] ss:$28 sps:$4 sm:$0xff]   ;;  %v6575_v56 = vld [vmem:[%s8577_s1 + $0x115c] ss:$28 sps:$4 sm:$0xff]  }
 0x207   :  { %3179 = vmatprep.mubr.f32.mxu0 %v7297_v55 }
 0x208   :  { %3462 = vmatmul.mubr.f32.vlgmr.msra.gmra.mrb[10].mxu1 %v6955_v47  ;;  %v6518_v47 = vld [vmem:[%s8577_s1 + $0xcc8] ss:$28 sps:$4 sm:$0xff]  }
 0x209   :  { %4882 = vmatpush1.bf16.msra.mxu0 %v6507_v57  ;;  %5054 = vmatpush3.bf16.msra.mxu1 %v6509_v58  ;;  %v6578_v57 = vld [vmem:[%s8577_s1 + $0x1128] ss:$28 sps:$4 sm:$0xff]   ;;  %v6577_v58 = vld [vmem:[%s8577_s1 + $0x1158] ss:$28 sps:$4 sm:$0xff]  }
 0x20a   :  { %4884 = vmatprep.subr.bf16.mxu0 %v6510_v59  ;;  %5056 = vmatprep.subr.bf16.mxu1 %v6513_v61  ;;  %v6579_v59 = vld [vmem:[%s8577_s1 + $0xf68] ss:$28 sps:$4 sm:$0xff]   ;;  %v6580_v61 = vld [vmem:[%s8577_s1 + $0x1194] ss:$28 sps:$4 sm:$0xff]  }
 0x20b   :  { %3531 = vmatprep.mubr.f32.mxu1 %v7093_v35  ;;  %v6523_v35 = vld [vmem:[%s8577_s1 + $0xd00] ss:$28 sps:$4 sm:$0xff]  }
 0x20d   :  { %4886 = vmatpush1.bf16.msra.mxu0 %v6512_v63  ;;  %5058 = vmatpush3.bf16.msra.mxu1 %v6514_v34  ;;  %v6583_v63 = vld [vmem:[%s8577_s1 + $0x1160] ss:$28 sps:$4 sm:$0xff]   ;;  %v6582_v34 = vld [vmem:[%s8577_s1 + $0x1190] ss:$28 sps:$4 sm:$0xff]  }
 0x20e   :  { %4888 = vmatprep.subr.bf16.mxu0 %v6515_v1  ;;  %5060 = vmatprep.subr.bf16.mxu1 %v6518_v47  ;;  %v6584_v1 = vld [vmem:[%s8577_s1 + $0xfa0] ss:$28 sps:$4 sm:$0xff]   ;;  %v6585_v47 = vld [vmem:[%s8577_s1 + $0x11cc] ss:$28 sps:$4 sm:$0xff]  }
 0x211   :  { %4890 = vmatpush1.bf16.msra.mxu0 %v6517_v3  ;;  %5062 = vmatpush3.bf16.msra.mxu1 %v6519_v38  ;;  %v6587_v3 = vld [vmem:[%s8577_s1 + $0x11c8] ss:$28 sps:$4 sm:$0xff]   ;;  %v6588_v38 = vld [vmem:[%s8577_s1 + $0x1198] ss:$28 sps:$4 sm:$0xff]  }
 0x212   :  { %4892 = vmatprep.subr.bf16.mxu0 %v6520_v4  ;;  %5064 = vmatprep.subr.bf16.mxu1 %v6523_v35  ;;  %v6614_v4 = vmov 0.0|0.0   ;;  %v6589_v35 = vld [vmem:[%s8577_s1 + $0x1204] ss:$28 sps:$4 sm:$0xff]  }
 0x215   :  { %4894 = vmatpush1.bf16.msra.mxu0 %v6522_v5  ;;  %5066 = vmatpush3.bf16.msra.mxu1 %v6524_v0  ;;  %v6591_v5 = vld [vmem:[%s8577_s1 + $0x1200] ss:$28 sps:$4 sm:$0xff]   ;;  %v6592_v0 = vld [vmem:[%s8577_s1 + $0x11d0] ss:$28 sps:$4 sm:$0xff]  }
 0x216   :  { %4896 = vmatprep.subr.bf16.mxu0 %v6525_v6  ;;  %5068 = vmatprep.subr.bf16.mxu1 %v6528_v7  ;;  %v6593_v6 = vld [vmem:[%s8577_s1 + $0x123c] ss:$28 sps:$4 sm:$0xff]  }
 0x217   :  { %v6595_v7 = vld [vmem:[%s8577_s1 + $0x1238] ss:$28 sps:$4 sm:$0xff]  }
 0x219   :  { %4898 = vmatpush1.bf16.msra.mxu0 %v6527_v2  ;;  %5070 = vmatpush3.bf16.msra.mxu1 %v6529_v8  ;;  %v6596_v2 = vld [vmem:[%s8577_s1 + $0x1208] ss:$28 sps:$4 sm:$0xff]  }
 0x21a   :  { %4900 = vmatprep.subr.bf16.mxu0 %v6530_v9  ;;  %5072 = vmatprep.subr.bf16.mxu1 %v6533_v10  ;;  %v6597_v10 = vld [vmem:[%s8577_s1 + $0x1240] ss:$28 sps:$4 sm:$0xff]  }
 0x21d   :  { %4902 = vmatpush1.bf16.msra.mxu0 %v6532_v11  ;;  %5074 = vmatpush3.bf16.msra.mxu1 %v6534_v12  ;;  %v689_v11 = vld [vmem:[%s8577_s1 + $0x1278] sm:$0xf] }
 0x21e   :  { %4904 = vmatprep.subr.bf16.mxu0 %v6535_v13  ;;  %5076 = vmatprep.subr.bf16.mxu1 %v6538_v15  ;;  %v1872_v12 = vunpack.c.l.bf16 %v689_v11  ;;  %v1888_v13 = vsub.s32 2, %v6753_v42  ;;  %v1892_v15 = vsub.s32 3, %v6753_v42 }
 0x221   :  { %4906 = vmatpush1.bf16.msra.mxu0 %v6537_v16  ;;  %5078 = vmatpush3.bf16.msra.mxu1 %v6539_v19  ;;  %v1889_v16 = vrot.slane %v8144_v36, %v1888_v13  ;;  %v1893_v19 = vrot.slane %v8144_v36, %v1892_v15 }
 0x222   :  { %4908 = vmatprep.subr.bf16.mxu0 %v6540_v20  ;;  %5080 = vmatprep.subr.bf16.mxu1 %v6543_v21 }
 0x225   :  { %4910 = vmatpush1.bf16.msra.mxu0 %v6542_v60  ;;  %5082 = vmatpush3.bf16.msra.mxu1 %v6544_v23 }
 0x226   :  { %4912 = vmatprep.subr.bf16.mxu0 %v6545_v24  ;;  %5084 = vmatprep.subr.bf16.mxu1 %v6548_v25 }
 0x228   :  { %3532 = vmatmul.mubr.f32.vlgmr.msra.gmra.mrb[12].mxu1 %v7077_v30  ;;  %v6558_v30 = vld [vmem:[%s8577_s1 + $0x1048] ss:$28 sps:$4 sm:$0xff]  }
 0x229   :  { %4914 = vmatpush1.bf16.msra.mxu0 %v6547_v51  ;;  %5086 = vmatpush3.bf16.msra.mxu1 %v6549_v26 }
 0x22a   :  { %4916 = vmatprep.subr.bf16.mxu0 %v6550_v27  ;;  %5088 = vmatprep.subr.bf16.mxu1 %v6553_v54 }
 0x22b   :  { %3601 = vmatprep.mubr.f32.mxu1 %v7297_v55  ;;  %v6563_v55 = vld [vmem:[%s8577_s1 + $0x1080] ss:$28 sps:$4 sm:$0xff]  }
 0x22d   :  { %4918 = vmatpush1.bf16.msra.mxu0 %v6552_v29  ;;  %5090 = vmatpush3.bf16.msra.mxu1 %v6554_v31  ;;  %v1904_v31 = vsub.s32 6, %v6753_v42 }
 0x22e   :  { %4920 = vmatprep.subr.bf16.mxu0 %v6555_v32  ;;  %5092 = vmatprep.subr.bf16.mxu1 %v6558_v30 }
 0x22f   :  { %v1905_v32 = vrot.slane %v8144_v36, %v1904_v31 }
 0x231   :  { %4922 = vmatpush1.bf16.msra.mxu0 %v6557_v33  ;;  %5094 = vmatpush3.bf16.msra.mxu1 %v6559_v62 }
 0x232   :  { %4924 = vmatprep.subr.bf16.mxu0 %v6560_v39  ;;  %5096 = vmatprep.subr.bf16.mxu1 %v6563_v55 }
 0x235   :  { %4926 = vmatpush1.bf16.msra.mxu0 %v6562_v40  ;;  %5098 = vmatpush3.bf16.msra.mxu1 %v6564_v41 }
 0x236   :  { %4928 = vmatprep.subr.bf16.mxu0 %v6565_v43  ;;  %5100 = vmatprep.subr.bf16.mxu1 %v6568_v44 }
 0x239   :  { %4930 = vmatpush1.bf16.msra.mxu0 %v6567_v45  ;;  %5102 = vmatpush3.bf16.msra.mxu1 %v6569_v48 }
 0x23a   :  { %4932 = vmatprep.subr.bf16.mxu0 %v6570_v50  ;;  %5104 = vmatprep.subr.bf16.mxu1 %v6573_v52 }
 0x23d   :  { %4934 = vmatpush1.bf16.msra.mxu0 %v6572_v28  ;;  %5106 = vmatpush3.bf16.msra.mxu1 %v6574_v53  ;;  %v1896_v53 = vsub.s32 4, %v6753_v42 }
 0x23e   :  { %4936 = vmatprep.subr.bf16.mxu0 %v6575_v56  ;;  %5108 = vmatprep.subr.bf16.mxu1 %v6578_v57  ;;  %v1900_v56 = vsub.s32 5, %v6753_v42 }
 0x23f   :  { %v1897_v57 = vrot.slane %v8144_v36, %v1896_v53 }
 0x241   :  { %4938 = vmatpush1.bf16.msra.mxu0 %v6577_v58  ;;  %5110 = vmatpush3.bf16.msra.mxu1 %v6579_v59  ;;  %v1901_v58 = vrot.slane %v8144_v36, %v1900_v56 }
 0x242   :  { %4940 = vmatprep.subr.bf16.mxu0 %v6580_v61  ;;  %5112 = vmatprep.subr.bf16.mxu1 %v6583_v63 }
 0x244   :  { %3180 = vmatmul.mubr.f32.vlgmr.msra.gmra.mrb[2].mxu0 %v7278_v46 }
 0x245   :  { %4942 = vmatpush1.bf16.msra.mxu0 %v6582_v34  ;;  %5114 = vmatpush3.bf16.msra.mxu1 %v6584_v1 }
 0x246   :  { %4944 = vmatprep.subr.bf16.mxu0 %v6585_v47  ;;  %5115 = vmatprep.subr.bf16.mxu1 %v6614_v4 }
 0x247   :  { %3250 = vmatprep.mubr.f32.mxu0 %v6613_v22 }
 0x248   :  { %3602 = vmatmul.mubr.f32.vlgmr.msra.gmra.mrb[14].mxu1 %v7278_v46  ;;  %v688_v46 = vld [vmem:[%s8577_s1 + $0x1270] sm:$0xff] }
 0x249   :  { %4946 = vmatpush1.bf16.msra.mxu0 %v6587_v3  ;;  %5117 = vmatpush3.bf16.msra.mxu1 %v6588_v38  ;;  %v1871_v8 = vunpack.c.h.bf16 %v688_v46  ;;  %v1870_v9 = vunpack.c.l.bf16 %v688_v46 }
 0x24a   :  { %4948 = vmatprep.subr.bf16.mxu0 %v6589_v35  ;;  %5118 = vmatprep.subr.bf16.mxu1 %v6614_v4 }
 0x24b   :  { %3944 = vmatprep.mubr.msk.f32.mxu1 %vm6615_vm1, %v6613_v22 }
 0x24d   :  { %4950 = vmatpush1.bf16.msra.mxu0 %v6591_v5  ;;  %5120 = vmatpush3.bf16.msra.mxu1 %v6592_v0 }
 0x24e   :  { %4952 = vmatprep.subr.bf16.mxu0 %v6593_v6  ;;  %5121 = vmatprep.subr.bf16.mxu1 %v6614_v4 }
 0x251   :  { %4954 = vmatpush1.bf16.msra.mxu0 %v6595_v7  ;;  %5123 = vmatpush3.bf16.msra.mxu1 %v6596_v2 }
 0x252   :  { %3202 = vmatprep.subr.mxu0 %v1871_v8  ;;  %5124 = vmatprep.subr.bf16.mxu1 %v6614_v4 }
 0x255   :  { %3203 = vmatpush1.msra.mxu0 %v1870_v9  ;;  %5126 = vmatpush3.bf16.msra.mxu1 %v6597_v10 }
 0x256   :  { %3739 = vmatmul.mubr.msk.f32.vlgmr.msra.gmra.mrb[2].mxu0 %vm1976_vm0, %v6923_v37  ;;  %3942 = vmatprep.subr.mxu1 %v6613_v22 }
 0x259   :  { %3943 = vmatpush3.msra.mxu1 %v1872_v12 }
 0x25a   :  { %3945 = vmatmul.mubr.msk.f32.vlgmr.msra.gmra.mrb[16].mxu1 %vm1976_vm0, %v6923_v37  ;;  %v3699_v37 = vrot.slane %v3691_v18, %v6771_v49 }
 0x27b   :  { %v2826_v20 = vpop.f32.mrb[4].mxu1 }
 0x27c   :  { %v5133_v21 = vadd.f32 %v2826_v20, %v1889_v16  ;;  %v2828_v60 = vpop.f32.mrb[5].mxu1 }
 0x27d   :  { %v5134_v23 = vadd.f32 %v2828_v60, %v1893_v19 }
 0x27e   :  { %6602 = vtanh.f32 %v5133_v21 }
 0x27f   :  { %6604 = vtanh.f32 %v5134_v23 }
 0x288   :  { %v6603_v24 = vpop.eup %6602 }
 0x289   :  { %v6605_v22 = vpop.eup %6604 }
 0x28a   :  { %v3692_v25 = vcombine.low %v6603_v24, %v6605_v22 }
 0x28c   :  { %v3706_v51 = vrot.slane %v3692_v25, %v6771_v49 }
 0x28e   :  { %v3707_v26 = vcombine.low %v3699_v37, %v3706_v51 }
 0x290   :  { %3726 = vst [vmem:[%s8580_s3] sm:$0xff] %v3707_v26 }
 0x29b   :  { %v3773_v27 = vpop.f32.mrb[6].mxu1 }
 0x29c   :  { %v3774_v54 = vpop.f32.mrb[7].mxu1 }
 0x29d   :  { %v3775_v29 = vadd.f32 %v3774_v54, %v3773_v27 }
 0x29f   :  { %v3324_v62 = vadd.f32 %v3775_v29, %v1905_v32 }
 0x2bb   :  { %v3808_v30 = vpop.f32.mrb[8].mxu1 }
 0x2bc   :  { %v3809_v33 = vpop.f32.mrb[9].mxu1 }
 0x2bd   :  { %v3810_v39 = vadd.f32 %v3809_v33, %v3808_v30 }
 0x2bf   :  { %v3394_v14 = vadd.f32 %v3810_v39, %v3324_v62 }
 0x2db   :  { %v3843_v17 = vpop.f32.mrb[10].mxu1 }
 0x2dc   :  { %v3844_v18 = vpop.f32.mrb[11].mxu1 }
 0x2dd   :  { %v3845_v55 = vadd.f32 %v3844_v18, %v3843_v17 }
 0x2df   :  { %v3464_v40 = vadd.f32 %v3845_v55, %v3394_v14 }
 0x2fb   :  { %v3878_v41 = vpop.f32.mrb[12].mxu1 }
 0x2fc   :  { %v3879_v43 = vpop.f32.mrb[13].mxu1 }
 0x2fd   :  { %v3880_v44 = vadd.f32 %v3879_v43, %v3878_v41 }
 0x2ff   :  { %v3534_v45 = vadd.f32 %v3880_v44, %v3464_v40 }
 0x31b   :  { %v3913_v48 = vpop.f32.mrb[14].mxu1 }
 0x31c   :  { %v3914_v50 = vpop.f32.mrb[15].mxu1 }
 0x31d   :  { %v3915_v52 = vadd.f32 %v3914_v50, %v3913_v48 }
 0x31f   :  { %v3604_v28 = vadd.f32 %v3915_v52, %v3534_v45 }
 0x329   :  { %v3252_v59 = vpop.f32.mrb[2].mxu0 }
 0x32a   :  { %v5135_v61 = vadd.f32 %v3252_v59, %v1897_v57  ;;  %v3254_v63 = vpop.f32.mrb[3].mxu0 }
 0x32b   :  { %v5136_v34 = vadd.f32 %v3254_v63, %v1901_v58 }
 0x32c   :  { %6606 = vtanh.f32 %v5135_v61 }
 0x32d   :  { %6608 = vtanh.f32 %v5136_v34  ;;  %v3673_v1 = vpop.f32.mrb[16].mxu1 }
 0x32e   :  { %v3674_v47 = vadd.f32 %v3673_v1, %v3604_v28  ;;  %v3946_v3 = vpop.f32.mrb[17].mxu1 }
 0x330   :  { %6610 = vtanh.f32 %v3674_v47 }
 0x336   :  { %v6607_v38 = vpop.eup %6606 }
 0x337   :  { %v6609_v4 = vpop.eup %6608 }
 0x338   :  { %v3708_v35 = vcombine.low %v6607_v38, %v6609_v4 }
 0x33a   :  { %v6611_v42 = vpop.eup %6610  ;;  %v3715_v36 = vrot.slane %v3708_v35, %v6771_v49 }
 0x33b   :  { %v3722_v5 = vrot.slane %v6611_v42, %v6771_v49 }
 0x33d   :  { %v3723_v0 = vcombine.low %v3715_v36, %v3722_v5 }
 0x33f   :  { %3732 = vst.msk [vmem:[%s8580_s3 + $0x8] sm:$0x3f] %vm3731_vm6, %v3723_v0 }

// kernel: _lambda_.6
= control target key start
LH: loop header
LB: loop body
LE: loop exit
PB: predicated region body
PF: predicated region fallthrough
CT: control target
= control target key end

     0   :  { %v1256_v36 = vlaneseq  ;;  %v7567_v37 = vmov 1983009808   ;;  %vm1341_vm0 = vcmask 523264   ;;  %vm7570_vm1 = vmmov 0   ;;  %s10089_s1 = inlined_call_operand.vmem [shape: bf16[576,1352], index: 1, kind: input, shape index: {}]   ;;  %s10090_s0 = inlined_call_operand.vmem [shape: f32[2,576], index: 0, kind: input, shape index: {}]   ;;  %s10091_s3 = inlined_call_operand.vmem [shape: f32[1352,8], index: 3, kind: input, shape index: {}]   ;;  %s10092_s2 = inlined_call_operand.vmem [shape: f32[1,1352], index: 2, kind: input, shape index: {}]   ;;  %s10093_s4 = inlined_call_operand.vmem [shape: f32[8,1352], index: 4, kind: input, shape index: {}]   ;;  %s10094_s5 = inlined_call_operand.vmem [shape: f32[1,1352], index: 5, kind: input, shape index: {}]   ;;  %s10095_s6 = inlined_call_operand.vmem [shape: f32[1,1352], index: 6, kind: input, shape index: {}]   ;;  %s10096_s7 = inlined_call_operand.vmem [shape: f32[2,1352], index: 7, kind: output, shape index: {}]  }
   0x1   :  { %v6987_v0 = vld [vmem:[%s10089_s1 + $0x4] ss:$44 sps:$4 sm:$0xff]   ;;  %v6989_v1 = vld [vmem:[%s10089_s1 + $0xc] ss:$44 sps:$4 sm:$0xff]   ;;  %v6992_v3 = vld [vmem:[%s10089_s1 + $0x8] ss:$44 sps:$4 sm:$0xff]   ;;  %v1315_v38 = vunpack.c.l.s4 %v7567_v37 }
   0x2   :  { %5418 = vmatprep.subr.bf16.mxu0 %v6987_v0  ;;  %v6991_v2 = vld [vmem:[%s10089_s1] ss:$44 sps:$4 sm:$0xff]   ;;  %5562 = vmatprep.subr.bf16.mxu1 %v6989_v1  ;;  %v6993_v4 = vld [vmem:[%s10089_s1 + $0x5c] ss:$44 sps:$4 sm:$0xff]   ;;  %v6995_v5 = vld [vmem:[%s10089_s1 + $0x64] ss:$44 sps:$4 sm:$0xff]  }
   0x3   :  { %5420 = vmatpush1.bf16.msra.mxu0 %v6991_v2  ;;  %5564 = vmatpush1.bf16.msra.mxu1 %v6992_v3  ;;  %v6997_v6 = vld [vmem:[%s10089_s1 + $0x58] ss:$44 sps:$4 sm:$0xff]   ;;  %v6998_v7 = vld [vmem:[%s10089_s1 + $0x60] ss:$44 sps:$4 sm:$0xff]   ;;  %v7001_v9 = vld [vmem:[%s10089_s1 + $0xbc] ss:$44 sps:$4 sm:$0xff]   ;;  %v1316_v43 = vunpack.c.0.s8 %v1315_v38 }
   0x4   :  { %5422 = vmatprep.subr.bf16.mxu0 %v6993_v4  ;;  %5566 = vmatprep.subr.bf16.mxu1 %v6995_v5  ;;  %v6999_v8 = vld [vmem:[%s10089_s1 + $0xb4] ss:$44 sps:$4 sm:$0xff]   ;;  %v7003_v10 = vld [vmem:[%s10089_s1 + $0xb0] ss:$44 sps:$4 sm:$0xff]   ;;  %v7004_v11 = vld [vmem:[%s10089_s1 + $0xb8] ss:$44 sps:$4 sm:$0xff]  }
   0x5   :  { %v7005_v12 = vld [vmem:[%s10089_s1 + $0x10c] ss:$44 sps:$4 sm:$0xff]   ;;  %v7007_v13 = vld [vmem:[%s10089_s1 + $0x114] ss:$44 sps:$4 sm:$0xff]   ;;  %v7010_v15 = vld [vmem:[%s10089_s1 + $0x110] ss:$44 sps:$4 sm:$0xff]  }
   0x6   :  { %v7009_v14 = vld [vmem:[%s10089_s1 + $0x108] ss:$44 sps:$4 sm:$0xff]   ;;  %v7011_v16 = vld [vmem:[%s10089_s1 + $0x164] ss:$44 sps:$4 sm:$0xff]   ;;  %v7013_v17 = vld [vmem:[%s10089_s1 + $0x16c] ss:$44 sps:$4 sm:$0xff]  }
   0x7   :  { %5424 = vmatpush1.bf16.msra.mxu0 %v6997_v6  ;;  %5568 = vmatpush1.bf16.msra.mxu1 %v6998_v7  ;;  %v7015_v18 = vld [vmem:[%s10089_s1 + $0x160] ss:$44 sps:$4 sm:$0xff]   ;;  %v7016_v19 = vld [vmem:[%s10089_s1 + $0x168] ss:$44 sps:$4 sm:$0xff]   ;;  %v7019_v21 = vld [vmem:[%s10089_s1 + $0x1c4] ss:$44 sps:$4 sm:$0xff]  }
   0x8   :  { %5426 = vmatprep.subr.bf16.mxu0 %v6999_v8  ;;  %5570 = vmatprep.subr.bf16.mxu1 %v7001_v9  ;;  %v7017_v20 = vld [vmem:[%s10089_s1 + $0x1bc] ss:$44 sps:$4 sm:$0xff]   ;;  %v7021_v22 = vld [vmem:[%s10089_s1 + $0x1b8] ss:$44 sps:$4 sm:$0xff]   ;;  %v7022_v23 = vld [vmem:[%s10089_s1 + $0x1c0] ss:$44 sps:$4 sm:$0xff]  }
   0x9   :  { %v7023_v24 = vld [vmem:[%s10089_s1 + $0x214] ss:$44 sps:$4 sm:$0xff]   ;;  %v7025_v25 = vld [vmem:[%s10089_s1 + $0x21c] ss:$44 sps:$4 sm:$0xff]   ;;  %v7028_v27 = vld [vmem:[%s10089_s1 + $0x218] ss:$44 sps:$4 sm:$0xff]  }
   0xa   :  { %v7027_v26 = vld [vmem:[%s10089_s1 + $0x210] ss:$44 sps:$4 sm:$0xff]   ;;  %v7029_v28 = vld [vmem:[%s10089_s1 + $0x26c] ss:$44 sps:$4 sm:$0xff]   ;;  %v7031_v29 = vld [vmem:[%s10089_s1 + $0x274] ss:$44 sps:$4 sm:$0xff]  }
   0xb   :  { %5428 = vmatpush1.bf16.msra.mxu0 %v7003_v10  ;;  %5572 = vmatpush1.bf16.msra.mxu1 %v7004_v11  ;;  %v7033_v30 = vld [vmem:[%s10089_s1 + $0x268] ss:$44 sps:$4 sm:$0xff]   ;;  %v7034_v31 = vld [vmem:[%s10089_s1 + $0x270] ss:$44 sps:$4 sm:$0xff]   ;;  %v7037_v33 = vld [vmem:[%s10089_s1 + $0x2cc] ss:$44 sps:$4 sm:$0xff]  }
   0xc   :  { %5430 = vmatprep.subr.bf16.mxu0 %v7005_v12  ;;  %5574 = vmatprep.subr.bf16.mxu1 %v7007_v13  ;;  %v7035_v32 = vld [vmem:[%s10089_s1 + $0x2c4] ss:$44 sps:$4 sm:$0xff]   ;;  %v7039_v34 = vld [vmem:[%s10089_s1 + $0x2c0] ss:$44 sps:$4 sm:$0xff]   ;;  %v7040_v35 = vld [vmem:[%s10089_s1 + $0x2c8] ss:$44 sps:$4 sm:$0xff]  }
   0xd   :  { %v7041_v39 = vld [vmem:[%s10089_s1 + $0x31c] ss:$44 sps:$4 sm:$0xff]   ;;  %v7043_v40 = vld [vmem:[%s10089_s1 + $0x324] ss:$44 sps:$4 sm:$0xff]   ;;  %v7728_v42 = vshrl.u32 %v1256_v36, 7  ;;  %vm2788_vm2 = vcmask 588800  }
   0xe   :  { %v7045_v41 = vld [vmem:[%s10089_s1 + $0x318] ss:$44 sps:$4 sm:$0xff]   ;;  %v7046_v44 = vld [vmem:[%s10089_s1 + $0x320] ss:$44 sps:$4 sm:$0xff]   ;;  %v7049_v46 = vld [vmem:[%s10089_s1 + $0x37c] ss:$44 sps:$4 sm:$0xff]  }
   0xf   :  { %5432 = vmatpush1.bf16.msra.mxu0 %v7009_v14  ;;  %5576 = vmatpush1.bf16.msra.mxu1 %v7010_v15  ;;  %v7047_v45 = vld [vmem:[%s10089_s1 + $0x374] ss:$44 sps:$4 sm:$0xff]   ;;  %v7051_v47 = vld [vmem:[%s10089_s1 + $0x370] ss:$44 sps:$4 sm:$0xff]   ;;  %v7052_v48 = vld [vmem:[%s10089_s1 + $0x378] ss:$44 sps:$4 sm:$0xff]   ;;  %v7746_v49 = vsub.s32 %v1316_v43, %v7728_v42 }
  0x10   :  { %5434 = vmatprep.subr.bf16.mxu0 %v7011_v16  ;;  %5578 = vmatprep.subr.bf16.mxu1 %v7013_v17  ;;  %v7053_v50 = vld [vmem:[%s10089_s1 + $0x3cc] ss:$44 sps:$4 sm:$0xff]   ;;  %v7055_v51 = vld [vmem:[%s10089_s1 + $0x3d4] ss:$44 sps:$4 sm:$0xff]   ;;  %v7058_v55 = vld [vmem:[%s10089_s1 + $0x3d0] ss:$44 sps:$4 sm:$0xff]  }
  0x11   :  { %10160 = vst [vmem:[#allocation2_spill] sm:$0xff] %v7746_v49  ;;  %v26_v52 = vld [vmem:[%s10090_s0] sm:$0xff]  ;;  %v7057_v53 = vld [vmem:[%s10089_s1 + $0x3c8] ss:$44 sps:$4 sm:$0xff]   ;;  %v7061_v57 = vld [vmem:[%s10089_s1 + $0x42c] ss:$44 sps:$4 sm:$0xff]  }
  0x12   :  { %v7761_v54 = vrot.slane %v26_v52, %v7746_v49  ;;  %v7059_v56 = vld [vmem:[%s10089_s1 + $0x424] ss:$44 sps:$4 sm:$0xff]   ;;  %v7063_v59 = vld [vmem:[%s10089_s1 + $0x420] ss:$44 sps:$4 sm:$0xff]   ;;  %v7064_v60 = vld [vmem:[%s10089_s1 + $0x428] ss:$44 sps:$4 sm:$0xff]   ;;  %v1313_v7 = vcombine.high %v26_v52, %v26_v52 }
  0x13   :  { %5436 = vmatpush1.bf16.msra.mxu0 %v7015_v18  ;;  %5580 = vmatpush1.bf16.msra.mxu1 %v7016_v19  ;;  %v7065_v61 = vld [vmem:[%s10089_s1 + $0x47c] ss:$44 sps:$4 sm:$0xff]   ;;  %v7067_v62 = vld [vmem:[%s10089_s1 + $0x484] ss:$44 sps:$4 sm:$0xff]   ;;  %v7070_v0 = vld [vmem:[%s10089_s1 + $0x480] ss:$44 sps:$4 sm:$0xff]  }
  0x14   :  { %5438 = vmatprep.subr.bf16.mxu0 %v7017_v20  ;;  %5582 = vmatprep.subr.bf16.mxu1 %v7019_v21  ;;  %v7774_v58 = vcombine.high %v7761_v54, %v7761_v54  ;;  %v7069_v63 = vld [vmem:[%s10089_s1 + $0x478] ss:$44 sps:$4 sm:$0xff]   ;;  %v7071_v1 = vld [vmem:[%s10089_s1 + $0x4d4] ss:$44 sps:$4 sm:$0xff]   ;;  %v7073_v2 = vld [vmem:[%s10089_s1 + $0x4dc] ss:$44 sps:$4 sm:$0xff]   ;;  %v7827_v12 = vrot.slane %v1313_v7, %v7746_v49 }
  0x15   :  { %v7075_v3 = vld [vmem:[%s10089_s1 + $0x4d0] ss:$44 sps:$4 sm:$0xff]   ;;  %v7076_v4 = vld [vmem:[%s10089_s1 + $0x4d8] ss:$44 sps:$4 sm:$0xff]   ;;  %v7079_v6 = vld [vmem:[%s10089_s1 + $0x534] ss:$44 sps:$4 sm:$0xff]  }
  0x16   :  { %1408 = vmatprep.mubr.f32.mxu0 %v7774_v58  ;;  %1621 = vmatprep.mubr.f32.mxu1 %v7774_v58  ;;  %v7077_v5 = vld [vmem:[%s10089_s1 + $0x52c] ss:$44 sps:$4 sm:$0xff]   ;;  %v7081_v8 = vld [vmem:[%s10089_s1 + $0x528] ss:$44 sps:$4 sm:$0xff]   ;;  %v7082_v9 = vld [vmem:[%s10089_s1 + $0x530] ss:$44 sps:$4 sm:$0xff]   ;;  %v7843_v17 = vcombine.high %v7827_v12, %v7827_v12 }
  0x17   :  { %5440 = vmatpush1.bf16.msra.mxu0 %v7021_v22  ;;  %5584 = vmatpush1.bf16.msra.mxu1 %v7022_v23  ;;  %v7083_v10 = vld [vmem:[%s10089_s1 + $0x584] ss:$44 sps:$4 sm:$0xff]   ;;  %v7086_v11 = vld [vmem:[%s10089_s1 + $0x58c] ss:$44 sps:$4 sm:$0xff]   ;;  %v7088_v14 = vld [vmem:[%s10089_s1 + $0x588] ss:$44 sps:$4 sm:$0xff]  }
  0x18   :  { %5442 = vmatprep.subr.bf16.mxu0 %v7023_v24  ;;  %5586 = vmatprep.subr.bf16.mxu1 %v7025_v25  ;;  %v7085_v13 = vld [vmem:[%s10089_s1 + $0x580] ss:$44 sps:$4 sm:$0xff]   ;;  %v7089_v15 = vld [vmem:[%s10089_s1 + $0x5dc] ss:$44 sps:$4 sm:$0xff]   ;;  %v7092_v16 = vld [vmem:[%s10089_s1 + $0x5e4] ss:$44 sps:$4 sm:$0xff]  }
  0x19   :  { %v7091_v18 = vld [vmem:[%s10089_s1 + $0x5d8] ss:$44 sps:$4 sm:$0xff]   ;;  %v7094_v19 = vld [vmem:[%s10089_s1 + $0x5e0] ss:$44 sps:$4 sm:$0xff]   ;;  %v7098_v21 = vld [vmem:[%s10089_s1 + $0x63c] ss:$44 sps:$4 sm:$0xff]  }
  0x1a   :  { %v7095_v20 = vld [vmem:[%s10089_s1 + $0x634] ss:$44 sps:$4 sm:$0xff]   ;;  %v7097_v22 = vld [vmem:[%s10089_s1 + $0x630] ss:$44 sps:$4 sm:$0xff]   ;;  %v7100_v23 = vld [vmem:[%s10089_s1 + $0x638] ss:$44 sps:$4 sm:$0xff]  }
  0x1b   :  { %5444 = vmatpush1.bf16.msra.mxu0 %v7027_v26  ;;  %5588 = vmatpush1.bf16.msra.mxu1 %v7028_v27  ;;  %v7101_v24 = vld [vmem:[%s10089_s1 + $0x68c] ss:$44 sps:$4 sm:$0xff]   ;;  %v7104_v25 = vld [vmem:[%s10089_s1 + $0x694] ss:$44 sps:$4 sm:$0xff]   ;;  %v7106_v27 = vld [vmem:[%s10089_s1 + $0x690] ss:$44 sps:$4 sm:$0xff]  }
  0x1c   :  { %5446 = vmatprep.subr.bf16.mxu0 %v7029_v28  ;;  %5590 = vmatprep.subr.bf16.mxu1 %v7031_v29  ;;  %v7103_v26 = vld [vmem:[%s10089_s1 + $0x688] ss:$44 sps:$4 sm:$0xff]   ;;  %v7107_v28 = vld [vmem:[%s10089_s1 + $0x6e4] ss:$44 sps:$4 sm:$0xff]   ;;  %v7110_v29 = vld [vmem:[%s10089_s1 + $0x6ec] ss:$44 sps:$4 sm:$0xff]  }
  0x1d   :  { %v7119_v36 = vld [vmem:[%s10089_s1 + $0x794] ss:$44 sps:$4 sm:$0xff]   ;;  %v7122_v37 = vld [vmem:[%s10089_s1 + $0x79c] ss:$44 sps:$4 sm:$0xff]   ;;  %v7139_v52 = vld [vmem:[%s10089_s1 + $0x898] ss:$44 sps:$4 sm:$0xff]  }
  0x1e   :  { %v7121_v38 = vld [vmem:[%s10089_s1 + $0x790] ss:$44 sps:$4 sm:$0xff]   ;;  %v7127_v43 = vld [vmem:[%s10089_s1 + $0x7e8] ss:$44 sps:$4 sm:$0xff]   ;;  %v7166_v7 = vld [vmem:[%s10089_s1 + $0xa00] ss:$44 sps:$4 sm:$0xff]  }
  0x1f   :  { %5448 = vmatpush1.bf16.msra.mxu0 %v7033_v30  ;;  %5592 = vmatpush1.bf16.msra.mxu1 %v7034_v31  ;;  %v7109_v30 = vld [vmem:[%s10089_s1 + $0x6e0] ss:$44 sps:$4 sm:$0xff]   ;;  %v7112_v31 = vld [vmem:[%s10089_s1 + $0x6e8] ss:$44 sps:$4 sm:$0xff]   ;;  %v2690_v49 = vld [vmem:[%s10091_s3 + $0x238] sm:$0xff]  ;;  %vm3646_vm3 = vcmask 58368  }
  0x20   :  { %5450 = vmatprep.subr.bf16.mxu0 %v7035_v32  ;;  %5594 = vmatprep.subr.bf16.mxu1 %v7037_v33  ;;  %v7113_v32 = vld [vmem:[%s10089_s1 + $0x73c] ss:$44 sps:$4 sm:$0xff]   ;;  %v7116_v33 = vld [vmem:[%s10089_s1 + $0x744] ss:$44 sps:$4 sm:$0xff]   ;;  %vm3678_vm4 = vcmask 64512   ;;  %vm4862_vm5 = vcmask 1041408  }
  0x21   :  { %vm4863_vm6 = vcmask 1043458   ;;  %vm4865_vm8 = vcmask 586756  }
  0x22   :  { %vm4864_vm7 = vmor %vm4863_vm6, %vm4862_vm5 }
  0x23   :  { %5452 = vmatpush1.bf16.msra.mxu0 %v7039_v34  ;;  %5596 = vmatpush1.bf16.msra.mxu1 %v7040_v35  ;;  %v7115_v34 = vld [vmem:[%s10089_s1 + $0x738] ss:$44 sps:$4 sm:$0xff]   ;;  %v7118_v35 = vld [vmem:[%s10089_s1 + $0x740] ss:$44 sps:$4 sm:$0xff]   ;;  %vm4866_vm9 = vmor %vm4865_vm8, %vm4864_vm7 }
  0x24   :  { %5454 = vmatprep.subr.bf16.mxu0 %v7041_v39  ;;  %5598 = vmatprep.subr.bf16.mxu1 %v7043_v40  ;;  %v7124_v39 = vld [vmem:[%s10089_s1 + $0x798] ss:$44 sps:$4 sm:$0xff]  }
  0x25   :  { %v7125_v40 = vld [vmem:[%s10089_s1 + $0x7ec] ss:$44 sps:$4 sm:$0xff]  }
  0x27   :  { %5456 = vmatpush1.bf16.msra.mxu0 %v7045_v41  ;;  %5600 = vmatpush1.bf16.msra.mxu1 %v7046_v44  ;;  %v7128_v41 = vld [vmem:[%s10089_s1 + $0x7f4] ss:$44 sps:$4 sm:$0xff]   ;;  %v7130_v44 = vld [vmem:[%s10089_s1 + $0x7f0] ss:$44 sps:$4 sm:$0xff]  }
  0x28   :  { %5458 = vmatprep.subr.bf16.mxu0 %v7047_v45  ;;  %5602 = vmatprep.subr.bf16.mxu1 %v7049_v46  ;;  %v7131_v45 = vld [vmem:[%s10089_s1 + $0x844] ss:$44 sps:$4 sm:$0xff]   ;;  %v7134_v46 = vld [vmem:[%s10089_s1 + $0x84c] ss:$44 sps:$4 sm:$0xff]  }
  0x2b   :  { %5460 = vmatpush1.bf16.msra.mxu0 %v7051_v47  ;;  %5604 = vmatpush1.bf16.msra.mxu1 %v7052_v48  ;;  %v7133_v47 = vld [vmem:[%s10089_s1 + $0x840] ss:$44 sps:$4 sm:$0xff]   ;;  %v7136_v48 = vld [vmem:[%s10089_s1 + $0x848] ss:$44 sps:$4 sm:$0xff]  }
  0x2c   :  { %5462 = vmatprep.subr.bf16.mxu0 %v7053_v50  ;;  %5606 = vmatprep.subr.bf16.mxu1 %v7055_v51  ;;  %v7137_v50 = vld [vmem:[%s10089_s1 + $0x89c] ss:$44 sps:$4 sm:$0xff]   ;;  %v7140_v51 = vld [vmem:[%s10089_s1 + $0x8a4] ss:$44 sps:$4 sm:$0xff]  }
  0x2f   :  { %5464 = vmatpush1.bf16.msra.mxu0 %v7057_v53  ;;  %5608 = vmatpush1.bf16.msra.mxu1 %v7058_v55  ;;  %v7142_v53 = vld [vmem:[%s10089_s1 + $0x8a0] ss:$44 sps:$4 sm:$0xff]  }
  0x30   :  { %5466 = vmatprep.subr.bf16.mxu0 %v7059_v56  ;;  %5610 = vmatprep.subr.bf16.mxu1 %v7061_v57  ;;  %v7143_v55 = vld [vmem:[%s10089_s1 + $0x8f4] ss:$44 sps:$4 sm:$0xff]   ;;  %v7146_v56 = vld [vmem:[%s10089_s1 + $0x8fc] ss:$44 sps:$4 sm:$0xff]  }
  0x31   :  { %v7145_v57 = vld [vmem:[%s10089_s1 + $0x8f0] ss:$44 sps:$4 sm:$0xff]  }
  0x33   :  { %5468 = vmatpush1.bf16.msra.mxu0 %v7063_v59  ;;  %5612 = vmatpush1.bf16.msra.mxu1 %v7064_v60  ;;  %v7148_v59 = vld [vmem:[%s10089_s1 + $0x8f8] ss:$44 sps:$4 sm:$0xff]  }
  0x34   :  { %5470 = vmatprep.subr.bf16.mxu0 %v7065_v61  ;;  %5614 = vmatprep.subr.bf16.mxu1 %v7067_v62  ;;  %v7149_v60 = vld [vmem:[%s10089_s1 + $0x94c] ss:$44 sps:$4 sm:$0xff]   ;;  %v7152_v61 = vld [vmem:[%s10089_s1 + $0x954] ss:$44 sps:$4 sm:$0xff]  }
  0x35   :  { %v7151_v62 = vld [vmem:[%s10089_s1 + $0x948] ss:$44 sps:$4 sm:$0xff]  }
  0x37   :  { %5472 = vmatpush1.bf16.msra.mxu0 %v7069_v63  ;;  %5616 = vmatpush1.bf16.msra.mxu1 %v7070_v0  ;;  %v7154_v63 = vld [vmem:[%s10089_s1 + $0x950] ss:$44 sps:$4 sm:$0xff]  }
  0x38   :  { %5474 = vmatprep.subr.bf16.mxu0 %v7071_v1  ;;  %5618 = vmatprep.subr.bf16.mxu1 %v7073_v2  ;;  %v7155_v0 = vld [vmem:[%s10089_s1 + $0x9a4] ss:$44 sps:$4 sm:$0xff]   ;;  %v7158_v1 = vld [vmem:[%s10089_s1 + $0x9ac] ss:$44 sps:$4 sm:$0xff]  }
  0x39   :  { %v7157_v2 = vld [vmem:[%s10089_s1 + $0x9a0] ss:$44 sps:$4 sm:$0xff]  }
  0x3b   :  { %5476 = vmatpush1.bf16.msra.mxu0 %v7075_v3  ;;  %5620 = vmatpush1.bf16.msra.mxu1 %v7076_v4  ;;  %v7160_v3 = vld [vmem:[%s10089_s1 + $0x9a8] ss:$44 sps:$4 sm:$0xff]  }
  0x3c   :  { %5478 = vmatprep.subr.bf16.mxu0 %v7077_v5  ;;  %5622 = vmatprep.subr.bf16.mxu1 %v7079_v6  ;;  %v7161_v4 = vld [vmem:[%s10089_s1 + $0x9fc] ss:$44 sps:$4 sm:$0xff]   ;;  %v7164_v5 = vld [vmem:[%s10089_s1 + $0xa04] ss:$44 sps:$4 sm:$0xff]  }
  0x3d   :  { %v7163_v6 = vld [vmem:[%s10089_s1 + $0x9f8] ss:$44 sps:$4 sm:$0xff]  }
  0x3f   :  { %5480 = vmatpush1.bf16.msra.mxu0 %v7081_v8  ;;  %5624 = vmatpush1.bf16.msra.mxu1 %v7082_v9  ;;  %v7167_v8 = vld [vmem:[%s10089_s1 + $0xa54] ss:$44 sps:$4 sm:$0xff]   ;;  %v7170_v9 = vld [vmem:[%s10089_s1 + $0xa5c] ss:$44 sps:$4 sm:$0xff]  }
  0x40   :  { %5482 = vmatprep.subr.bf16.mxu0 %v7083_v10  ;;  %5626 = vmatprep.subr.bf16.mxu1 %v7086_v11  ;;  %v7169_v10 = vld [vmem:[%s10089_s1 + $0xa50] ss:$44 sps:$4 sm:$0xff]   ;;  %v7172_v11 = vld [vmem:[%s10089_s1 + $0xa58] ss:$44 sps:$4 sm:$0xff]  }
  0x42   :  { %1409 = vmatmul.mubr.f32.vlgmr.msra.gmra.mrb[0].mxu0 %v7761_v54  ;;  %1622 = vmatmul.mubr.f32.vlgmr.msra.gmra.mrb[0].mxu1 %v7761_v54 }
  0x43   :  { %5484 = vmatpush1.bf16.msra.mxu0 %v7085_v13  ;;  %5628 = vmatpush1.bf16.msra.mxu1 %v7088_v14  ;;  %v7173_v13 = vld [vmem:[%s10089_s1 + $0xaac] ss:$44 sps:$4 sm:$0xff]   ;;  %v7176_v14 = vld [vmem:[%s10089_s1 + $0xab4] ss:$44 sps:$4 sm:$0xff]  }
  0x44   :  { %5486 = vmatprep.subr.bf16.mxu0 %v7089_v15  ;;  %5630 = vmatprep.subr.bf16.mxu1 %v7092_v16  ;;  %v7175_v15 = vld [vmem:[%s10089_s1 + $0xaa8] ss:$44 sps:$4 sm:$0xff]   ;;  %v7178_v16 = vld [vmem:[%s10089_s1 + $0xab0] ss:$44 sps:$4 sm:$0xff]  }
  0x45   :  { %1479 = vmatprep.mubr.f32.mxu0 %v7843_v17  ;;  %1692 = vmatprep.mubr.f32.mxu1 %v7843_v17 }
  0x47   :  { %5488 = vmatpush1.bf16.msra.mxu0 %v7091_v18  ;;  %5632 = vmatpush1.bf16.msra.mxu1 %v7094_v19  ;;  %v7180_v18 = vld [vmem:[%s10089_s1 + $0xb04] ss:$44 sps:$4 sm:$0xff]   ;;  %v7183_v19 = vld [vmem:[%s10089_s1 + $0xb0c] ss:$44 sps:$4 sm:$0xff]  }
  0x48   :  { %5490 = vmatprep.subr.bf16.mxu0 %v7095_v20  ;;  %5634 = vmatprep.subr.bf16.mxu1 %v7098_v21  ;;  %v7182_v20 = vld [vmem:[%s10089_s1 + $0xb00] ss:$44 sps:$4 sm:$0xff]   ;;  %v7185_v21 = vld [vmem:[%s10089_s1 + $0xb08] ss:$44 sps:$4 sm:$0xff]  }
  0x4b   :  { %5492 = vmatpush1.bf16.msra.mxu0 %v7097_v22  ;;  %5636 = vmatpush1.bf16.msra.mxu1 %v7100_v23  ;;  %v7186_v22 = vld [vmem:[%s10089_s1 + $0xb5c] ss:$44 sps:$4 sm:$0xff]   ;;  %v7189_v23 = vld [vmem:[%s10089_s1 + $0xb64] ss:$44 sps:$4 sm:$0xff]  }
  0x4c   :  { %5494 = vmatprep.subr.bf16.mxu0 %v7101_v24  ;;  %5638 = vmatprep.subr.bf16.mxu1 %v7104_v25  ;;  %v7188_v24 = vld [vmem:[%s10089_s1 + $0xb58] ss:$44 sps:$4 sm:$0xff]   ;;  %v7191_v25 = vld [vmem:[%s10089_s1 + $0xb60] ss:$44 sps:$4 sm:$0xff]  }
  0x4f   :  { %5496 = vmatpush1.bf16.msra.mxu0 %v7103_v26  ;;  %5640 = vmatpush1.bf16.msra.mxu1 %v7106_v27  ;;  %v7192_v26 = vld [vmem:[%s10089_s1 + $0xbb4] ss:$44 sps:$4 sm:$0xff]   ;;  %v7195_v27 = vld [vmem:[%s10089_s1 + $0xbbc] ss:$44 sps:$4 sm:$0xff]  }
  0x50   :  { %5498 = vmatprep.subr.bf16.mxu0 %v7107_v28  ;;  %5642 = vmatprep.subr.bf16.mxu1 %v7110_v29  ;;  %v10097_v28 = vmov 0.0   ;;  %v7194_v29 = vld [vmem:[%s10089_s1 + $0xbb0] ss:$44 sps:$4 sm:$0xff]  }
  0x53   :  { %5500 = vmatpush1.bf16.msra.mxu0 %v7109_v30  ;;  %5644 = vmatpush1.bf16.msra.mxu1 %v7112_v31  ;;  %v7197_v30 = vld [vmem:[%s10089_s1 + $0xbb8] ss:$44 sps:$4 sm:$0xff]  }
  0x54   :  { %5502 = vmatprep.subr.bf16.mxu0 %v7113_v32  ;;  %5646 = vmatprep.subr.bf16.mxu1 %v7116_v33  ;;  %v7198_v31 = vld [vmem:[%s10089_s1 + $0xc0c] ss:$44 sps:$4 sm:$0xff]   ;;  %v7201_v32 = vld [vmem:[%s10089_s1 + $0xc14] ss:$44 sps:$4 sm:$0xff]  }
  0x55   :  { %v7200_v33 = vld [vmem:[%s10089_s1 + $0xc08] ss:$44 sps:$4 sm:$0xff]  }
  0x57   :  { %5504 = vmatpush1.bf16.msra.mxu0 %v7115_v34  ;;  %5648 = vmatpush1.bf16.msra.mxu1 %v7118_v35  ;;  %v7203_v34 = vld [vmem:[%s10089_s1 + $0xc10] ss:$44 sps:$4 sm:$0xff]   ;;  %v7204_v35 = vld [vmem:[%s10089_s1 + $0x14] ss:$44 sps:$4 sm:$0xff]  }
  0x58   :  { %5506 = vmatprep.subr.bf16.mxu0 %v7119_v36  ;;  %5650 = vmatprep.subr.bf16.mxu1 %v7122_v37  ;;  %v7207_v36 = vld [vmem:[%s10089_s1 + $0x1c] ss:$44 sps:$4 sm:$0xff]  }
  0x59   :  { %v4872_v37 = vld.sshfl [vmem:[%s10090_s0 + $0x8] sm:$0x3 pattern:$0x76325410] }
  0x5b   :  { %5508 = vmatpush1.bf16.msra.mxu0 %v7121_v38  ;;  %5652 = vmatpush1.bf16.msra.mxu1 %v7124_v39  ;;  %v7206_v38 = vld [vmem:[%s10089_s1 + $0x10] ss:$44 sps:$4 sm:$0xff]   ;;  %v7209_v39 = vld [vmem:[%s10089_s1 + $0x18] ss:$44 sps:$4 sm:$0xff]  }
  0x5c   :  { %5510 = vmatprep.subr.bf16.mxu0 %v7125_v40  ;;  %5654 = vmatprep.subr.bf16.mxu1 %v7128_v41  ;;  %v7210_v40 = vld [vmem:[%s10089_s1 + $0x6c] ss:$44 sps:$4 sm:$0xff]   ;;  %v7213_v41 = vld [vmem:[%s10089_s1 + $0x74] ss:$44 sps:$4 sm:$0xff]  }
  0x5f   :  { %5512 = vmatpush1.bf16.msra.mxu0 %v7127_v43  ;;  %5656 = vmatpush1.bf16.msra.mxu1 %v7130_v44  ;;  %v7212_v43 = vld [vmem:[%s10089_s1 + $0x68] ss:$44 sps:$4 sm:$0xff]   ;;  %v7215_v44 = vld [vmem:[%s10089_s1 + $0x70] ss:$44 sps:$4 sm:$0xff]  }
  0x60   :  { %5514 = vmatprep.subr.bf16.mxu0 %v7131_v45  ;;  %5658 = vmatprep.subr.bf16.mxu1 %v7134_v46  ;;  %v7216_v45 = vld [vmem:[%s10089_s1 + $0xc4] ss:$44 sps:$4 sm:$0xff]   ;;  %v7219_v46 = vld [vmem:[%s10089_s1 + $0xcc] ss:$44 sps:$4 sm:$0xff]  }
  0x63   :  { %5516 = vmatpush1.bf16.msra.mxu0 %v7133_v47  ;;  %5660 = vmatpush1.bf16.msra.mxu1 %v7136_v48  ;;  %v7218_v47 = vld [vmem:[%s10089_s1 + $0xc0] ss:$44 sps:$4 sm:$0xff]   ;;  %v7221_v48 = vld [vmem:[%s10089_s1 + $0xc8] ss:$44 sps:$4 sm:$0xff]  }
  0x64   :  { %5518 = vmatprep.subr.bf16.mxu0 %v7137_v50  ;;  %5662 = vmatprep.subr.bf16.mxu1 %v7140_v51  ;;  %v7222_v50 = vld [vmem:[%s10089_s1 + $0x11c] ss:$44 sps:$4 sm:$0xff]   ;;  %v7225_v51 = vld [vmem:[%s10089_s1 + $0x124] ss:$44 sps:$4 sm:$0xff]  }
  0x67   :  { %5520 = vmatpush1.bf16.msra.mxu0 %v7139_v52  ;;  %5664 = vmatpush1.bf16.msra.mxu1 %v7142_v53  ;;  %v7224_v52 = vld [vmem:[%s10089_s1 + $0x118] ss:$44 sps:$4 sm:$0xff]   ;;  %v7227_v53 = vld [vmem:[%s10089_s1 + $0x120] ss:$44 sps:$4 sm:$0xff]  }
  0x68   :  { %5522 = vmatprep.subr.bf16.mxu0 %v7143_v55  ;;  %5666 = vmatprep.subr.bf16.mxu1 %v7146_v56  ;;  %v7228_v55 = vld [vmem:[%s10089_s1 + $0x174] ss:$44 sps:$4 sm:$0xff]   ;;  %v7231_v56 = vld [vmem:[%s10089_s1 + $0x17c] ss:$44 sps:$4 sm:$0xff]  }
  0x6b   :  { %5524 = vmatpush1.bf16.msra.mxu0 %v7145_v57  ;;  %5668 = vmatpush1.bf16.msra.mxu1 %v7148_v59  ;;  %v7230_v57 = vld [vmem:[%s10089_s1 + $0x170] ss:$44 sps:$4 sm:$0xff]   ;;  %v7233_v59 = vld [vmem:[%s10089_s1 + $0x178] ss:$44 sps:$4 sm:$0xff]  }
  0x6c   :  { %5526 = vmatprep.subr.bf16.mxu0 %v7149_v60  ;;  %5670 = vmatprep.subr.bf16.mxu1 %v7152_v61  ;;  %v7234_v60 = vld [vmem:[%s10089_s1 + $0x1cc] ss:$44 sps:$4 sm:$0xff]   ;;  %v7237_v61 = vld [vmem:[%s10089_s1 + $0x1d4] ss:$44 sps:$4 sm:$0xff]  }
  0x6f   :  { %5528 = vmatpush1.bf16.msra.mxu0 %v7151_v62  ;;  %5672 = vmatpush1.bf16.msra.mxu1 %v7154_v63  ;;  %v7236_v62 = vld [vmem:[%s10089_s1 + $0x1c8] ss:$44 sps:$4 sm:$0xff]   ;;  %v7239_v63 = vld [vmem:[%s10089_s1 + $0x1d0] ss:$44 sps:$4 sm:$0xff]  }
  0x70   :  { %5530 = vmatprep.subr.bf16.mxu0 %v7155_v0  ;;  %5674 = vmatprep.subr.bf16.mxu1 %v7158_v1  ;;  %v7240_v0 = vld [vmem:[%s10089_s1 + $0x224] ss:$44 sps:$4 sm:$0xff]   ;;  %v7243_v1 = vld [vmem:[%s10089_s1 + $0x22c] ss:$44 sps:$4 sm:$0xff]  }
  0x73   :  { %5532 = vmatpush1.bf16.msra.mxu0 %v7157_v2  ;;  %5676 = vmatpush1.bf16.msra.mxu1 %v7160_v3  ;;  %v7242_v2 = vld [vmem:[%s10089_s1 + $0x220] ss:$44 sps:$4 sm:$0xff]   ;;  %v7245_v3 = vld [vmem:[%s10089_s1 + $0x228] ss:$44 sps:$4 sm:$0xff]  }
  0x74   :  { %5534 = vmatprep.subr.bf16.mxu0 %v7161_v4  ;;  %5678 = vmatprep.subr.bf16.mxu1 %v7164_v5  ;;  %v7246_v4 = vld [vmem:[%s10089_s1 + $0x27c] ss:$44 sps:$4 sm:$0xff]   ;;  %v7249_v5 = vld [vmem:[%s10089_s1 + $0x284] ss:$44 sps:$4 sm:$0xff]  }
  0x77   :  { %5536 = vmatpush1.bf16.msra.mxu0 %v7163_v6  ;;  %5680 = vmatpush1.bf16.msra.mxu1 %v7166_v7  ;;  %v7248_v6 = vld [vmem:[%s10089_s1 + $0x278] ss:$44 sps:$4 sm:$0xff]   ;;  %v7251_v7 = vld [vmem:[%s10089_s1 + $0x280] ss:$44 sps:$4 sm:$0xff]  }
  0x78   :  { %5538 = vmatprep.subr.bf16.mxu0 %v7167_v8  ;;  %5682 = vmatprep.subr.bf16.mxu1 %v7170_v9  ;;  %v7252_v8 = vld [vmem:[%s10089_s1 + $0x2d4] ss:$44 sps:$4 sm:$0xff]   ;;  %v7255_v9 = vld [vmem:[%s10089_s1 + $0x2dc] ss:$44 sps:$4 sm:$0xff]  }
  0x7b   :  { %5540 = vmatpush1.bf16.msra.mxu0 %v7169_v10  ;;  %5684 = vmatpush1.bf16.msra.mxu1 %v7172_v11  ;;  %v7254_v10 = vld [vmem:[%s10089_s1 + $0x2d0] ss:$44 sps:$4 sm:$0xff]   ;;  %v7257_v11 = vld [vmem:[%s10089_s1 + $0x2d8] ss:$44 sps:$4 sm:$0xff]  }
  0x7c   :  { %5542 = vmatprep.subr.bf16.mxu0 %v7173_v13  ;;  %5686 = vmatprep.subr.bf16.mxu1 %v7176_v14  ;;  %v7258_v13 = vld [vmem:[%s10089_s1 + $0x32c] ss:$44 sps:$4 sm:$0xff]   ;;  %v7261_v14 = vld [vmem:[%s10089_s1 + $0x334] ss:$44 sps:$4 sm:$0xff]  }
  0x7f   :  { %5544 = vmatpush1.bf16.msra.mxu0 %v7175_v15  ;;  %5688 = vmatpush1.bf16.msra.mxu1 %v7178_v16  ;;  %v7260_v15 = vld [vmem:[%s10089_s1 + $0x328] ss:$44 sps:$4 sm:$0xff]   ;;  %v7263_v16 = vld [vmem:[%s10089_s1 + $0x330] ss:$44 sps:$4 sm:$0xff]  }
  0x80   :  { %5546 = vmatprep.subr.bf16.mxu0 %v7180_v18  ;;  %5690 = vmatprep.subr.bf16.mxu1 %v7183_v19  ;;  %v7264_v18 = vld [vmem:[%s10089_s1 + $0x384] ss:$44 sps:$4 sm:$0xff]   ;;  %v7267_v19 = vld [vmem:[%s10089_s1 + $0x38c] ss:$44 sps:$4 sm:$0xff]  }
  0x82   :  { %1480 = vmatmul.mubr.f32.vlgmr.msra.gmra.mrb[0].mxu0 %v7827_v12  ;;  %1693 = vmatmul.mubr.f32.vlgmr.msra.gmra.mrb[0].mxu1 %v7827_v12 }
  0x83   :  { %5548 = vmatpush1.bf16.msra.mxu0 %v7182_v20  ;;  %5692 = vmatpush1.bf16.msra.mxu1 %v7185_v21  ;;  %v7266_v20 = vld [vmem:[%s10089_s1 + $0x380] ss:$44 sps:$4 sm:$0xff]   ;;  %v7269_v21 = vld [vmem:[%s10089_s1 + $0x388] ss:$44 sps:$4 sm:$0xff]  }
  0x84   :  { %5550 = vmatprep.subr.bf16.mxu0 %v7186_v22  ;;  %5694 = vmatprep.subr.bf16.mxu1 %v7189_v23  ;;  %v7270_v22 = vld [vmem:[%s10089_s1 + $0x3dc] ss:$44 sps:$4 sm:$0xff]   ;;  %v7273_v23 = vld [vmem:[%s10089_s1 + $0x3e4] ss:$44 sps:$4 sm:$0xff]  }
  0x85   :  { %1550 = vmatprep.mubr.f32.mxu0 %v10097_v28  ;;  %1763 = vmatprep.mubr.f32.mxu1 %v10097_v28 }
  0x87   :  { %5552 = vmatpush1.bf16.msra.mxu0 %v7188_v24  ;;  %5696 = vmatpush1.bf16.msra.mxu1 %v7191_v25  ;;  %v7272_v24 = vld [vmem:[%s10089_s1 + $0x3d8] ss:$44 sps:$4 sm:$0xff]   ;;  %v7275_v25 = vld [vmem:[%s10089_s1 + $0x3e0] ss:$44 sps:$4 sm:$0xff]  }
  0x88   :  { %5554 = vmatprep.subr.bf16.mxu0 %v7192_v26  ;;  %5698 = vmatprep.subr.bf16.mxu1 %v7195_v27  ;;  %v7276_v26 = vld [vmem:[%s10089_s1 + $0x434] ss:$44 sps:$4 sm:$0xff]   ;;  %v7279_v27 = vld [vmem:[%s10089_s1 + $0x43c] ss:$44 sps:$4 sm:$0xff]  }
  0x8b   :  { %5556 = vmatpush1.bf16.msra.mxu0 %v7194_v29  ;;  %5700 = vmatpush1.bf16.msra.mxu1 %v7197_v30  ;;  %v7278_v29 = vld [vmem:[%s10089_s1 + $0x430] ss:$44 sps:$4 sm:$0xff]   ;;  %v7281_v30 = vld [vmem:[%s10089_s1 + $0x438] ss:$44 sps:$4 sm:$0xff]  }
  0x8c   :  { %5558 = vmatprep.subr.bf16.mxu0 %v7198_v31  ;;  %5702 = vmatprep.subr.bf16.mxu1 %v7201_v32  ;;  %v7282_v31 = vld [vmem:[%s10089_s1 + $0x48c] ss:$44 sps:$4 sm:$0xff]   ;;  %v7285_v32 = vld [vmem:[%s10089_s1 + $0x494] ss:$44 sps:$4 sm:$0xff]  }
  0x8f   :  { %5560 = vmatpush1.bf16.msra.mxu0 %v7200_v33  ;;  %5704 = vmatpush1.bf16.msra.mxu1 %v7203_v34  ;;  %v7284_v33 = vld [vmem:[%s10089_s1 + $0x488] ss:$44 sps:$4 sm:$0xff]   ;;  %v7287_v34 = vld [vmem:[%s10089_s1 + $0x490] ss:$44 sps:$4 sm:$0xff]  }
  0x90   :  { %5706 = vmatprep.subr.bf16.mxu0 %v7204_v35  ;;  %5850 = vmatprep.subr.bf16.mxu1 %v7207_v36  ;;  %v7288_v35 = vld [vmem:[%s10089_s1 + $0x4e4] ss:$44 sps:$4 sm:$0xff]   ;;  %v7291_v36 = vld [vmem:[%s10089_s1 + $0x4ec] ss:$44 sps:$4 sm:$0xff]  }
  0x92   :  { %4873 = vmatmul.mubr.msk.f32.vlgmr.msra.gmra.mrb[0].mxu0 %vm1341_vm0, %v4872_v37  ;;  %4874 = vmatmul.mubr.msk.f32.vlgmr.msra.gmra.mrb[0].mxu1 %vm1341_vm0, %v4872_v37  ;;  %v7290_v37 = vld [vmem:[%s10089_s1 + $0x4e0] ss:$44 sps:$4 sm:$0xff]  }
  0x93   :  { %5708 = vmatpush1.bf16.msra.mxu0 %v7206_v38  ;;  %5852 = vmatpush1.bf16.msra.mxu1 %v7209_v39  ;;  %v7293_v38 = vld [vmem:[%s10089_s1 + $0x4e8] ss:$44 sps:$4 sm:$0xff]  }
  0x94   :  { %5710 = vmatprep.subr.bf16.mxu0 %v7210_v40  ;;  %5854 = vmatprep.subr.bf16.mxu1 %v7213_v41  ;;  %v7294_v39 = vld [vmem:[%s10089_s1 + $0x53c] ss:$44 sps:$4 sm:$0xff]   ;;  %v7297_v40 = vld [vmem:[%s10089_s1 + $0x544] ss:$44 sps:$4 sm:$0xff]  }
  0x95   :  { %1834 = vmatprep.mubr.f32.mxu0 %v7774_v58  ;;  %2047 = vmatprep.mubr.f32.mxu1 %v7774_v58  ;;  %v7296_v41 = vld [vmem:[%s10089_s1 + $0x538] ss:$44 sps:$4 sm:$0xff]  }
  0x97   :  { %5712 = vmatpush1.bf16.msra.mxu0 %v7212_v43  ;;  %5856 = vmatpush1.bf16.msra.mxu1 %v7215_v44  ;;  %v7299_v43 = vld [vmem:[%s10089_s1 + $0x540] ss:$44 sps:$4 sm:$0xff]  }
  0x98   :  { %5714 = vmatprep.subr.bf16.mxu0 %v7216_v45  ;;  %5858 = vmatprep.subr.bf16.mxu1 %v7219_v46  ;;  %v7300_v44 = vld [vmem:[%s10089_s1 + $0x594] ss:$44 sps:$4 sm:$0xff]   ;;  %v7303_v45 = vld [vmem:[%s10089_s1 + $0x59c] ss:$44 sps:$4 sm:$0xff]  }
  0x99   :  { %v7302_v46 = vld [vmem:[%s10089_s1 + $0x590] ss:$44 sps:$4 sm:$0xff]  }
  0x9b   :  { %5716 = vmatpush1.bf16.msra.mxu0 %v7218_v47  ;;  %5860 = vmatpush1.bf16.msra.mxu1 %v7221_v48  ;;  %v7305_v47 = vld [vmem:[%s10089_s1 + $0x598] ss:$44 sps:$4 sm:$0xff]  }
  0x9c   :  { %5718 = vmatprep.subr.bf16.mxu0 %v7222_v50  ;;  %5862 = vmatprep.subr.bf16.mxu1 %v7225_v51  ;;  %v7306_v48 = vld [vmem:[%s10089_s1 + $0x5ec] ss:$44 sps:$4 sm:$0xff]   ;;  %v7309_v50 = vld [vmem:[%s10089_s1 + $0x5f4] ss:$44 sps:$4 sm:$0xff]  }
  0x9d   :  { %v7308_v51 = vld [vmem:[%s10089_s1 + $0x5e8] ss:$44 sps:$4 sm:$0xff]  }
  0x9f   :  { %5720 = vmatpush1.bf16.msra.mxu0 %v7224_v52  ;;  %5864 = vmatpush1.bf16.msra.mxu1 %v7227_v53  ;;  %v7311_v52 = vld [vmem:[%s10089_s1 + $0x5f0] ss:$44 sps:$4 sm:$0xff]  }
  0xa0   :  { %5722 = vmatprep.subr.bf16.mxu0 %v7228_v55  ;;  %5866 = vmatprep.subr.bf16.mxu1 %v7231_v56  ;;  %v7312_v53 = vld [vmem:[%s10089_s1 + $0x644] ss:$44 sps:$4 sm:$0xff]   ;;  %v7315_v55 = vld [vmem:[%s10089_s1 + $0x64c] ss:$44 sps:$4 sm:$0xff]  }
  0xa1   :  { %v7314_v56 = vld [vmem:[%s10089_s1 + $0x640] ss:$44 sps:$4 sm:$0xff]  }
  0xa3   :  { %5724 = vmatpush1.bf16.msra.mxu0 %v7230_v57  ;;  %5868 = vmatpush1.bf16.msra.mxu1 %v7233_v59  ;;  %v7317_v57 = vld [vmem:[%s10089_s1 + $0x648] ss:$44 sps:$4 sm:$0xff]  }
  0xa4   :  { %5726 = vmatprep.subr.bf16.mxu0 %v7234_v60  ;;  %5870 = vmatprep.subr.bf16.mxu1 %v7237_v61  ;;  %v7318_v59 = vld [vmem:[%s10089_s1 + $0x69c] ss:$44 sps:$4 sm:$0xff]   ;;  %v7321_v60 = vld [vmem:[%s10089_s1 + $0x6a4] ss:$44 sps:$4 sm:$0xff]  }
  0xa5   :  { %v7320_v61 = vld [vmem:[%s10089_s1 + $0x698] ss:$44 sps:$4 sm:$0xff]  }
  0xa7   :  { %5728 = vmatpush1.bf16.msra.mxu0 %v7236_v62  ;;  %5872 = vmatpush1.bf16.msra.mxu1 %v7239_v63  ;;  %v7323_v62 = vld [vmem:[%s10089_s1 + $0x6a0] ss:$44 sps:$4 sm:$0xff]  }
  0xa8   :  { %5730 = vmatprep.subr.bf16.mxu0 %v7240_v0  ;;  %5874 = vmatprep.subr.bf16.mxu1 %v7243_v1  ;;  %v7324_v63 = vld [vmem:[%s10089_s1 + $0x6f4] ss:$44 sps:$4 sm:$0xff]   ;;  %v7327_v0 = vld [vmem:[%s10089_s1 + $0x6fc] ss:$44 sps:$4 sm:$0xff]  }
  0xa9   :  { %v7326_v1 = vld [vmem:[%s10089_s1 + $0x6f0] ss:$44 sps:$4 sm:$0xff]  }
  0xab   :  { %5732 = vmatpush1.bf16.msra.mxu0 %v7242_v2  ;;  %5876 = vmatpush1.bf16.msra.mxu1 %v7245_v3  ;;  %v7329_v2 = vld [vmem:[%s10089_s1 + $0x6f8] ss:$44 sps:$4 sm:$0xff]  }
  0xac   :  { %5734 = vmatprep.subr.bf16.mxu0 %v7246_v4  ;;  %5878 = vmatprep.subr.bf16.mxu1 %v7249_v5  ;;  %v7330_v3 = vld [vmem:[%s10089_s1 + $0x74c] ss:$44 sps:$4 sm:$0xff]   ;;  %v7333_v4 = vld [vmem:[%s10089_s1 + $0x754] ss:$44 sps:$4 sm:$0xff]  }
  0xad   :  { %v7332_v5 = vld [vmem:[%s10089_s1 + $0x748] ss:$44 sps:$4 sm:$0xff]  }
  0xaf   :  { %5736 = vmatpush1.bf16.msra.mxu0 %v7248_v6  ;;  %5880 = vmatpush1.bf16.msra.mxu1 %v7251_v7  ;;  %v7335_v6 = vld [vmem:[%s10089_s1 + $0x750] ss:$44 sps:$4 sm:$0xff]  }
  0xb0   :  { %5738 = vmatprep.subr.bf16.mxu0 %v7252_v8  ;;  %5882 = vmatprep.subr.bf16.mxu1 %v7255_v9  ;;  %v7336_v7 = vld [vmem:[%s10089_s1 + $0x7a4] ss:$44 sps:$4 sm:$0xff]   ;;  %v7339_v8 = vld [vmem:[%s10089_s1 + $0x7ac] ss:$44 sps:$4 sm:$0xff]  }
  0xb1   :  { %v7338_v9 = vld [vmem:[%s10089_s1 + $0x7a0] ss:$44 sps:$4 sm:$0xff]  }
  0xb3   :  { %5740 = vmatpush1.bf16.msra.mxu0 %v7254_v10  ;;  %5884 = vmatpush1.bf16.msra.mxu1 %v7257_v11  ;;  %v7341_v10 = vld [vmem:[%s10089_s1 + $0x7a8] ss:$44 sps:$4 sm:$0xff]  }
  0xb4   :  { %5742 = vmatprep.subr.bf16.mxu0 %v7258_v13  ;;  %5886 = vmatprep.subr.bf16.mxu1 %v7261_v14  ;;  %v7342_v11 = vld [vmem:[%s10089_s1 + $0x7fc] ss:$44 sps:$4 sm:$0xff]   ;;  %v7345_v13 = vld [vmem:[%s10089_s1 + $0x804] ss:$44 sps:$4 sm:$0xff]  }
  0xb5   :  { %v7344_v14 = vld [vmem:[%s10089_s1 + $0x7f8] ss:$44 sps:$4 sm:$0xff]  }
  0xb7   :  { %5744 = vmatpush1.bf16.msra.mxu0 %v7260_v15  ;;  %5888 = vmatpush1.bf16.msra.mxu1 %v7263_v16  ;;  %v7347_v15 = vld [vmem:[%s10089_s1 + $0x800] ss:$44 sps:$4 sm:$0xff]  }
  0xb8   :  { %5746 = vmatprep.subr.bf16.mxu0 %v7264_v18  ;;  %5890 = vmatprep.subr.bf16.mxu1 %v7267_v19  ;;  %v7348_v16 = vld [vmem:[%s10089_s1 + $0x854] ss:$44 sps:$4 sm:$0xff]   ;;  %v7351_v18 = vld [vmem:[%s10089_s1 + $0x85c] ss:$44 sps:$4 sm:$0xff]  }
  0xb9   :  { %v7350_v19 = vld [vmem:[%s10089_s1 + $0x850] ss:$44 sps:$4 sm:$0xff]  }
  0xbb   :  { %5748 = vmatpush1.bf16.msra.mxu0 %v7266_v20  ;;  %5892 = vmatpush1.bf16.msra.mxu1 %v7269_v21  ;;  %v7353_v20 = vld [vmem:[%s10089_s1 + $0x858] ss:$44 sps:$4 sm:$0xff]  }
  0xbc   :  { %5750 = vmatprep.subr.bf16.mxu0 %v7270_v22  ;;  %5894 = vmatprep.subr.bf16.mxu1 %v7273_v23  ;;  %v7354_v21 = vld [vmem:[%s10089_s1 + $0x8ac] ss:$44 sps:$4 sm:$0xff]   ;;  %v7357_v22 = vld [vmem:[%s10089_s1 + $0x8b4] ss:$44 sps:$4 sm:$0xff]  }
  0xbd   :  { %v7356_v23 = vld [vmem:[%s10089_s1 + $0x8a8] ss:$44 sps:$4 sm:$0xff]  }
  0xbf   :  { %5752 = vmatpush1.bf16.msra.mxu0 %v7272_v24  ;;  %5896 = vmatpush1.bf16.msra.mxu1 %v7275_v25  ;;  %v7359_v24 = vld [vmem:[%s10089_s1 + $0x8b0] ss:$44 sps:$4 sm:$0xff]  }
  0xc0   :  { %5754 = vmatprep.subr.bf16.mxu0 %v7276_v26  ;;  %5898 = vmatprep.subr.bf16.mxu1 %v7279_v27  ;;  %v7360_v25 = vld [vmem:[%s10089_s1 + $0x904] ss:$44 sps:$4 sm:$0xff]   ;;  %v7363_v26 = vld [vmem:[%s10089_s1 + $0x90c] ss:$44 sps:$4 sm:$0xff]  }
  0xc1   :  { %v7362_v27 = vld [vmem:[%s10089_s1 + $0x900] ss:$44 sps:$4 sm:$0xff]  }
  0xc3   :  { %5756 = vmatpush1.bf16.msra.mxu0 %v7278_v29  ;;  %5900 = vmatpush1.bf16.msra.mxu1 %v7281_v30  ;;  %v7365_v29 = vld [vmem:[%s10089_s1 + $0x908] ss:$44 sps:$4 sm:$0xff]  }
  0xc4   :  { %5758 = vmatprep.subr.bf16.mxu0 %v7282_v31  ;;  %5902 = vmatprep.subr.bf16.mxu1 %v7285_v32  ;;  %v7366_v30 = vld [vmem:[%s10089_s1 + $0x95c] ss:$44 sps:$4 sm:$0xff]   ;;  %v7369_v31 = vld [vmem:[%s10089_s1 + $0x964] ss:$44 sps:$4 sm:$0xff]  }
  0xc5   :  { %v7368_v32 = vld [vmem:[%s10089_s1 + $0x958] ss:$44 sps:$4 sm:$0xff]  }
  0xc7   :  { %5760 = vmatpush1.bf16.msra.mxu0 %v7284_v33  ;;  %5904 = vmatpush1.bf16.msra.mxu1 %v7287_v34  ;;  %v7371_v33 = vld [vmem:[%s10089_s1 + $0x960] ss:$44 sps:$4 sm:$0xff]  }
  0xc8   :  { %5762 = vmatprep.subr.bf16.mxu0 %v7288_v35  ;;  %5906 = vmatprep.subr.bf16.mxu1 %v7291_v36  ;;  %v7372_v34 = vld [vmem:[%s10089_s1 + $0x9b4] ss:$44 sps:$4 sm:$0xff]   ;;  %v7375_v35 = vld [vmem:[%s10089_s1 + $0x9bc] ss:$44 sps:$4 sm:$0xff]  }
  0xc9   :  { %v7374_v36 = vld [vmem:[%s10089_s1 + $0x9b0] ss:$44 sps:$4 sm:$0xff]  }
  0xcb   :  { %5764 = vmatpush1.bf16.msra.mxu0 %v7290_v37  ;;  %5908 = vmatpush1.bf16.msra.mxu1 %v7293_v38  ;;  %v7377_v37 = vld [vmem:[%s10089_s1 + $0x9b8] ss:$44 sps:$4 sm:$0xff]  }
  0xcc   :  { %5766 = vmatprep.subr.bf16.mxu0 %v7294_v39  ;;  %5910 = vmatprep.subr.bf16.mxu1 %v7297_v40  ;;  %v7378_v38 = vld [vmem:[%s10089_s1 + $0xa0c] ss:$44 sps:$4 sm:$0xff]   ;;  %v7381_v39 = vld [vmem:[%s10089_s1 + $0xa14] ss:$44 sps:$4 sm:$0xff]  }
  0xcd   :  { %v7380_v40 = vld [vmem:[%s10089_s1 + $0xa08] ss:$44 sps:$4 sm:$0xff]  }
  0xcf   :  { %5768 = vmatpush1.bf16.msra.mxu0 %v7296_v41  ;;  %5912 = vmatpush1.bf16.msra.mxu1 %v7299_v43  ;;  %v7383_v41 = vld [vmem:[%s10089_s1 + $0xa10] ss:$44 sps:$4 sm:$0xff]  }
  0xd0   :  { %5770 = vmatprep.subr.bf16.mxu0 %v7300_v44  ;;  %5914 = vmatprep.subr.bf16.mxu1 %v7303_v45  ;;  %v7384_v43 = vld [vmem:[%s10089_s1 + $0xa64] ss:$44 sps:$4 sm:$0xff]   ;;  %v7387_v44 = vld [vmem:[%s10089_s1 + $0xa6c] ss:$44 sps:$4 sm:$0xff]  }
  0xd1   :  { %v7386_v45 = vld [vmem:[%s10089_s1 + $0xa60] ss:$44 sps:$4 sm:$0xff]  }
  0xd2   :  { %1835 = vmatmul.mubr.f32.vlgmr.msra.gmra.mrb[2].mxu0 %v7761_v54  ;;  %2048 = vmatmul.mubr.f32.vlgmr.msra.gmra.mrb[2].mxu1 %v7761_v54 }
  0xd3   :  { %5772 = vmatpush1.bf16.msra.mxu0 %v7302_v46  ;;  %5916 = vmatpush1.bf16.msra.mxu1 %v7305_v47  ;;  %v7389_v46 = vld [vmem:[%s10089_s1 + $0xa68] ss:$44 sps:$4 sm:$0xff]  }
  0xd4   :  { %5774 = vmatprep.subr.bf16.mxu0 %v7306_v48  ;;  %5918 = vmatprep.subr.bf16.mxu1 %v7309_v50  ;;  %v7390_v47 = vld [vmem:[%s10089_s1 + $0xabc] ss:$44 sps:$4 sm:$0xff]   ;;  %v7393_v48 = vld [vmem:[%s10089_s1 + $0xac4] ss:$44 sps:$4 sm:$0xff]  }
  0xd5   :  { %1905 = vmatprep.mubr.f32.mxu0 %v7843_v17  ;;  %2118 = vmatprep.mubr.f32.mxu1 %v7843_v17  ;;  %v7392_v50 = vld [vmem:[%s10089_s1 + $0xab8] ss:$44 sps:$4 sm:$0xff]  }
  0xd7   :  { %5776 = vmatpush1.bf16.msra.mxu0 %v7308_v51  ;;  %5920 = vmatpush1.bf16.msra.mxu1 %v7311_v52  ;;  %v7395_v51 = vld [vmem:[%s10089_s1 + $0xac0] ss:$44 sps:$4 sm:$0xff]  }
  0xd8   :  { %5778 = vmatprep.subr.bf16.mxu0 %v7312_v53  ;;  %5922 = vmatprep.subr.bf16.mxu1 %v7315_v55  ;;  %v7396_v52 = vld [vmem:[%s10089_s1 + $0xb14] ss:$44 sps:$4 sm:$0xff]   ;;  %v7399_v53 = vld [vmem:[%s10089_s1 + $0xb1c] ss:$44 sps:$4 sm:$0xff]  }
  0xd9   :  { %v7398_v55 = vld [vmem:[%s10089_s1 + $0xb10] ss:$44 sps:$4 sm:$0xff]  }
  0xdb   :  { %5780 = vmatpush1.bf16.msra.mxu0 %v7314_v56  ;;  %5924 = vmatpush1.bf16.msra.mxu1 %v7317_v57  ;;  %v7401_v56 = vld [vmem:[%s10089_s1 + $0xb18] ss:$44 sps:$4 sm:$0xff]  }
  0xdc   :  { %5782 = vmatprep.subr.bf16.mxu0 %v7318_v59  ;;  %5926 = vmatprep.subr.bf16.mxu1 %v7321_v60  ;;  %v7402_v57 = vld [vmem:[%s10089_s1 + $0xb6c] ss:$44 sps:$4 sm:$0xff]   ;;  %v7405_v59 = vld [vmem:[%s10089_s1 + $0xb74] ss:$44 sps:$4 sm:$0xff]  }
  0xdd   :  { %v7404_v60 = vld [vmem:[%s10089_s1 + $0xb68] ss:$44 sps:$4 sm:$0xff]  }
  0xdf   :  { %5784 = vmatpush1.bf16.msra.mxu0 %v7320_v61  ;;  %5928 = vmatpush1.bf16.msra.mxu1 %v7323_v62  ;;  %v7407_v61 = vld [vmem:[%s10089_s1 + $0xb70] ss:$44 sps:$4 sm:$0xff]  }
  0xe0   :  { %5786 = vmatprep.subr.bf16.mxu0 %v7324_v63  ;;  %5930 = vmatprep.subr.bf16.mxu1 %v7327_v0  ;;  %v7408_v62 = vld [vmem:[%s10089_s1 + $0xbc4] ss:$44 sps:$4 sm:$0xff]   ;;  %v7411_v63 = vld [vmem:[%s10089_s1 + $0xbcc] ss:$44 sps:$4 sm:$0xff]  }
  0xe1   :  { %v7410_v0 = vld [vmem:[%s10089_s1 + $0xbc0] ss:$44 sps:$4 sm:$0xff]  }
  0xe3   :  { %5788 = vmatpush1.bf16.msra.mxu0 %v7326_v1  ;;  %5932 = vmatpush1.bf16.msra.mxu1 %v7329_v2  ;;  %v7413_v1 = vld [vmem:[%s10089_s1 + $0xbc8] ss:$44 sps:$4 sm:$0xff]  }
  0xe4   :  { %5790 = vmatprep.subr.bf16.mxu0 %v7330_v3  ;;  %5934 = vmatprep.subr.bf16.mxu1 %v7333_v4  ;;  %v7414_v2 = vld [vmem:[%s10089_s1 + $0xc1c] ss:$44 sps:$4 sm:$0xff]   ;;  %v7417_v3 = vld [vmem:[%s10089_s1 + $0xc24] ss:$44 sps:$4 sm:$0xff]  }
  0xe5   :  { %v7416_v4 = vld [vmem:[%s10089_s1 + $0xc18] ss:$44 sps:$4 sm:$0xff]  }
  0xe7   :  { %5792 = vmatpush1.bf16.msra.mxu0 %v7332_v5  ;;  %5936 = vmatpush1.bf16.msra.mxu1 %v7335_v6  ;;  %v7419_v5 = vld [vmem:[%s10089_s1 + $0xc20] ss:$44 sps:$4 sm:$0xff]   ;;  %v7420_v6 = vld [vmem:[%s10089_s1 + $0x24] ss:$44 sps:$4 sm:$0xff]  }
  0xe8   :  { %5794 = vmatprep.subr.bf16.mxu0 %v7336_v7  ;;  %5938 = vmatprep.subr.bf16.mxu1 %v7339_v8  ;;  %v7423_v7 = vld [vmem:[%s10089_s1 + $0x2e8] ss:$44 sps:$4 sm:$0xff]   ;;  %v7422_v8 = vld [vmem:[%s10089_s1 + $0x20] ss:$44 sps:$4 sm:$0xff]  }
  0xeb   :  { %5796 = vmatpush1.bf16.msra.mxu0 %v7338_v9  ;;  %5940 = vmatpush1.bf16.msra.mxu1 %v7341_v10  ;;  %v7424_v9 = vld [vmem:[%s10089_s1 + $0x28] ss:$44 sps:$4 sm:$0xff]  }
  0xec   :  { %5798 = vmatprep.subr.bf16.mxu0 %v7342_v11  ;;  %5942 = vmatprep.subr.bf16.mxu1 %v7345_v13  ;;  %v7425_v10 = vld [vmem:[%s10089_s1 + $0x7c] ss:$44 sps:$4 sm:$0xff]   ;;  %v7428_v11 = vld [vmem:[%s10089_s1 + $0x340] ss:$44 sps:$4 sm:$0xff]   ;;  %v7427_v13 = vld [vmem:[%s10089_s1 + $0x78] ss:$44 sps:$4 sm:$0xff]  }
  0xef   :  { %5800 = vmatpush1.bf16.msra.mxu0 %v7344_v14  ;;  %5944 = vmatpush1.bf16.msra.mxu1 %v7347_v15  ;;  %v8546_v14 = vld.sshfl [vmem:[%s10090_s0 + $0x8] sm:$0x3 pattern:$0x76325410]  ;;  %v7429_v15 = vld [vmem:[%s10089_s1 + $0x80] ss:$44 sps:$4 sm:$0xff]  }
  0xf0   :  { %5802 = vmatprep.subr.bf16.mxu0 %v7348_v16  ;;  %5946 = vmatprep.subr.bf16.mxu1 %v7351_v18  ;;  %v7430_v16 = vld [vmem:[%s10089_s1 + $0xd4] ss:$44 sps:$4 sm:$0xff]   ;;  %v7433_v18 = vld [vmem:[%s10089_s1 + $0x398] ss:$44 sps:$4 sm:$0xff]  }
  0xf3   :  { %5804 = vmatpush1.bf16.msra.mxu0 %v7350_v19  ;;  %5948 = vmatpush1.bf16.msra.mxu1 %v7353_v20  ;;  %v7432_v19 = vld [vmem:[%s10089_s1 + $0xd0] ss:$44 sps:$4 sm:$0xff]   ;;  %v7434_v20 = vld [vmem:[%s10089_s1 + $0xd8] ss:$44 sps:$4 sm:$0xff]  }
  0xf4   :  { %5806 = vmatprep.subr.bf16.mxu0 %v7354_v21  ;;  %5950 = vmatprep.subr.bf16.mxu1 %v7357_v22  ;;  %v7435_v21 = vld [vmem:[%s10089_s1 + $0x12c] ss:$44 sps:$4 sm:$0xff]   ;;  %v7437_v22 = vld [vmem:[%s10089_s1 + $0x128] ss:$44 sps:$4 sm:$0xff]  }
  0xf7   :  { %5808 = vmatpush1.bf16.msra.mxu0 %v7356_v23  ;;  %5952 = vmatpush1.bf16.msra.mxu1 %v7359_v24  ;;  %v7439_v23 = vld [vmem:[%s10089_s1 + $0x130] ss:$44 sps:$4 sm:$0xff]  }
  0xf8   :  { %5810 = vmatprep.subr.bf16.mxu0 %v7360_v25  ;;  %5954 = vmatprep.subr.bf16.mxu1 %v7363_v26  ;;  %v7440_v24 = vld [vmem:[%s10089_s1 + $0x184] ss:$44 sps:$4 sm:$0xff]   ;;  %v7443_v25 = vld [vmem:[%s10089_s1 + $0x448] ss:$44 sps:$4 sm:$0xff]   ;;  %v7442_v26 = vld [vmem:[%s10089_s1 + $0x180] ss:$44 sps:$4 sm:$0xff]  }
  0xfb   :  { %5812 = vmatpush1.bf16.msra.mxu0 %v7362_v27  ;;  %5956 = vmatpush1.bf16.msra.mxu1 %v7365_v29  ;;  %v7444_v27 = vld [vmem:[%s10089_s1 + $0x188] ss:$44 sps:$4 sm:$0xff]  }
  0xfc   :  { %5814 = vmatprep.subr.bf16.mxu0 %v7366_v30  ;;  %5958 = vmatprep.subr.bf16.mxu1 %v7369_v31  ;;  %v7445_v29 = vld [vmem:[%s10089_s1 + $0x1dc] ss:$44 sps:$4 sm:$0xff]   ;;  %v7448_v30 = vld [vmem:[%s10089_s1 + $0x4a0] ss:$44 sps:$4 sm:$0xff]   ;;  %v7447_v31 = vld [vmem:[%s10089_s1 + $0x1d8] ss:$44 sps:$4 sm:$0xff]  }
  0xff   :  { %5816 = vmatpush1.bf16.msra.mxu0 %v7368_v32  ;;  %5960 = vmatpush1.bf16.msra.mxu1 %v7371_v33  ;;  %v7449_v32 = vld [vmem:[%s10089_s1 + $0x1e0] ss:$44 sps:$4 sm:$0xff]  }
 0x100   :  { %5818 = vmatprep.subr.bf16.mxu0 %v7372_v34  ;;  %5962 = vmatprep.subr.bf16.mxu1 %v7375_v35  ;;  %v7450_v33 = vld [vmem:[%s10089_s1 + $0x234] ss:$44 sps:$4 sm:$0xff]   ;;  %v7453_v34 = vld [vmem:[%s10089_s1 + $0x4f8] ss:$44 sps:$4 sm:$0xff]   ;;  %v7452_v35 = vld [vmem:[%s10089_s1 + $0x230] ss:$44 sps:$4 sm:$0xff]  }
 0x103   :  { %5820 = vmatpush1.bf16.msra.mxu0 %v7374_v36  ;;  %5964 = vmatpush1.bf16.msra.mxu1 %v7377_v37  ;;  %v7454_v36 = vld [vmem:[%s10089_s1 + $0x238] ss:$44 sps:$4 sm:$0xff]  }
 0x104   :  { %5822 = vmatprep.subr.bf16.mxu0 %v7378_v38  ;;  %5966 = vmatprep.subr.bf16.mxu1 %v7381_v39  ;;  %v7455_v37 = vld [vmem:[%s10089_s1 + $0x28c] ss:$44 sps:$4 sm:$0xff]   ;;  %v7458_v38 = vld [vmem:[%s10089_s1 + $0x550] ss:$44 sps:$4 sm:$0xff]   ;;  %v7457_v39 = vld [vmem:[%s10089_s1 + $0x288] ss:$44 sps:$4 sm:$0xff]  }
 0x107   :  { %5824 = vmatpush1.bf16.msra.mxu0 %v7380_v40  ;;  %5968 = vmatpush1.bf16.msra.mxu1 %v7383_v41  ;;  %v7459_v40 = vld [vmem:[%s10089_s1 + $0x290] ss:$44 sps:$4 sm:$0xff]  }
 0x108   :  { %5826 = vmatprep.subr.bf16.mxu0 %v7384_v43  ;;  %5970 = vmatprep.subr.bf16.mxu1 %v7387_v44  ;;  %v7460_v41 = vld [vmem:[%s10089_s1 + $0x2e4] ss:$44 sps:$4 sm:$0xff]   ;;  %v7463_v43 = vld [vmem:[%s10089_s1 + $0x868] ss:$44 sps:$4 sm:$0xff]   ;;  %v7462_v44 = vld [vmem:[%s10089_s1 + $0x2e0] ss:$44 sps:$4 sm:$0xff]  }
 0x10b   :  { %5828 = vmatpush1.bf16.msra.mxu0 %v7386_v45  ;;  %5972 = vmatpush1.bf16.msra.mxu1 %v7389_v46  ;;  %v7464_v45 = vld [vmem:[%s10089_s1 + $0x5a8] ss:$44 sps:$4 sm:$0xff]  }
 0x10c   :  { %5830 = vmatprep.subr.bf16.mxu0 %v7390_v47  ;;  %5974 = vmatprep.subr.bf16.mxu1 %v7393_v48  ;;  %v7465_v46 = vld [vmem:[%s10089_s1 + $0x33c] ss:$44 sps:$4 sm:$0xff]   ;;  %v7468_v47 = vld [vmem:[%s10089_s1 + $0x8c0] ss:$44 sps:$4 sm:$0xff]   ;;  %v7467_v48 = vld [vmem:[%s10089_s1 + $0x338] ss:$44 sps:$4 sm:$0xff]  }
 0x10f   :  { %5832 = vmatpush1.bf16.msra.mxu0 %v7392_v50  ;;  %5976 = vmatpush1.bf16.msra.mxu1 %v7395_v51  ;;  %v7469_v50 = vld [vmem:[%s10089_s1 + $0x600] ss:$44 sps:$4 sm:$0xff]  }
 0x110   :  { %5834 = vmatprep.subr.bf16.mxu0 %v7396_v52  ;;  %5978 = vmatprep.subr.bf16.mxu1 %v7399_v53  ;;  %v7470_v51 = vld [vmem:[%s10089_s1 + $0x394] ss:$44 sps:$4 sm:$0xff]   ;;  %v7473_v52 = vld [vmem:[%s10089_s1 + $0x918] ss:$44 sps:$4 sm:$0xff]   ;;  %v7472_v53 = vld [vmem:[%s10089_s1 + $0x390] ss:$44 sps:$4 sm:$0xff]  }
 0x112   :  { %1906 = vmatmul.mubr.f32.vlgmr.msra.gmra.mrb[2].mxu0 %v7827_v12  ;;  %2119 = vmatmul.mubr.f32.vlgmr.msra.gmra.mrb[2].mxu1 %v7827_v12 }
 0x113   :  { %5836 = vmatpush1.bf16.msra.mxu0 %v7398_v55  ;;  %5980 = vmatpush1.bf16.msra.mxu1 %v7401_v56  ;;  %v7474_v55 = vld [vmem:[%s10089_s1 + $0x658] ss:$44 sps:$4 sm:$0xff]  }
 0x114   :  { %5838 = vmatprep.subr.bf16.mxu0 %v7402_v57  ;;  %5982 = vmatprep.subr.bf16.mxu1 %v7405_v59  ;;  %v7475_v56 = vld [vmem:[%s10089_s1 + $0x3ec] ss:$44 sps:$4 sm:$0xff]   ;;  %v7478_v57 = vld [vmem:[%s10089_s1 + $0x970] ss:$44 sps:$4 sm:$0xff]   ;;  %v7477_v59 = vld [vmem:[%s10089_s1 + $0x3e8] ss:$44 sps:$4 sm:$0xff]  }
 0x115   :  { %1976 = vmatprep.mubr.f32.mxu0 %v10097_v28  ;;  %2189 = vmatprep.mubr.f32.mxu1 %v10097_v28 }
 0x117   :  { %5840 = vmatpush1.bf16.msra.mxu0 %v7404_v60  ;;  %5984 = vmatpush1.bf16.msra.mxu1 %v7407_v61  ;;  %v7479_v60 = vld [vmem:[%s10089_s1 + $0x6b0] ss:$44 sps:$4 sm:$0xff]  }
 0x118   :  { %5842 = vmatprep.subr.bf16.mxu0 %v7408_v62  ;;  %5986 = vmatprep.subr.bf16.mxu1 %v7411_v63  ;;  %v7480_v61 = vld [vmem:[%s10089_s1 + $0x444] ss:$44 sps:$4 sm:$0xff]   ;;  %v7483_v62 = vld [vmem:[%s10089_s1 + $0x9c8] ss:$44 sps:$4 sm:$0xff]   ;;  %v7482_v63 = vld [vmem:[%s10089_s1 + $0x440] ss:$44 sps:$4 sm:$0xff]  }
 0x11b   :  { %5844 = vmatpush1.bf16.msra.mxu0 %v7410_v0  ;;  %5988 = vmatpush1.bf16.msra.mxu1 %v7413_v1  ;;  %v7484_v0 = vld [vmem:[%s10089_s1 + $0x708] ss:$44 sps:$4 sm:$0xff]  }
 0x11c   :  { %5846 = vmatprep.subr.bf16.mxu0 %v7414_v2  ;;  %5990 = vmatprep.subr.bf16.mxu1 %v7417_v3  ;;  %v7485_v1 = vld [vmem:[%s10089_s1 + $0x49c] ss:$44 sps:$4 sm:$0xff]   ;;  %v7488_v2 = vld [vmem:[%s10089_s1 + $0xa20] ss:$44 sps:$4 sm:$0xff]   ;;  %v7487_v3 = vld [vmem:[%s10089_s1 + $0x498] ss:$44 sps:$4 sm:$0xff]  }
 0x11f   :  { %5848 = vmatpush1.bf16.msra.mxu0 %v7416_v4  ;;  %5992 = vmatpush1.bf16.msra.mxu1 %v7419_v5  ;;  %v7489_v4 = vld [vmem:[%s10089_s1 + $0x760] ss:$44 sps:$4 sm:$0xff]  }
 0x120   :  { %5994 = vmatprep.subr.bf16.mxu0 %v7420_v6  ;;  %6138 = vmatprep.subr.bf16.mxu1 %v7423_v7  ;;  %v7490_v5 = vld [vmem:[%s10089_s1 + $0x4f4] ss:$44 sps:$4 sm:$0xff]   ;;  %v7493_v6 = vld [vmem:[%s10089_s1 + $0xa78] ss:$44 sps:$4 sm:$0xff]   ;;  %v7492_v7 = vld [vmem:[%s10089_s1 + $0x4f0] ss:$44 sps:$4 sm:$0xff]  }
 0x122   :  { %4875 = vmatmul.mubr.msk.f32.vlgmr.msra.gmra.mrb[2].mxu0 %vm1341_vm0, %v8546_v14  ;;  %4876 = vmatmul.mubr.msk.f32.vlgmr.msra.gmra.mrb[2].mxu1 %vm1341_vm0, %v8546_v14 }
 0x123   :  { %5996 = vmatpush1.bf16.msra.mxu0 %v7422_v8  ;;  %6140 = vmatpush3.bf16.msra.mxu1 %v7424_v9  ;;  %v7494_v8 = vld [vmem:[%s10089_s1 + $0x7b8] ss:$44 sps:$4 sm:$0xff]  }
 0x124   :  { %5998 = vmatprep.subr.bf16.mxu0 %v7425_v10  ;;  %6142 = vmatprep.subr.bf16.mxu1 %v7428_v11  ;;  %v7495_v9 = vld [vmem:[%s10089_s1 + $0x54c] ss:$44 sps:$4 sm:$0xff]   ;;  %v7498_v10 = vld [vmem:[%s10089_s1 + $0xad0] ss:$44 sps:$4 sm:$0xff]   ;;  %v7497_v11 = vld [vmem:[%s10089_s1 + $0x548] ss:$44 sps:$4 sm:$0xff]  }
 0x125   :  { %2473 = vmatprep.mubr.f32.mxu1 %v7774_v58  ;;  %2260 = vmatprep.mubr.f32.mxu0 %v7774_v58  ;;  %v7438_v58 = vld [vmem:[%s10089_s1 + $0x3f0] ss:$44 sps:$4 sm:$0xff]  }
 0x127   :  { %6000 = vmatpush1.bf16.msra.mxu0 %v7427_v13  ;;  %6144 = vmatpush3.bf16.msra.mxu1 %v7429_v15  ;;  %v7499_v13 = vld [vmem:[%s10089_s1 + $0x810] ss:$44 sps:$4 sm:$0xff]  }
 0x128   :  { %6002 = vmatprep.subr.bf16.mxu0 %v7430_v16  ;;  %6146 = vmatprep.subr.bf16.mxu1 %v7433_v18  ;;  %v7500_v15 = vld [vmem:[%s10089_s1 + $0x5a4] ss:$44 sps:$4 sm:$0xff]   ;;  %v7502_v16 = vld [vmem:[%s10089_s1 + $0x5a0] ss:$44 sps:$4 sm:$0xff]   ;;  %v7503_v18 = vld [vmem:[%s10089_s1 + $0xb28] ss:$44 sps:$4 sm:$0xff]  }
 0x12b   :  { %6004 = vmatpush1.bf16.msra.mxu0 %v7432_v19  ;;  %6148 = vmatpush3.bf16.msra.mxu1 %v7434_v20  ;;  %v10099_v19 = vmov 0.0|0.0   ;;  %v7504_v20 = vld [vmem:[%s10089_s1 + $0x5fc] ss:$44 sps:$4 sm:$0xff]  }
 0x12c   :  { %6006 = vmatprep.subr.bf16.mxu0 %v7435_v21  ;;  %6150 = vmatprep.subr.bf16.mxu1 %v7438_v58  ;;  %v7506_v21 = vld [vmem:[%s10089_s1 + $0x5f8] ss:$44 sps:$4 sm:$0xff]   ;;  %v7507_v58 = vld [vmem:[%s10089_s1 + $0xb80] ss:$44 sps:$4 sm:$0xff]  }
 0x12f   :  { %6008 = vmatpush1.bf16.msra.mxu0 %v7437_v22  ;;  %6152 = vmatpush3.bf16.msra.mxu1 %v7439_v23  ;;  %v7508_v22 = vld [vmem:[%s10089_s1 + $0x654] ss:$44 sps:$4 sm:$0xff]  }
 0x130   :  { %6010 = vmatprep.subr.bf16.mxu0 %v7440_v24  ;;  %6154 = vmatprep.subr.bf16.mxu1 %v7443_v25 }
 0x133   :  { %6012 = vmatpush1.bf16.msra.mxu0 %v7442_v26  ;;  %6156 = vmatpush3.bf16.msra.mxu1 %v7444_v27  ;;  %v7510_v26 = vld [vmem:[%s10089_s1 + $0x650] ss:$44 sps:$4 sm:$0xff]   ;;  %v7511_v27 = vld [vmem:[%s10089_s1 + $0xbd8] ss:$44 sps:$4 sm:$0xff]  }
 0x134   :  { %6014 = vmatprep.subr.bf16.mxu0 %v7445_v29  ;;  %6158 = vmatprep.subr.bf16.mxu1 %v7448_v30  ;;  %v2635_v29 = vld [vmem:[%s10091_s3 + $0x80] sm:$0xff]  ;;  %v2636_v30 = vld [vmem:[%s10091_s3 + $0x88] sm:$0xff] }
 0x137   :  { %6016 = vmatpush1.bf16.msra.mxu0 %v7447_v31  ;;  %6160 = vmatpush3.bf16.msra.mxu1 %v7449_v32  ;;  %v8778_v31 = vsub.s32 1, %v7728_v42  ;;  %v8783_v32 = vld [vmem:[%s10092_s2] sm:$0xff] }
 0x138   :  { %6018 = vmatprep.subr.bf16.mxu0 %v7450_v33  ;;  %6162 = vmatprep.subr.bf16.mxu1 %v7453_v34  ;;  %v7514_v33 = vld [vmem:[%s10089_s1 + $0x6a8] ss:$44 sps:$4 sm:$0xff]   ;;  %v7515_v34 = vld [vmem:[%s10089_s1 + $0xc30] ss:$44 sps:$4 sm:$0xff]  }
 0x13b   :  { %6020 = vmatpush1.bf16.msra.mxu0 %v7452_v35  ;;  %6164 = vmatpush3.bf16.msra.mxu1 %v7454_v36  ;;  %v7516_v35 = vld [vmem:[%s10089_s1 + $0x704] ss:$44 sps:$4 sm:$0xff]   ;;  %v8795_v36 = vpack.c.bf16 %v2636_v30, %v2635_v29  ;;  %v7534_v30 = vld [vmem:[%s10089_s1 + $0x914] ss:$44 sps:$4 sm:$0xff]  }
 0x13c   :  { %6022 = vmatprep.subr.bf16.mxu0 %v7455_v37  ;;  %6166 = vmatprep.subr.bf16.mxu1 %v7458_v38  ;;  %v2619_v37 = vld [vmem:[%s10091_s3] sm:$0xff]  ;;  %v2620_v38 = vld [vmem:[%s10091_s3 + $0x8] sm:$0xff] }
 0x13f   :  { %6024 = vmatpush1.bf16.msra.mxu0 %v7457_v39  ;;  %6168 = vmatpush3.bf16.msra.mxu1 %v7459_v40  ;;  %v1263_v39 = vrot.slane %v8783_v32, %v8778_v31  ;;  %v2637_v40 = vld [vmem:[%s10091_s3 + $0x90] sm:$0xff] }
 0x140   :  { %6026 = vmatprep.subr.bf16.mxu0 %v7460_v41  ;;  %6170 = vmatprep.subr.bf16.mxu1 %v7463_v43  ;;  %v2638_v41 = vld [vmem:[%s10091_s3 + $0x98] sm:$0xff]  ;;  %v7518_v43 = vld [vmem:[%s10089_s1 + $0x700] ss:$44 sps:$4 sm:$0xff]  }
 0x142   :  { %2474 = vmatmul.mubr.f32.vlgmr.msra.gmra.mrb[4].mxu1 %v7761_v54 }
 0x143   :  { %6028 = vmatpush1.bf16.msra.mxu0 %v7462_v44  ;;  %6172 = vmatpush3.bf16.msra.mxu1 %v7464_v45  ;;  %v8814_v44 = vpack.c.bf16 %v2620_v38, %v2619_v37  ;;  %v7519_v45 = vld [vmem:[%s10089_s1 + $0x75c] ss:$44 sps:$4 sm:$0xff]   ;;  %v2649_v37 = vld [vmem:[%s10091_s3 + $0xf0] sm:$0xff] }
 0x144   :  { %6030 = vmatprep.subr.bf16.mxu0 %v7465_v46  ;;  %6174 = vmatprep.subr.bf16.mxu1 %v7468_v47  ;;  %v2621_v46 = vld [vmem:[%s10091_s3 + $0x10] sm:$0xff]  ;;  %v2622_v47 = vld [vmem:[%s10091_s3 + $0x18] sm:$0xff] }
 0x145   :  { %2543 = vmatprep.mubr.f32.mxu1 %v7843_v17  ;;  %v2650_v38 = vld [vmem:[%s10091_s3 + $0xf8] sm:$0xff] }
 0x147   :  { %6032 = vmatpush1.bf16.msra.mxu0 %v7467_v48  ;;  %6176 = vmatpush3.bf16.msra.mxu1 %v7469_v50  ;;  %v8826_v48 = vpack.c.bf16 %v2638_v41, %v2637_v40  ;;  %v2639_v50 = vld [vmem:[%s10091_s3 + $0xa0] sm:$0xff]  ;;  %v8966_v41 = vsub.s32 0, %v7728_v42 }
 0x148   :  { %6034 = vmatprep.subr.bf16.mxu0 %v7470_v51  ;;  %6178 = vmatprep.subr.bf16.mxu1 %v7473_v52  ;;  %v2640_v51 = vld [vmem:[%s10091_s3 + $0xa8] sm:$0xff] }
 0x14b   :  { %6036 = vmatpush1.bf16.msra.mxu0 %v7472_v53  ;;  %6180 = vmatpush3.bf16.msra.mxu1 %v7474_v55  ;;  %v7521_v53 = vld [vmem:[%s10089_s1 + $0x758] ss:$44 sps:$4 sm:$0xff]   ;;  %v8842_v55 = vpack.c.bf16 %v2622_v47, %v2621_v46  ;;  %v2633_v46 = vld [vmem:[%s10091_s3 + $0x70] sm:$0xff] }
 0x14c   :  { %6038 = vmatprep.subr.bf16.mxu0 %v7475_v56  ;;  %6182 = vmatprep.subr.bf16.mxu1 %v7478_v57  ;;  %v7522_v56 = vld [vmem:[%s10089_s1 + $0x7b4] ss:$44 sps:$4 sm:$0xff]   ;;  %v8848_v57 = vpack.c.bf16 %v2640_v51, %v2639_v50  ;;  %v2634_v47 = vld [vmem:[%s10091_s3 + $0x78] sm:$0xff]  ;;  %v2668_v51 = vld [vmem:[%s10091_s3 + $0x188] sm:$0xff] }
 0x14d   :  { %v2667_v50 = vld [vmem:[%s10091_s3 + $0x180] sm:$0xff] }
 0x14f   :  { %6040 = vmatpush1.bf16.msra.mxu0 %v7477_v59  ;;  %6184 = vmatpush3.bf16.msra.mxu1 %v7479_v60  ;;  %v2623_v59 = vld [vmem:[%s10091_s3 + $0x20] sm:$0xff]  ;;  %v2624_v60 = vld [vmem:[%s10091_s3 + $0x28] sm:$0xff] }
 0x150   :  { %6042 = vmatprep.subr.bf16.mxu0 %v7480_v61  ;;  %6186 = vmatprep.subr.bf16.mxu1 %v7483_v62  ;;  %v2641_v61 = vld [vmem:[%s10091_s3 + $0xb0] sm:$0xff]  ;;  %v2642_v62 = vld [vmem:[%s10091_s3 + $0xb8] sm:$0xff] }
 0x153   :  { %6044 = vmatpush1.bf16.msra.mxu0 %v7482_v63  ;;  %6188 = vmatpush3.bf16.msra.mxu1 %v7484_v0  ;;  %v7524_v63 = vld [vmem:[%s10089_s1 + $0x7b0] ss:$44 sps:$4 sm:$0xff]   ;;  %v8867_v0 = vpack.c.bf16 %v2624_v60, %v2623_v59  ;;  %v8993_v59 = vpack.c.bf16 %v2634_v47, %v2633_v46  ;;  %v1259_v60 = vrot.slane %v8783_v32, %v8966_v41  ;;  %v2675_v47 = vld [vmem:[%s10091_s3 + $0x1c0] sm:$0xff] }
 0x154   :  { %6046 = vmatprep.subr.bf16.mxu0 %v7485_v1  ;;  %6190 = vmatprep.subr.bf16.mxu1 %v7488_v2  ;;  %v7525_v1 = vld [vmem:[%s10089_s1 + $0x80c] ss:$44 sps:$4 sm:$0xff]   ;;  %v8873_v2 = vpack.c.bf16 %v2642_v62, %v2641_v61  ;;  %v7540_v61 = vld [vmem:[%s10089_s1 + $0x9c4] ss:$44 sps:$4 sm:$0xff]   ;;  %v9001_v62 = vpack.c.bf16 %v2668_v51, %v2667_v50  ;;  %v7551_v51 = vld [vmem:[%s10089_s1 + $0xac8] ss:$44 sps:$4 sm:$0xff]  }
 0x155   :  { %v2658_v46 = vld [vmem:[%s10091_s3 + $0x138] sm:$0xff]  ;;  %v2676_v50 = vld [vmem:[%s10091_s3 + $0x1c8] sm:$0xff] }
 0x157   :  { %6048 = vmatpush1.bf16.msra.mxu0 %v7487_v3  ;;  %6192 = vmatpush3.bf16.msra.mxu1 %v7489_v4  ;;  %v2625_v3 = vld [vmem:[%s10091_s3 + $0x30] sm:$0xff]  ;;  %v2626_v4 = vld [vmem:[%s10091_s3 + $0x38] sm:$0xff] }
 0x158   :  { %6050 = vmatprep.subr.bf16.mxu0 %v7490_v5  ;;  %6194 = vmatprep.subr.bf16.mxu1 %v7493_v6  ;;  %v2643_v5 = vld [vmem:[%s10091_s3 + $0xc0] sm:$0xff]  ;;  %v2644_v6 = vld [vmem:[%s10091_s3 + $0xc8] sm:$0xff] }
 0x15b   :  { %6052 = vmatpush1.bf16.msra.mxu0 %v7492_v7  ;;  %6196 = vmatpush3.bf16.msra.mxu1 %v7494_v8  ;;  %v7527_v7 = vld [vmem:[%s10089_s1 + $0x808] ss:$44 sps:$4 sm:$0xff]   ;;  %v8891_v8 = vpack.c.bf16 %v2626_v4, %v2625_v3 }
 0x15c   :  { %6054 = vmatprep.subr.bf16.mxu0 %v7495_v9  ;;  %6198 = vmatprep.subr.bf16.mxu1 %v7498_v10  ;;  %v7528_v9 = vld [vmem:[%s10089_s1 + $0x864] ss:$44 sps:$4 sm:$0xff]   ;;  %v8897_v10 = vpack.c.bf16 %v2644_v6, %v2643_v5  ;;  %v2670_v5 = vld [vmem:[%s10091_s3 + $0x198] sm:$0xff]  ;;  %v7542_v6 = vld [vmem:[%s10089_s1 + $0x9c0] ss:$44 sps:$4 sm:$0xff]  }
 0x15d   :  { %v2669_v4 = vld [vmem:[%s10091_s3 + $0x190] sm:$0xff] }
 0x15f   :  { %6056 = vmatpush1.bf16.msra.mxu0 %v7497_v11  ;;  %6200 = vmatpush3.bf16.msra.mxu1 %v7499_v13  ;;  %v2627_v11 = vld [vmem:[%s10091_s3 + $0x40] sm:$0xff]  ;;  %v2628_v13 = vld [vmem:[%s10091_s3 + $0x48] sm:$0xff] }
 0x160   :  { %6058 = vmatprep.subr.bf16.mxu0 %v7500_v15  ;;  %6201 = vmatprep.subr.bf16.mxu1 %v10099_v19  ;;  %v2645_v15 = vld [vmem:[%s10091_s3 + $0xd0] sm:$0xff] }
 0x162   :  { %2261 = vmatmul.mubr.f32.vlgmr.msra.gmra.mrb[4].mxu0 %v7761_v54  ;;  %2544 = vmatmul.mubr.f32.vlgmr.msra.gmra.mrb[6].mxu1 %v7827_v12 }
 0x163   :  { %6060 = vmatpush1.bf16.msra.mxu0 %v7502_v16  ;;  %6203 = vmatpush3.bf16.msra.mxu1 %v7503_v18  ;;  %v2646_v16 = vld [vmem:[%s10091_s3 + $0xd8] sm:$0xff]  ;;  %v7530_v18 = vld [vmem:[%s10089_s1 + $0x860] ss:$44 sps:$4 sm:$0xff]  }
 0x164   :  { %6062 = vmatprep.subr.bf16.mxu0 %v7504_v20  ;;  %6204 = vmatprep.subr.bf16.mxu1 %v10099_v19  ;;  %v8915_v20 = vpack.c.bf16 %v2628_v13, %v2627_v11  ;;  %v7543_v11 = vld [vmem:[%s10089_s1 + $0xa1c] ss:$44 sps:$4 sm:$0xff]   ;;  %v2653_v13 = vld [vmem:[%s10091_s3 + $0x110] sm:$0xff] }
 0x165   :  { %v8752_v54 = vpop.f32.mrb[0].mxu0  ;;  %v8754_v23 = vpop.f32.mrb[0].mxu1  ;;  %5362 = vmatprep.mubr.msk.f32.mxu1 %vm7570_vm1, %v10097_v28  ;;  %2331 = vmatprep.mubr.f32.mxu0 %v7843_v17  ;;  %v7512_v17 = vld [vmem:[%s10089_s1 + $0x6ac] ss:$44 sps:$4 sm:$0xff]  }
 0x166   :  { %v1554_v24 = vpop.f32.mrb[1].mxu0  ;;  %v8759_v25 = vpop.f32.mrb[1].mxu1 }
 0x167   :  { %6064 = vmatpush1.bf16.msra.mxu0 %v7506_v21  ;;  %6206 = vmatpush3.bf16.msra.mxu1 %v7507_v58  ;;  %v8834_v52 = vadd.f32 %v1554_v24, %v1263_v39  ;;  %v7531_v21 = vld [vmem:[%s10089_s1 + $0x8bc] ss:$44 sps:$4 sm:$0xff]   ;;  %v8921_v58 = vpack.c.bf16 %v2646_v16, %v2645_v15  ;;  %v9036_v16 = vpack.c.bf16 %v2670_v5, %v2669_v4  ;;  %v7554_v5 = vld [vmem:[%s10089_s1 + $0xb20] ss:$44 sps:$4 sm:$0xff]  }
 0x168   :  { %6066 = vmatprep.subr.bf16.mxu0 %v7508_v22  ;;  %6207 = vmatprep.subr.bf16.mxu1 %v10099_v19  ;;  %v2629_v22 = vld [vmem:[%s10091_s3 + $0x50] sm:$0xff]  ;;  %v2630_v24 = vld [vmem:[%s10091_s3 + $0x58] sm:$0xff] }
 0x169   :  { %v8939_v29 = vpack.c.bf16 %v2630_v24, %v2629_v22  ;;  %v7536_v39 = vld [vmem:[%s10089_s1 + $0x910] ss:$44 sps:$4 sm:$0xff]   ;;  %10162 = vst [vmem:[#allocation4_spill] sm:$0xff] %v9036_v16  ;;  %v7545_v22 = vld [vmem:[%s10089_s1 + $0xa18] ss:$44 sps:$4 sm:$0xff]  }
 0x16a   :  { %v2654_v15 = vld [vmem:[%s10091_s3 + $0x118] sm:$0xff] }
 0x16b   :  { %6068 = vmatpush1.bf16.msra.mxu0 %v7510_v26  ;;  %6209 = vmatpush3.bf16.msra.mxu1 %v7511_v27  ;;  %v2647_v26 = vld [vmem:[%s10091_s3 + $0xe0] sm:$0xff]  ;;  %v2648_v27 = vld [vmem:[%s10091_s3 + $0xe8] sm:$0xff]  ;;  %v9052_v24 = vpack.c.bf16 %v2654_v15, %v2653_v13  ;;  %v2678_v4 = vld [vmem:[%s10091_s3 + $0x1d8] sm:$0xff] }
 0x16c   :  { %6070 = vmatprep.subr.bf16.mxu0 %v7512_v17  ;;  %6210 = vmatprep.subr.bf16.mxu1 %v10099_v19  ;;  %v7533_v17 = vld [vmem:[%s10089_s1 + $0x8b8] ss:$44 sps:$4 sm:$0xff]   ;;  %v2661_v15 = vld [vmem:[%s10091_s3 + $0x150] sm:$0xff] }
 0x16d   :  { %10163 = vst [vmem:[#allocation5_spill] sm:$0xff] %v9052_v24  ;;  %v2689_v19 = vld [vmem:[%s10091_s3 + $0x230] sm:$0xff] }
 0x16f   :  { %6072 = vmatpush1.bf16.msra.mxu0 %v7514_v33  ;;  %6212 = vmatpush3.bf16.msra.mxu1 %v7515_v34  ;;  %v8945_v33 = vpack.c.bf16 %v2648_v27, %v2647_v26  ;;  %v2631_v34 = vld [vmem:[%s10091_s3 + $0x60] sm:$0xff] }
 0x170   :  { %6074 = vmatprep.subr.bf16.mxu0 %v7516_v35  ;;  %6214 = vmatprep.subr.bf16.mxu1 %v8795_v36  ;;  %v2632_v35 = vld [vmem:[%s10091_s3 + $0x68] sm:$0xff]  ;;  %v7546_v26 = vld [vmem:[%s10089_s1 + $0xa74] ss:$44 sps:$4 sm:$0xff]  }
 0x171   :  { %v8963_v40 = vpack.c.bf16 %v2632_v35, %v2631_v34  ;;  %v2655_v27 = vld [vmem:[%s10091_s3 + $0x120] sm:$0xff]  ;;  %v2674_v34 = vld [vmem:[%s10091_s3 + $0x1b8] sm:$0xff] }
 0x172   :  { %5363 = vmatmul.mubr.msk.f32.vlgmr.msra.gmra.mrb[8].mxu1 %vm1341_vm0, %v8546_v14  ;;  %v7548_v35 = vld [vmem:[%s10089_s1 + $0xa70] ss:$44 sps:$4 sm:$0xff]  }
 0x173   :  { %6076 = vmatpush1.bf16.msra.mxu0 %v7518_v43  ;;  %6216 = vmatpush3.bf16.msra.mxu1 %v8814_v44  ;;  %v7537_v43 = vld [vmem:[%s10089_s1 + $0x96c] ss:$44 sps:$4 sm:$0xff]  }
 0x174   :  { %2856 = vmatprep.mubr.f32.mxu1 %v8834_v52  ;;  %6078 = vmatprep.subr.bf16.mxu0 %v7519_v45  ;;  %v8972_v45 = vpack.c.bf16 %v2650_v38, %v2649_v37  ;;  %v7549_v38 = vld [vmem:[%s10089_s1 + $0xacc] ss:$44 sps:$4 sm:$0xff]  }
 0x175   :  { %6218 = vmatprep.subr.bf16.mxu1 %v8826_v48 }
 0x177   :  { %6080 = vmatpush1.bf16.msra.mxu0 %v7521_v53  ;;  %6220 = vmatpush3.bf16.msra.mxu1 %v8842_v55  ;;  %v8987_v53 = vsub.s32 3, %v7728_v42 }
 0x178   :  { %6082 = vmatprep.subr.bf16.mxu0 %v7522_v56  ;;  %6222 = vmatprep.subr.bf16.mxu1 %v8848_v57  ;;  %v7539_v56 = vld [vmem:[%s10089_s1 + $0x968] ss:$44 sps:$4 sm:$0xff]  }
 0x179   :  { %10161 = vst [vmem:[#allocation3_spill] sm:$0xff] %v8987_v53  ;;  %v1271_v3 = vrot.slane %v8783_v32, %v8987_v53 }
 0x17b   :  { %6084 = vmatpush1.bf16.msra.mxu0 %v7524_v63  ;;  %6224 = vmatpush3.bf16.msra.mxu1 %v8867_v0  ;;  %v2651_v63 = vld [vmem:[%s10091_s3 + $0x100] sm:$0xff] }
 0x17c   :  { %6086 = vmatprep.subr.bf16.mxu0 %v7525_v1  ;;  %6226 = vmatprep.subr.bf16.mxu1 %v8873_v2  ;;  %v2652_v1 = vld [vmem:[%s10091_s3 + $0x108] sm:$0xff] }
 0x17f   :  { %6088 = vmatpush1.bf16.msra.mxu0 %v7527_v7  ;;  %6228 = vmatpush3.bf16.msra.mxu1 %v8891_v8  ;;  %v9021_v7 = vpack.c.bf16 %v2652_v1, %v2651_v63  ;;  %v2659_v63 = vld [vmem:[%s10091_s3 + $0x140] sm:$0xff]  ;;  %v2660_v1 = vld [vmem:[%s10091_s3 + $0x148] sm:$0xff] }
 0x180   :  { %6090 = vmatprep.subr.bf16.mxu0 %v7528_v9  ;;  %6230 = vmatprep.subr.bf16.mxu1 %v8897_v10  ;;  %v9024_v9 = vadd.f32 %v8752_v54, %v1259_v60  ;;  %v2671_v54 = vld [vmem:[%s10091_s3 + $0x1a0] sm:$0xff] }
 0x181   :  { %v7552_v60 = vld [vmem:[%s10089_s1 + $0xb24] ss:$44 sps:$4 sm:$0xff]  }
 0x183   :  { %6092 = vmatpush1.bf16.msra.mxu0 %v7530_v18  ;;  %6232 = vmatpush3.bf16.msra.mxu1 %v8915_v20  ;;  %v2672_v18 = vld [vmem:[%s10091_s3 + $0x1a8] sm:$0xff] }
 0x184   :  { %6094 = vmatprep.subr.bf16.mxu0 %v7531_v21  ;;  %6234 = vmatprep.subr.bf16.mxu1 %v8921_v58  ;;  %v9045_v21 = vadd.f32 %v8759_v25, %v1271_v3  ;;  %v9058_v25 = vpack.c.bf16 %v2672_v18, %v2671_v54  ;;  %v2677_v3 = vld [vmem:[%s10091_s3 + $0x1d0] sm:$0xff]  ;;  %v2662_v54 = vld [vmem:[%s10091_s3 + $0x158] sm:$0xff]  ;;  %v2679_v18 = vld [vmem:[%s10091_s3 + $0x1e0] sm:$0xff] }
 0x185   :  { %v9131_v13 = vpack.c.bf16 %v2678_v4, %v2677_v3  ;;  %v2700_v3 = vld [vmem:[%s10091_s3 + $0x288] sm:$0xff]  ;;  %v2731_v4 = vld [vmem:[%s10091_s3 + $0x380] sm:$0xff] }
 0x186   :  { %10164 = vst [vmem:[#allocation6_spill] sm:$0xff] %v9058_v25 }
 0x187   :  { %6096 = vmatpush1.bf16.msra.mxu0 %v7533_v17  ;;  %6236 = vmatpush3.bf16.msra.mxu1 %v8939_v29  ;;  %v2656_v17 = vld [vmem:[%s10091_s3 + $0x128] sm:$0xff]  ;;  %10170 = vst [vmem:[#allocation12_spill] sm:$0xff] %v9131_v13 }
 0x188   :  { %6098 = vmatprep.subr.bf16.mxu0 %v7534_v30  ;;  %6238 = vmatprep.subr.bf16.mxu1 %v8945_v33  ;;  %v2673_v30 = vld [vmem:[%s10091_s3 + $0x1b0] sm:$0xff]  ;;  %v9077_v37 = vpack.c.bf16 %v2656_v17, %v2655_v27  ;;  %v9150_v27 = vpack.c.bf16 %v2662_v54, %v2661_v15  ;;  %v2683_v54 = vld [vmem:[%s10091_s3 + $0x200] sm:$0xff] }
 0x189   :  { %v7558_v17 = vld [vmem:[%s10089_s1 + $0xbd4] ss:$44 sps:$4 sm:$0xff]  }
 0x18a   :  { %10165 = vst [vmem:[#allocation7_spill] sm:$0xff] %v9077_v37  ;;  %10171 = vst [vmem:[#allocation13_spill] sm:$0xff] %v9150_v27 }
 0x18b   :  { %6100 = vmatpush1.bf16.msra.mxu0 %v7536_v39  ;;  %6240 = vmatpush3.bf16.msra.mxu1 %v8963_v40  ;;  %v9083_v39 = vpack.c.bf16 %v2674_v34, %v2673_v30  ;;  %v2664_v34 = vld [vmem:[%s10091_s3 + $0x168] sm:$0xff] }
 0x18c   :  { %6102 = vmatprep.subr.bf16.mxu0 %v7537_v43  ;;  %6242 = vmatprep.subr.bf16.mxu1 %v8972_v45  ;;  %v2657_v43 = vld [vmem:[%s10091_s3 + $0x130] sm:$0xff] }
 0x18d   :  { %10166 = vst [vmem:[#allocation8_spill] sm:$0xff] %v9083_v39 }
 0x18f   :  { %6104 = vmatpush1.bf16.msra.mxu0 %v7539_v56  ;;  %6244 = vmatpush3.bf16.msra.mxu1 %v8993_v59  ;;  %v9101_v56 = vpack.c.bf16 %v2658_v46, %v2657_v43  ;;  %v7560_v43 = vld [vmem:[%s10089_s1 + $0xbd0] ss:$44 sps:$4 sm:$0xff]  }
 0x190   :  { %6106 = vmatprep.subr.bf16.mxu0 %v7540_v61  ;;  %6246 = vmatprep.subr.bf16.mxu1 %v9001_v62  ;;  %v9107_v61 = vpack.c.bf16 %v2676_v50, %v2675_v47  ;;  %v7561_v47 = vld [vmem:[%s10089_s1 + $0xc2c] ss:$44 sps:$4 sm:$0xff]   ;;  %v9181_v50 = vsub.s32 2, %v7728_v42 }
 0x191   :  { %10167 = vst [vmem:[#allocation9_spill] sm:$0xff] %v9101_v56 }
 0x192   :  { %2857 = vmatmul.mubr.f32.vlgmr.msra.gmra.mrb[10].mxu1 %v9024_v9  ;;  %10168 = vst [vmem:[#allocation10_spill] sm:$0xff] %v9107_v61 }
 0x193   :  { %6108 = vmatpush1.bf16.msra.mxu0 %v7542_v6  ;;  %6248 = vmatpush3.bf16.msra.mxu1 %v9021_v7  ;;  %v9125_v6 = vpack.c.bf16 %v2660_v1, %v2659_v63  ;;  %v2666_v63 = vld [vmem:[%s10091_s3 + $0x178] sm:$0xff]  ;;  %v2699_v1 = vld [vmem:[%s10091_s3 + $0x280] sm:$0xff] }
 0x194   :  { %2926 = vmatprep.mubr.f32.mxu1 %v9045_v21  ;;  %6110 = vmatprep.subr.bf16.mxu0 %v7543_v11  ;;  %v7555_v11 = vld [vmem:[%s10089_s1 + $0xb7c] ss:$44 sps:$4 sm:$0xff]  }
 0x195   :  { %6250 = vmatprep.subr.bf16.mxu1 %v9036_v16  ;;  %10169 = vst [vmem:[#allocation11_spill] sm:$0xff] %v9125_v6 }
 0x197   :  { %6112 = vmatpush1.bf16.msra.mxu0 %v7545_v22  ;;  %6252 = vmatpush3.bf16.msra.mxu1 %v9052_v24  ;;  %v2680_v22 = vld [vmem:[%s10091_s3 + $0x1e8] sm:$0xff]  ;;  %v2782_v24 = vld [vmem:[%s10091_s3 + $0x518] sm:$0xff] }
 0x198   :  { %6114 = vmatprep.subr.bf16.mxu0 %v7546_v26  ;;  %6254 = vmatprep.subr.bf16.mxu1 %v9058_v25  ;;  %v7557_v26 = vld [vmem:[%s10089_s1 + $0xb78] ss:$44 sps:$4 sm:$0xff]   ;;  %v9156_v30 = vpack.c.bf16 %v2680_v22, %v2679_v18  ;;  %v2684_v18 = vld [vmem:[%s10091_s3 + $0x208] sm:$0xff]  ;;  %v1267_v22 = vrot.slane %v8783_v32, %v9181_v50  ;;  %v2781_v25 = vld [vmem:[%s10091_s3 + $0x510] sm:$0xff] }
 0x19a   :  { %10172 = vst [vmem:[#allocation14_spill] sm:$0xff] %v9156_v30 }
 0x19b   :  { %6116 = vmatpush1.bf16.msra.mxu0 %v7548_v35  ;;  %6256 = vmatpush3.bf16.msra.mxu1 %v9077_v37  ;;  %v2681_v35 = vld [vmem:[%s10091_s3 + $0x1f0] sm:$0xff] }
 0x19c   :  { %6118 = vmatprep.subr.bf16.mxu0 %v7549_v38  ;;  %6258 = vmatprep.subr.bf16.mxu1 %v9083_v39  ;;  %v2682_v38 = vld [vmem:[%s10091_s3 + $0x1f8] sm:$0xff] }
 0x19f   :  { %6120 = vmatpush1.bf16.msra.mxu0 %v7551_v51  ;;  %6260 = vmatpush3.bf16.msra.mxu1 %v9101_v56  ;;  %v9184_v51 = vpack.c.bf16 %v2682_v38, %v2681_v35  ;;  %v2701_v35 = vld [vmem:[%s10091_s3 + $0x290] sm:$0xff]  ;;  %v2702_v38 = vld [vmem:[%s10091_s3 + $0x298] sm:$0xff] }
 0x1a0   :  { %6122 = vmatprep.subr.bf16.mxu0 %v7552_v60  ;;  %6262 = vmatprep.subr.bf16.mxu1 %v9107_v61  ;;  %v2665_v60 = vld [vmem:[%s10091_s3 + $0x170] sm:$0xff] }
 0x1a1   :  { %10174 = vst [vmem:[#allocation16_spill] sm:$0xff] %v9184_v51  ;;  %v9208_v15 = vpack.c.bf16 %v2666_v63, %v2665_v60  ;;  %v9242_v60 = vpack.c.bf16 %v2684_v18, %v2683_v54  ;;  %v2717_v54 = vld [vmem:[%s10091_s3 + $0x310] sm:$0xff]  ;;  %v2718_v18 = vld [vmem:[%s10091_s3 + $0x318] sm:$0xff] }
 0x1a2   :  { %2332 = vmatmul.mubr.f32.vlgmr.msra.gmra.mrb[4].mxu0 %v7827_v12  ;;  %v2663_v12 = vld [vmem:[%s10091_s3 + $0x160] sm:$0xff] }
 0x1a3   :  { %6124 = vmatpush1.bf16.msra.mxu0 %v7554_v5  ;;  %6264 = vmatpush3.bf16.msra.mxu1 %v9125_v6  ;;  %v9175_v46 = vpack.c.bf16 %v2664_v34, %v2663_v12  ;;  %v2732_v5 = vld [vmem:[%s10091_s3 + $0x388] sm:$0xff]  ;;  %10175 = vst [vmem:[#allocation17_spill] sm:$0xff] %v9208_v15  ;;  %v2715_v12 = vld [vmem:[%s10091_s3 + $0x300] sm:$0xff] }
 0x1a4   :  { %6126 = vmatprep.subr.bf16.mxu0 %v7555_v11  ;;  %6266 = vmatprep.subr.bf16.mxu1 %v9131_v13  ;;  %v7563_v11 = vld [vmem:[%s10089_s1 + $0xc28] ss:$44 sps:$4 sm:$0xff]   ;;  %v2766_v13 = vld [vmem:[%s10091_s3 + $0x498] sm:$0xff] }
 0x1a5   :  { %2402 = vmatprep.mubr.f32.mxu0 %v10097_v28  ;;  %10173 = vst [vmem:[#allocation15_spill] sm:$0xff] %v9175_v46  ;;  %v2716_v34 = vld [vmem:[%s10091_s3 + $0x308] sm:$0xff] }
 0x1a6   :  { %v9244_v63 = vpack.c.bf16 %v2716_v34, %v2715_v12  ;;  %v2735_v12 = vld [vmem:[%s10091_s3 + $0x3a0] sm:$0xff]  ;;  %v2736_v34 = vld [vmem:[%s10091_s3 + $0x3a8] sm:$0xff] }
 0x1a7   :  { %6128 = vmatpush1.bf16.msra.mxu0 %v7557_v26  ;;  %6268 = vmatpush3.bf16.msra.mxu1 %v9150_v27  ;;  %v9219_v26 = vpack.c.bf16 %v2700_v3, %v2699_v1  ;;  %v2685_v1 = vld [vmem:[%s10091_s3 + $0x210] sm:$0xff]  ;;  %v2686_v3 = vld [vmem:[%s10091_s3 + $0x218] sm:$0xff]  ;;  %v9298_v28 = vpack.c.bf16 %v2736_v34, %v2735_v12 }
 0x1a8   :  { %6130 = vmatprep.subr.bf16.mxu0 %v7558_v17  ;;  %6270 = vmatprep.subr.bf16.mxu1 %v9156_v30  ;;  %v9221_v17 = vpack.c.bf16 %v2732_v5, %v2731_v4  ;;  %10177 = vst [vmem:[#allocation19_spill] sm:$0xff] %v9244_v63  ;;  %v9253_v4 = vadd.f32 %v8754_v23, %v1267_v22  ;;  %v2703_v23 = vld [vmem:[%s10091_s3 + $0x2a0] sm:$0xff]  ;;  %v2704_v22 = vld [vmem:[%s10091_s3 + $0x2a8] sm:$0xff] }
 0x1a9   :  { %v9257_v5 = vpack.c.bf16 %v2702_v38, %v2701_v35  ;;  %v9284_v35 = vpack.c.bf16 %v2686_v3, %v2685_v1  ;;  %v9286_v38 = vpack.c.bf16 %v2718_v18, %v2717_v54  ;;  %10181 = vst [vmem:[#allocation23_spill] sm:$0xff] %v9298_v28  ;;  %v2719_v1 = vld [vmem:[%s10091_s3 + $0x320] sm:$0xff]  ;;  %v2720_v3 = vld [vmem:[%s10091_s3 + $0x328] sm:$0xff]  ;;  %v2705_v54 = vld [vmem:[%s10091_s3 + $0x2b0] sm:$0xff] }
 0x1aa   :  { %10176 = vst [vmem:[#allocation18_spill] sm:$0xff] %v9221_v17  ;;  %10178 = vst [vmem:[#allocation20_spill] sm:$0xff] %v9253_v4  ;;  %v2706_v18 = vld [vmem:[%s10091_s3 + $0x2b8] sm:$0xff]  ;;  %v9322_v34 = vpack.c.bf16 %v2720_v3, %v2719_v1  ;;  %v2707_v1 = vld [vmem:[%s10091_s3 + $0x2c0] sm:$0xff] }
 0x1ab   :  { %6132 = vmatpush1.bf16.msra.mxu0 %v7560_v43  ;;  %6272 = vmatpush3.bf16.msra.mxu1 %v9175_v46  ;;  %v2733_v43 = vld [vmem:[%s10091_s3 + $0x390] sm:$0xff]  ;;  %10180 = vst [vmem:[#allocation22_spill] sm:$0xff] %v9286_v38  ;;  %v9332_v53 = vpack.c.bf16 %v2706_v18, %v2705_v54  ;;  %v2708_v3 = vld [vmem:[%s10091_s3 + $0x2c8] sm:$0xff]  ;;  %v2739_v54 = vld [vmem:[%s10091_s3 + $0x3c0] sm:$0xff] }
 0x1ac   :  { %6134 = vmatprep.subr.bf16.mxu0 %v7561_v47  ;;  %6274 = vmatprep.subr.bf16.mxu1 %v9184_v51  ;;  %v2734_v47 = vld [vmem:[%s10091_s3 + $0x398] sm:$0xff]  ;;  %10182 = vst [vmem:[#allocation24_spill] sm:$0xff] %v9322_v34  ;;  %v2740_v18 = vld [vmem:[%s10091_s3 + $0x3c8] sm:$0xff] }
 0x1af   :  { %6136 = vmatpush1.bf16.msra.mxu0 %v7563_v11  ;;  %6276 = vmatpush3.bf16.msra.mxu1 %v9208_v15  ;;  %v9259_v11 = vpack.c.bf16 %v2734_v47, %v2733_v43  ;;  %v2687_v43 = vld [vmem:[%s10091_s3 + $0x220] sm:$0xff]  ;;  %v2688_v47 = vld [vmem:[%s10091_s3 + $0x228] sm:$0xff] }
 0x1b0   :  { %6278 = vmatprep.subr.bf16.mxu0 %v9219_v26  ;;  %6310 = vmatprep.subr.bf16.mxu1 %v9221_v17  ;;  %v9320_v12 = vpack.c.bf16 %v2688_v47, %v2687_v43  ;;  %v2721_v43 = vld [vmem:[%s10091_s3 + $0x330] sm:$0xff]  ;;  %v2722_v47 = vld [vmem:[%s10091_s3 + $0x338] sm:$0xff]  ;;  %v9370_v17 = vpack.c.bf16 %v2740_v18, %v2739_v54 }
 0x1b1   :  { %10179 = vst [vmem:[#allocation21_spill] sm:$0xff] %v9259_v11 }
 0x1b2   :  { %4877 = vmatmul.mubr.msk.f32.vlgmr.msra.gmra.mrb[4].mxu0 %vm1341_vm0, %v8546_v14  ;;  %2927 = vmatmul.mubr.f32.vlgmr.msra.gmra.mrb[12].mxu1 %v9253_v4  ;;  %v9296_v14 = vpack.c.bf16 %v2704_v22, %v2703_v23  ;;  %v2737_v23 = vld [vmem:[%s10091_s3 + $0x3b0] sm:$0xff]  ;;  %v2738_v22 = vld [vmem:[%s10091_s3 + $0x3b8] sm:$0xff]  ;;  %10185 = vst [vmem:[#allocation27_spill] sm:$0xff] %v9370_v17 }
 0x1b3   :  { %6280 = vmatpush3.bf16.msra.mxu0 %v9242_v60  ;;  %6312 = vmatpush3.bf16.msra.mxu1 %v9244_v63  ;;  %v9368_v63 = vpack.c.bf16 %v2708_v3, %v2707_v1  ;;  %v2741_v1 = vld [vmem:[%s10091_s3 + $0x3d0] sm:$0xff]  ;;  %v2742_v3 = vld [vmem:[%s10091_s3 + $0x3d8] sm:$0xff] }
 0x1b4   :  { %6282 = vmatprep.subr.bf16.mxu0 %v9257_v5  ;;  %6314 = vmatprep.subr.bf16.mxu1 %v9259_v11  ;;  %v9334_v11 = vpack.c.bf16 %v2738_v22, %v2737_v23  ;;  %v9356_v23 = vpack.c.bf16 %v2690_v49, %v2689_v19  ;;  %v9358_v22 = vpack.c.bf16 %v2722_v47, %v2721_v43  ;;  %v2723_v49 = vld [vmem:[%s10091_s3 + $0x340] sm:$0xff]  ;;  %v2724_v19 = vld [vmem:[%s10091_s3 + $0x348] sm:$0xff]  ;;  %v2709_v43 = vld [vmem:[%s10091_s3 + $0x2d0] sm:$0xff] }
 0x1b5   :  { %v2710_v47 = vld [vmem:[%s10091_s3 + $0x2d8] sm:$0xff]  ;;  %v9394_v18 = vpack.c.bf16 %v2724_v19, %v2723_v49  ;;  %v9406_v15 = vpack.c.bf16 %v2742_v3, %v2741_v1  ;;  %v2711_v49 = vld [vmem:[%s10091_s3 + $0x2e0] sm:$0xff]  ;;  %v2712_v19 = vld [vmem:[%s10091_s3 + $0x2e8] sm:$0xff] }
 0x1b6   :  { %10183 = vst [vmem:[#allocation25_spill] sm:$0xff] %v9334_v11  ;;  %10184 = vst [vmem:[#allocation26_spill] sm:$0xff] %v9358_v22  ;;  %v9404_v4 = vpack.c.bf16 %v2710_v47, %v2709_v43  ;;  %v2743_v43 = vld [vmem:[%s10091_s3 + $0x3e0] sm:$0xff]  ;;  %v2744_v47 = vld [vmem:[%s10091_s3 + $0x3e8] sm:$0xff]  ;;  %v9440_v51 = vpack.c.bf16 %v2712_v19, %v2711_v49 }
 0x1b7   :  { %6284 = vmatpush3.bf16.msra.mxu0 %v9284_v35  ;;  %6316 = vmatpush3.bf16.msra.mxu1 %v9286_v38  ;;  %v2692_v38 = vld [vmem:[%s10091_s3 + $0x248] sm:$0xff]  ;;  %10186 = vst [vmem:[#allocation28_spill] sm:$0xff] %v9394_v18  ;;  %10187 = vst [vmem:[#allocation29_spill] sm:$0xff] %v9406_v15  ;;  %v9442_v46 = vpack.c.bf16 %v2744_v47, %v2743_v43  ;;  %v2745_v49 = vld [vmem:[%s10091_s3 + $0x3f0] sm:$0xff] }
 0x1b8   :  { %6286 = vmatprep.subr.bf16.mxu0 %v9296_v14  ;;  %6318 = vmatprep.subr.bf16.mxu1 %v9298_v28  ;;  %v2691_v28 = vld [vmem:[%s10091_s3 + $0x240] sm:$0xff]  ;;  %v2746_v19 = vld [vmem:[%s10091_s3 + $0x3f8] sm:$0xff] }
 0x1b9   :  { %v9392_v54 = vpack.c.bf16 %v2692_v38, %v2691_v28  ;;  %v2725_v28 = vld [vmem:[%s10091_s3 + $0x350] sm:$0xff]  ;;  %v2726_v38 = vld [vmem:[%s10091_s3 + $0x358] sm:$0xff]  ;;  %10189 = vst [vmem:[#allocation31_spill] sm:$0xff] %v9442_v46  ;;  %v9475_v30 = vpack.c.bf16 %v2746_v19, %v2745_v49  ;;  %v9507_v49 = vsub.s32 5, %v7728_v42  ;;  %v9510_v19 = vsub.s32 7, %v7728_v42 }
 0x1ba   :  { %v9430_v3 = vpack.c.bf16 %v2726_v38, %v2725_v28  ;;  %v2713_v28 = vld [vmem:[%s10091_s3 + $0x2f0] sm:$0xff]  ;;  %v2714_v38 = vld [vmem:[%s10091_s3 + $0x2f8] sm:$0xff] }
 0x1bb   :  { %6288 = vmatpush3.bf16.msra.mxu0 %v9320_v12  ;;  %6320 = vmatpush3.bf16.msra.mxu1 %v9322_v34  ;;  %v2694_v34 = vld [vmem:[%s10091_s3 + $0x258] sm:$0xff]  ;;  %10191 = vst [vmem:[#allocation33_spill] sm:$0xff] %v9475_v30  ;;  %10194 = vst [vmem:[#allocation35_spill] sm:$0xff] %v9507_v49 }
 0x1bc   :  { %6290 = vmatprep.subr.bf16.mxu0 %v9332_v53  ;;  %6322 = vmatprep.subr.bf16.mxu1 %v9334_v11  ;;  %v2693_v11 = vld [vmem:[%s10091_s3 + $0x250] sm:$0xff]  ;;  %10188 = vst [vmem:[#allocation30_spill] sm:$0xff] %v9430_v3  ;;  %10195 = vst [vmem:[#allocation36_spill] sm:$0xff] %v9510_v19 }
 0x1bd   :  { %v9428_v1 = vpack.c.bf16 %v2694_v34, %v2693_v11  ;;  %v2727_v11 = vld [vmem:[%s10091_s3 + $0x360] sm:$0xff]  ;;  %v2728_v34 = vld [vmem:[%s10091_s3 + $0x368] sm:$0xff] }
 0x1be   :  { %v9466_v47 = vpack.c.bf16 %v2728_v34, %v2727_v11 }
 0x1bf   :  { %6292 = vmatpush3.bf16.msra.mxu0 %v9356_v23  ;;  %6324 = vmatpush3.bf16.msra.mxu1 %v9358_v22  ;;  %v2696_v22 = vld [vmem:[%s10091_s3 + $0x268] sm:$0xff] }
 0x1c0   :  { %6294 = vmatprep.subr.bf16.mxu0 %v9368_v63  ;;  %6326 = vmatprep.subr.bf16.mxu1 %v9370_v17  ;;  %v2695_v17 = vld [vmem:[%s10091_s3 + $0x260] sm:$0xff]  ;;  %10190 = vst [vmem:[#allocation32_spill] sm:$0xff] %v9466_v47 }
 0x1c1   :  { %v9464_v43 = vpack.c.bf16 %v2696_v22, %v2695_v17  ;;  %v2729_v17 = vld [vmem:[%s10091_s3 + $0x370] sm:$0xff]  ;;  %v2730_v22 = vld [vmem:[%s10091_s3 + $0x378] sm:$0xff] }
 0x1c2   :  { %v9490_v34 = vpack.c.bf16 %v2730_v22, %v2729_v17  ;;  %v9513_v17 = vsub.s32 4, %v7728_v42  ;;  %v9516_v22 = vsub.s32 6, %v7728_v42  ;;  %v2780_v42 = vld [vmem:[%s10091_s3 + $0x508] sm:$0xff] }
 0x1c3   :  { %6296 = vmatpush3.bf16.msra.mxu0 %v9392_v54  ;;  %6328 = vmatpush3.bf16.msra.mxu1 %v9394_v18  ;;  %v9473_v18 = vpack.c.bf16 %v2714_v38, %v2713_v28  ;;  %v10193_v28 = vmov 0.0|0.0   ;;  %v2763_v38 = vld [vmem:[%s10091_s3 + $0x480] sm:$0xff] }
 0x1c4   :  { %6298 = vmatprep.subr.bf16.mxu0 %v9404_v4  ;;  %6330 = vmatprep.subr.bf16.mxu1 %v9406_v15  ;;  %v2697_v15 = vld [vmem:[%s10091_s3 + $0x270] sm:$0xff]  ;;  %10192 = vst [vmem:[#allocation34_spill] sm:$0xff] %v9490_v34  ;;  %10196 = vst [vmem:[#allocation37_spill] sm:$0xff] %v9513_v17 }
 0x1c5   :  { %10197 = vst [vmem:[#allocation38_spill] sm:$0xff] %v9516_v22 }
 0x1c7   :  { %6300 = vmatpush3.bf16.msra.mxu0 %v9428_v1  ;;  %6332 = vmatpush3.bf16.msra.mxu1 %v9430_v3  ;;  %v2698_v3 = vld [vmem:[%s10091_s3 + $0x278] sm:$0xff] }
 0x1c8   :  { %6302 = vmatprep.subr.bf16.mxu0 %v9440_v51  ;;  %6334 = vmatprep.subr.bf16.mxu1 %v9442_v46  ;;  %v9488_v11 = vpack.c.bf16 %v2698_v3, %v2697_v15  ;;  %v2764_v15 = vld [vmem:[%s10091_s3 + $0x488] sm:$0xff] }
 0x1c9   :  { %v9503_v3 = vpack.c.bf16 %v2764_v15, %v2763_v38  ;;  %v1287_v38 = vrot.slane %v8783_v32, %v9510_v19  ;;  %v1275_v15 = vrot.slane %v8783_v32, %v9513_v17  ;;  %v2747_v19 = vld [vmem:[%s10091_s3 + $0x400] sm:$0xff] }
 0x1cb   :  { %6304 = vmatpush3.bf16.msra.mxu0 %v9464_v43  ;;  %6336 = vmatpush3.bf16.msra.mxu1 %v9466_v47  ;;  %v2779_v47 = vld [vmem:[%s10091_s3 + $0x500] sm:$0xff] }
 0x1cc   :  { %6306 = vmatprep.subr.bf16.mxu0 %v9473_v18  ;;  %6338 = vmatprep.subr.bf16.mxu1 %v9475_v30  ;;  %v1283_v30 = vrot.slane %v8783_v32, %v9516_v22  ;;  %v2765_v22 = vld [vmem:[%s10091_s3 + $0x490] sm:$0xff]  ;;  %v9548_v56 = vpack.c.bf16 %v2780_v42, %v2779_v47  ;;  %v2770_v42 = vld [vmem:[%s10091_s3 + $0x4b8] sm:$0xff] }
 0x1cd   :  { %v9564_v47 = vpack.c.bf16 %v2766_v13, %v2765_v22  ;;  %v2768_v13 = vld [vmem:[%s10091_s3 + $0x4a8] sm:$0xff] }
 0x1ce   :  { %10199 = vst [vmem:[#allocation40_spill] sm:$0xff] %v9548_v56 }
 0x1cf   :  { %6308 = vmatpush3.bf16.msra.mxu0 %v9488_v11  ;;  %6340 = vmatpush3.bf16.msra.mxu1 %v9490_v34  ;;  %v1279_v34 = vrot.slane %v8783_v32, %v9507_v49  ;;  %v2748_v49 = vld [vmem:[%s10091_s3 + $0x408] sm:$0xff] }
 0x1d0   :  { %6373 = vmatprep.subr.bf16.mxu1 %v10193_v28  ;;  %6342 = vmatprep.subr.bf16.mxu0 %v9503_v3  ;;  %v9560_v16 = vpack.c.bf16 %v2748_v49, %v2747_v19  ;;  %v10202_v49 = vmov 0.0   ;;  %v2783_v19 = vld [vmem:[%s10091_s3 + $0x520] sm:$0xff] }
 0x1f5   :  { %v1978_v46 = vpop.f32.mrb[2].mxu0  ;;  %v2191_v27 = vpop.f32.mrb[2].mxu1 }
 0x1f6   :  { %v1980_v17 = vpop.f32.mrb[3].mxu0  ;;  %v2193_v32 = vpop.f32.mrb[3].mxu1  ;;  %v9550_v39 = vadd.f32 %v1978_v46, %v1275_v15  ;;  %v9552_v37 = vadd.f32 %v2191_v27, %v1283_v30  ;;  %v2749_v27 = vld [vmem:[%s10091_s3 + $0x410] sm:$0xff]  ;;  %v2750_v30 = vld [vmem:[%s10091_s3 + $0x418] sm:$0xff]  ;;  %v2767_v46 = vld [vmem:[%s10091_s3 + $0x4a0] sm:$0xff] }
 0x1f7   :  { %v9544_v6 = vadd.f32 %v1980_v17, %v1279_v34  ;;  %v9546_v61 = vadd.f32 %v2193_v32, %v1287_v38  ;;  %v9581_v34 = vpack.c.bf16 %v2782_v24, %v2781_v25  ;;  %v2784_v17 = vld [vmem:[%s10091_s3 + $0x528] sm:$0xff]  ;;  %v9593_v22 = vpack.c.bf16 %v2750_v30, %v2749_v27  ;;  %v2751_v25 = vld [vmem:[%s10091_s3 + $0x420] sm:$0xff]  ;;  %v2769_v15 = vld [vmem:[%s10091_s3 + $0x4b0] sm:$0xff] }
 0x1f8   :  { %10200 = vst [vmem:[#allocation41_spill] sm:$0xff] %v9552_v37  ;;  %v9596_v24 = vpack.c.bf16 %v2768_v13, %v2767_v46  ;;  %v2752_v38 = vld [vmem:[%s10091_s3 + $0x428] sm:$0xff]  ;;  %v9611_v32 = vpack.c.bf16 %v2784_v17, %v2783_v19  ;;  %v2785_v27 = vld [vmem:[%s10091_s3 + $0x530] sm:$0xff]  ;;  %v2786_v30 = vld [vmem:[%s10091_s3 + $0x538] sm:$0xff]  ;;  %v9624_v13 = vpack.c.bf16 %v2770_v42, %v2769_v15 }
 0x1f9   :  { %10198 = vst [vmem:[#allocation39_spill] sm:$0xff] %v9546_v61  ;;  %2996 = vmatprep.mubr.f32.mxu0 %v9544_v6  ;;  %3066 = vmatprep.mubr.f32.mxu1 %v9546_v61  ;;  %10201 = vst [vmem:[#allocation42_spill] sm:$0xff] %v9581_v34  ;;  %v9621_v46 = vpack.c.bf16 %v2752_v38, %v2751_v25  ;;  %v2753_v19 = vld [vmem:[%s10091_s3 + $0x430] sm:$0xff]  ;;  %v2754_v17 = vld [vmem:[%s10091_s3 + $0x438] sm:$0xff]  ;;  %v9639_v38 = vpack.c.bf16 %v2786_v30, %v2785_v27 }
 0x1fa   :  { %2997 = vmatmul.mubr.f32.vlgmr.msra.gmra.mrb[6].mxu0 %v9550_v39  ;;  %3067 = vmatmul.mubr.f32.vlgmr.msra.gmra.mrb[14].mxu1 %v9552_v37  ;;  %10203 = vst [vmem:[#allocation43_spill] sm:$0xff] %v9611_v32  ;;  %v2772_v25 = vld [vmem:[%s10091_s3 + $0x4c8] sm:$0xff]  ;;  %v9643_v15 = vpack.c.bf16 %v2754_v17, %v2753_v19  ;;  %v2773_v27 = vld [vmem:[%s10091_s3 + $0x4d0] sm:$0xff]  ;;  %v2774_v30 = vld [vmem:[%s10091_s3 + $0x4d8] sm:$0xff] }
 0x1fb   :  { %6375 = vmatpush3.bf16.msra.mxu1 %v9548_v56  ;;  %5383 = vmatprep.mubr.msk.f32.mxu1 %vm7570_vm1, %v10202_v49  ;;  %10204 = vst [vmem:[#allocation44_spill] sm:$0xff] %v9639_v38  ;;  %v2755_v56 = vld [vmem:[%s10091_s3 + $0x440] sm:$0xff]  ;;  %v9671_v17 = vpack.c.bf16 %v2774_v30, %v2773_v27  ;;  %v2760_v37 = vld [vmem:[%s10091_s3 + $0x468] sm:$0xff] }
 0x1fc   :  { %6376 = vmatprep.subr.bf16.mxu1 %v10193_v28  ;;  %6344 = vmatpush3.bf16.msra.mxu0 %v9560_v16  ;;  %v2759_v30 = vld [vmem:[%s10091_s3 + $0x460] sm:$0xff] }
 0x1fd   :  { %6346 = vmatprep.subr.bf16.mxu0 %v9564_v47 }
 0x1ff   :  { %6378 = vmatpush3.bf16.msra.mxu1 %v9581_v34  ;;  %v2771_v34 = vld [vmem:[%s10091_s3 + $0x4c0] sm:$0xff] }
 0x200   :  { %6379 = vmatprep.subr.bf16.mxu1 %v10193_v28  ;;  %6348 = vmatpush3.bf16.msra.mxu0 %v9593_v22  ;;  %v9646_v42 = vpack.c.bf16 %v2772_v25, %v2771_v34  ;;  %v9665_v34 = vld [vmem:[%s10091_s3 + $0x540] sm:$0xff]  ;;  %v2757_v25 = vld [vmem:[%s10091_s3 + $0x450] sm:$0xff] }
 0x201   :  { %6350 = vmatprep.subr.bf16.mxu0 %v9596_v24  ;;  %10205 = vst [vmem:[#allocation45_spill] sm:$0xff] %v9665_v34 }
 0x203   :  { %6381 = vmatpush3.bf16.msra.mxu1 %v9611_v32  ;;  %v2756_v32 = vld [vmem:[%s10091_s3 + $0x448] sm:$0xff] }
 0x204   :  { %6382 = vmatprep.subr.bf16.mxu1 %v10193_v28  ;;  %6352 = vmatpush3.bf16.msra.mxu0 %v9621_v46  ;;  %v9668_v19 = vpack.c.bf16 %v2756_v32, %v2755_v56  ;;  %v2775_v28 = vld [vmem:[%s10091_s3 + $0x4e0] sm:$0xff]  ;;  %v2776_v56 = vld [vmem:[%s10091_s3 + $0x4e8] sm:$0xff] }
 0x205   :  { %6354 = vmatprep.subr.bf16.mxu0 %v9624_v13  ;;  %v9691_v27 = vpack.c.bf16 %v2776_v56, %v2775_v28  ;;  %v9706_v28 = vpack.c.bf16 %v2760_v37, %v2759_v30  ;;  %v2761_v56 = vld [vmem:[%s10091_s3 + $0x470] sm:$0xff] }
 0x207   :  { %6384 = vmatpush3.bf16.msra.mxu1 %v9639_v38  ;;  %v2758_v38 = vld [vmem:[%s10091_s3 + $0x458] sm:$0xff]  ;;  %10207 = vst [vmem:[#allocation47_spill] sm:$0xff] %v9691_v27  ;;  %10208 = vst [vmem:[#allocation48_spill] sm:$0xff] %v9706_v28 }
 0x208   :  { %5381 = vmatprep.subr.mxu1 %v10202_v49  ;;  %6356 = vmatpush3.bf16.msra.mxu0 %v9643_v15  ;;  %v9688_v32 = vpack.c.bf16 %v2758_v38, %v2757_v25  ;;  %v2778_v38 = vld [vmem:[%s10091_s3 + $0x4f8] sm:$0xff] }
 0x209   :  { %6358 = vmatprep.subr.bf16.mxu0 %v9646_v42 }
 0x20a   :  { %10206 = vst [vmem:[#allocation46_spill] sm:$0xff] %v9688_v32 }
 0x20b   :  { %5382 = vmatpush3.msra.mxu1 %v9665_v34  ;;  %v2762_v34 = vld [vmem:[%s10091_s3 + $0x478] sm:$0xff] }
 0x20c   :  { %6386 = vmatprep.subr.bf16.mxu1 %v8795_v36  ;;  %6360 = vmatpush3.bf16.msra.mxu0 %v9668_v19  ;;  %v2777_v36 = vld [vmem:[%s10091_s3 + $0x4f0] sm:$0xff]  ;;  %v9718_v49 = vpack.c.bf16 %v2762_v34, %v2761_v56 }
 0x20d   :  { %6362 = vmatprep.subr.bf16.mxu0 %v9671_v17  ;;  %v9709_v25 = vpack.c.bf16 %v2778_v38, %v2777_v36  ;;  %v9726_v36 = vld [vmem:[%s10092_s2 + $0x8] sm:$0x7] }
 0x20e   :  { %v1299_v38 = vrot.slane %v9726_v36, %v9181_v50 }
 0x20f   :  { %10209 = vst [vmem:[#allocation49_spill] sm:$0xff] %v9709_v25 }
 0x210   :  { %6364 = vmatpush3.bf16.msra.mxu0 %v9688_v32 }
 0x211   :  { %6366 = vmatprep.subr.bf16.mxu0 %v9691_v27 }
 0x214   :  { %6368 = vmatpush3.bf16.msra.mxu0 %v9706_v28 }
 0x215   :  { %v4925_v61 = vpop.f32.mrb[4].mxu1  ;;  %6370 = vmatprep.subr.bf16.mxu0 %v9709_v25 }
 0x216   :  { %v4926_v37 = vpop.f32.mrb[5].mxu1 }
 0x217   :  { %v4927_v30 = vadd.f32 %v4926_v37, %v4925_v61 }
 0x218   :  { %6372 = vmatpush3.bf16.msra.mxu0 %v9718_v49 }
 0x219   :  { %6418 = vmatprep.subr.bf16.mxu0 %v9001_v62  ;;  %v2476_v28 = vadd.f32 %v4927_v30, %v1299_v38  ;;  %v3213_v62 = vmul.f32 %v8834_v52, %v8834_v52  ;;  %v10237_v30 = vld [vmem:[#allocation25_spill] sm:$0xff]  ;;  %v10239_v38 = vld [vmem:[#allocation27_spill] sm:$0xff] }
 0x235   :  { %v4960_v34 = vpop.f32.mrb[6].mxu1 }
 0x236   :  { %v4961_v56 = vpop.f32.mrb[7].mxu1 }
 0x237   :  { %v4962_v27 = vadd.f32 %v4961_v56, %v4960_v34  ;;  %v10240_v34 = vld [vmem:[#allocation28_spill] sm:$0xff]  ;;  %v10241_v56 = vld [vmem:[#allocation29_spill] sm:$0xff] }
 0x239   :  { %v2546_v32 = vadd.f32 %v4962_v27, %v2476_v28  ;;  %v10234_v27 = vld [vmem:[#allocation22_spill] sm:$0xff]  ;;  %v10235_v28 = vld [vmem:[#allocation23_spill] sm:$0xff] }
 0x245   :  { %v2615_v25 = vpop.f32.mrb[8].mxu1 }
 0x246   :  { %v9730_v61 = vadd.f32 %v2615_v25, %v2546_v32  ;;  %v5364_v37 = vpop.f32.mrb[9].mxu1  ;;  %v10232_v32 = vld [vmem:[#allocation19_spill] sm:$0xff]  ;;  %v10236_v25 = vld [vmem:[#allocation24_spill] sm:$0xff] }
 0x247   :  { %v10242_v37 = vld [vmem:[#allocation30_spill] sm:$0xff] }
 0x248   :  { %5384 = vmatmul.mubr.msk.f32.vlgmr.msra.gmra.mrb[16].mxu1 %vm2788_vm2, %v9730_v61 }
 0x249   :  { %6388 = vmatpush3.bf16.msra.mxu1 %v8814_v44  ;;  %3290 = vmatprep.mubr.f32.mxu1 %v3213_v62  ;;  %v10243_v62 = vld [vmem:[#allocation31_spill] sm:$0xff] }
 0x24a   :  { %6390 = vmatprep.subr.bf16.mxu1 %v8826_v48  ;;  %v3212_v48 = vmul.f32 %v9024_v9, %v9024_v9 }
 0x24d   :  { %6392 = vmatpush3.bf16.msra.mxu1 %v8842_v55 }
 0x24e   :  { %6394 = vmatprep.subr.bf16.mxu1 %v8848_v57 }
 0x251   :  { %6396 = vmatpush3.bf16.msra.mxu1 %v8867_v0  ;;  %v3217_v0 = vmul.f32 %v9544_v6, %v9544_v6 }
 0x252   :  { %6398 = vmatprep.subr.bf16.mxu1 %v8873_v2  ;;  %v1295_v2 = vrot.slane %v9726_v36, %v8778_v31 }
 0x255   :  { %6400 = vmatpush3.bf16.msra.mxu1 %v8891_v8  ;;  %v1291_v8 = vrot.slane %v9726_v36, %v8966_v41  ;;  %v10238_v36 = vld [vmem:[#allocation26_spill] sm:$0xff] }
 0x256   :  { %6402 = vmatprep.subr.bf16.mxu1 %v8897_v10 }
 0x259   :  { %6404 = vmatpush3.bf16.msra.mxu1 %v8915_v20 }
 0x25a   :  { %6406 = vmatprep.subr.bf16.mxu1 %v8921_v58  ;;  %v3216_v58 = vmul.f32 %v9550_v39, %v9550_v39 }
 0x25d   :  { %6408 = vmatpush3.bf16.msra.mxu1 %v8939_v29 }
 0x25e   :  { %6410 = vmatprep.subr.bf16.mxu1 %v8945_v33 }
 0x261   :  { %6412 = vmatpush3.bf16.msra.mxu1 %v8963_v40 }
 0x262   :  { %6414 = vmatprep.subr.bf16.mxu1 %v8972_v45 }
 0x265   :  { %6416 = vmatpush3.bf16.msra.mxu1 %v8993_v59  ;;  %v5004_v44 = vpop.f32.mrb[10].mxu1 }
 0x266   :  { %v5005_v55 = vpop.f32.mrb[11].mxu1  ;;  %6450 = vmatprep.subr.bf16.mxu1 %v9219_v26 }
 0x267   :  { %v5006_v57 = vadd.f32 %v5005_v55, %v5004_v44  ;;  %v10244_v44 = vld [vmem:[#allocation32_spill] sm:$0xff]  ;;  %v10246_v55 = vld [vmem:[#allocation34_spill] sm:$0xff] }
 0x268   :  { %3291 = vmatmul.mubr.f32.vlgmr.msra.gmra.mrb[18].mxu1 %v3212_v48  ;;  %v10245_v48 = vld [vmem:[#allocation33_spill] sm:$0xff] }
 0x269   :  { %6452 = vmatpush3.bf16.msra.mxu1 %v9242_v60  ;;  %3430 = vmatprep.mubr.f32.mxu1 %v3217_v0  ;;  %v10210_v60 = vld [vmem:[#allocation4_spill] sm:$0xff] }
 0x26a   :  { %6454 = vmatprep.subr.bf16.mxu1 %v9257_v5  ;;  %v10214_v5 = vld [vmem:[#allocation8_spill] sm:$0xff] }
 0x26d   :  { %6456 = vmatpush3.bf16.msra.mxu1 %v9284_v35  ;;  %v10216_v35 = vld [vmem:[#allocation10_spill] sm:$0xff] }
 0x26e   :  { %6458 = vmatprep.subr.bf16.mxu1 %v9296_v14  ;;  %v10217_v14 = vld [vmem:[#allocation11_spill] sm:$0xff] }
 0x271   :  { %6460 = vmatpush3.bf16.msra.mxu1 %v9320_v12  ;;  %v10218_v12 = vld [vmem:[#allocation12_spill] sm:$0xff] }
 0x272   :  { %6462 = vmatprep.subr.bf16.mxu1 %v9332_v53 }
 0x275   :  { %6464 = vmatpush3.bf16.msra.mxu1 %v9356_v23  ;;  %v10219_v23 = vld [vmem:[#allocation46_spill] sm:$0xff] }
 0x276   :  { %6466 = vmatprep.subr.bf16.mxu1 %v9368_v63  ;;  %v10212_v63 = vld [vmem:[#allocation6_spill] sm:$0xff] }
 0x279   :  { %6468 = vmatpush3.bf16.msra.mxu1 %v9392_v54  ;;  %v10220_v54 = vld [vmem:[#allocation47_spill] sm:$0xff] }
 0x27a   :  { %6470 = vmatprep.subr.bf16.mxu1 %v9404_v4  ;;  %v10213_v4 = vld [vmem:[#allocation7_spill] sm:$0xff] }
 0x27d   :  { %6472 = vmatpush3.bf16.msra.mxu1 %v9428_v1  ;;  %v10222_v1 = vld [vmem:[#allocation14_spill] sm:$0xff] }
 0x27e   :  { %6474 = vmatprep.subr.bf16.mxu1 %v9440_v51  ;;  %v3215_v51 = vmul.f32 %v9045_v21, %v9045_v21 }
 0x281   :  { %6476 = vmatpush3.bf16.msra.mxu1 %v9464_v43  ;;  %v10223_v43 = vld [vmem:[#allocation48_spill] sm:$0xff] }
 0x282   :  { %6478 = vmatprep.subr.bf16.mxu1 %v9473_v18  ;;  %v10221_v18 = vld [vmem:[#allocation13_spill] sm:$0xff] }
 0x285   :  { %6480 = vmatpush3.bf16.msra.mxu1 %v9488_v11  ;;  %v2404_v10 = vpop.f32.mrb[4].mxu0  ;;  %v5039_v20 = vpop.f32.mrb[12].mxu1  ;;  %v10224_v11 = vld [vmem:[#allocation49_spill] sm:$0xff] }
 0x286   :  { %v2406_v29 = vpop.f32.mrb[5].mxu0  ;;  %v5040_v33 = vpop.f32.mrb[13].mxu1  ;;  %6514 = vmatprep.subr.bf16.mxu1 %v9503_v3  ;;  %v9780_v53 = vadd.f32 %v2404_v10, %v1291_v8  ;;  %v10225_v3 = vld [vmem:[#allocation15_spill] sm:$0xff]  ;;  %v10249_v8 = vld [vmem:[#allocation40_spill] sm:$0xff] }
 0x287   :  { %v9778_v40 = vadd.f32 %v2406_v29, %v1295_v2  ;;  %v5041_v45 = vadd.f32 %v5040_v33, %v5039_v20  ;;  %v10248_v2 = vmov 0.0|0.0  }
 0x288   :  { %3431 = vmatmul.mubr.f32.vlgmr.msra.gmra.mrb[20].mxu1 %v3216_v58 }
 0x289   :  { %v9782_v59 = vadd.f32 %v5041_v45, %v5006_v57  ;;  %6516 = vmatpush3.bf16.msra.mxu1 %v9560_v16  ;;  %3136 = vmatprep.mubr.f32.mxu0 %v9778_v40  ;;  %v3221_v26 = vmul.f32 %v9778_v40, %v9778_v40  ;;  %v10211_v16 = vld [vmem:[#allocation5_spill] sm:$0xff] }
 0x28a   :  { %3137 = vmatmul.mubr.f32.vlgmr.msra.gmra.mrb[8].mxu0 %v9780_v53  ;;  %6518 = vmatprep.subr.bf16.mxu1 %v9564_v47  ;;  %v10226_v47 = vld [vmem:[#allocation16_spill] sm:$0xff]  ;;  %v10247_v57 = vld [vmem:[#allocation41_spill] sm:$0xff] }
 0x28b   :  { %6420 = vmatpush3.bf16.msra.mxu0 %v9021_v7  ;;  %3360 = vmatprep.mubr.f32.mxu0 %v3215_v51  ;;  %v10215_v7 = vld [vmem:[#allocation9_spill] sm:$0xff]  ;;  %v3218_v0 = vmul.f32 %v10247_v57, %v10247_v57  ;;  %v10250_v51 = vld [vmem:[#allocation42_spill] sm:$0xff] }
 0x28c   :  { %3570 = vmatprep.mubr.f32.mxu1 %v3221_v26  ;;  %6422 = vmatprep.subr.bf16.mxu0 %v10210_v60 }
 0x28d   :  { %6520 = vmatpush3.bf16.msra.mxu1 %v9593_v22  ;;  %v3220_v22 = vmul.f32 %v9780_v53, %v9780_v53 }
 0x28e   :  { %6522 = vmatprep.subr.bf16.mxu1 %v9596_v24  ;;  %v10227_v24 = vld [vmem:[#allocation17_spill] sm:$0xff] }
 0x28f   :  { %6424 = vmatpush3.bf16.msra.mxu0 %v10211_v16  ;;  %v10251_v16 = vld [vmem:[#allocation43_spill] sm:$0xff] }
 0x290   :  { %6426 = vmatprep.subr.bf16.mxu0 %v10212_v63  ;;  %v10252_v63 = vld [vmem:[#allocation44_spill] sm:$0xff] }
 0x291   :  { %6524 = vmatpush3.bf16.msra.mxu1 %v9621_v46  ;;  %v10228_v46 = vld [vmem:[#allocation20_spill] sm:$0xff] }
 0x292   :  { %6526 = vmatprep.subr.bf16.mxu1 %v9624_v13  ;;  %v3214_v13 = vmul.f32 %v10228_v46, %v10228_v46 }
 0x293   :  { %6428 = vmatpush3.bf16.msra.mxu0 %v10213_v4  ;;  %v3222_v4 = vmul.f32 %v9730_v61, %v9730_v61 }
 0x294   :  { %6430 = vmatprep.subr.bf16.mxu0 %v10214_v5  ;;  %v10253_v5 = vld [vmem:[#allocation45_spill] sm:$0xff] }
 0x295   :  { %6528 = vmatpush3.bf16.msra.mxu1 %v9643_v15  ;;  %v10229_v15 = vld [vmem:[#allocation18_spill] sm:$0xff] }
 0x296   :  { %6530 = vmatprep.subr.bf16.mxu1 %v9646_v42  ;;  %v10230_v42 = vld [vmem:[#allocation39_spill] sm:$0xff] }
 0x297   :  { %6432 = vmatpush3.bf16.msra.mxu0 %v10215_v7  ;;  %v3670_v7 = vld [vmem:[%s10093_s4 + $0x18] sm:$0xff] }
 0x298   :  { %6434 = vmatprep.subr.bf16.mxu0 %v10216_v35  ;;  %v3667_v35 = vld [vmem:[%s10093_s4] sm:$0xff] }
 0x299   :  { %6532 = vmatpush3.bf16.msra.mxu1 %v9668_v19  ;;  %v3219_v19 = vmul.f32 %v10230_v42, %v10230_v42 }
 0x29a   :  { %6534 = vmatprep.subr.bf16.mxu1 %v9671_v17  ;;  %v10231_v17 = vmov 0.0  }
 0x29b   :  { %6436 = vmatpush3.bf16.msra.mxu0 %v10217_v14  ;;  %v3669_v14 = vld [vmem:[%s10093_s4 + $0x10] sm:$0xff] }
 0x29c   :  { %6438 = vmatprep.subr.bf16.mxu0 %v10218_v12  ;;  %v3672_v12 = vld [vmem:[%s10093_s4 + $0x28] sm:$0xff] }
 0x29d   :  { %6536 = vmatpush3.bf16.msra.mxu1 %v10219_v23  ;;  %v3674_v23 = vld [vmem:[%s10093_s4 + $0x38] sm:$0xff] }
 0x29e   :  { %6538 = vmatprep.subr.bf16.mxu1 %v10220_v54 }
 0x29f   :  { %6440 = vmatpush3.bf16.msra.mxu0 %v10221_v18 }
 0x2a0   :  { %6442 = vmatprep.subr.bf16.mxu0 %v10222_v1 }
 0x2a1   :  { %6540 = vmatpush3.bf16.msra.mxu1 %v10223_v43 }
 0x2a2   :  { %6542 = vmatprep.subr.bf16.mxu1 %v10224_v11 }
 0x2a3   :  { %6444 = vmatpush3.bf16.msra.mxu0 %v10225_v3 }
 0x2a4   :  { %6446 = vmatprep.subr.bf16.mxu0 %v10226_v47 }
 0x2a5   :  { %6544 = vmatpush3.bf16.msra.mxu1 %v9718_v49  ;;  %v10233_v49 = vld [vmem:[#allocation21_spill] sm:$0xff] }
 0x2a6   :  { %3753 = vmatprep.subr.mxu1 %v3670_v7 }
 0x2a7   :  { %6448 = vmatpush3.bf16.msra.mxu0 %v10227_v24 }
 0x2a8   :  { %3571 = vmatmul.mubr.f32.vlgmr.msra.gmra.mrb[22].mxu1 %v3220_v22  ;;  %6482 = vmatprep.subr.bf16.mxu0 %v10229_v15 }
 0x2a9   :  { %3817 = vmatprep.mubr.f32.mxu1 %v10231_v17  ;;  %3754 = vmatpush1.msra.mxu1 %v3669_v14 }
 0x2aa   :  { %3361 = vmatmul.mubr.f32.vlgmr.msra.gmra.mrb[10].mxu0 %v3214_v13  ;;  %3895 = vmatprep.subr.mxu1 %v3674_v23 }
 0x2ab   :  { %6484 = vmatpush3.bf16.msra.mxu0 %v10232_v32  ;;  %3500 = vmatprep.mubr.f32.mxu0 %v3219_v19 }
 0x2ac   :  { %6486 = vmatprep.subr.bf16.mxu0 %v10233_v49 }
 0x2af   :  { %6488 = vmatpush3.bf16.msra.mxu0 %v10234_v27 }
 0x2b0   :  { %6490 = vmatprep.subr.bf16.mxu0 %v10235_v28 }
 0x2b3   :  { %6492 = vmatpush3.bf16.msra.mxu0 %v10236_v25 }
 0x2b4   :  { %6494 = vmatprep.subr.bf16.mxu0 %v10237_v30 }
 0x2b7   :  { %6496 = vmatpush3.bf16.msra.mxu0 %v10238_v36 }
 0x2b8   :  { %6498 = vmatprep.subr.bf16.mxu0 %v10239_v38 }
 0x2bb   :  { %6500 = vmatpush3.bf16.msra.mxu0 %v10240_v34 }
 0x2bc   :  { %6502 = vmatprep.subr.bf16.mxu0 %v10241_v56  ;;  %v3671_v56 = vld [vmem:[%s10093_s4 + $0x20] sm:$0xff] }
 0x2bf   :  { %6504 = vmatpush3.bf16.msra.mxu0 %v10242_v37  ;;  %v3673_v37 = vld [vmem:[%s10093_s4 + $0x30] sm:$0xff] }
 0x2c0   :  { %6506 = vmatprep.subr.bf16.mxu0 %v10243_v62  ;;  %v3676_v62 = vld [vmem:[%s10093_s4 + $0x48] sm:$0xff] }
 0x2c3   :  { %6508 = vmatpush3.bf16.msra.mxu0 %v10244_v44  ;;  %v3675_v44 = vld [vmem:[%s10093_s4 + $0x40] sm:$0xff] }
 0x2c4   :  { %6510 = vmatprep.subr.bf16.mxu0 %v10245_v48  ;;  %v3677_v48 = vld [vmem:[%s10093_s4 + $0x50] sm:$0xff] }
 0x2c7   :  { %6512 = vmatpush3.bf16.msra.mxu0 %v10246_v55 }
 0x2c8   :  { %6545 = vmatprep.subr.bf16.mxu0 %v10248_v2 }
 0x2ca   :  { %3501 = vmatmul.mubr.f32.vlgmr.msra.gmra.mrb[12].mxu0 %v3218_v0 }
 0x2cb   :  { %6547 = vmatpush3.bf16.msra.mxu0 %v10249_v8  ;;  %5404 = vmatprep.mubr.msk.f32.mxu0 %vm7570_vm1, %v10231_v17 }
 0x2cc   :  { %6548 = vmatprep.subr.bf16.mxu0 %v10248_v2 }
 0x2cd   :  { %v5074_v10 = vpop.f32.mrb[6].mxu0  ;;  %v5109_v20 = vpop.f32.mrb[14].mxu1 }
 0x2ce   :  { %v5075_v58 = vpop.f32.mrb[7].mxu0  ;;  %v5110_v29 = vpop.f32.mrb[15].mxu1 }
 0x2cf   :  { %v5076_v33 = vadd.f32 %v5075_v58, %v5074_v10  ;;  %v5111_v45 = vadd.f32 %v5110_v29, %v5109_v20  ;;  %6550 = vmatpush3.bf16.msra.mxu0 %v10250_v51 }
 0x2d0   :  { %6551 = vmatprep.subr.bf16.mxu0 %v10248_v2 }
 0x2d1   :  { %v2999_v26 = vadd.f32 %v5076_v33, %v9782_v59  ;;  %v3668_v59 = vld [vmem:[%s10093_s4 + $0x8] sm:$0xff] }
 0x2d3   :  { %v3069_v60 = vadd.f32 %v5111_v45, %v2999_v26  ;;  %6553 = vmatpush3.bf16.msra.mxu0 %v10251_v16 }
 0x2d4   :  { %6554 = vmatprep.subr.bf16.mxu0 %v10248_v2 }
 0x2d7   :  { %6556 = vmatpush3.bf16.msra.mxu0 %v10252_v63 }
 0x2d8   :  { %5402 = vmatprep.subr.mxu0 %v10231_v17 }
 0x2db   :  { %5403 = vmatpush3.msra.mxu0 %v10253_v5 }
 0x2dc   :  { %5405 = vmatmul.mubr.msk.f32.vlgmr.msra.gmra.mrb[14].mxu0 %vm2788_vm2, %v3222_v4  ;;  %3682 = vmatprep.subr.mxu0 %v3668_v59 }
 0x2dd   :  { %3746 = vmatprep.mubr.f32.mxu0 %v10231_v17  ;;  %3683 = vmatpush1.msra.mxu0 %v3667_v35 }
 0x2de   :  { %3824 = vmatprep.subr.mxu0 %v3672_v12 }
 0x31b   :  { %v3208_v54 = vpop.f32.mrb[16].mxu1 }
 0x31c   :  { %v5385_v18 = vpop.f32.mrb[17].mxu1 }
 0x33b   :  { %v5189_v1 = vpop.f32.mrb[18].mxu1 }
 0x33c   :  { %v5190_v43 = vpop.f32.mrb[19].mxu1 }
 0x33d   :  { %v5191_v11 = vadd.f32 %v5190_v43, %v5189_v1 }
 0x35b   :  { %v5259_v3 = vpop.f32.mrb[20].mxu1 }
 0x35c   :  { %v5260_v47 = vpop.f32.mrb[21].mxu1 }
 0x35d   :  { %v5261_v22 = vadd.f32 %v5260_v47, %v5259_v3  ;;  %v5144_v24 = vpop.f32.mrb[8].mxu0 }
 0x35e   :  { %v5145_v13 = vpop.f32.mrb[9].mxu0 }
 0x35f   :  { %v5146_v15 = vadd.f32 %v5145_v13, %v5144_v24 }
 0x361   :  { %v3139_v19 = vadd.f32 %v5146_v15, %v3069_v60 }
 0x363   :  { %v3209_v32 = vadd.f32 %v3208_v54, %v3139_v19 }
 0x365   :  { %v3647_v49 = vsel %vm3646_vm3, %v3209_v32, 0.0 }
 0x366   :  { %v3648_v27 = vrot.slane %v3647_v49, 4 }
 0x368   :  { %v3649_v28 = vadd.f32 %v3648_v27, %v3647_v49 }
 0x36a   :  { %v3650_v25 = vrot.slane %v3649_v28, 2 }
 0x36c   :  { %v3651_v30 = vadd.f32 %v3650_v25, %v3649_v28 }
 0x36e   :  { %v3652_v36 = vrot.slane %v3651_v30, 1 }
 0x370   :  { %v3653_v38 = vadd.f32 %v3652_v36, %v3651_v30  ;;  %v9933_v30 = vld [vmem:[%s10095_s6] sm:$0xff] }
 0x372   :  { %v3654_v34 = vmul.f32 0.00295858, %v3653_v38 }
 0x374   :  { %4881 = vmatmul.mubr.msk.f32.vlgmr.msra.gmra.mrb[16].mxu0 %vm3678_vm4, %v3654_v34  ;;  %4882 = vmatmul.mubr.msk.f32.vlgmr.msra.gmra.mrb[24].mxu1 %vm3678_vm4, %v3654_v34 }
 0x375   :  { %3825 = vmatpush1.msra.mxu0 %v3671_v56  ;;  %3888 = vmatprep.mubr.f32.mxu0 %v10231_v17 }
 0x376   :  { %3896 = vmatpush1.msra.mxu1 %v3673_v37  ;;  %3959 = vmatprep.mubr.f32.mxu1 %v10231_v17 }
 0x377   :  { %3966 = vmatprep.subr.mxu0 %v3676_v62  ;;  %5407 = vmatprep.subr.mxu1 %v10231_v17 }
 0x378   :  { %4883 = vmatmul.mubr.msk.f32.vlgmr.msra.gmra.mrb[18].mxu0 %vm3678_vm4, %v3654_v34  ;;  %4884 = vmatmul.mubr.msk.f32.vlgmr.msra.gmra.mrb[26].mxu1 %vm3678_vm4, %v3654_v34 }
 0x379   :  { %3967 = vmatpush1.msra.mxu0 %v3675_v44  ;;  %4030 = vmatprep.mubr.f32.mxu0 %v10231_v17 }
 0x37a   :  { %5408 = vmatpush3.msra.mxu1 %v3677_v48  ;;  %5409 = vmatprep.mubr.msk.f32.mxu1 %vm7570_vm1, %v10231_v17 }
 0x37b   :  { %v5329_v55 = vpop.f32.mrb[22].mxu1  ;;  %4110 = vmatprep.subr.mxu0 %v3668_v59  ;;  %4181 = vmatprep.subr.mxu1 %v3670_v7 }
 0x37c   :  { %v5330_v0 = vpop.f32.mrb[23].mxu1  ;;  %4885 = vmatmul.mubr.msk.f32.vlgmr.msra.gmra.mrb[20].mxu0 %vm3678_vm4, %v3654_v34  ;;  %5410 = vmatmul.mubr.msk.f32.vlgmr.msra.gmra.mrb[28].mxu1 %vm3678_vm4, %v3654_v34 }
 0x37d   :  { %v5331_v2 = vadd.f32 %v5330_v0, %v5329_v55  ;;  %v5224_v8 = vpop.f32.mrb[10].mxu0  ;;  %4111 = vmatpush1.msra.mxu0 %v3667_v35  ;;  %4174 = vmatprep.mubr.f32.mxu0 %v10231_v17  ;;  %v10255_v0 = vld [vmem:[#allocation37_spill] sm:$0xff] }
 0x37e   :  { %v5225_v10 = vpop.f32.mrb[11].mxu0  ;;  %4182 = vmatpush1.msra.mxu1 %v3669_v14  ;;  %4245 = vmatprep.mubr.f32.mxu1 %v10231_v17 }
 0x37f   :  { %v5226_v20 = vadd.f32 %v5225_v10, %v5224_v8  ;;  %4252 = vmatprep.subr.mxu0 %v3672_v12  ;;  %4323 = vmatprep.subr.mxu1 %v3674_v23  ;;  %v3663_v23 = vmul.f32 %v3654_v34, %v3654_v34  ;;  %v4722_v34 = vrot.slane %v9933_v30, %v8966_v41  ;;  %v10256_v8 = vld [vmem:[#allocation38_spill] sm:$0xff] }
 0x381   :  { %v3363_v58 = vadd.f32 %v5226_v20, %v5191_v11  ;;  %v9958_v20 = vld [vmem:[%s10094_s5 + $0x8] sm:$0x7] }
 0x383   :  { %v3433_v29 = vadd.f32 %v5261_v22, %v3363_v58 }
 0x39d   :  { %v5294_v33 = vpop.f32.mrb[12].mxu0 }
 0x39e   :  { %v5295_v45 = vpop.f32.mrb[13].mxu0 }
 0x39f   :  { %v5296_v51 = vadd.f32 %v5295_v45, %v5294_v33  ;;  %v10257_v33 = vld [vmem:[#allocation35_spill] sm:$0xff] }
 0x3a1   :  { %v3503_v26 = vadd.f32 %v5296_v51, %v3433_v29  ;;  %v4738_v29 = vrot.slane %v9933_v30, %v10255_v0  ;;  %v10258_v51 = vld [vmem:[#allocation36_spill] sm:$0xff] }
 0x3a3   :  { %v3573_v60 = vadd.f32 %v5331_v2, %v3503_v26 }
 0x3af   :  { %v3642_v16 = vpop.f32.mrb[14].mxu0 }
 0x3b0   :  { %v3643_v63 = vadd.f32 %v3642_v16, %v3573_v60  ;;  %v5406_v4 = vpop.f32.mrb[15].mxu0  ;;  %v9970_v60 = vld [vmem:[%s10095_s6 + $0x8] sm:$0x7] }
 0x3b1   :  { %v4746_v4 = vrot.slane %v9933_v30, %v10256_v8 }
 0x3b2   :  { %v3655_v5 = vsel %vm3646_vm3, %v3643_v63, 0.0 }
 0x3b3   :  { %v3656_v59 = vrot.slane %v3655_v5, 4 }
 0x3b5   :  { %v3657_v7 = vadd.f32 %v3656_v59, %v3655_v5  ;;  %v4742_v5 = vrot.slane %v9933_v30, %v10257_v33 }
 0x3b7   :  { %v3658_v35 = vrot.slane %v3657_v7, 2 }
 0x3b9   :  { %v3659_v14 = vadd.f32 %v3658_v35, %v3657_v7  ;;  %v4750_v35 = vrot.slane %v9933_v30, %v10258_v51 }
 0x3bb   :  { %v3660_v54 = vrot.slane %v3659_v14, 1 }
 0x3bd   :  { %v3661_v18 = vadd.f32 %v3660_v54, %v3659_v14  ;;  %v4684_v14 = vrot.slane %v9958_v20, %v8966_v41 }
 0x3bf   :  { %v3662_v12 = vmul.f32 0.00295858, %v3661_v18 }
 0x3c1   :  { %v3664_v1 = vsub.f32 %v3662_v12, %v3663_v23  ;;  %v4692_v23 = vrot.slane %v9958_v20, %v9181_v50 }
 0x3c3   :  { %v3665_v43 = vadd.f32 1e-05, %v3664_v1 }
 0x3c5   :  { %7564 = vrsqrt.f32 %v3665_v43 }
 0x3cf   :  { %v7565_v11 = vpop.eup %7564 }
 0x3d0   :  { %4887 = vmatmul.mubr.msk.f32.vlgmr.msra.gmra.mrb[22].mxu0 %vm3678_vm4, %v7565_v11  ;;  %4888 = vmatmul.mubr.msk.f32.vlgmr.msra.gmra.mrb[30].mxu1 %vm3678_vm4, %v7565_v11 }
 0x3d1   :  { %4253 = vmatpush1.msra.mxu0 %v3671_v56  ;;  %4316 = vmatprep.mubr.f32.mxu0 %v10231_v17  ;;  %v4730_v56 = vrot.slane %v9933_v30, %v9181_v50 }
 0x3d2   :  { %4324 = vmatpush1.msra.mxu1 %v3673_v37  ;;  %4387 = vmatprep.mubr.f32.mxu1 %v10231_v17 }
 0x3d3   :  { %4394 = vmatprep.subr.mxu0 %v3676_v62  ;;  %5412 = vmatprep.subr.mxu1 %v10231_v17  ;;  %v10254_v62 = vld [vmem:[#allocation3_spill] sm:$0xff] }
 0x3d4   :  { %4889 = vmatmul.mubr.msk.f32.vlgmr.msra.gmra.mrb[24].mxu0 %vm3678_vm4, %v7565_v11  ;;  %4890 = vmatmul.mubr.msk.f32.vlgmr.msra.gmra.mrb[32].mxu1 %vm3678_vm4, %v7565_v11  ;;  %v4734_v55 = vrot.slane %v9933_v30, %v10254_v62 }
 0x3d5   :  { %4395 = vmatpush1.msra.mxu0 %v3675_v44  ;;  %4458 = vmatprep.mubr.f32.mxu0 %v10231_v17 }
 0x3d6   :  { %5413 = vmatpush3.msra.mxu1 %v3677_v48  ;;  %5414 = vmatprep.mubr.msk.f32.mxu1 %vm7570_vm1, %v10231_v17  ;;  %v9928_v17 = vld [vmem:[%s10094_s5] sm:$0xff]  ;;  %v4726_v48 = vrot.slane %v9933_v30, %v8778_v31 }
 0x3d7   :  { %v4652_v36 = vrot.slane %v9928_v17, %v8966_v41  ;;  %v4660_v38 = vrot.slane %v9928_v17, %v9181_v50  ;;  %v4656_v37 = vrot.slane %v9928_v17, %v8778_v31  ;;  %v4664_v44 = vrot.slane %v9928_v17, %v10254_v62 }
 0x3d8   :  { %4891 = vmatmul.mubr.msk.f32.vlgmr.msra.gmra.mrb[26].mxu0 %vm3678_vm4, %v7565_v11  ;;  %5415 = vmatmul.mubr.msk.f32.vlgmr.msra.gmra.mrb[34].mxu1 %vm3678_vm4, %v7565_v11  ;;  %v4668_v2 = vrot.slane %v9928_v17, %v10255_v0  ;;  %v4676_v10 = vrot.slane %v9928_v17, %v10256_v8  ;;  %v4672_v45 = vrot.slane %v9928_v17, %v10257_v33  ;;  %v10259_v8 = vld [vmem:[#allocation2_spill] sm:$0xff] }
 0x3d9   :  { %v4680_v26 = vrot.slane %v9928_v17, %v10258_v51 }
 0x447   :  { %v3748_v3 = vpop.f32.mrb[16].mxu0  ;;  %v3819_v47 = vpop.f32.mrb[24].mxu1 }
 0x448   :  { %v3750_v22 = vpop.f32.mrb[17].mxu0  ;;  %v3821_v24 = vpop.f32.mrb[25].mxu1  ;;  %v4538_v58 = vrot.slane %v3748_v3, %v8966_v41  ;;  %v4546_v16 = vrot.slane %v3819_v47, %v8966_v41 }
 0x449   :  { %v4542_v63 = vrot.slane %v3750_v22, %v8966_v41  ;;  %v4550_v59 = vrot.slane %v3821_v24, %v8966_v41 }
 0x44a   :  { %v4579_v1 = vsub.f32 %v9024_v9, %v4538_v58  ;;  %v4581_v47 = vsub.f32 %v10228_v46, %v4546_v16 }
 0x44b   :  { %v3890_v13 = vpop.f32.mrb[18].mxu0  ;;  %v3961_v15 = vpop.f32.mrb[26].mxu1  ;;  %v4580_v22 = vsub.f32 %v8834_v52, %v4542_v63  ;;  %v4582_v9 = vsub.f32 %v9045_v21, %v4550_v59 }
 0x44c   :  { %v3892_v19 = vpop.f32.mrb[19].mxu0  ;;  %v3963_v32 = vpop.f32.mrb[27].mxu1  ;;  %v4554_v7 = vrot.slane %v3890_v13, %v8966_v41  ;;  %v4562_v54 = vrot.slane %v3961_v15, %v8966_v41 }
 0x44d   :  { %v4558_v18 = vrot.slane %v3892_v19, %v8966_v41  ;;  %v4566_v43 = vrot.slane %v3963_v32, %v8966_v41 }
 0x44e   :  { %v4583_v32 = vsub.f32 %v9550_v39, %v4554_v7  ;;  %v4585_v46 = vsub.f32 %v10247_v57, %v4562_v54 }
 0x44f   :  { %v4032_v49 = vpop.f32.mrb[20].mxu0  ;;  %v4103_v27 = vpop.f32.mrb[28].mxu1  ;;  %v4584_v52 = vsub.f32 %v9544_v6, %v4558_v18  ;;  %v4586_v16 = vsub.f32 %v10230_v42, %v4566_v43 }
 0x450   :  { %v9923_v28 = vpop.f32.mrb[21].mxu0  ;;  %v5411_v25 = vpop.f32.mrb[29].mxu1  ;;  %v4570_v24 = vrot.slane %v4032_v49, %v8966_v41  ;;  %v4578_v13 = vrot.slane %v4103_v27, %v8966_v41 }
 0x451   :  { %v4574_v21 = vrot.slane %v9923_v28, %v8966_v41 }
 0x452   :  { %v4587_v59 = vsub.f32 %v9780_v53, %v4570_v24  ;;  %v4589_v7 = vsub.f32 %v9730_v61, %v4578_v13 }
 0x4a3   :  { %v4176_v15 = vpop.f32.mrb[22].mxu0  ;;  %v4247_v19 = vpop.f32.mrb[30].mxu1 }
 0x4a4   :  { %v4593_v25 = vrot.slane %v4176_v15, %v8966_v41  ;;  %v4601_v58 = vrot.slane %v4247_v19, %v8966_v41  ;;  %v4178_v11 = vpop.f32.mrb[23].mxu0  ;;  %v4249_v3 = vpop.f32.mrb[31].mxu1 }
 0x4a5   :  { %v4597_v49 = vrot.slane %v4178_v11, %v8966_v41  ;;  %v4605_v27 = vrot.slane %v4249_v3, %v8966_v41 }
 0x4a6   :  { %v4634_v39 = vmul.f32 %v4593_v25, %v4579_v1  ;;  %v4636_v63 = vmul.f32 %v4601_v58, %v4581_v47 }
 0x4a7   :  { %v4635_v15 = vmul.f32 %v4597_v49, %v4580_v22  ;;  %v4637_v19 = vmul.f32 %v4605_v27, %v4582_v9  ;;  %v4318_v57 = vpop.f32.mrb[24].mxu0  ;;  %v4389_v54 = vpop.f32.mrb[32].mxu1 }
 0x4a8   :  { %v4704_v6 = vmul.f32 %v4652_v36, %v4634_v39  ;;  %v4706_v18 = vmul.f32 %v4660_v38, %v4636_v63  ;;  %v4609_v11 = vrot.slane %v4318_v57, %v8966_v41  ;;  %v4617_v3 = vrot.slane %v4389_v54, %v8966_v41  ;;  %v4320_v42 = vpop.f32.mrb[25].mxu0  ;;  %v4391_v43 = vpop.f32.mrb[33].mxu1 }
 0x4a9   :  { %v4705_v12 = vmul.f32 %v4656_v37, %v4635_v15  ;;  %v4707_v28 = vmul.f32 %v4664_v44, %v4637_v19  ;;  %v4613_v1 = vrot.slane %v4320_v42, %v8966_v41  ;;  %v4621_v53 = vrot.slane %v4391_v43, %v8966_v41 }
 0x4aa   :  { %v4774_v61 = vadd.f32 %v4722_v34, %v4704_v6  ;;  %v4776_v36 = vadd.f32 %v4730_v56, %v4706_v18  ;;  %v4638_v38 = vmul.f32 %v4609_v11, %v4583_v32  ;;  %v4640_v47 = vmul.f32 %v4617_v3, %v4585_v46 }
 0x4ab   :  { %v4775_v22 = vadd.f32 %v4726_v48, %v4705_v12  ;;  %v4777_v37 = vadd.f32 %v4734_v55, %v4707_v28  ;;  %v4639_v44 = vmul.f32 %v4613_v1, %v4584_v52  ;;  %v4641_v24 = vmul.f32 %v4621_v53, %v4586_v16  ;;  %v4460_v13 = vpop.f32.mrb[26].mxu0  ;;  %v4531_v9 = vpop.f32.mrb[34].mxu1 }
 0x4ac   :  { %v4785_v25 = vmax.f32 %v4774_v61, 0.0  ;;  %v4787_v34 = vmax.f32 %v4776_v36, 0.0  ;;  %v4708_v56 = vmul.f32 %v4668_v2, %v4638_v38  ;;  %v4710_v32 = vmul.f32 %v4676_v10, %v4640_v47  ;;  %v4462_v58 = vpop.f32.mrb[27].mxu0  ;;  %v5416_v48 = vpop.f32.mrb[35].mxu1 }
 0x4ad   :  { %v4786_v12 = vmax.f32 %v4775_v22, 0.0  ;;  %v4788_v46 = vmax.f32 %v4777_v37, 0.0  ;;  %v4709_v62 = vmul.f32 %v4672_v45, %v4639_v44  ;;  %v4711_v55 = vmul.f32 %v4680_v26, %v4641_v24 }
 0x4ae   :  { %v4778_v2 = vadd.f32 %v4738_v29, %v4708_v56  ;;  %v4780_v10 = vadd.f32 %v4746_v4, %v4710_v32  ;;  %v4625_v52 = vrot.slane %v4460_v13, %v8966_v41  ;;  %v4633_v49 = vrot.slane %v4531_v9, %v8966_v41 }
 0x4af   :  { %v4807_v27 = vcombine.low %v4785_v25, %v4786_v12  ;;  %v4808_v16 = vcombine.low %v4787_v34, %v4788_v46  ;;  %v4779_v45 = vadd.f32 %v4742_v5, %v4709_v62  ;;  %v4781_v17 = vadd.f32 %v4750_v35, %v4711_v55 }
 0x4b0   :  { %v4789_v0 = vmax.f32 %v4778_v2, 0.0  ;;  %v4791_v29 = vmax.f32 %v4780_v10, 0.0  ;;  %v4642_v26 = vmul.f32 %v4625_v52, %v4587_v59  ;;  %v4644_v39 = vmul.f32 %v4633_v49, %v4589_v7 }
 0x4b1   :  { %v4815_v4 = vrot.slane %v4807_v27, %v10259_v8  ;;  %v4822_v63 = vrot.slane %v4808_v16, %v10259_v8  ;;  %v4790_v15 = vmax.f32 %v4779_v45, 0.0  ;;  %v4792_v19 = vmax.f32 %v4781_v17, 0.0 }
 0x4b2   :  { %v4588_v57 = vsub.f32 %v9778_v40, %v4574_v21  ;;  %v4712_v33 = vmul.f32 %v4684_v14, %v4642_v26  ;;  %v4714_v30 = vmul.f32 %v4692_v23, %v4644_v39  ;;  %v4629_v51 = vrot.slane %v4462_v58, %v8966_v41 }
 0x4b3   :  { %v4823_v5 = vcombine.low %v4815_v4, %v4822_v63  ;;  %v4824_v35 = vcombine.low %v4789_v0, %v4790_v15  ;;  %v4825_v59 = vcombine.low %v4791_v29, %v4792_v19  ;;  %v10260_v7 = vrot.slane %v9970_v60, %v8966_v41 }
 0x4b4   :  { %v4643_v6 = vmul.f32 %v4629_v51, %v4588_v57  ;;  %v4758_v40 = vrot.slane %v9970_v60, %v8778_v31  ;;  %v10261_v21 = vrot.slane %v9970_v60, %v9181_v50  ;;  %v10262_v41 = vrot.slane %v9958_v20, %v8778_v31 }
 0x4b5   :  { %v4782_v54 = vadd.f32 %v10260_v7, %v4712_v33  ;;  %4860 = vst [vmem:[%s10096_s7] sm:$0xff] %v4823_v5  ;;  %v4832_v14 = vrot.slane %v4824_v35, %v10259_v8  ;;  %v4839_v23 = vrot.slane %v4825_v59, %v10259_v8 }
 0x4b6   :  { %v4784_v18 = vadd.f32 %v10261_v21, %v4714_v30  ;;  %v4713_v11 = vmul.f32 %v10262_v41, %v4643_v6 }
 0x4b7   :  { %v4840_v3 = vcombine.low %v4832_v14, %v4839_v23  ;;  %v4793_v42 = vmax.f32 %v4782_v54, 0.0 }
 0x4b8   :  { %v4783_v43 = vadd.f32 %v4758_v40, %v4713_v11  ;;  %v4795_v28 = vmax.f32 %v4784_v18, 0.0 }
 0x4b9   :  { %4861 = vst [vmem:[%s10096_s7 + $0x8] sm:$0xff] %v4840_v3 }
 0x4ba   :  { %v4794_v1 = vmax.f32 %v4783_v43, 0.0  ;;  %v4855_v50 = vrot.slane %v4795_v28, %v10259_v8 }
 0x4bc   :  { %v4841_v53 = vcombine.low %v4793_v42, %v4794_v1 }
 0x4be   :  { %v4848_v60 = vrot.slane %v4841_v53, %v10259_v8 }
 0x4c0   :  { %v4856_v31 = vcombine.low %v4848_v60, %v4855_v50 }
 0x4c2   :  { %4867 = vst.msk [vmem:[%s10096_s7 + $0x10] sm:$0x3f] %vm4866_vm9, %v4856_v31 }

</bundles_post_ra>
